<compile_context>
chip_gen: v6e
topology: v6e:2x2x1
jax: 0.10.0
libtpu: 0.0.40
codegen_flags: <defaults>
</compile_context>

<pallas_src>
import functools

import jax
import jax.numpy as jnp
from jax.experimental import pallas as pl
from jax.experimental.pallas import tpu as pltpu

_INV_SQRT2 = 0.7071067811865475
_CHUNK = 128  # K chunk width inside a grid step (interleaves erf with MXU work)


def _gelu_linear_kernel(x_ref, wh_ref, wl_ref, b_ref, o_ref):
    # x_ref : (M, tk)      f32  current K-slab of activations
    # wh_ref: (tk, C_out)  bf16 hi part of the (C_in, C_out) weight slab
    # wl_ref: (tk, C_out)  bf16 lo part of the (C_in, C_out) weight slab
    # b_ref : (1, C_out)   f32  bias
    # o_ref : (M, C_out)   f32  output tile, resident across the K grid axis
    k = pl.program_id(0)

    @pl.when(k == 0)
    def _init():
        # Seed the resident output with the bias; later steps just accumulate.
        o_ref[...] = jnp.broadcast_to(b_ref[...], o_ref.shape)

    tk = x_ref.shape[1]
    n_chunks = tk // _CHUNK

    acc = jnp.zeros(o_ref.shape, jnp.float32)
    # Static unrolled loop: independent erf (VALU/EUP) and matmul (MXU) chunks
    # live in one basic block so the VLIW scheduler can overlap them.
    for c in range(n_chunks):
        lo = c * _CHUNK
        xs = x_ref[:, lo:lo + _CHUNK]
        # Exact (erf) GELU — matches PyTorch GELU(approximate='none').
        g = 0.5 * xs * (1.0 + jax.lax.erf(xs * _INV_SQRT2))

        # bf16x3: g ~= g_hi + g_lo, w ~= w_hi + w_lo (w split precomputed on
        # host). Drop the tiny g_lo*w_lo term; accumulate in f32.
        g_hi = g.astype(jnp.bfloat16)
        g_lo = (g - g_hi.astype(jnp.float32)).astype(jnp.bfloat16)
        wh = wh_ref[lo:lo + _CHUNK, :]
        wl = wl_ref[lo:lo + _CHUNK, :]

        acc += jnp.dot(g_hi, wh, preferred_element_type=jnp.float32)
        acc += jnp.dot(g_lo, wh, preferred_element_type=jnp.float32)
        acc += jnp.dot(g_hi, wl, preferred_element_type=jnp.float32)

    o_ref[...] += acc


def prep_weight(weight):
    """One-time prep of the PyTorch (out, in) weight: transpose + bf16 hi/lo split."""
    w_t = jnp.asarray(weight.T, dtype=jnp.float32)          # (C_in, C_out)
    w_hi = w_t.astype(jnp.bfloat16)
    w_lo = (w_t - w_hi.astype(jnp.float32)).astype(jnp.bfloat16)
    return w_hi, w_lo


@functools.partial(jax.jit, static_argnames=("tk",))
def gelu_linear(x_nhwc, w_hi, w_lo, bias, *, tk=512):
    """x_nhwc: [N,H,W,C_in] f32; w_hi/w_lo: [C_in,C_out] bf16; bias: [C_out] f32."""
    N, H, W, C_in = x_nhwc.shape
    C_out = w_hi.shape[1]
    assert C_in % tk == 0, (C_in, tk)
    assert tk % _CHUNK == 0, (tk, _CHUNK)
    M = N * H * W

    # No row padding: the M dim (196) is a full-array block, which satisfies the
    # (8,128) block rule; Mosaic masks the ragged sublanes at negligible cost.
    x2d = x_nhwc.reshape(M, C_in)
    b2d = bias.reshape(1, C_out)

    cost = pl.CostEstimate(
        flops=2 * M * C_in * C_out,
        transcendentals=M * C_in,
        bytes_accessed=4 * M * C_in + 2 * 2 * C_in * C_out + 4 * C_out + 4 * M * C_out,
    )

    out2d = pl.pallas_call(
        _gelu_linear_kernel,
        out_shape=jax.ShapeDtypeStruct((M, C_out), jnp.float32),
        grid_spec=pltpu.PrefetchScalarGridSpec(
            num_scalar_prefetch=0,
            grid=(C_in // tk,),                              # K-reduction axis
            in_specs=[
                pl.BlockSpec((M, tk), lambda k: (0, k)),     # activations slab
                pl.BlockSpec((tk, C_out), lambda k: (k, 0)), # weight hi slab
                pl.BlockSpec((tk, C_out), lambda k: (k, 0)), # weight lo slab
                pl.BlockSpec((1, C_out), lambda k: (0, 0)),  # bias
            ],
            out_specs=pl.BlockSpec((M, C_out), lambda k: (0, 0)),  # resident acc
        ),
        compiler_params=pltpu.CompilerParams(
            dimension_semantics=("arbitrary",),              # reduction axis
        ),
        cost_estimate=cost,
    )(x2d, w_hi, w_lo, b2d)

    # NOTE: a v7x-specific variant could add a leading "parallel" M axis
    # (pad M to 208, block 104) to use both TensorCores; omitted to keep the
    # pad-free single-core layout that is best on v5e/v6e.
    return out2d.reshape(N, H, W, C_out)


def reference(x_nhwc, weight, bias):
    g = 0.5 * x_nhwc * (1.0 + jax.lax.erf(x_nhwc / jnp.sqrt(2.0)))
    return jnp.einsum("nhwc,oc->nhwo", g, weight,
                      precision=jax.lax.Precision.HIGHEST) + bias


if __name__ == "__main__":
    key = jax.random.PRNGKey(0)
    k_x, k_w, k_b = jax.random.split(key, 3)

    N, H, W, C_in, C_out = 1, 14, 14, 1536, 384

    x = jax.random.normal(k_x, (N, H, W, C_in), dtype=jnp.float32)
    # Deterministic Linear params (uniform like PyTorch's default init range).
    bound = 1.0 / (C_in ** 0.5)
    weight = jax.random.uniform(k_w, (C_out, C_in), jnp.float32, -bound, bound)
    bias = jax.random.uniform(k_b, (C_out,), jnp.float32, -bound, bound)

    # One-time weight prep (transpose + bf16 hi/lo split), outside the call path.
    w_hi, w_lo = prep_weight(weight)

    out = gelu_linear(x, w_hi, w_lo, bias)
    out = jax.block_until_ready(out)

    ref = reference(x, weight, bias)
    assert out.shape == (N, H, W, C_out), out.shape
    assert jnp.allclose(out, ref, atol=1e-4, rtol=1e-4), "mismatch vs reference"

    print("KERNEL_OK")
</pallas_src>

<mosaic_0001>
module attributes {stable_mosaic.version = 11 : i64} {
  func.func @_gelu_linear_kernel(%arg0: i32, %arg1: memref<196x512xf32, #tpu.memory_space<vmem>>, %arg2: memref<512x384xbf16, #tpu.memory_space<vmem>>, %arg3: memref<512x384xbf16, #tpu.memory_space<vmem>>, %arg4: memref<1x384xf32, #tpu.memory_space<vmem>>, %arg5: memref<196x384xf32, #tpu.memory_space<vmem>>) attributes {dimension_semantics = [#tpu.dimension_semantics<arbitrary>], iteration_bounds = array<i64: 3>, scalar_prefetch = 0 : i64, scratch_operands = 0 : i64, tpu.core_type = #tpu.core_type<tc>, window_params = [{transform_indices = @transform_0, window_bounds = array<i64: 196, 512>}, {transform_indices = @transform_1, window_bounds = array<i64: 512, 384>}, {transform_indices = @transform_2, window_bounds = array<i64: 512, 384>}, {pipeline_mode = #tpu.pipeline_mode<synchronous>, transform_indices = @transform_3, window_bounds = array<i64: 1, 384>}, {pipeline_mode = #tpu.pipeline_mode<synchronous>, transform_indices = @transform_4, window_bounds = array<i64: 196, 384>}]} {
    %c0_i32 = arith.constant 0 : i32
    %0 = arith.cmpi eq, %arg0, %c0_i32 : i32
    %1 = arith.extui %0 : i1 to i32
    %c0_i32_0 = arith.constant 0 : i32
    %2 = arith.cmpi ne, %1, %c0_i32_0 : i32
    scf.if %2 {
      %c0_49 = arith.constant 0 : index
      %c0_50 = arith.constant 0 : index
      %91 = vector.load %arg4[%c0_49, %c0_50] : memref<1x384xf32, #tpu.memory_space<vmem>>, vector<1x384xf32>
      %92 = vector.shape_cast %91 : vector<1x384xf32> to vector<1x384xf32>
      %93 = vector.broadcast %92 : vector<1x384xf32> to vector<196x384xf32>
      %c0_51 = arith.constant 0 : index
      %c0_52 = arith.constant 0 : index
      %94 = vector.load %arg5[%c0_51, %c0_52] : memref<196x384xf32, #tpu.memory_space<vmem>>, vector<196x384xf32>
      tpu.vector_store %arg5[%c0_51, %c0_52], %93 {strides = array<i32>} : memref<196x384xf32, #tpu.memory_space<vmem>>, vector<196x384xf32>,
    } else {
    }
    %cst = arith.constant 0.000000e+00 : f32
    %3 = vector.broadcast %cst : f32 to vector<196x384xf32>
    %c0 = arith.constant 0 : index
    %c0_1 = arith.constant 0 : index
    %4 = vector.load %arg1[%c0, %c0_1] : memref<196x512xf32, #tpu.memory_space<vmem>>, vector<196x128xf32>
    %cst_2 = arith.constant 5.000000e-01 : f32
    %5 = vector.broadcast %cst_2 : f32 to vector<196x128xf32>
    %6 = arith.mulf %5, %4 : vector<196x128xf32>
    %cst_3 = arith.constant 0.707106769 : f32
    %7 = vector.broadcast %cst_3 : f32 to vector<196x128xf32>
    %8 = arith.mulf %4, %7 : vector<196x128xf32>
    %9 = math.erf %8 : vector<196x128xf32>
    %cst_4 = arith.constant 1.000000e+00 : f32
    %10 = vector.broadcast %cst_4 : f32 to vector<196x128xf32>
    %11 = arith.addf %10, %9 : vector<196x128xf32>
    %12 = arith.mulf %6, %11 : vector<196x128xf32>
    %13 = arith.truncf %12 : vector<196x128xf32> to vector<196x128xbf16>
    %14 = arith.extf %13 : vector<196x128xbf16> to vector<196x128xf32>
    %15 = arith.subf %12, %14 : vector<196x128xf32>
    %16 = arith.truncf %15 : vector<196x128xf32> to vector<196x128xbf16>
    %c0_5 = arith.constant 0 : index
    %c0_6 = arith.constant 0 : index
    %17 = vector.load %arg2[%c0_5, %c0_6] : memref<512x384xbf16, #tpu.memory_space<vmem>>, vector<128x384xbf16>
    %c0_7 = arith.constant 0 : index
    %c0_8 = arith.constant 0 : index
    %18 = vector.load %arg3[%c0_7, %c0_8] : memref<512x384xbf16, #tpu.memory_space<vmem>>, vector<128x384xbf16>
    %cst_9 = arith.constant dense<0.000000e+00> : vector<196x384xf32>
    %19 = tpu.matmul %13, %17, %cst_9 {dimension_numbers = #tpu.dot_dimension_numbers<[1], [0], [0], [1], [0, 0, 1, 1], [], []>} : vector<196x128xbf16>, vector<128x384xbf16>, vector<196x384xf32> -> vector<196x384xf32>
    %20 = arith.addf %3, %19 : vector<196x384xf32>
    %cst_10 = arith.constant dense<0.000000e+00> : vector<196x384xf32>
    %21 = tpu.matmul %16, %17, %cst_10 {dimension_numbers = #tpu.dot_dimension_numbers<[1], [0], [0], [1], [0, 0, 1, 1], [], []>} : vector<196x128xbf16>, vector<128x384xbf16>, vector<196x384xf32> -> vector<196x384xf32>
    %22 = arith.addf %20, %21 : vector<196x384xf32>
    %cst_11 = arith.constant dense<0.000000e+00> : vector<196x384xf32>
    %23 = tpu.matmul %13, %18, %cst_11 {dimension_numbers = #tpu.dot_dimension_numbers<[1], [0], [0], [1], [0, 0, 1, 1], [], []>} : vector<196x128xbf16>, vector<128x384xbf16>, vector<196x384xf32> -> vector<196x384xf32>
    %24 = arith.addf %22, %23 : vector<196x384xf32>
    %c0_12 = arith.constant 0 : index
    %c128 = arith.constant 128 : index
    %25 = vector.load %arg1[%c0_12, %c128] : memref<196x512xf32, #tpu.memory_space<vmem>>, vector<196x128xf32>
    %cst_13 = arith.constant 5.000000e-01 : f32
    %26 = vector.broadcast %cst_13 : f32 to vector<196x128xf32>
    %27 = arith.mulf %26, %25 : vector<196x128xf32>
    %cst_14 = arith.constant 0.707106769 : f32
    %28 = vector.broadcast %cst_14 : f32 to vector<196x128xf32>
    %29 = arith.mulf %25, %28 : vector<196x128xf32>
    %30 = math.erf %29 : vector<196x128xf32>
    %cst_15 = arith.constant 1.000000e+00 : f32
    %31 = vector.broadcast %cst_15 : f32 to vector<196x128xf32>
    %32 = arith.addf %31, %30 : vector<196x128xf32>
    %33 = arith.mulf %27, %32 : vector<196x128xf32>
    %34 = arith.truncf %33 : vector<196x128xf32> to vector<196x128xbf16>
    %35 = arith.extf %34 : vector<196x128xbf16> to vector<196x128xf32>
    %36 = arith.subf %33, %35 : vector<196x128xf32>
    %37 = arith.truncf %36 : vector<196x128xf32> to vector<196x128xbf16>
    %c128_16 = arith.constant 128 : index
    %c0_17 = arith.constant 0 : index
    %38 = vector.load %arg2[%c128_16, %c0_17] : memref<512x384xbf16, #tpu.memory_space<vmem>>, vector<128x384xbf16>
    %c128_18 = arith.constant 128 : index
    %c0_19 = arith.constant 0 : index
    %39 = vector.load %arg3[%c128_18, %c0_19] : memref<512x384xbf16, #tpu.memory_space<vmem>>, vector<128x384xbf16>
    %cst_20 = arith.constant dense<0.000000e+00> : vector<196x384xf32>
    %40 = tpu.matmul %34, %38, %cst_20 {dimension_numbers = #tpu.dot_dimension_numbers<[1], [0], [0], [1], [0, 0, 1, 1], [], []>} : vector<196x128xbf16>, vector<128x384xbf16>, vector<196x384xf32> -> vector<196x384xf32>
    %41 = arith.addf %24, %40 : vector<196x384xf32>
    %cst_21 = arith.constant dense<0.000000e+00> : vector<196x384xf32>
    %42 = tpu.matmul %37, %38, %cst_21 {dimension_numbers = #tpu.dot_dimension_numbers<[1], [0], [0], [1], [0, 0, 1, 1], [], []>} : vector<196x128xbf16>, vector<128x384xbf16>, vector<196x384xf32> -> vector<196x384xf32>
    %43 = arith.addf %41, %42 : vector<196x384xf32>
    %cst_22 = arith.constant dense<0.000000e+00> : vector<196x384xf32>
    %44 = tpu.matmul %34, %39, %cst_22 {dimension_numbers = #tpu.dot_dimension_numbers<[1], [0], [0], [1], [0, 0, 1, 1], [], []>} : vector<196x128xbf16>, vector<128x384xbf16>, vector<196x384xf32> -> vector<196x384xf32>
    %45 = arith.addf %43, %44 : vector<196x384xf32>
    %c0_23 = arith.constant 0 : index
    %c256 = arith.constant 256 : index
    %46 = vector.load %arg1[%c0_23, %c256] : memref<196x512xf32, #tpu.memory_space<vmem>>, vector<196x128xf32>
    %cst_24 = arith.constant 5.000000e-01 : f32
    %47 = vector.broadcast %cst_24 : f32 to vector<196x128xf32>
    %48 = arith.mulf %47, %46 : vector<196x128xf32>
    %cst_25 = arith.constant 0.707106769 : f32
    %49 = vector.broadcast %cst_25 : f32 to vector<196x128xf32>
    %50 = arith.mulf %46, %49 : vector<196x128xf32>
    %51 = math.erf %50 : vector<196x128xf32>
    %cst_26 = arith.constant 1.000000e+00 : f32
    %52 = vector.broadcast %cst_26 : f32 to vector<196x128xf32>
    %53 = arith.addf %52, %51 : vector<196x128xf32>
    %54 = arith.mulf %48, %53 : vector<196x128xf32>
    %55 = arith.truncf %54 : vector<196x128xf32> to vector<196x128xbf16>
    %56 = arith.extf %55 : vector<196x128xbf16> to vector<196x128xf32>
    %57 = arith.subf %54, %56 : vector<196x128xf32>
    %58 = arith.truncf %57 : vector<196x128xf32> to vector<196x128xbf16>
    %c256_27 = arith.constant 256 : index
    %c0_28 = arith.constant 0 : index
    %59 = vector.load %arg2[%c256_27, %c0_28] : memref<512x384xbf16, #tpu.memory_space<vmem>>, vector<128x384xbf16>
    %c256_29 = arith.constant 256 : index
    %c0_30 = arith.constant 0 : index
    %60 = vector.load %arg3[%c256_29, %c0_30] : memref<512x384xbf16, #tpu.memory_space<vmem>>, vector<128x384xbf16>
    %cst_31 = arith.constant dense<0.000000e+00> : vector<196x384xf32>
    %61 = tpu.matmul %55, %59, %cst_31 {dimension_numbers = #tpu.dot_dimension_numbers<[1], [0], [0], [1], [0, 0, 1, 1], [], []>} : vector<196x128xbf16>, vector<128x384xbf16>, vector<196x384xf32> -> vector<196x384xf32>
    %62 = arith.addf %45, %61 : vector<196x384xf32>
    %cst_32 = arith.constant dense<0.000000e+00> : vector<196x384xf32>
    %63 = tpu.matmul %58, %59, %cst_32 {dimension_numbers = #tpu.dot_dimension_numbers<[1], [0], [0], [1], [0, 0, 1, 1], [], []>} : vector<196x128xbf16>, vector<128x384xbf16>, vector<196x384xf32> -> vector<196x384xf32>
    %64 = arith.addf %62, %63 : vector<196x384xf32>
    %cst_33 = arith.constant dense<0.000000e+00> : vector<196x384xf32>
    %65 = tpu.matmul %55, %60, %cst_33 {dimension_numbers = #tpu.dot_dimension_numbers<[1], [0], [0], [1], [0, 0, 1, 1], [], []>} : vector<196x128xbf16>, vector<128x384xbf16>, vector<196x384xf32> -> vector<196x384xf32>
    %66 = arith.addf %64, %65 : vector<196x384xf32>
    %c0_34 = arith.constant 0 : index
    %c384 = arith.constant 384 : index
    %67 = vector.load %arg1[%c0_34, %c384] : memref<196x512xf32, #tpu.memory_space<vmem>>, vector<196x128xf32>
    %cst_35 = arith.constant 5.000000e-01 : f32
    %68 = vector.broadcast %cst_35 : f32 to vector<196x128xf32>
    %69 = arith.mulf %68, %67 : vector<196x128xf32>
    %cst_36 = arith.constant 0.707106769 : f32
    %70 = vector.broadcast %cst_36 : f32 to vector<196x128xf32>
    %71 = arith.mulf %67, %70 : vector<196x128xf32>
    %72 = math.erf %71 : vector<196x128xf32>
    %cst_37 = arith.constant 1.000000e+00 : f32
    %73 = vector.broadcast %cst_37 : f32 to vector<196x128xf32>
    %74 = arith.addf %73, %72 : vector<196x128xf32>
    %75 = arith.mulf %69, %74 : vector<196x128xf32>
    %76 = arith.truncf %75 : vector<196x128xf32> to vector<196x128xbf16>
    %77 = arith.extf %76 : vector<196x128xbf16> to vector<196x128xf32>
    %78 = arith.subf %75, %77 : vector<196x128xf32>
    %79 = arith.truncf %78 : vector<196x128xf32> to vector<196x128xbf16>
    %c384_38 = arith.constant 384 : index
    %c0_39 = arith.constant 0 : index
    %80 = vector.load %arg2[%c384_38, %c0_39] : memref<512x384xbf16, #tpu.memory_space<vmem>>, vector<128x384xbf16>
    %c384_40 = arith.constant 384 : index
    %c0_41 = arith.constant 0 : index
    %81 = vector.load %arg3[%c384_40, %c0_41] : memref<512x384xbf16, #tpu.memory_space<vmem>>, vector<128x384xbf16>
    %cst_42 = arith.constant dense<0.000000e+00> : vector<196x384xf32>
    %82 = tpu.matmul %76, %80, %cst_42 {dimension_numbers = #tpu.dot_dimension_numbers<[1], [0], [0], [1], [0, 0, 1, 1], [], []>} : vector<196x128xbf16>, vector<128x384xbf16>, vector<196x384xf32> -> vector<196x384xf32>
    %83 = arith.addf %66, %82 : vector<196x384xf32>
    %cst_43 = arith.constant dense<0.000000e+00> : vector<196x384xf32>
    %84 = tpu.matmul %79, %80, %cst_43 {dimension_numbers = #tpu.dot_dimension_numbers<[1], [0], [0], [1], [0, 0, 1, 1], [], []>} : vector<196x128xbf16>, vector<128x384xbf16>, vector<196x384xf32> -> vector<196x384xf32>
    %85 = arith.addf %83, %84 : vector<196x384xf32>
    %cst_44 = arith.constant dense<0.000000e+00> : vector<196x384xf32>
    %86 = tpu.matmul %76, %81, %cst_44 {dimension_numbers = #tpu.dot_dimension_numbers<[1], [0], [0], [1], [0, 0, 1, 1], [], []>} : vector<196x128xbf16>, vector<128x384xbf16>, vector<196x384xf32> -> vector<196x384xf32>
    %87 = arith.addf %85, %86 : vector<196x384xf32>
    %c0_45 = arith.constant 0 : index
    %c0_46 = arith.constant 0 : index
    %88 = vector.load %arg5[%c0_45, %c0_46] : memref<196x384xf32, #tpu.memory_space<vmem>>, vector<196x384xf32>
    %89 = arith.addf %88, %87 : vector<196x384xf32>
    %c0_47 = arith.constant 0 : index
    %c0_48 = arith.constant 0 : index
    %90 = vector.load %arg5[%c0_47, %c0_48] : memref<196x384xf32, #tpu.memory_space<vmem>>, vector<196x384xf32>
    tpu.vector_store %arg5[%c0_47, %c0_48], %89 {strides = array<i32>} : memref<196x384xf32, #tpu.memory_space<vmem>>, vector<196x384xf32>,
    return
  }
  func.func @transform_0(%arg0: i32) -> (i32, i32) {
    %c0_i32 = arith.constant 0 : i32
    %c0_i32_0 = arith.constant 0 : i32
    return %c0_i32, %arg0 : i32, i32
  }
  func.func @transform_1(%arg0: i32) -> (i32, i32) {
    %c0_i32 = arith.constant 0 : i32
    %c0_i32_0 = arith.constant 0 : i32
    return %arg0, %c0_i32 : i32, i32
  }
  func.func @transform_2(%arg0: i32) -> (i32, i32) {
    %c0_i32 = arith.constant 0 : i32
    %c0_i32_0 = arith.constant 0 : i32
    return %arg0, %c0_i32 : i32, i32
  }
  func.func @transform_3(%arg0: i32) -> (i32, i32) {
    %c0_i32 = arith.constant 0 : i32
    %c0_i32_0 = arith.constant 0 : i32
    %c0_i32_1 = arith.constant 0 : i32
    return %c0_i32, %c0_i32_0 : i32, i32
  }
  func.func @transform_4(%arg0: i32) -> (i32, i32) {
    %c0_i32 = arith.constant 0 : i32
    %c0_i32_0 = arith.constant 0 : i32
    %c0_i32_1 = arith.constant 0 : i32
    return %c0_i32, %c0_i32_0 : i32, i32
  }
}

</mosaic_0001>

<bundles_post_ra>
// kernel: gelu_linear.1
= control target key start
LH: loop header
LB: loop body
LE: loop exit
PB: predicated region body
PF: predicated region fallthrough
CT: control target
= control target key end

     0   :  { %s9142_s15 = smov 0   ;;  %s9144_s16 = smov 0   ;;  %s14896_s0 = inlined_call_operand.vmem [shape: f32[196,1536], index: 0, kind: input, shape index: {}]   ;;  %s14897_s1 = inlined_call_operand.vmem [shape: bf16[1536,384], index: 1, kind: input, shape index: {}]   ;;  %s14898_s2 = inlined_call_operand.vmem [shape: bf16[1536,384], index: 2, kind: input, shape index: {}]   ;;  %s14899_s3 = inlined_call_operand.vmem [shape: f32[1,384], index: 3, kind: input, shape index: {}]   ;;  %s14900_s4 = inlined_call_operand.vmem [shape: f32[196,384], index: 4, kind: output, shape index: {}]  }
   0x1   :  { %s9146_s17 = smov 0  }
   0x2 LB: > { %s7330_s18 = sadd.s32 4294967295, %s9112_s17   ;;  %s9159_s19 = sadd.s32 1, %s9112_s17   ;;  %s9112_s17 = sphi %s9146_s17, %s16185_s17   ;;  %s9108_s16 = sphi %s9144_s16, %s16184_s16   ;;  %s9104_s15 = sphi %s9142_s15, %s16183_s15  }
   0x3   : > { %s18_s20 = ssub.s32 %s9112_s17, %s9159_s19  ;;  %s21_s21 = sadd.s32 1, %s9108_s16 }
   0x4   : > { %p19_p0 = scmp.eq.s32.totalorder %s18_s20, 0  ;;  %p28_p1 = scmp.ne.s32.totalorder %s9108_s16, %s9104_s15 }
   0x5   : > { %p29_p2 = scmp.eq.s32.totalorder %s9112_s17, 0  ;;  %p7332_p4 = scmp.ge.s32.totalorder %s9112_s17, 3 }
   0x6   : > { %s9168_s22 = scalar_select %p19_p0, %s9108_s16, %s21_s21  }
   0x7   : > { %p30_p3 = por %p29_p2, %p28_p1  ;;  %151 = sbr.rel (%p7332_p4) target bundleno = 67 (0x43), region = 20 }
   0xc   : > { %154 = sbr.rel (!%p30_p3) target bundleno = 67 (0x43), region = 24  ;;  %s156_s23 = sand.u32 (%p30_p3), 1, %s9108_s16  }
   0xd   : > { %s7535_s24 = sshll.u32 (%p30_p3), %s9112_s17, 5  ;;  %s8604_s25 = smul.u32 (%p30_p3), 800, %s156_s23 }
   0xe   : > { %s9176_s28 = scalar_lea.vmem (%p30_p3), %s14896_s0, %s7535_s24 }
   0xf   : > { %v174_v0 = vld [vmem:[%s9176_s28] sm:$0xff] (%p30_p3)  ;;  %v176_v1 = vld [vmem:[%s9176_s28 + $0x8] sm:$0xff] (%p30_p3)  ;;  %v178_v2 = vld [vmem:[%s9176_s28 + $0x10] sm:$0xff] (%p30_p3)  ;;  %s9184_s29 = scalar_lea.vmem (%p30_p3), [#allocation2], %s8604_s25 }
  0x10   : > { %v180_v3 = vld [vmem:[%s9176_s28 + $0x18] sm:$0xff] (%p30_p3)  ;;  %v182_v4 = vld [vmem:[%s9176_s28 + $0x60] sm:$0xff] (%p30_p3)  ;;  %v184_v5 = vld [vmem:[%s9176_s28 + $0x68] sm:$0xff] (%p30_p3)  ;;  %175 = vst [vmem:[%s9184_s29] sm:$0xff] (%p30_p3), %v174_v0 }
  0x11   : > { %177 = vst [vmem:[%s9184_s29 + $0x8] sm:$0xff] %v176_v1  ;;  %179 = vst [vmem:[%s9184_s29 + $0x10] sm:$0xff] %v178_v2  ;;  %v186_v6 = vld [vmem:[%s9176_s28 + $0x70] sm:$0xff]  ;;  %v188_v7 = vld [vmem:[%s9176_s28 + $0x78] sm:$0xff] }
  0x12   : > { %181 = vst [vmem:[%s9184_s29 + $0x18] sm:$0xff] %v180_v3  ;;  %183 = vst [vmem:[%s9184_s29 + $0x20] sm:$0xff] %v182_v4  ;;  %v190_v8 = vld [vmem:[%s9176_s28 + $0xc0] sm:$0xff]  ;;  %v192_v9 = vld [vmem:[%s9176_s28 + $0xc8] sm:$0xff] }
  0x13   : > { %185 = vst [vmem:[%s9184_s29 + $0x28] sm:$0xff] %v184_v5  ;;  %187 = vst [vmem:[%s9184_s29 + $0x30] sm:$0xff] %v186_v6  ;;  %v194_v10 = vld [vmem:[%s9176_s28 + $0xd0] sm:$0xff]  ;;  %v196_v11 = vld [vmem:[%s9176_s28 + $0xd8] sm:$0xff] }
  0x14   : > { %189 = vst [vmem:[%s9184_s29 + $0x38] sm:$0xff] %v188_v7  ;;  %191 = vst [vmem:[%s9184_s29 + $0x40] sm:$0xff] %v190_v8  ;;  %v198_v12 = vld [vmem:[%s9176_s28 + $0x120] sm:$0xff]  ;;  %v200_v13 = vld [vmem:[%s9176_s28 + $0x128] sm:$0xff] }
  0x15   : > { %193 = vst [vmem:[%s9184_s29 + $0x48] sm:$0xff] %v192_v9  ;;  %195 = vst [vmem:[%s9184_s29 + $0x50] sm:$0xff] %v194_v10  ;;  %v202_v14 = vld [vmem:[%s9176_s28 + $0x130] sm:$0xff]  ;;  %v204_v15 = vld [vmem:[%s9176_s28 + $0x138] sm:$0xff] }
  0x16   : > { %197 = vst [vmem:[%s9184_s29 + $0x58] sm:$0xff] %v196_v11  ;;  %199 = vst [vmem:[%s9184_s29 + $0x60] sm:$0xff] %v198_v12  ;;  %v206_v16 = vld [vmem:[%s9176_s28 + $0x180] sm:$0xff]  ;;  %v208_v17 = vld [vmem:[%s9176_s28 + $0x188] sm:$0xff] }
  0x17   : > { %201 = vst [vmem:[%s9184_s29 + $0x68] sm:$0xff] %v200_v13  ;;  %203 = vst [vmem:[%s9184_s29 + $0x70] sm:$0xff] %v202_v14  ;;  %v210_v18 = vld [vmem:[%s9176_s28 + $0x190] sm:$0xff]  ;;  %v212_v19 = vld [vmem:[%s9176_s28 + $0x198] sm:$0xff] }
  0x18   : > { %205 = vst [vmem:[%s9184_s29 + $0x78] sm:$0xff] %v204_v15  ;;  %207 = vst [vmem:[%s9184_s29 + $0x80] sm:$0xff] %v206_v16  ;;  %v214_v20 = vld [vmem:[%s9176_s28 + $0x1e0] sm:$0xff]  ;;  %v216_v21 = vld [vmem:[%s9176_s28 + $0x1e8] sm:$0xff] }
  0x19   : > { %209 = vst [vmem:[%s9184_s29 + $0x88] sm:$0xff] %v208_v17  ;;  %211 = vst [vmem:[%s9184_s29 + $0x90] sm:$0xff] %v210_v18  ;;  %v218_v22 = vld [vmem:[%s9176_s28 + $0x1f0] sm:$0xff]  ;;  %v220_v23 = vld [vmem:[%s9176_s28 + $0x1f8] sm:$0xff] }
  0x1a   : > { %213 = vst [vmem:[%s9184_s29 + $0x98] sm:$0xff] %v212_v19  ;;  %215 = vst [vmem:[%s9184_s29 + $0xa0] sm:$0xff] %v214_v20  ;;  %v222_v24 = vld [vmem:[%s9176_s28 + $0x240] sm:$0xff]  ;;  %v224_v25 = vld [vmem:[%s9176_s28 + $0x248] sm:$0xff] }
  0x1b   : > { %217 = vst [vmem:[%s9184_s29 + $0xa8] sm:$0xff] %v216_v21  ;;  %219 = vst [vmem:[%s9184_s29 + $0xb0] sm:$0xff] %v218_v22  ;;  %v226_v26 = vld [vmem:[%s9176_s28 + $0x250] sm:$0xff]  ;;  %v228_v27 = vld [vmem:[%s9176_s28 + $0x258] sm:$0xff] }
  0x1c   : > { %221 = vst [vmem:[%s9184_s29 + $0xb8] sm:$0xff] %v220_v23  ;;  %223 = vst [vmem:[%s9184_s29 + $0xc0] sm:$0xff] %v222_v24  ;;  %v230_v28 = vld [vmem:[%s9176_s28 + $0x2a0] sm:$0xff]  ;;  %v232_v29 = vld [vmem:[%s9176_s28 + $0x2a8] sm:$0xff] }
  0x1d   : > { %225 = vst [vmem:[%s9184_s29 + $0xc8] sm:$0xff] %v224_v25  ;;  %227 = vst [vmem:[%s9184_s29 + $0xd0] sm:$0xff] %v226_v26  ;;  %v234_v30 = vld [vmem:[%s9176_s28 + $0x2b0] sm:$0xff]  ;;  %v236_v31 = vld [vmem:[%s9176_s28 + $0x2b8] sm:$0xff] }
  0x1e   : > { %229 = vst [vmem:[%s9184_s29 + $0xd8] sm:$0xff] %v228_v27  ;;  %231 = vst [vmem:[%s9184_s29 + $0xe0] sm:$0xff] %v230_v28  ;;  %v238_v32 = vld [vmem:[%s9176_s28 + $0x300] sm:$0xff]  ;;  %v240_v33 = vld [vmem:[%s9176_s28 + $0x308] sm:$0xff] }
  0x1f   : > { %233 = vst [vmem:[%s9184_s29 + $0xe8] sm:$0xff] %v232_v29  ;;  %235 = vst [vmem:[%s9184_s29 + $0xf0] sm:$0xff] %v234_v30  ;;  %v242_v34 = vld [vmem:[%s9176_s28 + $0x310] sm:$0xff]  ;;  %v244_v35 = vld [vmem:[%s9176_s28 + $0x318] sm:$0xff] }
  0x20   : > { %237 = vst [vmem:[%s9184_s29 + $0xf8] sm:$0xff] %v236_v31  ;;  %239 = vst [vmem:[%s9184_s29 + $0x100] sm:$0xff] %v238_v32  ;;  %v246_v36 = vld [vmem:[%s9176_s28 + $0x360] sm:$0xff]  ;;  %v248_v37 = vld [vmem:[%s9176_s28 + $0x368] sm:$0xff] }
  0x21   : > { %241 = vst [vmem:[%s9184_s29 + $0x108] sm:$0xff] %v240_v33  ;;  %243 = vst [vmem:[%s9184_s29 + $0x110] sm:$0xff] %v242_v34  ;;  %v250_v38 = vld [vmem:[%s9176_s28 + $0x370] sm:$0xff]  ;;  %v252_v39 = vld [vmem:[%s9176_s28 + $0x378] sm:$0xff] }
  0x22   : > { %245 = vst [vmem:[%s9184_s29 + $0x118] sm:$0xff] %v244_v35  ;;  %247 = vst [vmem:[%s9184_s29 + $0x120] sm:$0xff] %v246_v36  ;;  %v254_v40 = vld [vmem:[%s9176_s28 + $0x3c0] sm:$0xff]  ;;  %v256_v41 = vld [vmem:[%s9176_s28 + $0x3c8] sm:$0xff] }
  0x23   : > { %249 = vst [vmem:[%s9184_s29 + $0x128] sm:$0xff] %v248_v37  ;;  %251 = vst [vmem:[%s9184_s29 + $0x130] sm:$0xff] %v250_v38  ;;  %v258_v42 = vld [vmem:[%s9176_s28 + $0x3d0] sm:$0xff]  ;;  %v260_v43 = vld [vmem:[%s9176_s28 + $0x3d8] sm:$0xff] }
  0x24   : > { %253 = vst [vmem:[%s9184_s29 + $0x138] sm:$0xff] %v252_v39  ;;  %255 = vst [vmem:[%s9184_s29 + $0x140] sm:$0xff] %v254_v40  ;;  %v262_v44 = vld [vmem:[%s9176_s28 + $0x420] sm:$0xff]  ;;  %v264_v45 = vld [vmem:[%s9176_s28 + $0x428] sm:$0xff] }
  0x25   : > { %257 = vst [vmem:[%s9184_s29 + $0x148] sm:$0xff] %v256_v41  ;;  %259 = vst [vmem:[%s9184_s29 + $0x150] sm:$0xff] %v258_v42  ;;  %v266_v46 = vld [vmem:[%s9176_s28 + $0x430] sm:$0xff]  ;;  %v268_v47 = vld [vmem:[%s9176_s28 + $0x438] sm:$0xff] }
  0x26   : > { %261 = vst [vmem:[%s9184_s29 + $0x158] sm:$0xff] %v260_v43  ;;  %263 = vst [vmem:[%s9184_s29 + $0x160] sm:$0xff] %v262_v44  ;;  %v270_v48 = vld [vmem:[%s9176_s28 + $0x480] sm:$0xff]  ;;  %v272_v49 = vld [vmem:[%s9176_s28 + $0x488] sm:$0xff] }
  0x27   : > { %265 = vst [vmem:[%s9184_s29 + $0x168] sm:$0xff] %v264_v45  ;;  %267 = vst [vmem:[%s9184_s29 + $0x170] sm:$0xff] %v266_v46  ;;  %v274_v50 = vld [vmem:[%s9176_s28 + $0x490] sm:$0xff]  ;;  %v276_v51 = vld [vmem:[%s9176_s28 + $0x498] sm:$0xff] }
  0x28   : > { %269 = vst [vmem:[%s9184_s29 + $0x178] sm:$0xff] %v268_v47  ;;  %271 = vst [vmem:[%s9184_s29 + $0x180] sm:$0xff] %v270_v48  ;;  %v278_v52 = vld [vmem:[%s9176_s28 + $0x4e0] sm:$0xff]  ;;  %v280_v53 = vld [vmem:[%s9176_s28 + $0x4e8] sm:$0xff] }
  0x29   : > { %273 = vst [vmem:[%s9184_s29 + $0x188] sm:$0xff] %v272_v49  ;;  %275 = vst [vmem:[%s9184_s29 + $0x190] sm:$0xff] %v274_v50  ;;  %v282_v54 = vld [vmem:[%s9176_s28 + $0x4f0] sm:$0xff]  ;;  %v284_v55 = vld [vmem:[%s9176_s28 + $0x4f8] sm:$0xff] }
  0x2a   : > { %277 = vst [vmem:[%s9184_s29 + $0x198] sm:$0xff] %v276_v51  ;;  %279 = vst [vmem:[%s9184_s29 + $0x1a0] sm:$0xff] %v278_v52  ;;  %v286_v56 = vld [vmem:[%s9176_s28 + $0x540] sm:$0xff]  ;;  %v288_v57 = vld [vmem:[%s9176_s28 + $0x548] sm:$0xff] }
  0x2b   : > { %281 = vst [vmem:[%s9184_s29 + $0x1a8] sm:$0xff] %v280_v53  ;;  %283 = vst [vmem:[%s9184_s29 + $0x1b0] sm:$0xff] %v282_v54  ;;  %v290_v58 = vld [vmem:[%s9176_s28 + $0x550] sm:$0xff]  ;;  %v292_v59 = vld [vmem:[%s9176_s28 + $0x558] sm:$0xff] }
  0x2c   : > { %285 = vst [vmem:[%s9184_s29 + $0x1b8] sm:$0xff] %v284_v55  ;;  %287 = vst [vmem:[%s9184_s29 + $0x1c0] sm:$0xff] %v286_v56  ;;  %v294_v60 = vld [vmem:[%s9176_s28 + $0x5a0] sm:$0xff]  ;;  %v296_v61 = vld [vmem:[%s9176_s28 + $0x5a8] sm:$0xff] }
  0x2d   : > { %289 = vst [vmem:[%s9184_s29 + $0x1c8] sm:$0xff] %v288_v57  ;;  %291 = vst [vmem:[%s9184_s29 + $0x1d0] sm:$0xff] %v290_v58  ;;  %v298_v62 = vld [vmem:[%s9176_s28 + $0x5b0] sm:$0xff]  ;;  %v300_v63 = vld [vmem:[%s9176_s28 + $0x5b8] sm:$0xff] }
  0x2e   : > { %293 = vst [vmem:[%s9184_s29 + $0x1d8] sm:$0xff] %v292_v59  ;;  %295 = vst [vmem:[%s9184_s29 + $0x1e0] sm:$0xff] %v294_v60  ;;  %v302_v0 = vld [vmem:[%s9176_s28 + $0x600] sm:$0xff]  ;;  %v304_v1 = vld [vmem:[%s9176_s28 + $0x608] sm:$0xff] }
  0x2f   : > { %297 = vst [vmem:[%s9184_s29 + $0x1e8] sm:$0xff] %v296_v61  ;;  %299 = vst [vmem:[%s9184_s29 + $0x1f0] sm:$0xff] %v298_v62  ;;  %v306_v2 = vld [vmem:[%s9176_s28 + $0x610] sm:$0xff]  ;;  %v308_v3 = vld [vmem:[%s9176_s28 + $0x618] sm:$0xff] }
  0x30   : > { %301 = vst [vmem:[%s9184_s29 + $0x1f8] sm:$0xff] %v300_v63  ;;  %303 = vst [vmem:[%s9184_s29 + $0x200] sm:$0xff] %v302_v0  ;;  %v310_v4 = vld [vmem:[%s9176_s28 + $0x660] sm:$0xff]  ;;  %v312_v5 = vld [vmem:[%s9176_s28 + $0x668] sm:$0xff] }
  0x31   : > { %305 = vst [vmem:[%s9184_s29 + $0x208] sm:$0xff] %v304_v1  ;;  %307 = vst [vmem:[%s9184_s29 + $0x210] sm:$0xff] %v306_v2  ;;  %v314_v6 = vld [vmem:[%s9176_s28 + $0x670] sm:$0xff]  ;;  %v316_v7 = vld [vmem:[%s9176_s28 + $0x678] sm:$0xff] }
  0x32   : > { %309 = vst [vmem:[%s9184_s29 + $0x218] sm:$0xff] %v308_v3  ;;  %311 = vst [vmem:[%s9184_s29 + $0x220] sm:$0xff] %v310_v4  ;;  %v318_v8 = vld [vmem:[%s9176_s28 + $0x6c0] sm:$0xff]  ;;  %v320_v9 = vld [vmem:[%s9176_s28 + $0x6c8] sm:$0xff] }
  0x33   : > { %313 = vst [vmem:[%s9184_s29 + $0x228] sm:$0xff] %v312_v5  ;;  %315 = vst [vmem:[%s9184_s29 + $0x230] sm:$0xff] %v314_v6  ;;  %v322_v10 = vld [vmem:[%s9176_s28 + $0x6d0] sm:$0xff]  ;;  %v324_v11 = vld [vmem:[%s9176_s28 + $0x6d8] sm:$0xff] }
  0x34   : > { %317 = vst [vmem:[%s9184_s29 + $0x238] sm:$0xff] %v316_v7  ;;  %319 = vst [vmem:[%s9184_s29 + $0x240] sm:$0xff] %v318_v8  ;;  %v326_v12 = vld [vmem:[%s9176_s28 + $0x720] sm:$0xff]  ;;  %v328_v13 = vld [vmem:[%s9176_s28 + $0x728] sm:$0xff] }
  0x35   : > { %321 = vst [vmem:[%s9184_s29 + $0x248] sm:$0xff] %v320_v9  ;;  %323 = vst [vmem:[%s9184_s29 + $0x250] sm:$0xff] %v322_v10  ;;  %v330_v14 = vld [vmem:[%s9176_s28 + $0x730] sm:$0xff]  ;;  %v332_v15 = vld [vmem:[%s9176_s28 + $0x738] sm:$0xff] }
  0x36   : > { %325 = vst [vmem:[%s9184_s29 + $0x258] sm:$0xff] %v324_v11  ;;  %327 = vst [vmem:[%s9184_s29 + $0x260] sm:$0xff] %v326_v12  ;;  %v334_v16 = vld [vmem:[%s9176_s28 + $0x780] sm:$0xff]  ;;  %v336_v17 = vld [vmem:[%s9176_s28 + $0x788] sm:$0xff] }
  0x37   : > { %329 = vst [vmem:[%s9184_s29 + $0x268] sm:$0xff] %v328_v13  ;;  %331 = vst [vmem:[%s9184_s29 + $0x270] sm:$0xff] %v330_v14  ;;  %v338_v18 = vld [vmem:[%s9176_s28 + $0x790] sm:$0xff]  ;;  %v340_v19 = vld [vmem:[%s9176_s28 + $0x798] sm:$0xff] }
  0x38   : > { %333 = vst [vmem:[%s9184_s29 + $0x278] sm:$0xff] %v332_v15  ;;  %335 = vst [vmem:[%s9184_s29 + $0x280] sm:$0xff] %v334_v16  ;;  %v342_v20 = vld [vmem:[%s9176_s28 + $0x7e0] sm:$0xff]  ;;  %v344_v21 = vld [vmem:[%s9176_s28 + $0x7e8] sm:$0xff] }
  0x39   : > { %337 = vst [vmem:[%s9184_s29 + $0x288] sm:$0xff] %v336_v17  ;;  %339 = vst [vmem:[%s9184_s29 + $0x290] sm:$0xff] %v338_v18  ;;  %v346_v22 = vld [vmem:[%s9176_s28 + $0x7f0] sm:$0xff]  ;;  %v348_v23 = vld [vmem:[%s9176_s28 + $0x7f8] sm:$0xff] }
  0x3a   : > { %341 = vst [vmem:[%s9184_s29 + $0x298] sm:$0xff] %v340_v19  ;;  %343 = vst [vmem:[%s9184_s29 + $0x2a0] sm:$0xff] %v342_v20  ;;  %v350_v24 = vld [vmem:[%s9176_s28 + $0x840] sm:$0xff]  ;;  %v352_v25 = vld [vmem:[%s9176_s28 + $0x848] sm:$0xff] }
  0x3b   : > { %345 = vst [vmem:[%s9184_s29 + $0x2a8] sm:$0xff] %v344_v21  ;;  %347 = vst [vmem:[%s9184_s29 + $0x2b0] sm:$0xff] %v346_v22  ;;  %v354_v26 = vld [vmem:[%s9176_s28 + $0x850] sm:$0xff]  ;;  %v356_v27 = vld [vmem:[%s9176_s28 + $0x858] sm:$0xff] }
  0x3c   : > { %349 = vst [vmem:[%s9184_s29 + $0x2b8] sm:$0xff] %v348_v23  ;;  %351 = vst [vmem:[%s9184_s29 + $0x2c0] sm:$0xff] %v350_v24  ;;  %v358_v28 = vld [vmem:[%s9176_s28 + $0x8a0] sm:$0xff]  ;;  %v360_v29 = vld [vmem:[%s9176_s28 + $0x8a8] sm:$0xff] }
  0x3d   : > { %353 = vst [vmem:[%s9184_s29 + $0x2c8] sm:$0xff] %v352_v25  ;;  %355 = vst [vmem:[%s9184_s29 + $0x2d0] sm:$0xff] %v354_v26  ;;  %v362_v30 = vld [vmem:[%s9176_s28 + $0x8b0] sm:$0xff]  ;;  %v364_v31 = vld [vmem:[%s9176_s28 + $0x8b8] sm:$0xff] }
  0x3e   : > { %357 = vst [vmem:[%s9184_s29 + $0x2d8] sm:$0xff] %v356_v27  ;;  %359 = vst [vmem:[%s9184_s29 + $0x2e0] sm:$0xff] %v358_v28  ;;  %v366_v32 = vld [vmem:[%s9176_s28 + $0x900] sm:$0xff]  ;;  %v368_v33 = vld [vmem:[%s9176_s28 + $0x908] sm:$0xff] }
  0x3f   : > { %361 = vst [vmem:[%s9184_s29 + $0x2e8] sm:$0xff] %v360_v29  ;;  %363 = vst [vmem:[%s9184_s29 + $0x2f0] sm:$0xff] %v362_v30  ;;  %v370_v34 = vld [vmem:[%s9176_s28 + $0x910] sm:$0xff]  ;;  %v372_v35 = vld [vmem:[%s9176_s28 + $0x918] sm:$0xff] }
  0x40   : > { %365 = vst [vmem:[%s9184_s29 + $0x2f8] sm:$0xff] %v364_v31  ;;  %367 = vst [vmem:[%s9184_s29 + $0x300] sm:$0xff] %v366_v32 }
  0x41   : > { %369 = vst [vmem:[%s9184_s29 + $0x308] sm:$0xff] %v368_v33  ;;  %371 = vst [vmem:[%s9184_s29 + $0x310] sm:$0xff] %v370_v34 }
  0x42   : > { %373 = vst [vmem:[%s9184_s29 + $0x318] sm:$0xff] %v372_v35 }
  0x43 PF: > { %p7335_p5 = scmp.ge.s32.totalorder %s9112_s17, 1  ;;  %p398_p6 = scmp.lt.s32.totalorder %s9112_s17, 4 }
  0x45   : > { %p399_p7 = pnand %p7335_p5, %p398_p6 }
  0x47   : > { %402 = sbr.rel (%p399_p7) target bundleno = 1609 (0x649), region = 55 }
  0x4c   : > { %s405_s30 = sand.u32 1, %s9104_s15   ;;  %s7336_s5 = sshll.u32 %s7330_s18, 6 }
  0x4d   : > { %s8605_s6 = smul.u32 800, %s405_s30  ;;  %p439_p8 = scmp.lt.s32.totalorder %s7336_s5, 191 }
  0x4e   : > { %p7340_p9 = scmp.ne.s32.totalorder %s7330_s18, 0 }
  0x4f   : > { %s16187_s5 = smov (!%p439_p8, %s7336_s5), 191  ;;  %s9395_s14 = scalar_lea.vmem [#allocation2], %s8605_s6 }
  0x50   : > { %s8606_s7 = smul.u32 12, %s16187_s5 }
  0x51   : > { %456 = sbr.rel (%p7340_p9) target bundleno = 132 (0x84), region = 63 }
  0x52   : > { %s9388_s10 = scalar_lea.vmem %s14897_s1, %s8606_s7  ;;  %s9393_s13 = scalar_lea.vmem %s14898_s2, %s8606_s7 }
  0x56   : > { %v459_v36 = vlaneseq  ;;  %v457_v38 = vld [vmem:[%s14899_s3] sm:$0x7] }
  0x58   : > { %v460_v37 = vshrl.u32 %v459_v36, 7 }
  0x5a   : > { %v461_v39 = vsub.s32 0, %v460_v37  ;;  %v465_v40 = vsub.s32 1, %v460_v37  ;;  %v469_v41 = vsub.s32 2, %v460_v37 }
  0x5c   : > { %v462_v42 = vrot.slane %v457_v38, %v461_v39  ;;  %v466_v43 = vrot.slane %v457_v38, %v465_v40  ;;  %v9402_v44 = vrot.slane %v457_v38, %v469_v41 }
  0x5e   : > { %474 = vst [vmem:[%s14900_s4] sm:$0xff] %v462_v42  ;;  %477 = vst [vmem:[%s14900_s4 + $0x18] sm:$0xff] %v462_v42 }
  0x5f   : > { %480 = vst [vmem:[%s14900_s4 + $0x30] sm:$0xff] %v462_v42  ;;  %483 = vst [vmem:[%s14900_s4 + $0x48] sm:$0xff] %v462_v42 }
  0x60   : > { %486 = vst [vmem:[%s14900_s4 + $0x60] sm:$0xff] %v462_v42  ;;  %489 = vst [vmem:[%s14900_s4 + $0x78] sm:$0xff] %v462_v42 }
  0x61   : > { %492 = vst [vmem:[%s14900_s4 + $0x90] sm:$0xff] %v462_v42  ;;  %495 = vst [vmem:[%s14900_s4 + $0xa8] sm:$0xff] %v462_v42 }
  0x62   : > { %498 = vst [vmem:[%s14900_s4 + $0xc0] sm:$0xff] %v462_v42  ;;  %501 = vst [vmem:[%s14900_s4 + $0xd8] sm:$0xff] %v462_v42 }
  0x63   : > { %504 = vst [vmem:[%s14900_s4 + $0xf0] sm:$0xff] %v462_v42  ;;  %507 = vst [vmem:[%s14900_s4 + $0x108] sm:$0xff] %v462_v42 }
  0x64   : > { %510 = vst [vmem:[%s14900_s4 + $0x120] sm:$0xff] %v462_v42  ;;  %513 = vst [vmem:[%s14900_s4 + $0x138] sm:$0xff] %v462_v42 }
  0x65   : > { %516 = vst [vmem:[%s14900_s4 + $0x150] sm:$0xff] %v462_v42  ;;  %519 = vst [vmem:[%s14900_s4 + $0x168] sm:$0xff] %v462_v42 }
  0x66   : > { %522 = vst [vmem:[%s14900_s4 + $0x180] sm:$0xff] %v462_v42  ;;  %525 = vst [vmem:[%s14900_s4 + $0x198] sm:$0xff] %v462_v42 }
  0x67   : > { %528 = vst [vmem:[%s14900_s4 + $0x1b0] sm:$0xff] %v462_v42  ;;  %531 = vst [vmem:[%s14900_s4 + $0x1c8] sm:$0xff] %v462_v42 }
  0x68   : > { %534 = vst [vmem:[%s14900_s4 + $0x1e0] sm:$0xff] %v462_v42  ;;  %537 = vst [vmem:[%s14900_s4 + $0x1f8] sm:$0xff] %v462_v42 }
  0x69   : > { %540 = vst [vmem:[%s14900_s4 + $0x210] sm:$0xff] %v462_v42  ;;  %543 = vst [vmem:[%s14900_s4 + $0x228] sm:$0xff] %v462_v42 }
  0x6a   : > { %546 = vst [vmem:[%s14900_s4 + $0x240] sm:$0xf] %v462_v42  ;;  %475 = vst [vmem:[%s14900_s4 + $0x8] sm:$0xff] %v466_v43 }
  0x6b   : > { %478 = vst [vmem:[%s14900_s4 + $0x20] sm:$0xff] %v466_v43  ;;  %481 = vst [vmem:[%s14900_s4 + $0x38] sm:$0xff] %v466_v43 }
  0x6c   : > { %484 = vst [vmem:[%s14900_s4 + $0x50] sm:$0xff] %v466_v43  ;;  %487 = vst [vmem:[%s14900_s4 + $0x68] sm:$0xff] %v466_v43 }
  0x6d   : > { %490 = vst [vmem:[%s14900_s4 + $0x80] sm:$0xff] %v466_v43  ;;  %493 = vst [vmem:[%s14900_s4 + $0x98] sm:$0xff] %v466_v43 }
  0x6e   : > { %496 = vst [vmem:[%s14900_s4 + $0xb0] sm:$0xff] %v466_v43  ;;  %499 = vst [vmem:[%s14900_s4 + $0xc8] sm:$0xff] %v466_v43 }
  0x6f   : > { %502 = vst [vmem:[%s14900_s4 + $0xe0] sm:$0xff] %v466_v43  ;;  %505 = vst [vmem:[%s14900_s4 + $0xf8] sm:$0xff] %v466_v43 }
  0x70   : > { %508 = vst [vmem:[%s14900_s4 + $0x110] sm:$0xff] %v466_v43  ;;  %511 = vst [vmem:[%s14900_s4 + $0x128] sm:$0xff] %v466_v43 }
  0x71   : > { %514 = vst [vmem:[%s14900_s4 + $0x140] sm:$0xff] %v466_v43  ;;  %517 = vst [vmem:[%s14900_s4 + $0x158] sm:$0xff] %v466_v43 }
  0x72   : > { %520 = vst [vmem:[%s14900_s4 + $0x170] sm:$0xff] %v466_v43  ;;  %523 = vst [vmem:[%s14900_s4 + $0x188] sm:$0xff] %v466_v43 }
  0x73   : > { %526 = vst [vmem:[%s14900_s4 + $0x1a0] sm:$0xff] %v466_v43  ;;  %529 = vst [vmem:[%s14900_s4 + $0x1b8] sm:$0xff] %v466_v43 }
  0x74   : > { %532 = vst [vmem:[%s14900_s4 + $0x1d0] sm:$0xff] %v466_v43  ;;  %535 = vst [vmem:[%s14900_s4 + $0x1e8] sm:$0xff] %v466_v43 }
  0x75   : > { %538 = vst [vmem:[%s14900_s4 + $0x200] sm:$0xff] %v466_v43  ;;  %541 = vst [vmem:[%s14900_s4 + $0x218] sm:$0xff] %v466_v43 }
  0x76   : > { %544 = vst [vmem:[%s14900_s4 + $0x230] sm:$0xff] %v466_v43  ;;  %547 = vst [vmem:[%s14900_s4 + $0x248] sm:$0xf] %v466_v43 }
  0x77   : > { %476 = vst [vmem:[%s14900_s4 + $0x10] sm:$0xff] %v9402_v44  ;;  %479 = vst [vmem:[%s14900_s4 + $0x28] sm:$0xff] %v9402_v44 }
  0x78   : > { %482 = vst [vmem:[%s14900_s4 + $0x40] sm:$0xff] %v9402_v44  ;;  %485 = vst [vmem:[%s14900_s4 + $0x58] sm:$0xff] %v9402_v44 }
  0x79   : > { %488 = vst [vmem:[%s14900_s4 + $0x70] sm:$0xff] %v9402_v44  ;;  %491 = vst [vmem:[%s14900_s4 + $0x88] sm:$0xff] %v9402_v44 }
  0x7a   : > { %494 = vst [vmem:[%s14900_s4 + $0xa0] sm:$0xff] %v9402_v44  ;;  %497 = vst [vmem:[%s14900_s4 + $0xb8] sm:$0xff] %v9402_v44 }
  0x7b   : > { %500 = vst [vmem:[%s14900_s4 + $0xd0] sm:$0xff] %v9402_v44  ;;  %503 = vst [vmem:[%s14900_s4 + $0xe8] sm:$0xff] %v9402_v44 }
  0x7c   : > { %506 = vst [vmem:[%s14900_s4 + $0x100] sm:$0xff] %v9402_v44  ;;  %509 = vst [vmem:[%s14900_s4 + $0x118] sm:$0xff] %v9402_v44 }
  0x7d   : > { %512 = vst [vmem:[%s14900_s4 + $0x130] sm:$0xff] %v9402_v44  ;;  %515 = vst [vmem:[%s14900_s4 + $0x148] sm:$0xff] %v9402_v44 }
  0x7e   : > { %518 = vst [vmem:[%s14900_s4 + $0x160] sm:$0xff] %v9402_v44  ;;  %521 = vst [vmem:[%s14900_s4 + $0x178] sm:$0xff] %v9402_v44 }
  0x7f   : > { %524 = vst [vmem:[%s14900_s4 + $0x190] sm:$0xff] %v9402_v44  ;;  %527 = vst [vmem:[%s14900_s4 + $0x1a8] sm:$0xff] %v9402_v44 }
  0x80   : > { %530 = vst [vmem:[%s14900_s4 + $0x1c0] sm:$0xff] %v9402_v44  ;;  %533 = vst [vmem:[%s14900_s4 + $0x1d8] sm:$0xff] %v9402_v44 }
  0x81   : > { %536 = vst [vmem:[%s14900_s4 + $0x1f0] sm:$0xff] %v9402_v44  ;;  %539 = vst [vmem:[%s14900_s4 + $0x208] sm:$0xff] %v9402_v44 }
  0x82   : > { %542 = vst [vmem:[%s14900_s4 + $0x220] sm:$0xff] %v9402_v44  ;;  %545 = vst [vmem:[%s14900_s4 + $0x238] sm:$0xff] %v9402_v44 }
  0x83   : > { %548 = vst [vmem:[%s14900_s4 + $0x250] sm:$0xf] %v9402_v44 }
  0x84 PF: > { %v9655_v45 = vld [vmem:[%s9388_s10 + $0xac] ss:$12 sps:$4 sm:$0xff]   ;;  %v14903_v46 = vmov 0.0   ;;  %v9659_v47 = vld [vmem:[%s9388_s10 + $0xb0] ss:$12 sps:$4 sm:$0xff]   ;;  %vm9115_vm0 = vmmov 0  }
  0x85   : > { %7788 = vmatprep.subr.bf16.mxu1 %v14903_v46  ;;  %7804 = vmatprep.mubr.msk.bf16.mxu1 %vm9115_vm0, %v14903_v46  ;;  %v9665_v48 = vld [vmem:[%s9388_s10 + $0xa8] ss:$12 sps:$4 sm:$0xff]   ;;  %v14901_v50 = vmov 0   ;;  %v9675_v51 = vld [vmem:[%s9388_s10 + $0x98] ss:$12 sps:$4 sm:$0xff]  }
  0x86   : > { %967 = vmatprep.subr.bf16.mxu0 %v9655_v45  ;;  %7789 = vmatpush3.bf16.msra.mxu1 %v9659_v47  ;;  %v9669_v49 = vld [vmem:[%s9388_s10 + $0x94] ss:$12 sps:$4 sm:$0xff]   ;;  %v9678_v52 = vld [vmem:[%s9388_s10 + $0x90] ss:$12 sps:$4 sm:$0xff]   ;;  %v9691_v55 = vld [vmem:[%s9388_s10 + $0x78] ss:$12 sps:$4 sm:$0xff]  }
  0x87   : > { %999 = vmatprep.mubr.bf16.mxu0 %v14901_v50  ;;  %968 = vmatpush1.bf16.msra.mxu0 %v9665_v48  ;;  %v9682_v53 = vld [vmem:[%s9388_s10 + $0x7c] ss:$12 sps:$4 sm:$0xff]   ;;  %v9686_v54 = vld [vmem:[%s9388_s10 + $0x80] ss:$12 sps:$4 sm:$0xff]   ;;  %v9695_v56 = vld [vmem:[%s9388_s10 + $0x64] ss:$12 sps:$4 sm:$0xff]  }
  0x88   : > { %7790 = vmatprep.subr.bf16.mxu1 %v14903_v46  ;;  %969 = vmatprep.subr.bf16.mxu0 %v9669_v49  ;;  %v9699_v57 = vld [vmem:[%s9388_s10 + $0x68] ss:$12 sps:$4 sm:$0xff]   ;;  %v9704_v58 = vld [vmem:[%s9388_s10 + $0x60] ss:$12 sps:$4 sm:$0xff]   ;;  %v9712_v60 = vld [vmem:[%s9388_s10 + $0x50] ss:$12 sps:$4 sm:$0xff]  }
  0x89   : > { %v9708_v59 = vld [vmem:[%s9388_s10 + $0x4c] ss:$12 sps:$4 sm:$0xff]   ;;  %v9717_v61 = vld [vmem:[%s9388_s10 + $0x48] ss:$12 sps:$4 sm:$0xff]   ;;  %v9727_v0 = vld [vmem:[%s9388_s10 + $0x30] ss:$12 sps:$4 sm:$0xff]  }
  0x8a   : > { %7791 = vmatpush3.bf16.msra.mxu1 %v9675_v51  ;;  %v9721_v62 = vld [vmem:[%s9388_s10 + $0x34] ss:$12 sps:$4 sm:$0xff]   ;;  %v9724_v63 = vld [vmem:[%s9388_s10 + $0x38] ss:$12 sps:$4 sm:$0xff]   ;;  %v9737_v6 = vld [vmem:[%s9388_s10 + $0x1c] ss:$12 sps:$4 sm:$0xff]  }
  0x8b   : > { %970 = vmatpush1.bf16.msra.mxu0 %v9678_v52  ;;  %7792 = vmatprep.subr.bf16.mxu1 %v14903_v46  ;;  %v549_v1 = vld [vmem:[%s9395_s14] sm:$0xff]  ;;  %v9763_v19 = vld [vmem:[%s9388_s10 + $0x8] ss:$12 sps:$4 sm:$0xff]  }
  0x8c   : > { %971 = vmatprep.subr.bf16.mxu0 %v9682_v53  ;;  %v550_v2 = vld [vmem:[%s9395_s14 + $0x20] sm:$0xff]  ;;  %v599_v3 = vmul.f32 0.70710677, %v549_v1  ;;  %v574_v24 = vmul.f32 0.5, %v549_v1 }
  0x8d   : > { %v551_v4 = vld [vmem:[%s9395_s14 + $0x40] sm:$0xff]  ;;  %v600_v7 = vmul.f32 0.70710677, %v550_v2  ;;  %v575_v27 = vmul.f32 0.5, %v550_v2 }
  0x8e   : > { %7793 = vmatpush3.bf16.msra.mxu1 %v9686_v54  ;;  %v552_v5 = vld [vmem:[%s9395_s14 + $0x60] sm:$0xff]  ;;  %8890 = verf.f32 %v599_v3  ;;  %v601_v9 = vmul.f32 0.70710677, %v551_v4  ;;  %v576_v30 = vmul.f32 0.5, %v551_v4 }
  0x8f   : > { %972 = vmatpush1.bf16.msra.mxu0 %v9691_v55  ;;  %7794 = vmatprep.subr.bf16.mxu1 %v14903_v46  ;;  %v553_v8 = vld [vmem:[%s9395_s14 + $0x80] sm:$0xff]  ;;  %v602_v10 = vmul.f32 0.70710677, %v552_v5  ;;  %8892 = verf.f32 %v600_v7  ;;  %v577_v34 = vmul.f32 0.5, %v552_v5 }
  0x90   : > { %973 = vmatprep.subr.bf16.mxu0 %v9695_v56  ;;  %v554_v11 = vld [vmem:[%s9395_s14 + $0xa0] sm:$0xff]  ;;  %v603_v12 = vmul.f32 0.70710677, %v553_v8  ;;  %8894 = verf.f32 %v601_v9  ;;  %v578_v42 = vmul.f32 0.5, %v553_v8 }
  0x91   : > { %v604_v13 = vmul.f32 0.70710677, %v554_v11  ;;  %v9744_v14 = vld [vmem:[%s9388_s10 + $0x20] ss:$12 sps:$4 sm:$0xff]   ;;  %v9749_v15 = vld [vmem:[%s9388_s10 + $0x18] ss:$12 sps:$4 sm:$0xff]   ;;  %8896 = verf.f32 %v602_v10 }
  0x92   : > { %7795 = vmatpush3.bf16.msra.mxu1 %v9699_v57  ;;  %v9752_v16 = vld [vmem:[%s9395_s14 + $0xc0] sm:$0xff]  ;;  %8898 = verf.f32 %v603_v12  ;;  %v579_v1 = vmul.f32 0.5, %v554_v11 }
  0x93   : > { %974 = vmatpush1.bf16.msra.mxu0 %v9704_v58  ;;  %7796 = vmatprep.subr.bf16.mxu1 %v14903_v46  ;;  %v9756_v17 = vld [vmem:[%s9388_s10 + $0x4] ss:$12 sps:$4 sm:$0xff]   ;;  %8900 = verf.f32 %v604_v13  ;;  %v605_v20 = vmul.f32 0.70710677, %v9752_v16  ;;  %v9769_v21 = vld [vmem:[%s9388_s10] ss:$12 sps:$4 sm:$0xff]  }
  0x94   : > { %975 = vmatprep.subr.bf16.mxu0 %v9708_v59  ;;  %v9759_v18 = vld [vmem:[%s9395_s14 + $0xe0] sm:$0xff] }
  0x95   : > { %v606_v22 = vmul.f32 0.70710677, %v9759_v18  ;;  %8902 = verf.f32 %v605_v20  ;;  %v9777_v23 = vld [vmem:[%s9395_s14 + $0x100] sm:$0xff] }
  0x96   : > { %7797 = vmatpush3.bf16.msra.mxu1 %v9712_v60  ;;  %v9781_v25 = vld [vmem:[%s9395_s14 + $0x120] sm:$0xff]  ;;  %v607_v31 = vmul.f32 0.70710677, %v9777_v23 }
  0x97   : > { %976 = vmatpush1.bf16.msra.mxu0 %v9717_v61  ;;  %7798 = vmatprep.subr.bf16.mxu1 %v14903_v46  ;;  %8904 = verf.f32 %v606_v22  ;;  %v608_v35 = vmul.f32 0.70710677, %v9781_v25  ;;  %v9786_v43 = vld [vmem:[%s9395_s14 + $0x140] sm:$0xff] }
  0x98   : > { %977 = vmatprep.subr.bf16.mxu0 %v9721_v62  ;;  %8906 = verf.f32 %v607_v31  ;;  %v9789_v3 = vld [vmem:[%s9395_s14 + $0x160] sm:$0xff]  ;;  %v609_v9 = vmul.f32 0.70710677, %v9786_v43 }
  0x99   : > { %8908 = verf.f32 %v608_v35  ;;  %v610_v20 = vmul.f32 0.70710677, %v9789_v3 }
  0x9a   : > { %7799 = vmatpush3.bf16.msra.mxu1 %v9724_v63  ;;  %8910 = verf.f32 %v609_v9 }
  0x9b   : > { %978 = vmatpush1.bf16.msra.mxu0 %v9727_v0  ;;  %7800 = vmatprep.subr.bf16.mxu1 %v14903_v46  ;;  %v8891_v26 = vpop.eup %8890  ;;  %8912 = verf.f32 %v610_v20 }
  0x9c   : > { %979 = vmatprep.subr.bf16.mxu0 %v9737_v6  ;;  %v8893_v28 = vpop.eup %8892  ;;  %v649_v29 = vadd.f32 1.0, %v8891_v26 }
  0x9d   : > { %v8895_v32 = vpop.eup %8894  ;;  %v650_v33 = vadd.f32 1.0, %v8893_v28 }
  0x9e   : > { %7801 = vmatpush3.bf16.msra.mxu1 %v9744_v14  ;;  %v8897_v36 = vpop.eup %8896  ;;  %v674_v37 = vmul.f32 %v649_v29, %v574_v24  ;;  %v651_v38 = vadd.f32 1.0, %v8895_v32  ;;  %v9802_v29 = vld [vmem:[%s9395_s14 + $0x180] sm:$0xff]  ;;  %v580_v32 = vmul.f32 0.5, %v9752_v16 }
  0x9f   : > { %980 = vmatpush1.bf16.msra.mxu0 %v9749_v15  ;;  %7802 = vmatprep.subr.bf16.mxu1 %v14903_v46  ;;  %v8899_v39 = vpop.eup %8898  ;;  %v675_v40 = vmul.f32 %v650_v33, %v575_v27  ;;  %v652_v41 = vadd.f32 1.0, %v8897_v36  ;;  %v611_v16 = vmul.f32 0.70710677, %v9802_v29 }
  0xa0   : > { %981 = vmatprep.subr.bf16.mxu0 %v9756_v17  ;;  %v8901_v44 = vpop.eup %8900  ;;  %v653_v2 = vadd.f32 1.0, %v8899_v39 }
  0xa1   : > { %v9791_v4 = vpack.c.bf16 %v675_v40, %v674_v37  ;;  %v677_v5 = vmul.f32 %v652_v41, %v577_v34  ;;  %v654_v7 = vadd.f32 1.0, %v8901_v44  ;;  %v581_v34 = vmul.f32 0.5, %v9759_v18 }
  0xa2   : > { %7803 = vmatpush3.bf16.msra.mxu1 %v9763_v19  ;;  %v678_v11 = vmul.f32 %v653_v2, %v578_v42  ;;  %v8903_v22 = vpop.eup %8902  ;;  %v9829_v2 = vld [vmem:[%s9395_s14 + $0x1e0] sm:$0xff]  ;;  %8914 = verf.f32 %v611_v16 }
  0xa3   : > { %982 = vmatpush1.bf16.msra.mxu0 %v9769_v21  ;;  %7856 = vmatprep.subr.bf16.mxu1 %v14903_v46  ;;  %v712_v8 = vunpack.c.l.bf16 %v9791_v4  ;;  %v713_v10 = vunpack.c.h.bf16 %v9791_v4  ;;  %v679_v13 = vmul.f32 %v654_v7, %v579_v1  ;;  %v655_v35 = vadd.f32 1.0, %v8903_v22  ;;  %v9835_v7 = vld [vmem:[%s9395_s14 + $0x200] sm:$0xff] }
  0xa4   : > { %1264 = vmatprep.subr.bf16.mxu0 %v9655_v45  ;;  %v676_v45 = vmul.f32 %v651_v38, %v576_v30  ;;  %v9805_v30 = vld [vmem:[%s9395_s14 + $0x1a0] sm:$0xff]  ;;  %v8905_v31 = vpop.eup %8904 }
  0xa5   : > { %v737_v24 = vsub.f32 %v674_v37, %v712_v8  ;;  %v738_v26 = vsub.f32 %v675_v40, %v713_v10  ;;  %v9809_v38 = vpack.c.bf16 %v679_v13, %v678_v11  ;;  %v656_v39 = vadd.f32 1.0, %v8905_v31  ;;  %v8907_v41 = vpop.eup %8906 }
  0xa6   : > { %v9796_v12 = vpack.c.bf16 %v677_v5, %v676_v45  ;;  %v612_v40 = vmul.f32 0.70710677, %v9805_v30  ;;  %v680_v18 = vmul.f32 %v655_v35, %v580_v32  ;;  %v8909_v1 = vpop.eup %8908  ;;  %v657_v9 = vadd.f32 1.0, %v8907_v41 }
  0xa7   : > { %v762_v33 = vpack.c.bf16 %v738_v26, %v737_v24  ;;  %v717_v42 = vunpack.c.h.bf16 %v9809_v38  ;;  %v681_v44 = vmul.f32 %v656_v39, %v581_v34  ;;  %v8911_v10 = vpop.eup %8910  ;;  %v9863_v34 = vld [vmem:[%s9395_s14 + $0x240] sm:$0xff] }
  0xa8   : > { %v714_v27 = vunpack.c.l.bf16 %v9796_v12  ;;  %v715_v28 = vunpack.c.h.bf16 %v9796_v12  ;;  %8916 = verf.f32 %v612_v40  ;;  %v8913_v20 = vpop.eup %8912  ;;  %v9877_v40 = vld [vmem:[%s9395_s14 + $0x260] sm:$0xff] }
  0xa9   : > { %7805 = vmatmul.mubr.bf16.vlgmr.msra.gmra.mxu1 %v762_v33  ;;  %1000 = vmatmul.mubr.bf16.vlgmr.msra.gmra.mxu0 %v762_v33  ;;  %v742_v8 = vsub.f32 %v679_v13, %v717_v42  ;;  %v615_v13 = vmul.f32 0.70710677, %v9835_v7 }
  0xaa   : > { %v739_v36 = vsub.f32 %v676_v45, %v714_v27  ;;  %v740_v37 = vsub.f32 %v677_v5, %v715_v28  ;;  %1265 = vmatpush1.bf16.msra.mxu0 %v9665_v48  ;;  %7857 = vmatpush3.bf16.msra.mxu1 %v9659_v47  ;;  %v716_v47 = vunpack.c.l.bf16 %v9809_v38  ;;  %v9823_v45 = vld [vmem:[%s9395_s14 + $0x1c0] sm:$0xff]  ;;  %v583_v5 = vmul.f32 0.5, %v9781_v25 }
  0xab   : > { %7808 = vmatprep.mubr.msk.bf16.mxu1 %vm9115_vm0, %v14903_v46  ;;  %1009 = vmatprep.mubr.bf16.mxu0 %v14901_v50  ;;  %v614_v25 = vmul.f32 0.70710677, %v9829_v2  ;;  %v659_v28 = vadd.f32 1.0, %v8911_v10 }
  0xac   : > { %1266 = vmatprep.subr.bf16.mxu0 %v9669_v49  ;;  %7858 = vmatprep.subr.bf16.mxu1 %v14903_v46  ;;  %v763_v48 = vpack.c.bf16 %v740_v37, %v739_v36  ;;  %v582_v49 = vmul.f32 0.5, %v9777_v23  ;;  %v658_v23 = vadd.f32 1.0, %v8909_v1 }
  0xae   : > { %1267 = vmatpush1.bf16.msra.mxu0 %v9678_v52  ;;  %7859 = vmatpush3.bf16.msra.mxu1 %v9675_v51  ;;  %v741_v52 = vsub.f32 %v678_v11, %v716_v47  ;;  %v9837_v51 = vpack.c.bf16 %v681_v44, %v680_v18  ;;  %v682_v11 = vmul.f32 %v657_v9, %v582_v49  ;;  %v9902_v9 = vld [vmem:[%s9395_s14 + $0x2a0] sm:$0xff] }
  0xaf   : > { %1268 = vmatprep.subr.bf16.mxu0 %v9682_v53  ;;  %7860 = vmatprep.subr.bf16.mxu1 %v14903_v46  ;;  %v613_v53 = vmul.f32 0.70710677, %v9823_v45  ;;  %v683_v27 = vmul.f32 %v658_v23, %v583_v5  ;;  %v9899_v5 = vld [vmem:[%s9395_s14 + $0x280] sm:$0xff] }
  0xb0   : > { %v764_v22 = vpack.c.bf16 %v742_v8, %v741_v52  ;;  %v718_v24 = vunpack.c.l.bf16 %v9837_v51  ;;  %v719_v26 = vunpack.c.h.bf16 %v9837_v51 }
  0xb1   : > { %7809 = vmatmul.mubr.bf16.gmra.mxu1 %v763_v48  ;;  %1010 = vmatmul.mubr.bf16.gmra.mxu0 %v763_v48  ;;  %8918 = verf.f32 %v613_v53  ;;  %v9860_v33 = vpack.c.bf16 %v683_v27, %v682_v11 }
  0xb2   : > { %7812 = vmatprep.mubr.msk.bf16.mxu1 %vm9115_vm0, %v14903_v46  ;;  %1019 = vmatprep.mubr.bf16.mxu0 %v14901_v50  ;;  %8920 = verf.f32 %v614_v25  ;;  %v743_v31 = vsub.f32 %v680_v18, %v718_v24  ;;  %v744_v32 = vsub.f32 %v681_v44, %v719_v26  ;;  %v590_v24 = vmul.f32 0.5, %v9835_v7 }
  0xb3   : > { %1269 = vmatpush1.bf16.msra.mxu0 %v9691_v55  ;;  %7861 = vmatpush3.bf16.msra.mxu1 %v9686_v54  ;;  %v9852_v55 = vld [vmem:[%s9395_s14 + $0x220] sm:$0xff]  ;;  %v584_v54 = vmul.f32 0.5, %v9786_v43  ;;  %v660_v43 = vadd.f32 1.0, %v8913_v20  ;;  %v720_v37 = vunpack.c.l.bf16 %v9860_v33  ;;  %v721_v39 = vunpack.c.h.bf16 %v9860_v33 }
  0xb4   : > { %1270 = vmatprep.subr.bf16.mxu0 %v9695_v56  ;;  %7862 = vmatprep.subr.bf16.mxu1 %v14903_v46  ;;  %v585_v56 = vmul.f32 0.5, %v9789_v3  ;;  %v586_v3 = vmul.f32 0.5, %v9802_v29  ;;  %v765_v36 = vpack.c.bf16 %v744_v32, %v743_v31  ;;  %8922 = verf.f32 %v615_v13  ;;  %v572_v32 = vld [vmem:[%s9395_s14 + $0x2e0] sm:$0xff] }
  0xb5   : > { %v745_v29 = vsub.f32 %v682_v11, %v720_v37  ;;  %v746_v18 = vsub.f32 %v683_v27, %v721_v39  ;;  %v591_v26 = vmul.f32 0.5, %v9852_v55  ;;  %v573_v37 = vld [vmem:[%s9395_s14 + $0x300] sm:$0xf]  ;;  %v592_v39 = vmul.f32 0.5, %v9863_v34 }
  0xb6   : > { %v685_v16 = vmul.f32 %v660_v43, %v585_v56 }
  0xb7   : > { %1271 = vmatpush1.bf16.msra.mxu0 %v9704_v58  ;;  %7863 = vmatpush3.bf16.msra.mxu1 %v9699_v57  ;;  %v616_v57 = vmul.f32 0.70710677, %v9852_v55  ;;  %v8915_v58 = vpop.eup %8914  ;;  %v766_v42 = vpack.c.bf16 %v746_v18, %v745_v29 }
  0xb8   : > { %1272 = vmatprep.subr.bf16.mxu0 %v9708_v59  ;;  %7864 = vmatprep.subr.bf16.mxu1 %v14903_v46  ;;  %v684_v59 = vmul.f32 %v659_v28, %v584_v54  ;;  %v8917_v35 = vpop.eup %8916 }
  0xb9   : > { %7813 = vmatmul.mubr.bf16.gmra.mxu1 %v764_v22  ;;  %1020 = vmatmul.mubr.bf16.gmra.mxu0 %v764_v22  ;;  %8924 = verf.f32 %v616_v57  ;;  %v662_v48 = vadd.f32 1.0, %v8917_v35  ;;  %v9919_v22 = vld [vmem:[%s9395_s14 + $0x2c0] sm:$0xff]  ;;  %v622_v57 = vmul.f32 0.70710677, %v572_v32 }
  0xba   : > { %7816 = vmatprep.mubr.msk.bf16.mxu1 %vm9115_vm0, %v14903_v46  ;;  %1029 = vmatprep.mubr.bf16.mxu0 %v14901_v50  ;;  %v9885_v41 = vpack.c.bf16 %v685_v16, %v684_v59  ;;  %v621_v7 = vmul.f32 0.70710677, %v9919_v22 }
  0xbb   : > { %1273 = vmatpush1.bf16.msra.mxu0 %v9717_v61  ;;  %7865 = vmatpush3.bf16.msra.mxu1 %v9712_v60  ;;  %v617_v61 = vmul.f32 0.70710677, %v9863_v34  ;;  %v587_v60 = vmul.f32 0.5, %v9805_v30 }
  0xbc   : > { %1274 = vmatprep.subr.bf16.mxu0 %v9721_v62  ;;  %7866 = vmatprep.subr.bf16.mxu1 %v14903_v46  ;;  %v661_v62 = vadd.f32 1.0, %v8915_v58  ;;  %v722_v44 = vunpack.c.l.bf16 %v9885_v41  ;;  %v723_v1 = vunpack.c.h.bf16 %v9885_v41 }
  0xbd   : > { %v687_v49 = vmul.f32 %v662_v48, %v587_v60  ;;  %8926 = verf.f32 %v617_v61  ;;  %v623_v48 = vmul.f32 0.70710677, %v573_v37 }
  0xbe   : > { %v686_v30 = vmul.f32 %v661_v62, %v586_v3  ;;  %v747_v52 = vsub.f32 %v684_v59, %v722_v44  ;;  %v748_v8 = vsub.f32 %v685_v16, %v723_v1  ;;  %v593_v16 = vmul.f32 0.5, %v9877_v40 }
  0xbf   : > { %1275 = vmatpush1.bf16.msra.mxu0 %v9727_v0  ;;  %7867 = vmatpush3.bf16.msra.mxu1 %v9724_v63  ;;  %v8668_v63 = vld [vmem:[%s9393_s13 + $0xac] ss:$12 sps:$4 sm:$0xff]   ;;  %v618_v0 = vmul.f32 0.70710677, %v9877_v40  ;;  %v595_v44 = vmul.f32 0.5, %v9902_v9 }
  0xc0   : > { %1276 = vmatprep.subr.bf16.mxu0 %v9737_v6  ;;  %7868 = vmatprep.subr.bf16.mxu1 %v14903_v46  ;;  %v8919_v6 = vpop.eup %8918  ;;  %v9909_v23 = vpack.c.bf16 %v687_v49, %v686_v30  ;;  %v767_v10 = vpack.c.bf16 %v748_v8, %v747_v52 }
  0xc1   : > { %7817 = vmatmul.mubr.bf16.gmra.mxu1 %v765_v36  ;;  %1030 = vmatmul.mubr.bf16.gmra.mxu0 %v765_v36  ;;  %v8921_v47 = vpop.eup %8920  ;;  %8928 = verf.f32 %v618_v0 }
  0xc2   : > { %7820 = vmatprep.mubr.msk.bf16.mxu1 %vm9115_vm0, %v14903_v46  ;;  %1039 = vmatprep.mubr.bf16.mxu0 %v14901_v50  ;;  %v724_v11 = vunpack.c.l.bf16 %v9909_v23  ;;  %v725_v13 = vunpack.c.h.bf16 %v9909_v23 }
  0xc3   : > { %1277 = vmatpush1.bf16.msra.mxu0 %v9749_v15  ;;  %7869 = vmatpush3.bf16.msra.mxu1 %v9744_v14  ;;  %v588_v15 = vmul.f32 0.5, %v9823_v45  ;;  %v589_v14 = vmul.f32 0.5, %v9829_v2  ;;  %v664_v45 = vadd.f32 1.0, %v8921_v47  ;;  %v8923_v2 = vpop.eup %8922 }
  0xc4   : > { %1278 = vmatprep.subr.bf16.mxu0 %v9756_v17  ;;  %7870 = vmatprep.subr.bf16.mxu1 %v14903_v46  ;;  %v663_v17 = vadd.f32 1.0, %v8919_v6  ;;  %v665_v27 = vadd.f32 1.0, %v8923_v2  ;;  %v749_v54 = vsub.f32 %v686_v30, %v724_v11  ;;  %v750_v56 = vsub.f32 %v687_v49, %v725_v13 }
  0xc5   : > { %v689_v20 = vmul.f32 %v664_v45, %v589_v14 }
  0xc6   : > { %v688_v53 = vmul.f32 %v663_v17, %v588_v15  ;;  %v8925_v25 = vpop.eup %8924  ;;  %v690_v43 = vmul.f32 %v665_v27, %v590_v24  ;;  %v768_v59 = vpack.c.bf16 %v750_v56, %v749_v54 }
  0xc7   : > { %1279 = vmatpush1.bf16.msra.mxu0 %v9769_v21  ;;  %7871 = vmatpush3.bf16.msra.mxu1 %v9763_v19  ;;  %v619_v19 = vmul.f32 0.70710677, %v9899_v5  ;;  %v620_v21 = vmul.f32 0.70710677, %v9902_v9  ;;  %v666_v31 = vadd.f32 1.0, %v8925_v25  ;;  %v597_v25 = vmul.f32 0.5, %v572_v32 }
  0xc8   : > { %1689 = vmatprep.subr.bf16.mxu0 %v8668_v63  ;;  %7924 = vmatprep.subr.bf16.mxu1 %v14903_v46  ;;  %v9923_v28 = vpack.c.bf16 %v689_v20, %v688_v53 }
  0xc9   : > { %7821 = vmatmul.mubr.bf16.gmra.mxu1 %v766_v42  ;;  %1040 = vmatmul.mubr.bf16.gmra.mxu0 %v766_v42  ;;  %8930 = verf.f32 %v619_v19  ;;  %v691_v36 = vmul.f32 %v666_v31, %v591_v26  ;;  %v594_v42 = vmul.f32 0.5, %v9899_v5  ;;  %v598_v31 = vmul.f32 0.5, %v573_v37 }
  0xca   : > { %7824 = vmatprep.mubr.msk.bf16.mxu1 %vm9115_vm0, %v14903_v46  ;;  %1049 = vmatprep.mubr.bf16.mxu0 %v14901_v50  ;;  %8932 = verf.f32 %v620_v21  ;;  %v8927_v55 = vpop.eup %8926  ;;  %v726_v3 = vunpack.c.l.bf16 %v9923_v28  ;;  %v727_v35 = vunpack.c.h.bf16 %v9923_v28 }
  0xcb   : > { %v667_v61 = vadd.f32 1.0, %v8927_v55  ;;  %8934 = verf.f32 %v621_v7  ;;  %v9935_v18 = vpack.c.bf16 %v691_v36, %v690_v43 }
  0xcc   : > { %v751_v62 = vsub.f32 %v688_v53, %v726_v3  ;;  %v752_v29 = vsub.f32 %v689_v20, %v727_v35  ;;  %8936 = verf.f32 %v622_v57  ;;  %v596_v53 = vmul.f32 0.5, %v9919_v22 }
  0xcd   : > { %v692_v34 = vmul.f32 %v667_v61, %v592_v39  ;;  %v728_v6 = vunpack.c.l.bf16 %v9935_v18  ;;  %v729_v30 = vunpack.c.h.bf16 %v9935_v18  ;;  %8938 = verf.f32 %v623_v48  ;;  %v8672_v48 = vld [vmem:[%s9393_s13 + $0x94] ss:$12 sps:$4 sm:$0xff]  }
  0xce   : > { %v8929_v58 = vpop.eup %8928  ;;  %v769_v40 = vpack.c.bf16 %v752_v29, %v751_v62  ;;  %v8666_v62 = vld [vmem:[%s9393_s13 + $0xa8] ss:$12 sps:$4 sm:$0xff]   ;;  %v8669_v29 = vld [vmem:[%s9393_s13 + $0xb0] ss:$12 sps:$4 sm:$0xff]  }
  0xcf   : > { %v668_v60 = vadd.f32 1.0, %v8929_v58  ;;  %v753_v15 = vsub.f32 %v690_v43, %v728_v6  ;;  %v754_v14 = vsub.f32 %v691_v36, %v729_v30  ;;  %v8677_v6 = vld [vmem:[%s9393_s13 + $0x80] ss:$12 sps:$4 sm:$0xff]   ;;  %v8680_v30 = vld [vmem:[%s9393_s13 + $0x64] ss:$12 sps:$4 sm:$0xff]  }
  0xd1   : > { %7825 = vmatmul.mubr.bf16.gmra.mxu1 %v767_v10  ;;  %1050 = vmatmul.mubr.bf16.gmra.mxu0 %v767_v10  ;;  %v693_v47 = vmul.f32 %v668_v60, %v593_v16  ;;  %v770_v5 = vpack.c.bf16 %v754_v14, %v753_v15  ;;  %v8688_v15 = vld [vmem:[%s9393_s13 + $0x34] ss:$12 sps:$4 sm:$0xff]   ;;  %v8686_v14 = vld [vmem:[%s9393_s13 + $0x30] ss:$12 sps:$4 sm:$0xff]  }
  0xd2   : > { %7828 = vmatprep.mubr.msk.bf16.mxu1 %vm9115_vm0, %v14903_v46  ;;  %1059 = vmatprep.mubr.bf16.mxu0 %v14901_v50 }
  0xd3   : > { %v9944_v17 = vpack.c.bf16 %v693_v47, %v692_v34 }
  0xd5   : > { %v730_v9 = vunpack.c.l.bf16 %v9944_v17  ;;  %v731_v19 = vunpack.c.h.bf16 %v9944_v17 }
  0xd6   : > { %v8931_v63 = vpop.eup %8930 }
  0xd7   : > { %v8933_v0 = vpop.eup %8932  ;;  %v669_v1 = vadd.f32 1.0, %v8931_v63  ;;  %v755_v10 = vsub.f32 %v692_v34, %v730_v9  ;;  %v756_v11 = vsub.f32 %v693_v47, %v731_v19  ;;  %v8670_v63 = vld [vmem:[%s9393_s13 + $0x90] ss:$12 sps:$4 sm:$0xff]   ;;  %v8673_v34 = vld [vmem:[%s9393_s13 + $0x98] ss:$12 sps:$4 sm:$0xff]  }
  0xd8   : > { %v670_v49 = vadd.f32 1.0, %v8933_v0  ;;  %v8935_v45 = vpop.eup %8934  ;;  %v8676_v0 = vld [vmem:[%s9393_s13 + $0x7c] ss:$12 sps:$4 sm:$0xff]   ;;  %v8678_v47 = vld [vmem:[%s9393_s13 + $0x60] ss:$12 sps:$4 sm:$0xff]  }
  0xd9   : > { %7829 = vmatmul.mubr.bf16.gmra.mxu1 %v768_v59  ;;  %1060 = vmatmul.mubr.bf16.gmra.mxu0 %v768_v59  ;;  %v694_v52 = vmul.f32 %v669_v1, %v594_v42  ;;  %v8937_v21 = vpop.eup %8936  ;;  %v671_v13 = vadd.f32 1.0, %v8935_v45  ;;  %v771_v26 = vpack.c.bf16 %v756_v11, %v755_v10  ;;  %v8681_v42 = vld [vmem:[%s9393_s13 + $0x68] ss:$12 sps:$4 sm:$0xff]   ;;  %v8690_v45 = vld [vmem:[%s9393_s13 + $0x18] ss:$12 sps:$4 sm:$0xff]  }
  0xda   : > { %7832 = vmatprep.mubr.msk.bf16.mxu1 %vm9115_vm0, %v14903_v46  ;;  %1069 = vmatprep.mubr.bf16.mxu0 %v14901_v50  ;;  %v695_v8 = vmul.f32 %v670_v49, %v595_v44  ;;  %v672_v20 = vadd.f32 1.0, %v8937_v21  ;;  %v8939_v22 = vpop.eup %8938  ;;  %v8684_v44 = vld [vmem:[%s9393_s13 + $0x4c] ss:$12 sps:$4 sm:$0xff]   ;;  %v8682_v1 = vld [vmem:[%s9393_s13 + $0x48] ss:$12 sps:$4 sm:$0xff]  }
  0xdb   : > { %v696_v54 = vmul.f32 %v671_v13, %v596_v53  ;;  %v673_v43 = vadd.f32 1.0, %v8939_v22  ;;  %v8685_v49 = vld [vmem:[%s9393_s13 + $0x50] ss:$12 sps:$4 sm:$0xff]   ;;  %v8694_v19 = vld [vmem:[%s9393_s13] ss:$12 sps:$4 sm:$0xff]  }
  0xdc   : > { %v9951_v2 = vpack.c.bf16 %v695_v8, %v694_v52  ;;  %v697_v56 = vmul.f32 %v672_v20, %v597_v25  ;;  %v8696_v9 = vld [vmem:[%s9393_s13 + $0x4] ss:$12 sps:$4 sm:$0xff]   ;;  %v8697_v21 = vld [vmem:[%s9393_s13 + $0x8] ss:$12 sps:$4 sm:$0xff]   ;;  %v10029_v53 = vld [vmem:[%s9388_s10 + $0x16c] ss:$12 sps:$4 sm:$0xff]  }
  0xdd   : > { %v698_v3 = vmul.f32 %v673_v43, %v598_v31  ;;  %v10101_v43 = vld [vmem:[%s9388_s10 + $0x168] ss:$12 sps:$4 sm:$0xff]  }
  0xde   : > { %v732_v24 = vunpack.c.l.bf16 %v9951_v2  ;;  %v733_v27 = vunpack.c.h.bf16 %v9951_v2  ;;  %v9959_v55 = vpack.c.bf16 %v697_v56, %v696_v54 }
  0xdf   : > { %v9966_v37 = vpack.c.bf16 %v698_v3, %v698_v3 }
  0xe0   : > { %v757_v32 = vsub.f32 %v694_v52, %v732_v24  ;;  %v758_v7 = vsub.f32 %v695_v8, %v733_v27  ;;  %v734_v58 = vunpack.c.l.bf16 %v9959_v55  ;;  %v735_v59 = vunpack.c.h.bf16 %v9959_v55  ;;  %v8689_v52 = vld [vmem:[%s9393_s13 + $0x38] ss:$12 sps:$4 sm:$0xff]   ;;  %v8692_v8 = vld [vmem:[%s9393_s13 + $0x1c] ss:$12 sps:$4 sm:$0xff]  }
  0xe1   : > { %7833 = vmatmul.mubr.bf16.gmra.mxu1 %v769_v40  ;;  %1070 = vmatmul.mubr.bf16.gmra.mxu0 %v769_v40  ;;  %v736_v16 = vunpack.c.l.bf16 %v9966_v37  ;;  %v8674_v40 = vld [vmem:[%s9393_s13 + $0x78] ss:$12 sps:$4 sm:$0xff]  }
  0xe2   : > { %7836 = vmatprep.mubr.msk.bf16.mxu1 %vm9115_vm0, %v14903_v46  ;;  %1079 = vmatprep.mubr.bf16.mxu0 %v14901_v50  ;;  %v772_v57 = vpack.c.bf16 %v758_v7, %v757_v32  ;;  %v759_v35 = vsub.f32 %v696_v54, %v734_v58  ;;  %v760_v36 = vsub.f32 %v697_v56, %v735_v59 }
  0xe3   : > { %v761_v61 = vsub.f32 %v698_v3, %v736_v16  ;;  %v10109_v3 = vld [vmem:[%s9388_s10 + $0x154] ss:$12 sps:$4 sm:$0xff]   ;;  %v10123_v16 = vld [vmem:[%s9388_s10 + $0x158] ss:$12 sps:$4 sm:$0xff]  }
  0xe4   : > { %v773_v39 = vpack.c.bf16 %v760_v36, %v759_v35 }
  0xe5   : > { %v774_v60 = vpack.c.bf16 %v761_v61, %v761_v61 }
  0xe9   : > { %7837 = vmatmul.mubr.bf16.gmra.mxu1 %v770_v5  ;;  %1080 = vmatmul.mubr.bf16.gmra.mxu0 %v770_v5  ;;  %v8693_v5 = vld [vmem:[%s9393_s13 + $0x20] ss:$12 sps:$4 sm:$0xff]  }
  0xea   : > { %7840 = vmatprep.mubr.msk.bf16.mxu1 %vm9115_vm0, %v14903_v46  ;;  %1089 = vmatprep.mubr.bf16.mxu0 %v14901_v50 }
  0xf1   : > { %7841 = vmatmul.mubr.bf16.gmra.mxu1 %v771_v26  ;;  %1090 = vmatmul.mubr.bf16.gmra.mxu0 %v771_v26 }
  0xf2   : > { %7844 = vmatprep.mubr.msk.bf16.mxu1 %vm9115_vm0, %v14903_v46  ;;  %1099 = vmatprep.mubr.bf16.mxu0 %v14901_v50 }
  0xf9   : > { %7845 = vmatmul.mubr.bf16.gmra.mxu1 %v772_v57  ;;  %1100 = vmatmul.mubr.bf16.gmra.mxu0 %v772_v57  ;;  %v10104_v57 = vld [vmem:[%s9388_s10 + $0x170] ss:$12 sps:$4 sm:$0xff]  }
  0xfa   : > { %7848 = vmatprep.mubr.msk.bf16.mxu1 %vm9115_vm0, %v14903_v46  ;;  %1109 = vmatprep.mubr.bf16.mxu0 %v14901_v50 }
 0x101   : > { %7849 = vmatmul.mubr.bf16.gmra.mxu1 %v773_v39  ;;  %1110 = vmatmul.mubr.bf16.gmra.mxu0 %v773_v39  ;;  %v10120_v39 = vld [vmem:[%s9388_s10 + $0x150] ss:$12 sps:$4 sm:$0xff]  }
 0x102   : > { %7852 = vmatprep.mubr.msk.bf16.mxu1 %vm9115_vm0, %v14903_v46  ;;  %1119 = vmatprep.mubr.bf16.mxu0 %v14901_v50 }
 0x109   : > { %7853 = vmatmul.mubr.bf16.gmra.mxu1 %v774_v60  ;;  %1120 = vmatmul.mubr.bf16.gmra.mxu0 %v774_v60 }
 0x10a   : > { %7872 = vmatprep.mubr.msk.bf16.mxu1 %vm9115_vm0, %v14903_v46  ;;  %1296 = vmatprep.mubr.bf16.mxu0 %v14901_v50 }
 0x111   : > { %7873 = vmatmul.mubr.bf16.vlgmr.msra.gmra.mxu1 %v9791_v4  ;;  %1297 = vmatmul.mubr.bf16.vlgmr.msra.gmra.mxu0 %v9791_v4 }
 0x112   : > { %1690 = vmatpush1.bf16.msra.mxu0 %v8666_v62  ;;  %7925 = vmatpush3.bf16.msra.mxu1 %v8669_v29 }
 0x113   : > { %7876 = vmatprep.mubr.msk.bf16.mxu1 %vm9115_vm0, %v14903_v46  ;;  %1306 = vmatprep.mubr.bf16.mxu0 %v14901_v50 }
 0x114   : > { %1691 = vmatprep.subr.bf16.mxu0 %v8672_v48  ;;  %7926 = vmatprep.subr.bf16.mxu1 %v14903_v46 }
 0x116   : > { %1692 = vmatpush1.bf16.msra.mxu0 %v8670_v63  ;;  %7927 = vmatpush3.bf16.msra.mxu1 %v8673_v34  ;;  %v10144_v34 = vld [vmem:[%s9388_s10 + $0x138] ss:$12 sps:$4 sm:$0xff]  }
 0x117   : > { %1693 = vmatprep.subr.bf16.mxu0 %v8676_v0  ;;  %7928 = vmatprep.subr.bf16.mxu1 %v14903_v46  ;;  %v10149_v0 = vld [vmem:[%s9388_s10 + $0x140] ss:$12 sps:$4 sm:$0xff]  }
 0x119   : > { %7877 = vmatmul.mubr.bf16.gmra.mxu1 %v9796_v12  ;;  %1307 = vmatmul.mubr.bf16.gmra.mxu0 %v9796_v12 }
 0x11a   : > { %7880 = vmatprep.mubr.msk.bf16.mxu1 %vm9115_vm0, %v14903_v46  ;;  %1316 = vmatprep.mubr.bf16.mxu0 %v14901_v50 }
 0x11b   : > { %1694 = vmatpush1.bf16.msra.mxu0 %v8674_v40  ;;  %7929 = vmatpush3.bf16.msra.mxu1 %v8677_v6  ;;  %v10152_v40 = vld [vmem:[%s9388_s10 + $0x124] ss:$12 sps:$4 sm:$0xff]  }
 0x11c   : > { %1695 = vmatprep.subr.bf16.mxu0 %v8680_v30  ;;  %7930 = vmatprep.subr.bf16.mxu1 %v14903_v46 }
 0x11f   : > { %1696 = vmatpush1.bf16.msra.mxu0 %v8678_v47  ;;  %7931 = vmatpush3.bf16.msra.mxu1 %v8681_v42 }
 0x120   : > { %1697 = vmatprep.subr.bf16.mxu0 %v8684_v44  ;;  %7932 = vmatprep.subr.bf16.mxu1 %v14903_v46  ;;  %v10168_v44 = vld [vmem:[%s9388_s10 + $0x120] ss:$12 sps:$4 sm:$0xff]  }
 0x121   : > { %7881 = vmatmul.mubr.bf16.gmra.mxu1 %v9809_v38  ;;  %1317 = vmatmul.mubr.bf16.gmra.mxu0 %v9809_v38 }
 0x122   : > { %7884 = vmatprep.mubr.msk.bf16.mxu1 %vm9115_vm0, %v14903_v46  ;;  %1326 = vmatprep.mubr.bf16.mxu0 %v14901_v50 }
 0x123   : > { %1698 = vmatpush1.bf16.msra.mxu0 %v8682_v1  ;;  %7933 = vmatpush3.bf16.msra.mxu1 %v8685_v49  ;;  %v10171_v1 = vld [vmem:[%s9388_s10 + $0x128] ss:$12 sps:$4 sm:$0xff]  }
 0x124   : > { %1699 = vmatprep.subr.bf16.mxu0 %v8688_v15  ;;  %7934 = vmatprep.subr.bf16.mxu1 %v14903_v46 }
 0x127   : > { %1700 = vmatpush1.bf16.msra.mxu0 %v8686_v14  ;;  %7935 = vmatpush3.bf16.msra.mxu1 %v8689_v52 }
 0x128   : > { %1701 = vmatprep.subr.bf16.mxu0 %v8692_v8  ;;  %7936 = vmatprep.subr.bf16.mxu1 %v14903_v46  ;;  %v10187_v8 = vld [vmem:[%s9388_s10 + $0x108] ss:$12 sps:$4 sm:$0xff]  }
 0x129   : > { %7885 = vmatmul.mubr.bf16.gmra.mxu1 %v9837_v51  ;;  %1327 = vmatmul.mubr.bf16.gmra.mxu0 %v9837_v51 }
 0x12a   : > { %7888 = vmatprep.mubr.msk.bf16.mxu1 %vm9115_vm0, %v14903_v46  ;;  %1336 = vmatprep.mubr.bf16.mxu0 %v14901_v50 }
 0x12b   : > { %1702 = vmatpush1.bf16.msra.mxu0 %v8690_v45  ;;  %7937 = vmatpush3.bf16.msra.mxu1 %v8693_v5  ;;  %v10190_v45 = vld [vmem:[%s9388_s10 + $0x110] ss:$12 sps:$4 sm:$0xff]   ;;  %v10195_v5 = vld [vmem:[%s9388_s10 + $0xf4] ss:$12 sps:$4 sm:$0xff]  }
 0x12c   : > { %1703 = vmatprep.subr.bf16.mxu0 %v8696_v9  ;;  %7938 = vmatprep.subr.bf16.mxu1 %v14903_v46 }
 0x12f   : > { %1704 = vmatpush1.bf16.msra.mxu0 %v8694_v19  ;;  %7939 = vmatpush3.bf16.msra.mxu1 %v8697_v21 }
 0x130   : > { %2479 = vmatprep.subr.bf16.mxu0 %v10029_v53  ;;  %7992 = vmatprep.subr.bf16.mxu1 %v14903_v46 }
 0x131   : > { %7889 = vmatmul.mubr.bf16.gmra.mxu1 %v9860_v33  ;;  %1337 = vmatmul.mubr.bf16.gmra.mxu0 %v9860_v33 }
 0x132   : > { %7892 = vmatprep.mubr.msk.bf16.mxu1 %vm9115_vm0, %v14903_v46  ;;  %1346 = vmatprep.mubr.bf16.mxu0 %v14901_v50 }
 0x139   : > { %7893 = vmatmul.mubr.bf16.gmra.mxu1 %v9885_v41  ;;  %1347 = vmatmul.mubr.bf16.gmra.mxu0 %v9885_v41 }
 0x13a   : > { %7896 = vmatprep.mubr.msk.bf16.mxu1 %vm9115_vm0, %v14903_v46  ;;  %1356 = vmatprep.mubr.bf16.mxu0 %v14901_v50 }
 0x141   : > { %7897 = vmatmul.mubr.bf16.gmra.mxu1 %v9909_v23  ;;  %1357 = vmatmul.mubr.bf16.gmra.mxu0 %v9909_v23 }
 0x142   : > { %7900 = vmatprep.mubr.msk.bf16.mxu1 %vm9115_vm0, %v14903_v46  ;;  %1366 = vmatprep.mubr.bf16.mxu0 %v14901_v50 }
 0x149   : > { %7901 = vmatmul.mubr.bf16.gmra.mxu1 %v9923_v28  ;;  %1367 = vmatmul.mubr.bf16.gmra.mxu0 %v9923_v28 }
 0x14a   : > { %7904 = vmatprep.mubr.msk.bf16.mxu1 %vm9115_vm0, %v14903_v46  ;;  %1376 = vmatprep.mubr.bf16.mxu0 %v14901_v50 }
 0x151   : > { %7905 = vmatmul.mubr.bf16.gmra.mxu1 %v9935_v18  ;;  %1377 = vmatmul.mubr.bf16.gmra.mxu0 %v9935_v18 }
 0x152   : > { %7908 = vmatprep.mubr.msk.bf16.mxu1 %vm9115_vm0, %v14903_v46  ;;  %1386 = vmatprep.mubr.bf16.mxu0 %v14901_v50 }
 0x159   : > { %7909 = vmatmul.mubr.bf16.gmra.mxu1 %v9944_v17  ;;  %1387 = vmatmul.mubr.bf16.gmra.mxu0 %v9944_v17 }
 0x15a   : > { %7912 = vmatprep.mubr.msk.bf16.mxu1 %vm9115_vm0, %v14903_v46  ;;  %1396 = vmatprep.mubr.bf16.mxu0 %v14901_v50 }
 0x161   : > { %7913 = vmatmul.mubr.bf16.gmra.mxu1 %v9951_v2  ;;  %1397 = vmatmul.mubr.bf16.gmra.mxu0 %v9951_v2 }
 0x162   : > { %7916 = vmatprep.mubr.msk.bf16.mxu1 %vm9115_vm0, %v14903_v46  ;;  %1406 = vmatprep.mubr.bf16.mxu0 %v14901_v50 }
 0x169   : > { %v10068_v25 = vpop.f32.mrf.mxu1  ;;  %7917 = vmatmul.mubr.bf16.gmra.mxu1 %v9959_v55  ;;  %v10071_v10 = vpop.f32.mrf.mxu0  ;;  %1407 = vmatmul.mubr.bf16.gmra.mxu0 %v9959_v55 }
 0x16a   : > { %7920 = vmatprep.mubr.msk.bf16.mxu1 %vm9115_vm0, %v14903_v46  ;;  %1416 = vmatprep.mubr.bf16.mxu0 %v14901_v50 }
 0x16b   : > { %v7806_v11 = vpop.f32.mrf.mxu1  ;;  %v10077_v13 = vpop.f32.mrf.mxu0 }
 0x16d   : > { %v10079_v20 = vpop.f32.mrf.mxu1  ;;  %v10081_v24 = vpop.f32.mrf.mxu0 }
 0x16f   : > { %v7807_v26 = vpop.f32.mrf.mxu1  ;;  %v10083_v27 = vpop.f32.mrf.mxu0 }
 0x170   : > { %v10211_v26 = vld [vmem:[%s9388_s10 + $0xf0] ss:$12 sps:$4 sm:$0xff]  }
 0x171   : > { %v10085_v54 = vpop.f32.mrf.mxu1  ;;  %7921 = vmatmul.mubr.bf16.gmra.mxu1 %v9966_v37  ;;  %v10088_v56 = vpop.f32.mrf.mxu0  ;;  %1417 = vmatmul.mubr.bf16.gmra.mxu0 %v9966_v37 }
 0x172   : > { %7940 = vmatprep.mubr.msk.bf16.mxu1 %vm9115_vm0, %v14903_v46  ;;  %1721 = vmatprep.mubr.bf16.mxu0 %v14901_v50 }
 0x173   : > { %v7810_v22 = vpop.f32.mrf.mxu1  ;;  %v10094_v31 = vpop.f32.mrf.mxu0 }
 0x174   : > { %15057 = vst [vmem:[#allocation3_spill] sm:$0xff] %v10094_v31  ;;  %v10214_v22 = vld [vmem:[%s9388_s10 + $0xf8] ss:$12 sps:$4 sm:$0xff]  }
 0x175   : > { %v10096_v32 = vpop.f32.mrf.mxu1  ;;  %v10098_v7 = vpop.f32.mrf.mxu0 }
 0x176   : > { %15058 = vst [vmem:[#allocation4_spill] sm:$0xff] %v10096_v32  ;;  %15059 = vst [vmem:[#allocation5_spill] sm:$0xff] %v10098_v7 }
 0x177   : > { %v7811_v58 = vpop.f32.mrf.mxu1  ;;  %v10106_v59 = vpop.f32.mrf.mxu0 }
 0x178   : > { %15060 = vst [vmem:[#allocation6_spill] sm:$0xff] %v10106_v59 }
 0x179   : > { %v10111_v35 = vpop.f32.mrf.mxu1  ;;  %7941 = vmatmul.mubr.bf16.vlgmr.msra.gmra.mxu1 %v9791_v4  ;;  %v10114_v36 = vpop.f32.mrf.mxu0  ;;  %1722 = vmatmul.mubr.bf16.vlgmr.msra.gmra.mxu0 %v9791_v4  ;;  %v10131_v4 = vld [vmem:[%s9388_s10 + $0x13c] ss:$12 sps:$4 sm:$0xff]  }
 0x17a   : > { %15061 = vst [vmem:[#allocation7_spill] sm:$0xff] %v10111_v35  ;;  %15062 = vst [vmem:[#allocation8_spill] sm:$0xff] %v10114_v36  ;;  %2480 = vmatpush1.bf16.msra.mxu0 %v10101_v43  ;;  %7993 = vmatpush3.bf16.msra.mxu1 %v10104_v57 }
 0x17b   : > { %v7814_v61 = vpop.f32.mrf.mxu1  ;;  %v10125_v60 = vpop.f32.mrf.mxu0  ;;  %7944 = vmatprep.mubr.msk.bf16.mxu1 %vm9115_vm0, %v14903_v46  ;;  %1731 = vmatprep.mubr.bf16.mxu0 %v14901_v50 }
 0x17c   : > { %15063 = vst [vmem:[#allocation9_spill] sm:$0xff] %v10125_v60  ;;  %2481 = vmatprep.subr.bf16.mxu0 %v10109_v3  ;;  %7994 = vmatprep.subr.bf16.mxu1 %v14903_v46 }
 0x17d   : > { %v10135_v62 = vpop.f32.mrf.mxu1  ;;  %v10137_v29 = vpop.f32.mrf.mxu0 }
 0x17e   : > { %15064 = vst [vmem:[#allocation10_spill] sm:$0xff] %v10135_v62  ;;  %15065 = vst [vmem:[#allocation11_spill] sm:$0xff] %v10137_v29  ;;  %2482 = vmatpush1.bf16.msra.mxu0 %v10120_v39  ;;  %7995 = vmatpush3.bf16.msra.mxu1 %v10123_v16  ;;  %v10415_v29 = vld [vmem:[%s9395_s14 + $0xc8] sm:$0xff] }
 0x17f   : > { %v7815_v48 = vpop.f32.mrf.mxu1  ;;  %v10141_v63 = vpop.f32.mrf.mxu0  ;;  %2483 = vmatprep.subr.bf16.mxu0 %v10131_v4  ;;  %7996 = vmatprep.subr.bf16.mxu1 %v14903_v46 }
 0x180   : > { %15066 = vst [vmem:[#allocation12_spill] sm:$0xff] %v10141_v63 }
 0x181   : > { %v10154_v6 = vpop.f32.mrf.mxu1  ;;  %7945 = vmatmul.mubr.bf16.gmra.mxu1 %v9796_v12  ;;  %v10157_v30 = vpop.f32.mrf.mxu0  ;;  %1732 = vmatmul.mubr.bf16.gmra.mxu0 %v9796_v12  ;;  %v10176_v12 = vld [vmem:[%s9388_s10 + $0x10c] ss:$12 sps:$4 sm:$0xff]  }
 0x182   : > { %15067 = vst [vmem:[#allocation13_spill] sm:$0xff] %v10154_v6  ;;  %15068 = vst [vmem:[#allocation14_spill] sm:$0xff] %v10157_v30  ;;  %7948 = vmatprep.mubr.msk.bf16.mxu1 %vm9115_vm0, %v14903_v46  ;;  %1741 = vmatprep.mubr.bf16.mxu0 %v14901_v50 }
 0x183   : > { %v7818_v47 = vpop.f32.mrf.mxu1  ;;  %v10163_v42 = vpop.f32.mrf.mxu0  ;;  %2484 = vmatpush1.bf16.msra.mxu0 %v10144_v34  ;;  %7997 = vmatpush3.bf16.msra.mxu1 %v10149_v0 }
 0x184   : > { %15069 = vst [vmem:[#allocation15_spill] sm:$0xff] %v10163_v42  ;;  %2485 = vmatprep.subr.bf16.mxu0 %v10152_v40  ;;  %7998 = vmatprep.subr.bf16.mxu1 %v14903_v46 }
 0x185   : > { %v10178_v49 = vpop.f32.mrf.mxu1  ;;  %v10180_v15 = vpop.f32.mrf.mxu0 }
 0x186   : > { %15070 = vst [vmem:[#allocation16_spill] sm:$0xff] %v10178_v49  ;;  %15071 = vst [vmem:[#allocation17_spill] sm:$0xff] %v10180_v15 }
 0x187   : > { %v7819_v14 = vpop.f32.mrf.mxu1  ;;  %v10182_v52 = vpop.f32.mrf.mxu0  ;;  %2486 = vmatpush1.bf16.msra.mxu0 %v10168_v44  ;;  %7999 = vmatpush3.bf16.msra.mxu1 %v10171_v1 }
 0x188   : > { %15072 = vst [vmem:[#allocation18_spill] sm:$0xff] %v10182_v52  ;;  %2487 = vmatprep.subr.bf16.mxu0 %v10176_v12  ;;  %8000 = vmatprep.subr.bf16.mxu1 %v14903_v46  ;;  %v10230_v14 = vld [vmem:[%s9388_s10 + $0xd8] ss:$12 sps:$4 sm:$0xff]  }
 0x189   : > { %v10197_v9 = vpop.f32.mrf.mxu1  ;;  %7949 = vmatmul.mubr.bf16.gmra.mxu1 %v9809_v38  ;;  %v10200_v19 = vpop.f32.mrf.mxu0  ;;  %1742 = vmatmul.mubr.bf16.gmra.mxu0 %v9809_v38  ;;  %v10219_v38 = vld [vmem:[%s9388_s10 + $0xdc] ss:$12 sps:$4 sm:$0xff]  }
 0x18a   : > { %15073 = vst [vmem:[#allocation19_spill] sm:$0xff] %v10197_v9  ;;  %15074 = vst [vmem:[#allocation20_spill] sm:$0xff] %v10200_v19  ;;  %7952 = vmatprep.mubr.msk.bf16.mxu1 %vm9115_vm0, %v14903_v46  ;;  %1751 = vmatprep.mubr.bf16.mxu0 %v14901_v50  ;;  %v10238_v50 = vld [vmem:[%s9388_s10 + $0xc4] ss:$12 sps:$4 sm:$0xff]   ;;  %v10254_v19 = vld [vmem:[%s9388_s10 + $0xc0] ss:$12 sps:$4 sm:$0xff]  }
 0x18b   : > { %v7822_v21 = vpop.f32.mrf.mxu1  ;;  %v10206_v11 = vpop.f32.mrf.mxu0  ;;  %2488 = vmatpush1.bf16.msra.mxu0 %v10187_v8  ;;  %8001 = vmatpush3.bf16.msra.mxu1 %v10190_v45 }
 0x18c   : > { %15075 = vst [vmem:[#allocation21_spill] sm:$0xff] %v10206_v11  ;;  %2489 = vmatprep.subr.bf16.mxu0 %v10195_v5  ;;  %8002 = vmatprep.subr.bf16.mxu1 %v14903_v46  ;;  %v10233_v21 = vld [vmem:[%s9388_s10 + $0xe0] ss:$12 sps:$4 sm:$0xff]  }
 0x18d   : > { %v10221_v58 = vpop.f32.mrf.mxu1  ;;  %v10223_v61 = vpop.f32.mrf.mxu0 }
 0x18e   : > { %15076 = vst [vmem:[#allocation22_spill] sm:$0xff] %v10221_v58  ;;  %15077 = vst [vmem:[#allocation23_spill] sm:$0xff] %v10223_v61 }
 0x18f   : > { %v7823_v48 = vpop.f32.mrf.mxu1  ;;  %v10225_v47 = vpop.f32.mrf.mxu0  ;;  %2490 = vmatpush1.bf16.msra.mxu0 %v10211_v26  ;;  %8003 = vmatpush3.bf16.msra.mxu1 %v10214_v22 }
 0x190   : > { %15078 = vst [vmem:[#allocation24_spill] sm:$0xff] %v10225_v47  ;;  %2491 = vmatprep.subr.bf16.mxu0 %v10219_v38  ;;  %8004 = vmatprep.subr.bf16.mxu1 %v14903_v46  ;;  %v15081_v47 = vmov 0  }
 0x191   : > { %v10240_v61 = vpop.f32.mrf.mxu1  ;;  %7953 = vmatmul.mubr.bf16.gmra.mxu1 %v9837_v51  ;;  %v10243_v48 = vpop.f32.mrf.mxu0  ;;  %1752 = vmatmul.mubr.bf16.gmra.mxu0 %v9837_v51 }
 0x192   : > { %15079 = vst [vmem:[#allocation25_spill] sm:$0xff] %v10240_v61  ;;  %15080 = vst [vmem:[#allocation26_spill] sm:$0xff] %v10243_v48  ;;  %7956 = vmatprep.mubr.msk.bf16.mxu1 %vm9115_vm0, %v14903_v46  ;;  %1761 = vmatprep.mubr.bf16.mxu0 %v15081_v47  ;;  %v10257_v61 = vld [vmem:[%s9388_s10 + $0xc8] ss:$12 sps:$4 sm:$0xff]  }
 0x193   : > { %v7826_v58 = vpop.f32.mrf.mxu1  ;;  %v10249_v11 = vpop.f32.mrf.mxu0  ;;  %2492 = vmatpush1.bf16.msra.mxu0 %v10230_v14  ;;  %8005 = vmatpush3.bf16.msra.mxu1 %v10233_v21 }
 0x194   : > { %15082 = vst [vmem:[#allocation27_spill] sm:$0xff] %v10249_v11  ;;  %2493 = vmatprep.subr.bf16.mxu0 %v10238_v50  ;;  %8006 = vmatprep.subr.bf16.mxu1 %v14903_v46 }
 0x195   : > { %v10261_v51 = vpop.f32.mrf.mxu1  ;;  %v10263_v48 = vpop.f32.mrf.mxu0 }
 0x196   : > { %15083 = vst [vmem:[#allocation28_spill] sm:$0xff] %v10261_v51  ;;  %15084 = vst [vmem:[#allocation29_spill] sm:$0xff] %v10263_v48 }
 0x197   : > { %v7827_v9 = vpop.f32.mrf.mxu1  ;;  %v10265_v58 = vpop.f32.mrf.mxu0  ;;  %2494 = vmatpush1.bf16.msra.mxu0 %v10254_v19  ;;  %8007 = vmatpush3.bf16.msra.mxu1 %v10257_v61 }
 0x198   : > { %15085 = vst [vmem:[#allocation30_spill] sm:$0xff] %v10265_v58  ;;  %2851 = vmatprep.subr.bf16.mxu0 %v10029_v53  ;;  %8060 = vmatprep.subr.bf16.mxu1 %v14903_v46 }
 0x199   : > { %v10271_v11 = vpop.f32.mrf.mxu1  ;;  %7957 = vmatmul.mubr.bf16.gmra.mxu1 %v9860_v33  ;;  %v10274_v52 = vpop.f32.mrf.mxu0  ;;  %1762 = vmatmul.mubr.bf16.gmra.mxu0 %v9860_v33 }
 0x19a   : > { %15086 = vst [vmem:[#allocation31_spill] sm:$0xff] %v10271_v11  ;;  %15087 = vst [vmem:[#allocation32_spill] sm:$0xff] %v10274_v52  ;;  %7960 = vmatprep.mubr.msk.bf16.mxu1 %vm9115_vm0, %v14903_v46  ;;  %1771 = vmatprep.mubr.bf16.mxu0 %v15081_v47 }
 0x19b   : > { %v7830_v9 = vpop.f32.mrf.mxu1  ;;  %v10280_v58 = vpop.f32.mrf.mxu0 }
 0x19c   : > { %15088 = vst [vmem:[#allocation33_spill] sm:$0xff] %v10280_v58 }
 0x19d   : > { %v10282_v48 = vpop.f32.mrf.mxu1  ;;  %v10284_v53 = vpop.f32.mrf.mxu0 }
 0x19e   : > { %15089 = vst [vmem:[#allocation34_spill] sm:$0xff] %v10282_v48  ;;  %15090 = vst [vmem:[#allocation35_spill] sm:$0xff] %v10284_v53 }
 0x19f   : > { %v7831_v51 = vpop.f32.mrf.mxu1  ;;  %v10286_v11 = vpop.f32.mrf.mxu0 }
 0x1a0   : > { %15091 = vst [vmem:[#allocation36_spill] sm:$0xff] %v10286_v11 }
 0x1a1   : > { %v10288_v15 = vpop.f32.mrf.mxu1  ;;  %7961 = vmatmul.mubr.bf16.gmra.mxu1 %v9885_v41  ;;  %v10291_v33 = vpop.f32.mrf.mxu0  ;;  %1772 = vmatmul.mubr.bf16.gmra.mxu0 %v9885_v41 }
 0x1a2   : > { %15092 = vst [vmem:[#allocation37_spill] sm:$0xff] %v10288_v15  ;;  %15093 = vst [vmem:[#allocation38_spill] sm:$0xff] %v10291_v33  ;;  %7964 = vmatprep.mubr.msk.bf16.mxu1 %vm9115_vm0, %v14903_v46  ;;  %1781 = vmatprep.mubr.bf16.mxu0 %v15081_v47 }
 0x1a3   : > { %v7834_v9 = vpop.f32.mrf.mxu1  ;;  %v10297_v48 = vpop.f32.mrf.mxu0 }
 0x1a4   : > { %15094 = vst [vmem:[#allocation39_spill] sm:$0xff] %v10297_v48 }
 0x1a5   : > { %v10299_v53 = vpop.f32.mrf.mxu1  ;;  %v10301_v51 = vpop.f32.mrf.mxu0 }
 0x1a6   : > { %15095 = vst [vmem:[#allocation40_spill] sm:$0xff] %v10299_v53  ;;  %15096 = vst [vmem:[#allocation41_spill] sm:$0xff] %v10301_v51 }
 0x1a7   : > { %v7835_v11 = vpop.f32.mrf.mxu1  ;;  %v10303_v15 = vpop.f32.mrf.mxu0 }
 0x1a8   : > { %15097 = vst [vmem:[#allocation42_spill] sm:$0xff] %v10303_v15 }
 0x1a9   : > { %v10305_v58 = vpop.f32.mrf.mxu1  ;;  %7965 = vmatmul.mubr.bf16.gmra.mxu1 %v9909_v23  ;;  %v10308_v41 = vpop.f32.mrf.mxu0  ;;  %1782 = vmatmul.mubr.bf16.gmra.mxu0 %v9909_v23 }
 0x1aa   : > { %15098 = vst [vmem:[#allocation43_spill] sm:$0xff] %v10305_v58  ;;  %15099 = vst [vmem:[#allocation44_spill] sm:$0xff] %v10308_v41  ;;  %7968 = vmatprep.mubr.msk.bf16.mxu1 %vm9115_vm0, %v14903_v46  ;;  %1791 = vmatprep.mubr.bf16.mxu0 %v15081_v47 }
 0x1ab   : > { %v7838_v9 = vpop.f32.mrf.mxu1  ;;  %v10314_v53 = vpop.f32.mrf.mxu0 }
 0x1ac   : > { %15100 = vst [vmem:[#allocation45_spill] sm:$0xff] %v10314_v53 }
 0x1ad   : > { %v10316_v51 = vpop.f32.mrf.mxu1  ;;  %v10318_v11 = vpop.f32.mrf.mxu0 }
 0x1ae   : > { %15101 = vst [vmem:[#allocation46_spill] sm:$0xff] %v10316_v51  ;;  %15102 = vst [vmem:[#allocation47_spill] sm:$0xff] %v10318_v11 }
 0x1af   : > { %v7839_v15 = vpop.f32.mrf.mxu1  ;;  %v10320_v58 = vpop.f32.mrf.mxu0 }
 0x1b0   : > { %15103 = vst [vmem:[#allocation48_spill] sm:$0xff] %v10320_v58 }
 0x1b1   : > { %v10322_v48 = vpop.f32.mrf.mxu1  ;;  %7969 = vmatmul.mubr.bf16.gmra.mxu1 %v9923_v28  ;;  %v10325_v23 = vpop.f32.mrf.mxu0  ;;  %1792 = vmatmul.mubr.bf16.gmra.mxu0 %v9923_v28 }
 0x1b2   : > { %15104 = vst [vmem:[#allocation49_spill] sm:$0xff] %v10322_v48  ;;  %15105 = vst [vmem:[#allocation50_spill] sm:$0xff] %v10325_v23  ;;  %7972 = vmatprep.mubr.msk.bf16.mxu1 %vm9115_vm0, %v14903_v46  ;;  %1801 = vmatprep.mubr.bf16.mxu0 %v15081_v47 }
 0x1b3   : > { %v7842_v9 = vpop.f32.mrf.mxu1  ;;  %v10331_v51 = vpop.f32.mrf.mxu0 }
 0x1b4   : > { %15106 = vst [vmem:[#allocation51_spill] sm:$0xff] %v10331_v51 }
 0x1b5   : > { %v10333_v15 = vpop.f32.mrf.mxu1  ;;  %v10335_v58 = vpop.f32.mrf.mxu0 }
 0x1b6   : > { %15107 = vst [vmem:[#allocation52_spill] sm:$0xff] %v10333_v15  ;;  %15108 = vst [vmem:[#allocation53_spill] sm:$0xff] %v10335_v58  ;;  %v2061_v58 = vld [vmem:[%s9395_s14 + $0x8] sm:$0xff] }
 0x1b7   : > { %v7843_v48 = vpop.f32.mrf.mxu1  ;;  %v10337_v11 = vpop.f32.mrf.mxu0 }
 0x1b8   : > { %15109 = vst [vmem:[#allocation54_spill] sm:$0xff] %v10337_v11 }
 0x1b9   : > { %v10339_v23 = vpop.f32.mrf.mxu1  ;;  %7973 = vmatmul.mubr.bf16.gmra.mxu1 %v9935_v18  ;;  %v10342_v28 = vpop.f32.mrf.mxu0  ;;  %1802 = vmatmul.mubr.bf16.gmra.mxu0 %v9935_v18  ;;  %v2111_v18 = vmul.f32 0.70710677, %v2061_v58 }
 0x1ba   : > { %15110 = vst [vmem:[#allocation55_spill] sm:$0xff] %v10339_v23  ;;  %15111 = vst [vmem:[#allocation56_spill] sm:$0xff] %v10342_v28  ;;  %7976 = vmatprep.mubr.msk.bf16.mxu1 %vm9115_vm0, %v14903_v46  ;;  %1811 = vmatprep.mubr.bf16.mxu0 %v15081_v47  ;;  %v2062_v23 = vld [vmem:[%s9395_s14 + $0x28] sm:$0xff] }
 0x1bb   : > { %v7846_v9 = vpop.f32.mrf.mxu1  ;;  %v10348_v15 = vpop.f32.mrf.mxu0  ;;  %v2112_v28 = vmul.f32 0.70710677, %v2062_v23  ;;  %8940 = verf.f32 %v2111_v18  ;;  %v15124_v18 = vmov 0.0  }
 0x1bc   : > { %15112 = vst [vmem:[#allocation57_spill] sm:$0xff] %v10348_v15  ;;  %v10375_v15 = vld [vmem:[%s9395_s14 + $0x68] sm:$0xff] }
 0x1bd   : > { %v10351_v48 = vpop.f32.mrf.mxu1  ;;  %v10353_v11 = vpop.f32.mrf.mxu0  ;;  %8942 = verf.f32 %v2112_v28  ;;  %v2114_v28 = vmul.f32 0.70710677, %v10375_v15  ;;  %v2089_v59 = vmul.f32 0.5, %v10375_v15 }
 0x1be   : > { %15113 = vst [vmem:[#allocation58_spill] sm:$0xff] %v10351_v48  ;;  %15114 = vst [vmem:[#allocation59_spill] sm:$0xff] %v10353_v11 }
 0x1bf   : > { %v7847_v51 = vpop.f32.mrf.mxu1  ;;  %v10356_v53 = vpop.f32.mrf.mxu0 }
 0x1c0   : > { %15115 = vst [vmem:[#allocation60_spill] sm:$0xff] %v10356_v53 }
 0x1c1   : > { %v10358_v41 = vpop.f32.mrf.mxu1  ;;  %7977 = vmatmul.mubr.bf16.gmra.mxu1 %v9944_v17  ;;  %v10361_v9 = vpop.f32.mrf.mxu0  ;;  %1812 = vmatmul.mubr.bf16.gmra.mxu0 %v9944_v17 }
 0x1c2   : > { %15116 = vst [vmem:[#allocation61_spill] sm:$0xff] %v10358_v41  ;;  %15117 = vst [vmem:[#allocation62_spill] sm:$0xff] %v10361_v9  ;;  %7980 = vmatprep.mubr.msk.bf16.mxu1 %vm9115_vm0, %v14903_v46  ;;  %1821 = vmatprep.mubr.bf16.mxu0 %v15081_v47  ;;  %v2063_v41 = vld [vmem:[%s9395_s14 + $0x48] sm:$0xff] }
 0x1c3   : > { %v7850_v51 = vpop.f32.mrf.mxu1  ;;  %v10367_v11 = vpop.f32.mrf.mxu0  ;;  %v2113_v46 = vmul.f32 0.70710677, %v2063_v41 }
 0x1c4   : > { %15118 = vst [vmem:[#allocation63_spill] sm:$0xff] %v10367_v11  ;;  %v10395_v11 = vld [vmem:[%s9395_s14 + $0xa8] sm:$0xff] }
 0x1c5   : > { %v10369_v53 = vpop.f32.mrf.mxu1  ;;  %v10371_v48 = vpop.f32.mrf.mxu0  ;;  %8944 = verf.f32 %v2113_v46  ;;  %v2116_v42 = vmul.f32 0.70710677, %v10395_v11 }
 0x1c6   : > { %15119 = vst [vmem:[#allocation64_spill] sm:$0xff] %v10369_v53  ;;  %15120 = vst [vmem:[#allocation65_spill] sm:$0xff] %v10371_v48  ;;  %8946 = verf.f32 %v2114_v28  ;;  %v2087_v28 = vmul.f32 0.5, %v2062_v23 }
 0x1c7   : > { %v7851_v9 = vpop.f32.mrf.mxu1  ;;  %v10377_v17 = vpop.f32.mrf.mxu0 }
 0x1c8   : > { %15121 = vst [vmem:[#allocation66_spill] sm:$0xff] %v10377_v17  ;;  %v10392_v17 = vld [vmem:[%s9395_s14 + $0x88] sm:$0xff]  ;;  %v8941_v49 = vpop.eup %8940 }
 0x1c9   : > { %v10379_v33 = vpop.f32.mrf.mxu1  ;;  %7981 = vmatmul.mubr.bf16.gmra.mxu1 %v9951_v2  ;;  %v10382_v51 = vpop.f32.mrf.mxu0  ;;  %1822 = vmatmul.mubr.bf16.gmra.mxu0 %v9951_v2  ;;  %v2115_v52 = vmul.f32 0.70710677, %v10392_v17 }
 0x1ca   : > { %15122 = vst [vmem:[#allocation67_spill] sm:$0xff] %v10379_v33  ;;  %15123 = vst [vmem:[#allocation68_spill] sm:$0xff] %v10382_v51  ;;  %7984 = vmatprep.mubr.msk.bf16.mxu1 %vm9115_vm0, %v15124_v18  ;;  %1831 = vmatprep.mubr.bf16.mxu0 %v15081_v47  ;;  %v8943_v30 = vpop.eup %8942 }
 0x1cb   : > { %v7854_v9 = vpop.f32.mrf.mxu1  ;;  %v10389_v48 = vpop.f32.mrf.mxu0  ;;  %8948 = verf.f32 %v2115_v52 }
 0x1cc   : > { %15125 = vst [vmem:[#allocation69_spill] sm:$0xff] %v10389_v48  ;;  %v2161_v9 = vadd.f32 1.0, %v8941_v49  ;;  %8950 = verf.f32 %v2116_v42  ;;  %v2117_v49 = vmul.f32 0.70710677, %v10415_v29 }
 0x1cd   : > { %v1261_v33 = vpop.f32.mrf.mxu1  ;;  %v1125_v53 = vpop.f32.mrf.mxu0 }
 0x1ce   : > { %8952 = verf.f32 %v2117_v49 }
 0x1cf   : > { %v7855_v51 = vpop.f32.mrf.mxu1  ;;  %v1126_v2 = vpop.f32.mrf.mxu0 }
 0x1d0   : > { %v2086_v51 = vmul.f32 0.5, %v2061_v58  ;;  %v2162_v2 = vadd.f32 1.0, %v8943_v30 }
 0x1d1   : > { %v10399_v6 = vpop.f32.mrf.mxu1  ;;  %7985 = vmatmul.mubr.bf16.gmra.mxu1 %v9959_v55  ;;  %v10402_v46 = vpop.f32.mrf.mxu0  ;;  %1832 = vmatmul.mubr.bf16.gmra.mxu0 %v9959_v55  ;;  %v10418_v55 = vld [vmem:[%s9395_s14 + $0xe8] sm:$0xff] }
 0x1d2   : > { %7988 = vmatprep.mubr.msk.bf16.mxu1 %vm9115_vm0, %v15124_v18  ;;  %1841 = vmatprep.mubr.bf16.mxu0 %v15081_v47  ;;  %v10424_v36 = vmul.f32 %v2162_v2, %v2087_v28  ;;  %v8945_v30 = vpop.eup %8944  ;;  %v10444_v2 = vld [vmem:[%s9395_s14 + $0x108] sm:$0xff] }
 0x1d3   : > { %v7874_v53 = vpop.f32.mrf.mxu1  ;;  %v10408_v33 = vpop.f32.mrf.mxu0  ;;  %v2163_v7 = vadd.f32 1.0, %v8945_v30 }
 0x1d4   : > { %v10422_v53 = vmul.f32 %v2161_v9, %v2086_v51  ;;  %15127 = vst [vmem:[#allocation71_spill] sm:$0xff] %v10424_v36  ;;  %v8947_v58 = vpop.eup %8946  ;;  %v2088_v9 = vmul.f32 0.5, %v2063_v41 }
 0x1d5   : > { %v10410_v48 = vpop.f32.mrf.mxu1  ;;  %v10412_v63 = vpop.f32.mrf.mxu0  ;;  %v2164_v32 = vadd.f32 1.0, %v8947_v58 }
 0x1d6   : > { %15126 = vst [vmem:[#allocation70_spill] sm:$0xff] %v10422_v53  ;;  %v10441_v28 = vpack.c.bf16 %v10424_v36, %v10422_v53  ;;  %v2119_v36 = vmul.f32 0.70710677, %v10444_v2  ;;  %v10464_v15 = vmul.f32 %v2163_v7, %v2088_v9 }
 0x1d7   : > { %v7875_v62 = vpop.f32.mrf.mxu1  ;;  %v10420_v60 = vpop.f32.mrf.mxu0  ;;  %v10466_v30 = vmul.f32 %v2164_v32, %v2089_v59  ;;  %v2091_v32 = vmul.f32 0.5, %v10395_v11 }
 0x1d8   : > { %v2118_v62 = vmul.f32 0.70710677, %v10418_v55  ;;  %15130 = vst [vmem:[#allocation74_spill] sm:$0xff] %v10441_v28  ;;  %v8949_v41 = vpop.eup %8948 }
 0x1d9   : > { %v10427_v42 = vpop.f32.mrf.mxu1  ;;  %7989 = vmatmul.mubr.bf16.gmra.mxu1 %v9966_v37  ;;  %v10430_v52 = vpop.f32.mrf.mxu0  ;;  %1842 = vmatmul.mubr.bf16.gmra.mxu0 %v9966_v37  ;;  %v2165_v7 = vadd.f32 1.0, %v8949_v41  ;;  %v10485_v9 = vpack.c.bf16 %v10466_v30, %v10464_v15 }
 0x1da   : > { %15128 = vst [vmem:[#allocation72_spill] sm:$0xff] %v10430_v52  ;;  %8008 = vmatprep.mubr.msk.bf16.mxu1 %vm9115_vm0, %v15124_v18  ;;  %2511 = vmatprep.mubr.bf16.mxu0 %v15081_v47  ;;  %8954 = verf.f32 %v2118_v62  ;;  %v8951_v53 = vpop.eup %8950 }
 0x1db   : > { %v7878_v23 = vpop.f32.mrf.mxu1  ;;  %v10437_v51 = vpop.f32.mrf.mxu0  ;;  %8956 = verf.f32 %v2119_v36  ;;  %15133 = vst [vmem:[#allocation77_spill] sm:$0xff] %v10485_v9 }
 0x1dc   : > { %15129 = vst [vmem:[#allocation73_spill] sm:$0xff] %v10437_v51  ;;  %v10452_v23 = vld [vmem:[%s9395_s14 + $0x128] sm:$0xff] }
 0x1dd   : > { %v10446_v37 = vpop.f32.mrf.mxu1  ;;  %v10448_v35 = vpop.f32.mrf.mxu0  ;;  %v2120_v49 = vmul.f32 0.70710677, %v10452_v23 }
 0x1de   : > { %15131 = vst [vmem:[#allocation75_spill] sm:$0xff] %v10448_v35 }
 0x1df   : > { %v7879_v51 = vpop.f32.mrf.mxu1  ;;  %v10454_v31 = vpop.f32.mrf.mxu0  ;;  %8958 = verf.f32 %v2120_v49 }
 0x1e0   : > { %v2090_v51 = vmul.f32 0.5, %v10392_v17  ;;  %v8953_v49 = vpop.eup %8952 }
 0x1e1   : > { %v10458_v52 = vpop.f32.mrf.mxu1  ;;  %8009 = vmatmul.mubr.bf16.vlgmr.msra.gmra.mxu1 %v10441_v28  ;;  %v10461_v35 = vpop.f32.mrf.mxu0  ;;  %2512 = vmatmul.mubr.bf16.vlgmr.msra.gmra.mxu0 %v10441_v28 }
 0x1e2   : > { %2852 = vmatpush1.bf16.msra.mxu0 %v10101_v43  ;;  %8061 = vmatpush3.bf16.msra.mxu1 %v10104_v57  ;;  %v2166_v43 = vadd.f32 1.0, %v8951_v53  ;;  %v10499_v17 = vmul.f32 %v2165_v7, %v2090_v51 }
 0x1e3   : > { %v7882_v62 = vpop.f32.mrf.mxu1  ;;  %v10470_v58 = vpop.f32.mrf.mxu0  ;;  %8012 = vmatprep.mubr.msk.bf16.mxu1 %vm9115_vm0, %v15124_v18  ;;  %2521 = vmatprep.mubr.bf16.mxu0 %v15081_v47 }
 0x1e4   : > { %2853 = vmatprep.subr.bf16.mxu0 %v10109_v3  ;;  %8062 = vmatprep.subr.bf16.mxu1 %v15124_v18  ;;  %v10488_v62 = vld [vmem:[%s9395_s14 + $0x148] sm:$0xff]  ;;  %15134 = vst [vmem:[#allocation78_spill] sm:$0xff] %v10499_v17  ;;  %v10501_v53 = vmul.f32 %v2166_v43, %v2091_v32  ;;  %v2092_v43 = vmul.f32 0.5, %v10415_v29 }
 0x1e5   : > { %v10479_v57 = vpop.f32.mrf.mxu1  ;;  %v10481_v59 = vpop.f32.mrf.mxu0  ;;  %v10493_v3 = vld [vmem:[%s9395_s14 + $0x168] sm:$0xff]  ;;  %v2121_v41 = vmul.f32 0.70710677, %v10488_v62 }
 0x1e6   : > { %15132 = vst [vmem:[#allocation76_spill] sm:$0xff] %v10481_v59  ;;  %2854 = vmatpush1.bf16.msra.mxu0 %v10120_v39  ;;  %8063 = vmatpush3.bf16.msra.mxu1 %v10123_v16  ;;  %15135 = vst [vmem:[#allocation79_spill] sm:$0xff] %v10501_v53  ;;  %v2122_v16 = vmul.f32 0.70710677, %v10493_v3  ;;  %v10520_v7 = vpack.c.bf16 %v10501_v53, %v10499_v17  ;;  %v10534_v53 = vld [vmem:[%s9395_s14 + $0x1a8] sm:$0xff] }
 0x1e7   : > { %v7883_v36 = vpop.f32.mrf.mxu1  ;;  %v10495_v11 = vpop.f32.mrf.mxu0  ;;  %2855 = vmatprep.subr.bf16.mxu0 %v10131_v4  ;;  %8064 = vmatprep.subr.bf16.mxu1 %v15124_v18  ;;  %8960 = verf.f32 %v2121_v41 }
 0x1e8   : > { %v8955_v4 = vpop.eup %8954  ;;  %15138 = vst [vmem:[#allocation82_spill] sm:$0xff] %v10520_v7  ;;  %v10526_v36 = vld [vmem:[%s9395_s14 + $0x188] sm:$0xff]  ;;  %8962 = verf.f32 %v2122_v16 }
 0x1e9   : > { %v10504_v59 = vpop.f32.mrf.mxu1  ;;  %8013 = vmatmul.mubr.bf16.gmra.mxu1 %v10485_v9  ;;  %v10507_v39 = vpop.f32.mrf.mxu0  ;;  %2522 = vmatmul.mubr.bf16.gmra.mxu0 %v10485_v9 }
 0x1ea   : > { %15136 = vst [vmem:[#allocation80_spill] sm:$0xff] %v10507_v39  ;;  %8016 = vmatprep.mubr.msk.bf16.mxu1 %vm9115_vm0, %v15124_v18  ;;  %2531 = vmatprep.mubr.bf16.mxu0 %v15081_v47  ;;  %v2168_v39 = vadd.f32 1.0, %v8955_v4  ;;  %v8957_v41 = vpop.eup %8956  ;;  %v2094_v4 = vmul.f32 0.5, %v10444_v2 }
 0x1eb   : > { %v7886_v51 = vpop.f32.mrf.mxu1  ;;  %v10514_v32 = vpop.f32.mrf.mxu0  ;;  %2856 = vmatpush1.bf16.msra.mxu0 %v10144_v34  ;;  %8065 = vmatpush3.bf16.msra.mxu1 %v10149_v0  ;;  %v2093_v34 = vmul.f32 0.5, %v10418_v55  ;;  %v2167_v0 = vadd.f32 1.0, %v8953_v49 }
 0x1ec   : > { %15137 = vst [vmem:[#allocation81_spill] sm:$0xff] %v10514_v32  ;;  %2857 = vmatprep.subr.bf16.mxu0 %v10152_v40  ;;  %8066 = vmatprep.subr.bf16.mxu1 %v15124_v18  ;;  %v2123_v40 = vmul.f32 0.70710677, %v10526_v36  ;;  %v8959_v55 = vpop.eup %8958 }
 0x1ed   : > { %v10528_v51 = vpop.f32.mrf.mxu1  ;;  %v10530_v32 = vpop.f32.mrf.mxu0 }
 0x1ee   : > { %15139 = vst [vmem:[#allocation83_spill] sm:$0xff] %v10528_v51  ;;  %v2124_v51 = vmul.f32 0.70710677, %v10534_v53  ;;  %8964 = verf.f32 %v2123_v40 }
 0x1ef   : > { %v7887_v17 = vpop.f32.mrf.mxu1  ;;  %v10536_v29 = vpop.f32.mrf.mxu0  ;;  %2858 = vmatpush1.bf16.msra.mxu0 %v10168_v44  ;;  %8067 = vmatpush3.bf16.msra.mxu1 %v10171_v1  ;;  %v10550_v44 = vmul.f32 %v2167_v0, %v2092_v43  ;;  %v10552_v1 = vmul.f32 %v2168_v39, %v2093_v34  ;;  %v2095_v39 = vmul.f32 0.5, %v10452_v23  ;;  %v2169_v43 = vadd.f32 1.0, %v8957_v41 }
 0x1f0   : > { %2859 = vmatprep.subr.bf16.mxu0 %v10176_v12  ;;  %8068 = vmatprep.subr.bf16.mxu1 %v15124_v18  ;;  %v2170_v34 = vadd.f32 1.0, %v8959_v55  ;;  %8966 = verf.f32 %v2124_v51 }
 0x1f1   : > { %v10544_v49 = vpop.f32.mrf.mxu1  ;;  %8017 = vmatmul.mubr.bf16.gmra.mxu1 %v10520_v7  ;;  %v10547_v17 = vpop.f32.mrf.mxu0  ;;  %2532 = vmatmul.mubr.bf16.gmra.mxu0 %v10520_v7  ;;  %v10571_v2 = vpack.c.bf16 %v10552_v1, %v10550_v44 }
 0x1f2   : > { %8020 = vmatprep.mubr.msk.bf16.mxu1 %vm9115_vm0, %v15124_v18  ;;  %2541 = vmatprep.mubr.bf16.mxu0 %v15081_v47  ;;  %v10585_v51 = vmul.f32 %v2170_v34, %v2095_v39  ;;  %v10610_v34 = vld [vmem:[%s9395_s14 + $0x208] sm:$0xff] }
 0x1f3   : > { %v7890_v12 = vpop.f32.mrf.mxu1  ;;  %v10557_v16 = vpop.f32.mrf.mxu0  ;;  %2860 = vmatpush1.bf16.msra.mxu0 %v10187_v8  ;;  %8069 = vmatpush3.bf16.msra.mxu1 %v10190_v45  ;;  %15141 = vst [vmem:[#allocation85_spill] sm:$0xff] %v10571_v2  ;;  %v10574_v8 = vld [vmem:[%s9395_s14 + $0x1c8] sm:$0xff] }
 0x1f4   : > { %2861 = vmatprep.subr.bf16.mxu0 %v10195_v5  ;;  %8070 = vmatprep.subr.bf16.mxu1 %v15124_v18  ;;  %v10577_v45 = vld [vmem:[%s9395_s14 + $0x1e8] sm:$0xff]  ;;  %v10583_v5 = vmul.f32 %v2169_v43, %v2094_v4  ;;  %15144 = vst [vmem:[#allocation88_spill] sm:$0xff] %v10585_v51  ;;  %v2125_v41 = vmul.f32 0.70710677, %v10574_v8  ;;  %v8961_v55 = vpop.eup %8960  ;;  %v2096_v43 = vmul.f32 0.5, %v10488_v62 }
 0x1f5   : > { %v10565_v0 = vpop.f32.mrf.mxu1  ;;  %v10567_v12 = vpop.f32.mrf.mxu0 }
 0x1f6   : > { %15140 = vst [vmem:[#allocation84_spill] sm:$0xff] %v10567_v12  ;;  %15143 = vst [vmem:[#allocation87_spill] sm:$0xff] %v10583_v5  ;;  %v10606_v39 = vpack.c.bf16 %v10585_v51, %v10583_v5  ;;  %8968 = verf.f32 %v2125_v41  ;;  %v10621_v51 = vld [vmem:[%s9395_s14 + $0x228] sm:$0xff]  ;;  %v2127_v5 = vmul.f32 0.70710677, %v10610_v34 }
 0x1f7   : > { %v7891_v23 = vpop.f32.mrf.mxu1  ;;  %v10579_v40 = vpop.f32.mrf.mxu0  ;;  %2862 = vmatpush1.bf16.msra.mxu0 %v10211_v26  ;;  %8071 = vmatpush3.bf16.msra.mxu1 %v10214_v22  ;;  %v2126_v26 = vmul.f32 0.70710677, %v10577_v45 }
 0x1f8   : > { %15142 = vst [vmem:[#allocation86_spill] sm:$0xff] %v10579_v40  ;;  %2863 = vmatprep.subr.bf16.mxu0 %v10219_v38  ;;  %8072 = vmatprep.subr.bf16.mxu1 %v15124_v18  ;;  %v8963_v22 = vpop.eup %8962  ;;  %15148 = vst [vmem:[#allocation92_spill] sm:$0xff] %v10606_v39 }
 0x1f9   : > { %v10590_v12 = vpop.f32.mrf.mxu1  ;;  %8021 = vmatmul.mubr.bf16.gmra.mxu1 %v10571_v2  ;;  %v10593_v23 = vpop.f32.mrf.mxu0  ;;  %2542 = vmatmul.mubr.bf16.gmra.mxu0 %v10571_v2  ;;  %8970 = verf.f32 %v2126_v26 }
 0x1fa   : > { %15145 = vst [vmem:[#allocation89_spill] sm:$0xff] %v10590_v12  ;;  %15146 = vst [vmem:[#allocation90_spill] sm:$0xff] %v10593_v23  ;;  %8024 = vmatprep.mubr.msk.bf16.mxu1 %vm9115_vm0, %v15124_v18  ;;  %2551 = vmatprep.mubr.bf16.mxu0 %v15081_v47  ;;  %v2172_v12 = vadd.f32 1.0, %v8963_v22  ;;  %8972 = verf.f32 %v2127_v5 }
 0x1fb   : > { %v7894_v38 = vpop.f32.mrf.mxu1  ;;  %v10600_v4 = vpop.f32.mrf.mxu0  ;;  %2864 = vmatpush1.bf16.msra.mxu0 %v10230_v14  ;;  %8073 = vmatpush3.bf16.msra.mxu1 %v10233_v21  ;;  %v2097_v14 = vmul.f32 0.5, %v10493_v3  ;;  %v2171_v21 = vadd.f32 1.0, %v8961_v55 }
 0x1fc   : > { %15147 = vst [vmem:[#allocation91_spill] sm:$0xff] %v10600_v4  ;;  %2865 = vmatprep.subr.bf16.mxu0 %v10238_v50  ;;  %8074 = vmatprep.subr.bf16.mxu1 %v15124_v18  ;;  %v8732_v38 = vld [vmem:[%s9393_s13 + $0x16c] ss:$12 sps:$4 sm:$0xff]   ;;  %v8965_v50 = vpop.eup %8964 }
 0x1fd   : > { %v10615_v4 = vpop.f32.mrf.mxu1  ;;  %v10617_v23 = vpop.f32.mrf.mxu0  ;;  %v10636_v22 = vmul.f32 %v2171_v21, %v2096_v43  ;;  %v10656_v21 = vld [vmem:[%s9395_s14 + $0x248] sm:$0xff] }
 0x1fe   : > { %15149 = vst [vmem:[#allocation93_spill] sm:$0xff] %v10615_v4  ;;  %15150 = vst [vmem:[#allocation94_spill] sm:$0xff] %v10617_v23  ;;  %v2128_v4 = vmul.f32 0.70710677, %v10621_v51  ;;  %v8967_v3 = vpop.eup %8966 }
 0x1ff   : > { %v7895_v62 = vpop.f32.mrf.mxu1  ;;  %v10623_v41 = vpop.f32.mrf.mxu0  ;;  %2866 = vmatpush1.bf16.msra.mxu0 %v10254_v19  ;;  %8075 = vmatpush3.bf16.msra.mxu1 %v10257_v61  ;;  %15154 = vst [vmem:[#allocation98_spill] sm:$0xff] %v10636_v22  ;;  %v10638_v19 = vmul.f32 %v2172_v12, %v2097_v14 }
 0x200   : > { %15151 = vst [vmem:[#allocation95_spill] sm:$0xff] %v10623_v41  ;;  %3351 = vmatprep.subr.bf16.mxu0 %v8732_v38  ;;  %8128 = vmatprep.subr.bf16.mxu1 %v15124_v18  ;;  %v2098_v62 = vmul.f32 0.5, %v10526_v36  ;;  %v2174_v41 = vadd.f32 1.0, %v8967_v3  ;;  %8974 = verf.f32 %v2128_v4  ;;  %v2129_v4 = vmul.f32 0.70710677, %v10656_v21 }
 0x201   : > { %v10630_v55 = vpop.f32.mrf.mxu1  ;;  %8025 = vmatmul.mubr.bf16.gmra.mxu1 %v10606_v39  ;;  %v10633_v26 = vpop.f32.mrf.mxu0  ;;  %2552 = vmatmul.mubr.bf16.gmra.mxu0 %v10606_v39  ;;  %15155 = vst [vmem:[#allocation99_spill] sm:$0xff] %v10638_v19  ;;  %v10653_v14 = vpack.c.bf16 %v10638_v19, %v10636_v22  ;;  %v2101_v19 = vmul.f32 0.5, %v10577_v45 }
 0x202   : > { %15152 = vst [vmem:[#allocation96_spill] sm:$0xff] %v10630_v55  ;;  %15153 = vst [vmem:[#allocation97_spill] sm:$0xff] %v10633_v26  ;;  %8028 = vmatprep.mubr.msk.bf16.mxu1 %vm9115_vm0, %v15124_v18  ;;  %2561 = vmatprep.mubr.bf16.mxu0 %v15081_v47  ;;  %v2099_v26 = vmul.f32 0.5, %v10534_v53  ;;  %v2173_v55 = vadd.f32 1.0, %v8965_v50  ;;  %8976 = verf.f32 %v2129_v4 }
 0x203   : > { %v7898_v61 = vpop.f32.mrf.mxu1  ;;  %v10643_v38 = vpop.f32.mrf.mxu0  ;;  %15159 = vst [vmem:[#allocation103_spill] sm:$0xff] %v10653_v14 }
 0x204   : > { %15156 = vst [vmem:[#allocation100_spill] sm:$0xff] %v10643_v38  ;;  %v10659_v61 = vld [vmem:[%s9395_s14 + $0x268] sm:$0xff]  ;;  %v10663_v5 = vmul.f32 %v2173_v55, %v2098_v62  ;;  %v10665_v53 = vmul.f32 %v2174_v41, %v2099_v26  ;;  %v8969_v50 = vpop.eup %8968  ;;  %v2100_v62 = vmul.f32 0.5, %v10574_v8 }
 0x205   : > { %v10647_v43 = vpop.f32.mrf.mxu1  ;;  %v10649_v12 = vpop.f32.mrf.mxu0  ;;  %v2175_v22 = vadd.f32 1.0, %v8969_v50 }
 0x206   : > { %15157 = vst [vmem:[#allocation101_spill] sm:$0xff] %v10647_v43  ;;  %15158 = vst [vmem:[#allocation102_spill] sm:$0xff] %v10649_v12  ;;  %v10682_v26 = vpack.c.bf16 %v10665_v53, %v10663_v5 }
 0x207   : > { %v7899_v38 = vpop.f32.mrf.mxu1  ;;  %v10661_v36 = vpop.f32.mrf.mxu0  ;;  %15161 = vst [vmem:[#allocation105_spill] sm:$0xff] %v10663_v5  ;;  %15162 = vst [vmem:[#allocation106_spill] sm:$0xff] %v10665_v53  ;;  %v10706_v45 = vmul.f32 %v2175_v22, %v2100_v62  ;;  %v10726_v62 = vld [vmem:[%s9395_s14 + $0x2c8] sm:$0xff] }
 0x208   : > { %15160 = vst [vmem:[#allocation104_spill] sm:$0xff] %v10661_v36  ;;  %v2130_v38 = vmul.f32 0.70710677, %v10659_v61  ;;  %v8971_v36 = vpop.eup %8970  ;;  %15166 = vst [vmem:[#allocation110_spill] sm:$0xff] %v10682_v26 }
 0x209   : > { %v10668_v3 = vpop.f32.mrf.mxu1  ;;  %8029 = vmatmul.mubr.bf16.gmra.mxu1 %v10653_v14  ;;  %v10671_v12 = vpop.f32.mrf.mxu0  ;;  %2562 = vmatmul.mubr.bf16.gmra.mxu0 %v10653_v14  ;;  %v2176_v14 = vadd.f32 1.0, %v8971_v36  ;;  %15172 = vst [vmem:[#allocation116_spill] sm:$0xff] %v10706_v45 }
 0x20a   : > { %15163 = vst [vmem:[#allocation107_spill] sm:$0xff] %v10668_v3  ;;  %15164 = vst [vmem:[#allocation108_spill] sm:$0xff] %v10671_v12  ;;  %8032 = vmatprep.mubr.msk.bf16.mxu1 %vm9115_vm0, %v15124_v18  ;;  %2571 = vmatprep.mubr.bf16.mxu0 %v15081_v47  ;;  %v10686_v12 = vld [vmem:[%s9395_s14 + $0x288] sm:$0xff]  ;;  %8978 = verf.f32 %v2130_v38  ;;  %v8973_v8 = vpop.eup %8972 }
 0x20b   : > { %v7902_v41 = vpop.f32.mrf.mxu1  ;;  %v10678_v55 = vpop.f32.mrf.mxu0  ;;  %v2131_v53 = vmul.f32 0.70710677, %v10686_v12  ;;  %v10708_v36 = vmul.f32 %v2176_v14, %v2101_v19 }
 0x20c   : > { %15165 = vst [vmem:[#allocation109_spill] sm:$0xff] %v10678_v55  ;;  %v10694_v41 = vld [vmem:[%s9395_s14 + $0x2a8] sm:$0xff] }
 0x20d   : > { %v10688_v3 = vpop.f32.mrf.mxu1  ;;  %v10690_v43 = vpop.f32.mrf.mxu0  ;;  %v2132_v4 = vmul.f32 0.70710677, %v10694_v41  ;;  %15173 = vst [vmem:[#allocation117_spill] sm:$0xff] %v10708_v36  ;;  %8980 = verf.f32 %v2131_v53  ;;  %v10723_v14 = vpack.c.bf16 %v10708_v36, %v10706_v45 }
 0x20e   : > { %15167 = vst [vmem:[#allocation111_spill] sm:$0xff] %v10688_v3  ;;  %15168 = vst [vmem:[#allocation112_spill] sm:$0xff] %v10690_v43  ;;  %v8975_v5 = vpop.eup %8974 }
 0x20f   : > { %v7903_v55 = vpop.f32.mrf.mxu1  ;;  %v10696_v23 = vpop.f32.mrf.mxu0  ;;  %8982 = verf.f32 %v2132_v4  ;;  %15177 = vst [vmem:[#allocation121_spill] sm:$0xff] %v10723_v14 }
 0x210   : > { %15169 = vst [vmem:[#allocation113_spill] sm:$0xff] %v10696_v23  ;;  %v2102_v55 = vmul.f32 0.5, %v10610_v34  ;;  %v2178_v23 = vadd.f32 1.0, %v8975_v5  ;;  %v2133_v5 = vmul.f32 0.70710677, %v10726_v62 }
 0x211   : > { %v10700_v40 = vpop.f32.mrf.mxu1  ;;  %8033 = vmatmul.mubr.bf16.gmra.mxu1 %v10682_v26  ;;  %v10703_v43 = vpop.f32.mrf.mxu0  ;;  %2572 = vmatmul.mubr.bf16.gmra.mxu0 %v10682_v26 }
 0x212   : > { %15170 = vst [vmem:[#allocation114_spill] sm:$0xff] %v10700_v40  ;;  %15171 = vst [vmem:[#allocation115_spill] sm:$0xff] %v10703_v43  ;;  %8036 = vmatprep.mubr.msk.bf16.mxu1 %vm9115_vm0, %v15124_v18  ;;  %2581 = vmatprep.mubr.bf16.mxu0 %v15081_v47  ;;  %v2103_v43 = vmul.f32 0.5, %v10621_v51  ;;  %v2177_v40 = vadd.f32 1.0, %v8973_v8  ;;  %v8977_v8 = vpop.eup %8976  ;;  %8984 = verf.f32 %v2133_v5 }
 0x213   : > { %v7906_v50 = vpop.f32.mrf.mxu1  ;;  %v10713_v38 = vpop.f32.mrf.mxu0  ;;  %v2179_v36 = vadd.f32 1.0, %v8977_v8 }
 0x214   : > { %15174 = vst [vmem:[#allocation118_spill] sm:$0xff] %v10713_v38  ;;  %v10729_v50 = vld [vmem:[%s9395_s14 + $0x2e8] sm:$0xff]  ;;  %v10733_v53 = vmul.f32 %v2177_v40, %v2102_v55  ;;  %v10735_v51 = vmul.f32 %v2178_v23, %v2103_v43  ;;  %v2104_v55 = vmul.f32 0.5, %v10656_v21 }
 0x215   : > { %v10717_v22 = vpop.f32.mrf.mxu1  ;;  %v10719_v19 = vpop.f32.mrf.mxu0 }
 0x216   : > { %15175 = vst [vmem:[#allocation119_spill] sm:$0xff] %v10717_v22  ;;  %15176 = vst [vmem:[#allocation120_spill] sm:$0xff] %v10719_v19  ;;  %v10752_v43 = vpack.c.bf16 %v10735_v51, %v10733_v53  ;;  %v10769_v5 = vmul.f32 %v2179_v36, %v2104_v55 }
 0x217   : > { %v7907_v38 = vpop.f32.mrf.mxu1  ;;  %v10731_v34 = vpop.f32.mrf.mxu0  ;;  %15179 = vst [vmem:[#allocation123_spill] sm:$0xff] %v10735_v51 }
 0x218   : > { %15178 = vst [vmem:[#allocation122_spill] sm:$0xff] %v10731_v34  ;;  %v2134_v38 = vmul.f32 0.70710677, %v10729_v50  ;;  %v8979_v22 = vpop.eup %8978  ;;  %15183 = vst [vmem:[#allocation127_spill] sm:$0xff] %v10752_v43  ;;  %v2105_v34 = vmul.f32 0.5, %v10659_v61 }
 0x219   : > { %v10738_v4 = vpop.f32.mrf.mxu1  ;;  %8037 = vmatmul.mubr.bf16.gmra.mxu1 %v10723_v14  ;;  %v10741_v19 = vpop.f32.mrf.mxu0  ;;  %2582 = vmatmul.mubr.bf16.gmra.mxu0 %v10723_v14  ;;  %v2180_v45 = vadd.f32 1.0, %v8979_v22  ;;  %v2085_v14 = vld [vmem:[%s9395_s14 + $0x308] sm:$0xf] }
 0x21a   : > { %15180 = vst [vmem:[#allocation124_spill] sm:$0xff] %v10738_v4  ;;  %15181 = vst [vmem:[#allocation125_spill] sm:$0xff] %v10741_v19  ;;  %8040 = vmatprep.mubr.msk.bf16.mxu1 %vm9115_vm0, %v15124_v18  ;;  %2591 = vmatprep.mubr.bf16.mxu0 %v15081_v47  ;;  %8986 = verf.f32 %v2134_v38  ;;  %v2135_v22 = vmul.f32 0.70710677, %v2085_v14 }
 0x21b   : > { %v7910_v40 = vpop.f32.mrf.mxu1  ;;  %v10748_v23 = vpop.f32.mrf.mxu0  ;;  %v10771_v61 = vmul.f32 %v2180_v45, %v2105_v34 }
 0x21c   : > { %15182 = vst [vmem:[#allocation126_spill] sm:$0xff] %v10748_v23  ;;  %v8981_v23 = vpop.eup %8980  ;;  %8988 = verf.f32 %v2135_v22 }
 0x21d   : > { %v10755_v19 = vpop.f32.mrf.mxu1  ;;  %v10757_v4 = vpop.f32.mrf.mxu0  ;;  %v10786_v45 = vpack.c.bf16 %v10771_v61, %v10769_v5 }
 0x21e   : > { %15184 = vst [vmem:[#allocation128_spill] sm:$0xff] %v10757_v4  ;;  %v8983_v26 = vpop.eup %8982 }
 0x21f   : > { %v7911_v40 = vpop.f32.mrf.mxu1  ;;  %v10761_v3 = vpop.f32.mrf.mxu0  ;;  %15191 = vst [vmem:[#allocation135_spill] sm:$0xff] %v10786_v45 }
 0x220   : > { %15185 = vst [vmem:[#allocation129_spill] sm:$0xff] %v10761_v3  ;;  %v2106_v40 = vmul.f32 0.5, %v10686_v12  ;;  %v2182_v3 = vadd.f32 1.0, %v8983_v26  ;;  %v8985_v12 = vpop.eup %8984 }
 0x221   : > { %v10763_v51 = vpop.f32.mrf.mxu1  ;;  %8041 = vmatmul.mubr.bf16.gmra.mxu1 %v10752_v43  ;;  %v10766_v21 = vpop.f32.mrf.mxu0  ;;  %2592 = vmatmul.mubr.bf16.gmra.mxu0 %v10752_v43 }
 0x222   : > { %15186 = vst [vmem:[#allocation130_spill] sm:$0xff] %v10763_v51  ;;  %15187 = vst [vmem:[#allocation131_spill] sm:$0xff] %v10766_v21  ;;  %8044 = vmatprep.mubr.msk.bf16.mxu1 %vm9115_vm0, %v15124_v18  ;;  %2601 = vmatprep.mubr.bf16.mxu0 %v15081_v47  ;;  %v2107_v51 = vmul.f32 0.5, %v10694_v41  ;;  %v2181_v21 = vadd.f32 1.0, %v8981_v23 }
 0x223   : > { %v7914_v8 = vpop.f32.mrf.mxu1  ;;  %v10776_v38 = vpop.f32.mrf.mxu0 }
 0x224   : > { %15188 = vst [vmem:[#allocation132_spill] sm:$0xff] %v10776_v38  ;;  %v10790_v8 = vmul.f32 %v2181_v21, %v2106_v40  ;;  %v10792_v38 = vmul.f32 %v2182_v3, %v2107_v51 }
 0x225   : > { %v10780_v4 = vpop.f32.mrf.mxu1  ;;  %v10782_v36 = vpop.f32.mrf.mxu0 }
 0x226   : > { %15189 = vst [vmem:[#allocation133_spill] sm:$0xff] %v10780_v4  ;;  %15190 = vst [vmem:[#allocation134_spill] sm:$0xff] %v10782_v36  ;;  %v10807_v3 = vpack.c.bf16 %v10792_v38, %v10790_v8 }
 0x227   : > { %v7915_v34 = vpop.f32.mrf.mxu1  ;;  %v10788_v55 = vpop.f32.mrf.mxu0  ;;  %15193 = vst [vmem:[#allocation137_spill] sm:$0xff] %v10792_v38 }
 0x228   : > { %15192 = vst [vmem:[#allocation136_spill] sm:$0xff] %v10788_v55  ;;  %v8987_v23 = vpop.eup %8986  ;;  %15197 = vst [vmem:[#allocation141_spill] sm:$0xff] %v10807_v3  ;;  %v2108_v34 = vmul.f32 0.5, %v10726_v62 }
 0x229   : > { %v10794_v41 = vpop.f32.mrf.mxu1  ;;  %8045 = vmatmul.mubr.bf16.gmra.mxu1 %v10786_v45  ;;  %v10797_v26 = vpop.f32.mrf.mxu0  ;;  %2602 = vmatmul.mubr.bf16.gmra.mxu0 %v10786_v45  ;;  %v2184_v55 = vadd.f32 1.0, %v8987_v23 }
 0x22a   : > { %15194 = vst [vmem:[#allocation138_spill] sm:$0xff] %v10794_v41  ;;  %15195 = vst [vmem:[#allocation139_spill] sm:$0xff] %v10797_v26  ;;  %8048 = vmatprep.mubr.msk.bf16.mxu1 %vm9115_vm0, %v15124_v18  ;;  %2611 = vmatprep.mubr.bf16.mxu0 %v15081_v47  ;;  %v2109_v26 = vmul.f32 0.5, %v10729_v50  ;;  %v2183_v41 = vadd.f32 1.0, %v8985_v12  ;;  %v8989_v62 = vpop.eup %8988 }
 0x22b   : > { %v7918_v22 = vpop.f32.mrf.mxu1  ;;  %v10803_v21 = vpop.f32.mrf.mxu0 }
 0x22c   : > { %15196 = vst [vmem:[#allocation140_spill] sm:$0xff] %v10803_v21 }
 0x22d   : > { %v10809_v51 = vpop.f32.mrf.mxu1  ;;  %v10811_v40 = vpop.f32.mrf.mxu0 }
 0x22e   : > { %15198 = vst [vmem:[#allocation142_spill] sm:$0xff] %v10809_v51  ;;  %15199 = vst [vmem:[#allocation143_spill] sm:$0xff] %v10811_v40  ;;  %v10823_v51 = vmul.f32 %v2183_v41, %v2108_v34  ;;  %v10825_v40 = vmul.f32 %v2184_v55, %v2109_v26  ;;  %v2185_v41 = vadd.f32 1.0, %v8989_v62  ;;  %v1460_v26 = vadd.f32 %v10399_v6, %v10068_v25 }
 0x22f   : > { %v7919_v36 = vpop.f32.mrf.mxu1  ;;  %v10815_v4 = vpop.f32.mrf.mxu0  ;;  %v1463_v6 = vadd.f32 %v10410_v48, %v10079_v20  ;;  %v1468_v48 = vadd.f32 %v10427_v42, %v10085_v54 }
 0x230   : > { %15200 = vst [vmem:[#allocation144_spill] sm:$0xff] %v10815_v4  ;;  %v1299_v4 = vadd.f32 %v10402_v46, %v10071_v10  ;;  %v1303_v46 = vadd.f32 %v10412_v63, %v10081_v24 }
 0x231   : > { %v10817_v22 = vpop.f32.mrf.mxu1  ;;  %8049 = vmatmul.mubr.bf16.gmra.mxu1 %v10807_v3  ;;  %v10820_v21 = vpop.f32.mrf.mxu0  ;;  %2612 = vmatmul.mubr.bf16.gmra.mxu0 %v10807_v3 }
 0x232   : > { %15201 = vst [vmem:[#allocation145_spill] sm:$0xff] %v10817_v22  ;;  %15202 = vst [vmem:[#allocation146_spill] sm:$0xff] %v10820_v21  ;;  %8052 = vmatprep.mubr.msk.bf16.mxu1 %vm9115_vm0, %v15124_v18  ;;  %2621 = vmatprep.mubr.bf16.mxu0 %v15081_v47  ;;  %v10834_v21 = vpack.c.bf16 %v10825_v40, %v10823_v51  ;;  %v2110_v22 = vmul.f32 0.5, %v2085_v14  ;;  %v1301_v14 = vadd.f32 %v10408_v33, %v10077_v13 }
 0x233   : > { %v7922_v50 = vpop.f32.mrf.mxu1  ;;  %v10830_v36 = vpop.f32.mrf.mxu0 }
 0x234   : > { %15203 = vst [vmem:[#allocation147_spill] sm:$0xff] %v10834_v21 }
 0x235   : > { %v1558_v12 = vpop.f32.mrf.mxu1  ;;  %v1422_v23 = vpop.f32.mrf.mxu0 }
 0x236   : > { %v10842_v12 = vmul.f32 %v2185_v41, %v2110_v22  ;;  %v2225_v41 = vunpack.c.h.bf16 %v10441_v28 }
 0x237   : > { %v7923_v34 = vpop.f32.mrf.mxu1  ;;  %v1423_v55 = vpop.f32.mrf.mxu0 }
 0x238   : > { %v1305_v34 = vadd.f32 %v10420_v60, %v10083_v27  ;;  %v15205_v27 = vld [vmem:[#allocation70_spill] sm:$0xff] }
 0x239   : > { %v1884_v38 = vpop.f32.mrf.mxu1  ;;  %8053 = vmatmul.mubr.bf16.gmra.mxu1 %v10834_v21  ;;  %v1723_v50 = vpop.f32.mrf.mxu0  ;;  %2622 = vmatmul.mubr.bf16.gmra.mxu0 %v10834_v21 }
 0x23a   : > { %v10846_v62 = vadd.f32 %v1884_v38, %v1460_v26  ;;  %v10848_v23 = vadd.f32 %v1723_v50, %v1299_v4  ;;  %8056 = vmatprep.mubr.msk.bf16.mxu1 %vm9115_vm0, %v15124_v18  ;;  %2631 = vmatprep.mubr.bf16.mxu0 %v15081_v47  ;;  %v10861_v4 = vpack.c.bf16 %v10842_v12, %v10842_v12  ;;  %v2224_v38 = vunpack.c.l.bf16 %v10441_v28  ;;  %v15204_v26 = vld [vmem:[#allocation72_spill] sm:$0xff] }
 0x23b   : > { %v7942_v25 = vpop.f32.mrf.mxu1  ;;  %v1725_v10 = vpop.f32.mrf.mxu0  ;;  %v1309_v50 = vadd.f32 %v15204_v26, %v10088_v56 }
 0x23c   : > { %v10857_v22 = vadd.f32 %v1725_v10, %v1301_v14  ;;  %v2249_v60 = vsub.f32 %v15205_v27, %v2224_v38 }
 0x23d   : > { %v1887_v13 = vpop.f32.mrf.mxu1  ;;  %v1727_v33 = vpop.f32.mrf.mxu0 }
 0x23e   : > { %v10867_v55 = vadd.f32 %v1887_v13, %v1463_v6  ;;  %v10869_v20 = vadd.f32 %v1727_v33, %v1303_v46  ;;  %v15206_v6 = vld [vmem:[#allocation71_spill] sm:$0xff]  ;;  %v15208_v33 = vld [vmem:[#allocation73_spill] sm:$0xff] }
 0x23f   : > { %v7943_v24 = vpop.f32.mrf.mxu1  ;;  %v1729_v63 = vpop.f32.mrf.mxu0  ;;  %v2250_v46 = vsub.f32 %v15206_v6, %v2225_v41  ;;  %v15207_v13 = vld [vmem:[#allocation3_spill] sm:$0xff]  ;;  %v15211_v41 = vld [vmem:[#allocation5_spill] sm:$0xff]  ;;  %v2227_v6 = vunpack.c.h.bf16 %v10485_v9 }
 0x240   : > { %v10875_v14 = vadd.f32 %v1729_v63, %v1305_v34  ;;  %v1311_v24 = vadd.f32 %v15208_v33, %v15207_v13  ;;  %v15210_v34 = vld [vmem:[#allocation4_spill] sm:$0xff]  ;;  %v15212_v63 = vld [vmem:[#allocation75_spill] sm:$0xff]  ;;  %v15214_v13 = vld [vmem:[#allocation6_spill] sm:$0xff] }
 0x241   : > { %v1892_v25 = vpop.f32.mrf.mxu1  ;;  %8057 = vmatmul.mubr.bf16.gmra.mxu1 %v10861_v4  ;;  %v1733_v10 = vpop.f32.mrf.mxu0  ;;  %2632 = vmatmul.mubr.bf16.gmra.mxu0 %v10861_v4  ;;  %v1471_v38 = vadd.f32 %v10446_v37, %v15210_v34  ;;  %v1313_v26 = vadd.f32 %v15212_v63, %v15211_v41  ;;  %v1315_v33 = vadd.f32 %v10454_v31, %v15214_v13  ;;  %v8730_v37 = vld [vmem:[%s9393_s13 + $0x168] ss:$12 sps:$4 sm:$0xff]   ;;  %v8733_v34 = vld [vmem:[%s9393_s13 + $0x170] ss:$12 sps:$4 sm:$0xff]  }
 0x242   : > { %v10883_v28 = vadd.f32 %v1892_v25, %v1468_v48  ;;  %v10885_v54 = vadd.f32 %v1733_v10, %v1309_v50  ;;  %8076 = vmatprep.mubr.msk.bf16.mxu1 %vm9115_vm0, %v15124_v18  ;;  %2883 = vmatprep.mubr.bf16.mxu0 %v15081_v47  ;;  %v2274_v25 = vpack.c.bf16 %v2250_v46, %v2249_v60  ;;  %v2226_v10 = vunpack.c.l.bf16 %v10485_v9  ;;  %v15216_v60 = vld [vmem:[#allocation8_spill] sm:$0xff] }
 0x243   : > { %v7946_v56 = vpop.f32.mrf.mxu1  ;;  %v1735_v42 = vpop.f32.mrf.mxu0  ;;  %v1319_v46 = vadd.f32 %v10461_v35, %v15216_v60  ;;  %v8734_v35 = vld [vmem:[%s9393_s13 + $0x150] ss:$12 sps:$4 sm:$0xff]  }
 0x244   : > { %15209 = vst [vmem:[#allocation72_spill] sm:$0xff] %v10885_v54  ;;  %v10894_v27 = vadd.f32 %v1735_v42, %v1311_v24  ;;  %v15215_v42 = vld [vmem:[#allocation7_spill] sm:$0xff] }
 0x245   : > { %v1895_v48 = vpop.f32.mrf.mxu1  ;;  %v1737_v50 = vpop.f32.mrf.mxu0  ;;  %v1476_v63 = vadd.f32 %v10458_v52, %v15215_v42 }
 0x246   : > { %15213 = vst [vmem:[#allocation70_spill] sm:$0xff] %v10894_v27  ;;  %v10900_v56 = vadd.f32 %v1895_v48, %v1471_v38  ;;  %v10902_v54 = vadd.f32 %v1737_v50, %v1313_v26  ;;  %v8736_v27 = vld [vmem:[%s9393_s13 + $0x154] ss:$12 sps:$4 sm:$0xff]   ;;  %v2251_v26 = vsub.f32 %v10464_v15, %v2226_v10  ;;  %v2252_v48 = vsub.f32 %v10466_v30, %v2227_v6  ;;  %v8740_v15 = vld [vmem:[%s9393_s13 + $0x13c] ss:$12 sps:$4 sm:$0xff]  }
 0x247   : > { %v7947_v41 = vpop.f32.mrf.mxu1  ;;  %v1739_v24 = vpop.f32.mrf.mxu0  ;;  %v15217_v50 = vld [vmem:[#allocation9_spill] sm:$0xff]  ;;  %v15218_v30 = vld [vmem:[#allocation10_spill] sm:$0xff]  ;;  %v15220_v10 = vld [vmem:[#allocation76_spill] sm:$0xff] }
 0x248   : > { %v10910_v9 = vadd.f32 %v1739_v24, %v1315_v33  ;;  %v1321_v13 = vadd.f32 %v10470_v58, %v15217_v50  ;;  %v8737_v33 = vld [vmem:[%s9393_s13 + $0x158] ss:$12 sps:$4 sm:$0xff]   ;;  %v2275_v60 = vpack.c.bf16 %v2252_v48, %v2251_v26  ;;  %v8741_v26 = vld [vmem:[%s9393_s13 + $0x140] ss:$12 sps:$4 sm:$0xff]   ;;  %v15223_v48 = vld [vmem:[#allocation13_spill] sm:$0xff] }
 0x249   : > { %v1900_v31 = vpop.f32.mrf.mxu1  ;;  %8077 = vmatmul.mubr.bf16.vlgmr.msra.gmra.mxu1 %v2274_v25  ;;  %v1743_v38 = vpop.f32.mrf.mxu0  ;;  %2884 = vmatmul.mubr.bf16.vlgmr.msra.gmra.mxu0 %v2274_v25  ;;  %v1479_v25 = vadd.f32 %v10479_v57, %v15218_v30  ;;  %v15219_v58 = vld [vmem:[#allocation11_spill] sm:$0xff]  ;;  %v1484_v30 = vadd.f32 %v10504_v59, %v15223_v48 }
 0x24a   : > { %v10917_v52 = vadd.f32 %v1900_v31, %v1476_v63  ;;  %v10919_v41 = vadd.f32 %v1743_v38, %v1319_v46  ;;  %3352 = vmatpush1.bf16.msra.mxu0 %v8730_v37  ;;  %8129 = vmatpush3.bf16.msra.mxu1 %v8733_v34  ;;  %v1323_v6 = vadd.f32 %v15220_v10, %v15219_v58  ;;  %v2228_v46 = vunpack.c.l.bf16 %v10520_v7  ;;  %v15221_v38 = vld [vmem:[#allocation12_spill] sm:$0xff]  ;;  %v15224_v58 = vld [vmem:[#allocation14_spill] sm:$0xff] }
 0x24b   : > { %v7950_v24 = vpop.f32.mrf.mxu1  ;;  %v1745_v42 = vpop.f32.mrf.mxu0  ;;  %8080 = vmatprep.mubr.msk.bf16.mxu1 %vm9115_vm0, %v15124_v18  ;;  %2893 = vmatprep.mubr.bf16.mxu0 %v15081_v47  ;;  %v2229_v31 = vunpack.c.h.bf16 %v10520_v7  ;;  %v1325_v57 = vadd.f32 %v10495_v11, %v15221_v38  ;;  %v15225_v10 = vld [vmem:[#allocation80_spill] sm:$0xff]  ;;  %v15228_v38 = vld [vmem:[#allocation15_spill] sm:$0xff] }
 0x24c   : > { %v10931_v63 = vadd.f32 %v1745_v42, %v1321_v13  ;;  %3353 = vmatprep.subr.bf16.mxu0 %v8736_v27  ;;  %8130 = vmatprep.subr.bf16.mxu1 %v15124_v18  ;;  %v8738_v42 = vld [vmem:[%s9393_s13 + $0x138] ss:$12 sps:$4 sm:$0xff]   ;;  %v1329_v7 = vadd.f32 %v15225_v10, %v15224_v58 }
 0x24d   : > { %v1903_v37 = vpop.f32.mrf.mxu1  ;;  %v1747_v34 = vpop.f32.mrf.mxu0  ;;  %v15231_v58 = vld [vmem:[#allocation83_spill] sm:$0xff] }
 0x24e   : > { %v10938_v50 = vadd.f32 %v1903_v37, %v1479_v25  ;;  %v10940_v24 = vadd.f32 %v1747_v34, %v1323_v6  ;;  %3354 = vmatpush1.bf16.msra.mxu0 %v8734_v35  ;;  %8131 = vmatpush3.bf16.msra.mxu1 %v8737_v33  ;;  %v8744_v25 = vld [vmem:[%s9393_s13 + $0x124] ss:$12 sps:$4 sm:$0xff]   ;;  %v15226_v33 = vld [vmem:[#allocation78_spill] sm:$0xff] }
 0x24f   : > { %v7951_v27 = vpop.f32.mrf.mxu1  ;;  %v1749_v13 = vpop.f32.mrf.mxu0  ;;  %3355 = vmatprep.subr.bf16.mxu0 %v8740_v15  ;;  %8132 = vmatprep.subr.bf16.mxu1 %v15124_v18  ;;  %v2253_v15 = vsub.f32 %v15226_v33, %v2228_v46  ;;  %v15227_v37 = vld [vmem:[#allocation79_spill] sm:$0xff]  ;;  %v8745_v46 = vld [vmem:[%s9393_s13 + $0x128] ss:$12 sps:$4 sm:$0xff]  }
 0x250   : > { %15222 = vst [vmem:[#allocation71_spill] sm:$0xff] %v10940_v24  ;;  %v10949_v11 = vadd.f32 %v1749_v13, %v1325_v57  ;;  %v2254_v34 = vsub.f32 %v15227_v37, %v2229_v31  ;;  %v15229_v27 = vld [vmem:[#allocation81_spill] sm:$0xff]  ;;  %v15230_v31 = vld [vmem:[#allocation16_spill] sm:$0xff] }
 0x251   : > { %v1908_v6 = vpop.f32.mrf.mxu1  ;;  %8081 = vmatmul.mubr.bf16.gmra.mxu1 %v2275_v60  ;;  %v1753_v35 = vpop.f32.mrf.mxu0  ;;  %2894 = vmatmul.mubr.bf16.gmra.mxu0 %v2275_v60  ;;  %v1331_v24 = vadd.f32 %v15229_v27, %v15228_v38  ;;  %v8742_v60 = vld [vmem:[%s9393_s13 + $0x120] ss:$12 sps:$4 sm:$0xff]   ;;  %v1487_v10 = vadd.f32 %v15231_v58, %v15230_v31  ;;  %v15232_v33 = vld [vmem:[#allocation17_spill] sm:$0xff]  ;;  %v2231_v38 = vunpack.c.h.bf16 %v10571_v2  ;;  %v15234_v27 = vld [vmem:[#allocation18_spill] sm:$0xff] }
 0x252   : > { %v10956_v59 = vadd.f32 %v1908_v6, %v1484_v30  ;;  %v10958_v48 = vadd.f32 %v1753_v35, %v1329_v7  ;;  %8084 = vmatprep.mubr.msk.bf16.mxu1 %vm9115_vm0, %v15124_v18  ;;  %2903 = vmatprep.mubr.bf16.mxu0 %v15081_v47  ;;  %v1333_v30 = vadd.f32 %v10530_v32, %v15232_v33  ;;  %v8748_v7 = vld [vmem:[%s9393_s13 + $0x10c] ss:$12 sps:$4 sm:$0xff]   ;;  %v8746_v31 = vld [vmem:[%s9393_s13 + $0x108] ss:$12 sps:$4 sm:$0xff]   ;;  %v8749_v58 = vld [vmem:[%s9393_s13 + $0x110] ss:$12 sps:$4 sm:$0xff]  }
 0x253   : > { %v7954_v57 = vpop.f32.mrf.mxu1  ;;  %v1755_v13 = vpop.f32.mrf.mxu0  ;;  %3356 = vmatpush1.bf16.msra.mxu0 %v8738_v42  ;;  %8133 = vmatpush3.bf16.msra.mxu1 %v8741_v26  ;;  %v2276_v42 = vpack.c.bf16 %v2254_v34, %v2253_v15  ;;  %v2230_v26 = vunpack.c.l.bf16 %v10571_v2  ;;  %v15235_v33 = vld [vmem:[#allocation19_spill] sm:$0xff]  ;;  %v15236_v34 = vld [vmem:[#allocation20_spill] sm:$0xff] }
 0x254   : > { %v10969_v6 = vadd.f32 %v1755_v13, %v1331_v24  ;;  %3357 = vmatprep.subr.bf16.mxu0 %v8744_v25  ;;  %8134 = vmatprep.subr.bf16.mxu1 %v15124_v18  ;;  %v1335_v57 = vadd.f32 %v10536_v29, %v15234_v27  ;;  %v1492_v15 = vadd.f32 %v10544_v49, %v15235_v33  ;;  %v8752_v29 = vld [vmem:[%s9393_s13 + $0xf4] ss:$12 sps:$4 sm:$0xff]  }
 0x255   : > { %v1911_v35 = vpop.f32.mrf.mxu1  ;;  %v1757_v37 = vpop.f32.mrf.mxu0  ;;  %v15237_v49 = vld [vmem:[#allocation21_spill] sm:$0xff] }
 0x256   : > { %15233 = vst [vmem:[#allocation3_spill] sm:$0xff] %v10969_v6  ;;  %v10977_v32 = vadd.f32 %v1911_v35, %v1487_v10  ;;  %v10979_v24 = vadd.f32 %v1757_v37, %v1333_v30  ;;  %v1339_v6 = vadd.f32 %v10547_v17, %v15236_v34  ;;  %v2256_v30 = vsub.f32 %v10552_v1, %v2231_v38  ;;  %v15238_v1 = vld [vmem:[#allocation22_spill] sm:$0xff]  ;;  %v15240_v38 = vld [vmem:[#allocation84_spill] sm:$0xff] }
 0x257   : > { %v7955_v25 = vpop.f32.mrf.mxu1  ;;  %v1759_v13 = vpop.f32.mrf.mxu0  ;;  %3358 = vmatpush1.bf16.msra.mxu0 %v8742_v60  ;;  %8135 = vmatpush3.bf16.msra.mxu1 %v8745_v46  ;;  %v2255_v46 = vsub.f32 %v10550_v44, %v2230_v26  ;;  %v1341_v35 = vadd.f32 %v10557_v16, %v15237_v49  ;;  %v8750_v44 = vld [vmem:[%s9393_s13 + $0xf0] ss:$12 sps:$4 sm:$0xff]   ;;  %v1495_v26 = vadd.f32 %v10565_v0, %v15238_v1  ;;  %v15239_v16 = vld [vmem:[#allocation23_spill] sm:$0xff]  ;;  %v15242_v0 = vld [vmem:[#allocation24_spill] sm:$0xff] }
 0x258   : > { %v10987_v2 = vadd.f32 %v1759_v13, %v1335_v57  ;;  %3359 = vmatprep.subr.bf16.mxu0 %v8748_v7  ;;  %8136 = vmatprep.subr.bf16.mxu1 %v15124_v18  ;;  %v1343_v57 = vadd.f32 %v15240_v38, %v15239_v16  ;;  %v15243_v34 = vld [vmem:[#allocation86_spill] sm:$0xff]  ;;  %v15245_v1 = vld [vmem:[#allocation25_spill] sm:$0xff] }
 0x259   : > { %v1916_v10 = vpop.f32.mrf.mxu1  ;;  %8085 = vmatmul.mubr.bf16.gmra.mxu1 %v2276_v42  ;;  %v1763_v60 = vpop.f32.mrf.mxu0  ;;  %2904 = vmatmul.mubr.bf16.gmra.mxu0 %v2276_v42  ;;  %v8753_v42 = vld [vmem:[%s9393_s13 + $0xf8] ss:$12 sps:$4 sm:$0xff]  }
 0x25a   : > { %v10995_v17 = vadd.f32 %v1916_v10, %v1492_v15  ;;  %v10997_v7 = vadd.f32 %v1763_v60, %v1339_v6  ;;  %8088 = vmatprep.mubr.msk.bf16.mxu1 %vm9115_vm0, %v15124_v18  ;;  %2913 = vmatprep.mubr.bf16.mxu0 %v15081_v47  ;;  %v8756_v6 = vld [vmem:[%s9393_s13 + $0xdc] ss:$12 sps:$4 sm:$0xff]   ;;  %v2233_v15 = vunpack.c.h.bf16 %v10606_v39  ;;  %v1345_v10 = vadd.f32 %v15243_v34, %v15242_v0  ;;  %v15252_v34 = vld [vmem:[#allocation27_spill] sm:$0xff] }
 0x25b   : > { %v7958_v37 = vpop.f32.mrf.mxu1  ;;  %v1765_v27 = vpop.f32.mrf.mxu0  ;;  %3360 = vmatpush1.bf16.msra.mxu0 %v8746_v31  ;;  %8137 = vmatpush3.bf16.msra.mxu1 %v8749_v58  ;;  %v2277_v31 = vpack.c.bf16 %v2256_v30, %v2255_v46  ;;  %v2232_v58 = vunpack.c.l.bf16 %v10606_v39  ;;  %v15246_v46 = vld [vmem:[#allocation89_spill] sm:$0xff]  ;;  %v15247_v16 = vld [vmem:[#allocation26_spill] sm:$0xff] }
 0x25c   : > { %v11008_v25 = vadd.f32 %v1765_v27, %v1341_v35  ;;  %3361 = vmatprep.subr.bf16.mxu0 %v8752_v29  ;;  %8138 = vmatprep.subr.bf16.mxu1 %v15124_v18  ;;  %v8754_v37 = vld [vmem:[%s9393_s13 + $0xd8] ss:$12 sps:$4 sm:$0xff]   ;;  %v8757_v27 = vld [vmem:[%s9393_s13 + $0xe0] ss:$12 sps:$4 sm:$0xff]   ;;  %v1500_v30 = vadd.f32 %v15246_v46, %v15245_v1 }
 0x25d   : > { %v1919_v13 = vpop.f32.mrf.mxu1  ;;  %v1767_v33 = vpop.f32.mrf.mxu0  ;;  %v15248_v38 = vld [vmem:[#allocation90_spill] sm:$0xff] }
 0x25e   : > { %15241 = vst [vmem:[#allocation73_spill] sm:$0xff] %v11008_v25  ;;  %v11016_v60 = vadd.f32 %v1919_v13, %v1495_v26  ;;  %v11018_v49 = vadd.f32 %v1767_v33, %v1343_v57  ;;  %v1349_v25 = vadd.f32 %v15248_v38, %v15247_v16  ;;  %v8760_v26 = vld [vmem:[%s9393_s13 + $0xc4] ss:$12 sps:$4 sm:$0xff]   ;;  %v15251_v33 = vld [vmem:[#allocation88_spill] sm:$0xff] }
 0x25f   : > { %v7959_v29 = vpop.f32.mrf.mxu1  ;;  %v1769_v35 = vpop.f32.mrf.mxu0  ;;  %3362 = vmatpush1.bf16.msra.mxu0 %v8750_v44  ;;  %8139 = vmatpush3.bf16.msra.mxu1 %v8753_v42  ;;  %v15250_v42 = vld [vmem:[#allocation87_spill] sm:$0xff]  ;;  %v2258_v0 = vsub.f32 %v15251_v33, %v2233_v15  ;;  %v15256_v15 = vld [vmem:[#allocation28_spill] sm:$0xff]  ;;  %v15257_v16 = vld [vmem:[#allocation93_spill] sm:$0xff] }
 0x260   : > { %15244 = vst [vmem:[#allocation4_spill] sm:$0xff] %v11018_v49  ;;  %v11026_v39 = vadd.f32 %v1769_v35, %v1345_v10  ;;  %3363 = vmatprep.subr.bf16.mxu0 %v8756_v6  ;;  %8140 = vmatprep.subr.bf16.mxu1 %v15124_v18  ;;  %v2257_v13 = vsub.f32 %v15250_v42, %v2232_v58  ;;  %v15253_v29 = vld [vmem:[#allocation91_spill] sm:$0xff]  ;;  %v8761_v58 = vld [vmem:[%s9393_s13 + $0xc8] ss:$12 sps:$4 sm:$0xff]   ;;  %v15259_v33 = vld [vmem:[#allocation94_spill] sm:$0xff] }
 0x261   : > { %v1924_v57 = vpop.f32.mrf.mxu1  ;;  %8089 = vmatmul.mubr.bf16.gmra.mxu1 %v2277_v31  ;;  %v1773_v44 = vpop.f32.mrf.mxu0  ;;  %2914 = vmatmul.mubr.bf16.gmra.mxu0 %v2277_v31  ;;  %v1351_v1 = vadd.f32 %v15253_v29, %v15252_v34  ;;  %v8758_v31 = vld [vmem:[%s9393_s13 + $0xc0] ss:$12 sps:$4 sm:$0xff]   ;;  %v1503_v38 = vadd.f32 %v15257_v16, %v15256_v15  ;;  %v15258_v42 = vld [vmem:[#allocation29_spill] sm:$0xff] }
 0x262   : > { %15249 = vst [vmem:[#allocation5_spill] sm:$0xff] %v11026_v39  ;;  %v11034_v10 = vadd.f32 %v1924_v57, %v1500_v30  ;;  %v11036_v6 = vadd.f32 %v1773_v44, %v1349_v25  ;;  %8092 = vmatprep.mubr.msk.bf16.mxu1 %vm9115_vm0, %v15124_v18  ;;  %2923 = vmatprep.mubr.bf16.mxu0 %v15081_v47  ;;  %v11051_v25 = vld [vmem:[%s9388_s10 + $0x22c] ss:$12 sps:$4 sm:$0xff]  }
 0x263   : > { %v7962_v35 = vpop.f32.mrf.mxu1  ;;  %v1775_v46 = vpop.f32.mrf.mxu0  ;;  %3364 = vmatpush1.bf16.msra.mxu0 %v8754_v37  ;;  %8141 = vmatpush3.bf16.msra.mxu1 %v8757_v27  ;;  %v1353_v30 = vadd.f32 %v15259_v33, %v15258_v42  ;;  %15261 = vst [vmem:[#allocation8_spill] sm:$0xff] %v11051_v25  ;;  %v2278_v29 = vpack.c.bf16 %v2258_v0, %v2257_v13  ;;  %v15262_v37 = vld [vmem:[#allocation103_spill] sm:$0xff]  ;;  %v15267_v33 = vld [vmem:[#allocation96_spill] sm:$0xff]  ;;  %v15269_v13 = vld [vmem:[#allocation97_spill] sm:$0xff] }
 0x264   : > { %15254 = vst [vmem:[#allocation75_spill] sm:$0xff] %v11034_v10  ;;  %15255 = vst [vmem:[#allocation6_spill] sm:$0xff] %v11036_v6  ;;  %v11047_v57 = vadd.f32 %v1775_v46, %v1351_v1  ;;  %3365 = vmatprep.subr.bf16.mxu0 %v8760_v26  ;;  %8142 = vmatprep.subr.bf16.mxu1 %v15124_v18  ;;  %v2234_v27 = vunpack.c.l.bf16 %v15262_v37  ;;  %v2235_v35 = vunpack.c.h.bf16 %v15262_v37  ;;  %v15263_v6 = vld [vmem:[#allocation30_spill] sm:$0xff]  ;;  %v15264_v10 = vld [vmem:[#allocation95_spill] sm:$0xff] }
 0x265   : > { %v1927_v44 = vpop.f32.mrf.mxu1  ;;  %v1777_v34 = vpop.f32.mrf.mxu0  ;;  %v1355_v15 = vadd.f32 %v15264_v10, %v15263_v6  ;;  %v15266_v46 = vld [vmem:[#allocation31_spill] sm:$0xff]  ;;  %v15268_v39 = vld [vmem:[#allocation32_spill] sm:$0xff] }
 0x266   : > { %15260 = vst [vmem:[#allocation7_spill] sm:$0xff] %v11047_v57  ;;  %v11057_v16 = vadd.f32 %v1927_v44, %v1503_v38  ;;  %v11059_v42 = vadd.f32 %v1777_v34, %v1353_v30  ;;  %v1508_v57 = vadd.f32 %v15267_v33, %v15266_v46  ;;  %v1359_v0 = vadd.f32 %v15269_v13, %v15268_v39  ;;  %v15271_v38 = vld [vmem:[#allocation98_spill] sm:$0xff]  ;;  %v15273_v44 = vld [vmem:[#allocation33_spill] sm:$0xff]  ;;  %v15274_v34 = vld [vmem:[#allocation100_spill] sm:$0xff] }
 0x267   : > { %v7963_v1 = vpop.f32.mrf.mxu1  ;;  %v1779_v26 = vpop.f32.mrf.mxu0  ;;  %3366 = vmatpush1.bf16.msra.mxu0 %v8758_v31  ;;  %8143 = vmatpush3.bf16.msra.mxu1 %v8761_v58  ;;  %v2259_v30 = vsub.f32 %v15271_v38, %v2234_v27  ;;  %v15272_v31 = vld [vmem:[#allocation99_spill] sm:$0xff]  ;;  %v15277_v33 = vld [vmem:[#allocation34_spill] sm:$0xff]  ;;  %v15283_v37 = vld [vmem:[#allocation36_spill] sm:$0xff] }
 0x268   : > { %15265 = vst [vmem:[#allocation9_spill] sm:$0xff] %v11059_v42  ;;  %v11065_v49 = vadd.f32 %v1779_v26, %v1355_v15  ;;  %4141 = vmatprep.subr.bf16.mxu0 %v11051_v25  ;;  %8196 = vmatprep.subr.bf16.mxu1 %v15124_v18  ;;  %v2260_v58 = vsub.f32 %v15272_v31, %v2235_v35  ;;  %v15279_v27 = vld [vmem:[#allocation35_spill] sm:$0xff]  ;;  %v15280_v38 = vld [vmem:[#allocation102_spill] sm:$0xff]  ;;  %v15292_v42 = vld [vmem:[#allocation105_spill] sm:$0xff] }
 0x269   : > { %v1932_v10 = vpop.f32.mrf.mxu1  ;;  %8093 = vmatmul.mubr.bf16.gmra.mxu1 %v2278_v29  ;;  %v1783_v6 = vpop.f32.mrf.mxu0  ;;  %2924 = vmatmul.mubr.bf16.gmra.mxu0 %v2278_v29  ;;  %v1361_v1 = vadd.f32 %v15274_v34, %v15273_v44  ;;  %v15278_v29 = vld [vmem:[#allocation101_spill] sm:$0xff]  ;;  %v1363_v35 = vadd.f32 %v15280_v38, %v15279_v27  ;;  %v15288_v27 = vld [vmem:[#allocation107_spill] sm:$0xff]  ;;  %v15290_v38 = vld [vmem:[#allocation108_spill] sm:$0xff] }
 0x26a   : > { %15270 = vst [vmem:[#allocation10_spill] sm:$0xff] %v11065_v49  ;;  %v11073_v46 = vadd.f32 %v1932_v10, %v1508_v57  ;;  %v11075_v39 = vadd.f32 %v1783_v6, %v1359_v0  ;;  %8096 = vmatprep.mubr.msk.bf16.mxu1 %vm9115_vm0, %v15124_v18  ;;  %2933 = vmatprep.mubr.bf16.mxu0 %v15081_v47  ;;  %v15282_v0 = vld [vmem:[#allocation110_spill] sm:$0xff]  ;;  %v15287_v49 = vld [vmem:[#allocation37_spill] sm:$0xff] }
 0x26b   : > { %v7966_v15 = vpop.f32.mrf.mxu1  ;;  %v1785_v26 = vpop.f32.mrf.mxu0  ;;  %v1511_v13 = vadd.f32 %v15278_v29, %v15277_v33  ;;  %v2279_v10 = vpack.c.bf16 %v2260_v58, %v2259_v30  ;;  %v2236_v6 = vunpack.c.l.bf16 %v15282_v0  ;;  %v2237_v34 = vunpack.c.h.bf16 %v15282_v0 }
 0x26c   : > { %15275 = vst [vmem:[#allocation11_spill] sm:$0xff] %v11073_v46  ;;  %15276 = vst [vmem:[#allocation76_spill] sm:$0xff] %v11075_v39  ;;  %v11084_v31 = vadd.f32 %v1785_v26, %v1361_v1  ;;  %v15284_v39 = vld [vmem:[#allocation104_spill] sm:$0xff]  ;;  %v1516_v1 = vadd.f32 %v15288_v27, %v15287_v49  ;;  %v15289_v26 = vld [vmem:[#allocation38_spill] sm:$0xff] }
 0x26d   : > { %v1935_v44 = vpop.f32.mrf.mxu1  ;;  %v1787_v57 = vpop.f32.mrf.mxu0  ;;  %v1365_v46 = vadd.f32 %v15284_v39, %v15283_v37  ;;  %v2261_v37 = vsub.f32 %v15292_v42, %v2236_v6  ;;  %v15293_v39 = vld [vmem:[#allocation106_spill] sm:$0xff]  ;;  %v15300_v42 = vld [vmem:[#allocation41_spill] sm:$0xff]  ;;  %v15301_v6 = vld [vmem:[#allocation112_spill] sm:$0xff] }
 0x26e   : > { %15281 = vst [vmem:[#allocation12_spill] sm:$0xff] %v11084_v31  ;;  %v11090_v15 = vadd.f32 %v1935_v44, %v1511_v13  ;;  %v11092_v25 = vadd.f32 %v1787_v57, %v1363_v35  ;;  %v1369_v31 = vadd.f32 %v15290_v38, %v15289_v26  ;;  %v2262_v13 = vsub.f32 %v15293_v39, %v2237_v34  ;;  %v15294_v35 = vld [vmem:[#allocation39_spill] sm:$0xff]  ;;  %v15295_v44 = vld [vmem:[#allocation109_spill] sm:$0xff] }
 0x26f   : > { %v7967_v33 = vpop.f32.mrf.mxu1  ;;  %v1789_v29 = vpop.f32.mrf.mxu0  ;;  %v1371_v57 = vadd.f32 %v15295_v44, %v15294_v35  ;;  %v1373_v34 = vadd.f32 %v15301_v6, %v15300_v42  ;;  %v15304_v35 = vld [vmem:[#allocation42_spill] sm:$0xff]  ;;  %v15305_v44 = vld [vmem:[#allocation113_spill] sm:$0xff]  ;;  %v15310_v6 = vld [vmem:[#allocation115_spill] sm:$0xff] }
 0x270   : > { %15285 = vst [vmem:[#allocation13_spill] sm:$0xff] %v11090_v15  ;;  %15286 = vst [vmem:[#allocation14_spill] sm:$0xff] %v11092_v25  ;;  %v11098_v30 = vadd.f32 %v1789_v29, %v1365_v46  ;;  %v15298_v29 = vld [vmem:[#allocation40_spill] sm:$0xff]  ;;  %v15308_v42 = vld [vmem:[#allocation114_spill] sm:$0xff] }
 0x271   : > { %v1940_v58 = vpop.f32.mrf.mxu1  ;;  %8097 = vmatmul.mubr.bf16.gmra.mxu1 %v2279_v10  ;;  %v1793_v0 = vpop.f32.mrf.mxu0  ;;  %2934 = vmatmul.mubr.bf16.gmra.mxu0 %v2279_v10  ;;  %v15299_v10 = vld [vmem:[#allocation111_spill] sm:$0xff]  ;;  %v15311_v15 = vld [vmem:[#allocation116_spill] sm:$0xff] }
 0x272   : > { %15291 = vst [vmem:[#allocation80_spill] sm:$0xff] %v11098_v30  ;;  %v11104_v33 = vadd.f32 %v1940_v58, %v1516_v1  ;;  %v11106_v25 = vadd.f32 %v1793_v0, %v1369_v31  ;;  %8100 = vmatprep.mubr.msk.bf16.mxu1 %vm9115_vm0, %v15124_v18  ;;  %2943 = vmatprep.mubr.bf16.mxu0 %v15081_v47  ;;  %v15303_v31 = vld [vmem:[#allocation121_spill] sm:$0xff]  ;;  %v15307_v30 = vld [vmem:[#allocation43_spill] sm:$0xff] }
 0x273   : > { %v7970_v49 = vpop.f32.mrf.mxu1  ;;  %v1795_v46 = vpop.f32.mrf.mxu0  ;;  %v1519_v27 = vadd.f32 %v15299_v10, %v15298_v29  ;;  %v2280_v58 = vpack.c.bf16 %v2262_v13, %v2261_v37  ;;  %v2238_v0 = vunpack.c.l.bf16 %v15303_v31  ;;  %v2239_v39 = vunpack.c.h.bf16 %v15303_v31 }
 0x274   : > { %15296 = vst [vmem:[#allocation78_spill] sm:$0xff] %v11104_v33  ;;  %15297 = vst [vmem:[#allocation79_spill] sm:$0xff] %v11106_v25  ;;  %v11115_v26 = vadd.f32 %v1795_v46, %v1371_v57  ;;  %v1375_v25 = vadd.f32 %v15305_v44, %v15304_v35  ;;  %v1524_v57 = vadd.f32 %v15308_v42, %v15307_v30  ;;  %v15309_v46 = vld [vmem:[#allocation44_spill] sm:$0xff] }
 0x275   : > { %v1943_v38 = vpop.f32.mrf.mxu1  ;;  %v1797_v1 = vpop.f32.mrf.mxu0  ;;  %v2263_v35 = vsub.f32 %v15311_v15, %v2238_v0  ;;  %v15319_v15 = vld [vmem:[#allocation47_spill] sm:$0xff]  ;;  %v15320_v0 = vld [vmem:[#allocation120_spill] sm:$0xff] }
 0x276   : > { %15302 = vst [vmem:[#allocation15_spill] sm:$0xff] %v11115_v26  ;;  %v11121_v49 = vadd.f32 %v1943_v38, %v1519_v27  ;;  %v11123_v33 = vadd.f32 %v1797_v1, %v1373_v34  ;;  %v1379_v26 = vadd.f32 %v15310_v6, %v15309_v46  ;;  %v15312_v27 = vld [vmem:[#allocation117_spill] sm:$0xff]  ;;  %v15314_v1 = vld [vmem:[#allocation118_spill] sm:$0xff] }
 0x277   : > { %v7971_v29 = vpop.f32.mrf.mxu1  ;;  %v1799_v10 = vpop.f32.mrf.mxu0  ;;  %v2264_v38 = vsub.f32 %v15312_v27, %v2239_v39  ;;  %v15313_v34 = vld [vmem:[#allocation45_spill] sm:$0xff]  ;;  %v1383_v39 = vadd.f32 %v15320_v0, %v15319_v15  ;;  %v15322_v27 = vld [vmem:[#allocation48_spill] sm:$0xff] }
 0x278   : > { %15306 = vst [vmem:[#allocation81_spill] sm:$0xff] %v11123_v33  ;;  %v11129_v37 = vadd.f32 %v1799_v10, %v1375_v25  ;;  %v1381_v44 = vadd.f32 %v15314_v1, %v15313_v34  ;;  %v15317_v10 = vld [vmem:[#allocation46_spill] sm:$0xff]  ;;  %v15326_v15 = vld [vmem:[#allocation124_spill] sm:$0xff]  ;;  %v15328_v0 = vld [vmem:[#allocation125_spill] sm:$0xff] }
 0x279   : > { %v1948_v13 = vpop.f32.mrf.mxu1  ;;  %8101 = vmatmul.mubr.bf16.gmra.mxu1 %v2280_v58  ;;  %v1803_v31 = vpop.f32.mrf.mxu0  ;;  %2944 = vmatmul.mubr.bf16.gmra.mxu0 %v2280_v58  ;;  %v15318_v58 = vld [vmem:[#allocation119_spill] sm:$0xff]  ;;  %v15323_v34 = vld [vmem:[#allocation122_spill] sm:$0xff] }
 0x27a   : > { %v11135_v29 = vadd.f32 %v1948_v13, %v1524_v57  ;;  %v11137_v33 = vadd.f32 %v1803_v31, %v1379_v26  ;;  %8104 = vmatprep.mubr.msk.bf16.mxu1 %vm9115_vm0, %v15124_v18  ;;  %2953 = vmatprep.mubr.bf16.mxu0 %v15081_v47  ;;  %v1527_v42 = vadd.f32 %v15318_v58, %v15317_v10  ;;  %v2240_v26 = vunpack.c.l.bf16 %v10752_v43 }
 0x27b   : > { %v7974_v25 = vpop.f32.mrf.mxu1  ;;  %v1805_v30 = vpop.f32.mrf.mxu0  ;;  %v2281_v13 = vpack.c.bf16 %v2264_v38, %v2263_v35  ;;  %v2241_v31 = vunpack.c.h.bf16 %v10752_v43  ;;  %v1385_v1 = vadd.f32 %v15323_v34, %v15322_v27 }
 0x27c   : > { %15315 = vst [vmem:[#allocation16_spill] sm:$0xff] %v11135_v29  ;;  %15316 = vst [vmem:[#allocation83_spill] sm:$0xff] %v11137_v33  ;;  %v11146_v46 = vadd.f32 %v1805_v30, %v1381_v44  ;;  %v15325_v29 = vld [vmem:[#allocation49_spill] sm:$0xff]  ;;  %v15327_v30 = vld [vmem:[#allocation50_spill] sm:$0xff]  ;;  %v2265_v27 = vsub.f32 %v10733_v53, %v2240_v26 }
 0x27d   : > { %v1951_v6 = vpop.f32.mrf.mxu1  ;;  %v1807_v57 = vpop.f32.mrf.mxu0  ;;  %v1532_v44 = vadd.f32 %v15326_v15, %v15325_v29  ;;  %v15334_v53 = vld [vmem:[#allocation53_spill] sm:$0xff]  ;;  %v15335_v26 = vld [vmem:[#allocation128_spill] sm:$0xff] }
 0x27e   : > { %15321 = vst [vmem:[#allocation17_spill] sm:$0xff] %v11146_v46  ;;  %v11152_v25 = vadd.f32 %v1951_v6, %v1527_v42  ;;  %v11154_v33 = vadd.f32 %v1807_v57, %v1383_v39  ;;  %v1389_v46 = vadd.f32 %v15328_v0, %v15327_v30  ;;  %v15329_v42 = vld [vmem:[#allocation123_spill] sm:$0xff]  ;;  %v15331_v57 = vld [vmem:[#allocation126_spill] sm:$0xff] }
 0x27f   : > { %v7975_v10 = vpop.f32.mrf.mxu1  ;;  %v1809_v58 = vpop.f32.mrf.mxu0  ;;  %v2266_v6 = vsub.f32 %v15329_v42, %v2241_v31  ;;  %v15330_v39 = vld [vmem:[#allocation51_spill] sm:$0xff]  ;;  %v1393_v31 = vadd.f32 %v15335_v26, %v15334_v53  ;;  %v15338_v42 = vld [vmem:[#allocation129_spill] sm:$0xff]  ;;  %v15340_v53 = vld [vmem:[#allocation130_spill] sm:$0xff] }
 0x280   : > { %15324 = vst [vmem:[#allocation18_spill] sm:$0xff] %v11154_v33  ;;  %v11160_v35 = vadd.f32 %v1809_v58, %v1385_v1  ;;  %v1391_v34 = vadd.f32 %v15331_v57, %v15330_v39  ;;  %v15333_v58 = vld [vmem:[#allocation52_spill] sm:$0xff]  ;;  %v15342_v26 = vld [vmem:[#allocation131_spill] sm:$0xff] }
 0x281   : > { %v1956_v38 = vpop.f32.mrf.mxu1  ;;  %8105 = vmatmul.mubr.bf16.gmra.mxu1 %v2281_v13  ;;  %v1813_v43 = vpop.f32.mrf.mxu0  ;;  %2954 = vmatmul.mubr.bf16.gmra.mxu0 %v2281_v13  ;;  %v1535_v13 = vadd.f32 %v10755_v19, %v15333_v58  ;;  %v2282_v0 = vpack.c.bf16 %v2266_v6, %v2265_v27 }
 0x282   : > { %v11166_v10 = vadd.f32 %v1956_v38, %v1532_v44  ;;  %v11168_v33 = vadd.f32 %v1813_v43, %v1389_v46  ;;  %8108 = vmatprep.mubr.msk.bf16.mxu1 %vm9115_vm0, %v15124_v18  ;;  %2963 = vmatprep.mubr.bf16.mxu0 %v15081_v47  ;;  %v2242_v43 = vunpack.c.l.bf16 %v10786_v45  ;;  %v2243_v46 = vunpack.c.h.bf16 %v10786_v45  ;;  %v15337_v38 = vld [vmem:[#allocation54_spill] sm:$0xff] }
 0x283   : > { %v7978_v29 = vpop.f32.mrf.mxu1  ;;  %v1815_v1 = vpop.f32.mrf.mxu0  ;;  %v1395_v39 = vadd.f32 %v15338_v42, %v15337_v38 }
 0x284   : > { %15332 = vst [vmem:[#allocation19_spill] sm:$0xff] %v11168_v33  ;;  %v11177_v15 = vadd.f32 %v1815_v1, %v1391_v34  ;;  %v15339_v33 = vld [vmem:[#allocation55_spill] sm:$0xff]  ;;  %v15341_v1 = vld [vmem:[#allocation56_spill] sm:$0xff]  ;;  %v2267_v38 = vsub.f32 %v10769_v5, %v2242_v43  ;;  %v15350_v43 = vld [vmem:[#allocation134_spill] sm:$0xff] }
 0x285   : > { %v1959_v30 = vpop.f32.mrf.mxu1  ;;  %v1817_v44 = vpop.f32.mrf.mxu0  ;;  %v1540_v34 = vadd.f32 %v15340_v53, %v15339_v33  ;;  %v15349_v5 = vld [vmem:[#allocation59_spill] sm:$0xff] }
 0x286   : > { %15336 = vst [vmem:[#allocation20_spill] sm:$0xff] %v11177_v15  ;;  %v11183_v57 = vadd.f32 %v1959_v30, %v1535_v13  ;;  %v11185_v29 = vadd.f32 %v1817_v44, %v1393_v31  ;;  %v1399_v15 = vadd.f32 %v15342_v26, %v15341_v1  ;;  %v2268_v13 = vsub.f32 %v10771_v61, %v2243_v46  ;;  %v15343_v31 = vld [vmem:[#allocation57_spill] sm:$0xff]  ;;  %v15344_v30 = vld [vmem:[#allocation132_spill] sm:$0xff] }
 0x287   : > { %v7979_v19 = vpop.f32.mrf.mxu1  ;;  %v1819_v58 = vpop.f32.mrf.mxu0  ;;  %v1401_v44 = vadd.f32 %v15344_v30, %v15343_v31  ;;  %v1403_v61 = vadd.f32 %v15350_v43, %v15349_v5  ;;  %v15353_v31 = vld [vmem:[#allocation136_spill] sm:$0xff]  ;;  %v15356_v5 = vld [vmem:[#allocation138_spill] sm:$0xff]  ;;  %v15358_v43 = vld [vmem:[#allocation139_spill] sm:$0xff] }
 0x288   : > { %v11191_v27 = vadd.f32 %v1819_v58, %v1395_v39  ;;  %v15347_v58 = vld [vmem:[#allocation58_spill] sm:$0xff]  ;;  %v2283_v26 = vpack.c.bf16 %v2268_v13, %v2267_v38 }
 0x289   : > { %v1964_v6 = vpop.f32.mrf.mxu1  ;;  %8109 = vmatmul.mubr.bf16.gmra.mxu1 %v2282_v0  ;;  %v1823_v45 = vpop.f32.mrf.mxu0  ;;  %2964 = vmatmul.mubr.bf16.gmra.mxu0 %v2282_v0  ;;  %v15348_v0 = vld [vmem:[#allocation133_spill] sm:$0xff] }
 0x28a   : > { %v11197_v42 = vadd.f32 %v1964_v6, %v1540_v34  ;;  %v11199_v19 = vadd.f32 %v1823_v45, %v1399_v15  ;;  %8112 = vmatprep.mubr.msk.bf16.mxu1 %vm9115_vm0, %v15124_v18  ;;  %2973 = vmatprep.mubr.bf16.mxu0 %v15081_v47  ;;  %v1543_v53 = vadd.f32 %v15348_v0, %v15347_v58  ;;  %v2244_v45 = vunpack.c.l.bf16 %v10807_v3  ;;  %v15352_v6 = vld [vmem:[#allocation60_spill] sm:$0xff] }
 0x28b   : > { %v7982_v33 = vpop.f32.mrf.mxu1  ;;  %v1825_v39 = vpop.f32.mrf.mxu0  ;;  %v2245_v15 = vunpack.c.h.bf16 %v10807_v3  ;;  %v1405_v30 = vadd.f32 %v15353_v31, %v15352_v6 }
 0x28c   : > { %15345 = vst [vmem:[#allocation21_spill] sm:$0xff] %v11197_v42  ;;  %15346 = vst [vmem:[#allocation22_spill] sm:$0xff] %v11199_v19  ;;  %v11208_v46 = vadd.f32 %v1825_v39, %v1401_v44  ;;  %v15355_v42 = vld [vmem:[#allocation61_spill] sm:$0xff]  ;;  %v15357_v39 = vld [vmem:[#allocation62_spill] sm:$0xff]  ;;  %v2269_v6 = vsub.f32 %v10790_v8, %v2244_v45 }
 0x28d   : > { %v1967_v1 = vpop.f32.mrf.mxu1  ;;  %v1827_v34 = vpop.f32.mrf.mxu0  ;;  %v1548_v44 = vadd.f32 %v15356_v5, %v15355_v42  ;;  %v15366_v8 = vld [vmem:[#allocation65_spill] sm:$0xff]  ;;  %v15367_v45 = vld [vmem:[#allocation143_spill] sm:$0xff] }
 0x28e   : > { %15351 = vst [vmem:[#allocation23_spill] sm:$0xff] %v11208_v46  ;;  %v11214_v33 = vadd.f32 %v1967_v1, %v1543_v53  ;;  %v11216_v19 = vadd.f32 %v1827_v34, %v1403_v61  ;;  %v1409_v46 = vadd.f32 %v15358_v43, %v15357_v39  ;;  %v15359_v53 = vld [vmem:[#allocation137_spill] sm:$0xff]  ;;  %v15360_v61 = vld [vmem:[#allocation63_spill] sm:$0xff]  ;;  %v15361_v34 = vld [vmem:[#allocation140_spill] sm:$0xff] }
 0x28f   : > { %v7983_v58 = vpop.f32.mrf.mxu1  ;;  %v1829_v0 = vpop.f32.mrf.mxu0  ;;  %v2270_v1 = vsub.f32 %v15359_v53, %v2245_v15  ;;  %v1411_v31 = vadd.f32 %v15361_v34, %v15360_v61  ;;  %v1413_v15 = vadd.f32 %v15367_v45, %v15366_v8  ;;  %v15369_v53 = vld [vmem:[#allocation66_spill] sm:$0xff]  ;;  %v15370_v61 = vld [vmem:[#allocation144_spill] sm:$0xff]  ;;  %v15372_v8 = vld [vmem:[#allocation145_spill] sm:$0xff] }
 0x290   : > { %15354 = vst [vmem:[#allocation84_spill] sm:$0xff] %v11216_v19  ;;  %v11222_v38 = vadd.f32 %v1829_v0, %v1405_v30  ;;  %v15364_v0 = vld [vmem:[#allocation64_spill] sm:$0xff]  ;;  %v1415_v34 = vadd.f32 %v15370_v61, %v15369_v53  ;;  %v15374_v45 = vld [vmem:[#allocation146_spill] sm:$0xff] }
 0x291   : > { %v1972_v13 = vpop.f32.mrf.mxu1  ;;  %8113 = vmatmul.mubr.bf16.gmra.mxu1 %v2283_v26  ;;  %v1833_v3 = vpop.f32.mrf.mxu0  ;;  %2974 = vmatmul.mubr.bf16.gmra.mxu0 %v2283_v26  ;;  %v15365_v26 = vld [vmem:[#allocation142_spill] sm:$0xff] }
 0x292   : > { %v11228_v58 = vadd.f32 %v1972_v13, %v1548_v44  ;;  %v11230_v19 = vadd.f32 %v1833_v3, %v1409_v46  ;;  %8116 = vmatprep.mubr.msk.bf16.mxu1 %vm9115_vm0, %v15124_v18  ;;  %2983 = vmatprep.mubr.bf16.mxu0 %v15081_v47  ;;  %v1551_v5 = vadd.f32 %v15365_v26, %v15364_v0  ;;  %v2246_v3 = vunpack.c.l.bf16 %v10834_v21 }
 0x293   : > { %v7986_v42 = vpop.f32.mrf.mxu1  ;;  %v1835_v30 = vpop.f32.mrf.mxu0  ;;  %v2284_v13 = vpack.c.bf16 %v2270_v1, %v2269_v6  ;;  %v2247_v46 = vunpack.c.h.bf16 %v10834_v21 }
 0x294   : > { %15362 = vst [vmem:[#allocation24_spill] sm:$0xff] %v11228_v58  ;;  %15363 = vst [vmem:[#allocation86_spill] sm:$0xff] %v11230_v19  ;;  %v11239_v39 = vadd.f32 %v1835_v30, %v1411_v31  ;;  %v15371_v58 = vld [vmem:[#allocation67_spill] sm:$0xff]  ;;  %v15373_v30 = vld [vmem:[#allocation68_spill] sm:$0xff]  ;;  %v2271_v53 = vsub.f32 %v10823_v51, %v2246_v3 }
 0x295   : > { %v1975_v43 = vpop.f32.mrf.mxu1  ;;  %v1837_v44 = vpop.f32.mrf.mxu0  ;;  %v1556_v31 = vadd.f32 %v15372_v8, %v15371_v58 }
 0x296   : > { %15368 = vst [vmem:[#allocation25_spill] sm:$0xff] %v11239_v39  ;;  %v11245_v42 = vadd.f32 %v1975_v43, %v1551_v5  ;;  %v11247_v19 = vadd.f32 %v1837_v44, %v1413_v15  ;;  %v1419_v39 = vadd.f32 %v15374_v45, %v15373_v30  ;;  %v2272_v5 = vsub.f32 %v10825_v40, %v2247_v46  ;;  %v15375_v15 = vld [vmem:[#allocation69_spill] sm:$0xff] }
 0x297   : > { %v7987_v0 = vpop.f32.mrf.mxu1  ;;  %v1839_v26 = vpop.f32.mrf.mxu0  ;;  %v1421_v43 = vadd.f32 %v10830_v36, %v15375_v15  ;;  %v2248_v40 = vunpack.c.l.bf16 %v10861_v4 }
 0x298   : > { %v11253_v6 = vadd.f32 %v1839_v26, %v1415_v34  ;;  %v2285_v3 = vpack.c.bf16 %v2272_v5, %v2271_v53 }
 0x299   : > { %v1980_v1 = vpop.f32.mrf.mxu1  ;;  %8117 = vmatmul.mubr.bf16.gmra.mxu1 %v2284_v13  ;;  %v1843_v21 = vpop.f32.mrf.mxu0  ;;  %2984 = vmatmul.mubr.bf16.gmra.mxu0 %v2284_v13 }
 0x29a   : > { %v11259_v44 = vadd.f32 %v1980_v1, %v1556_v31  ;;  %v11261_v61 = vadd.f32 %v1843_v21, %v1419_v39  ;;  %8120 = vmatprep.mubr.msk.bf16.mxu1 %vm9115_vm0, %v15124_v18  ;;  %2993 = vmatprep.mubr.bf16.mxu0 %v15081_v47  ;;  %v2273_v39 = vsub.f32 %v10842_v12, %v2248_v40 }
 0x29b   : > { %v7990_v58 = vpop.f32.mrf.mxu1  ;;  %v1845_v34 = vpop.f32.mrf.mxu0 }
 0x29c   : > { %v11266_v0 = vadd.f32 %v1845_v34, %v1421_v43  ;;  %v2286_v15 = vpack.c.bf16 %v2273_v39, %v2273_v39  ;;  %v11313_v39 = vld [vmem:[%s9388_s10 + $0x230] ss:$12 sps:$4 sm:$0xff]  }
 0x29d   : > { %v1983_v13 = vpop.f32.mrf.mxu1  ;;  %v1847_v51 = vpop.f32.mrf.mxu0 }
 0x29e   : > { %v15376_v51 = vld [vmem:[#allocation72_spill] sm:$0xff] }
 0x29f   : > { %v7991_v46 = vpop.f32.mrf.mxu1  ;;  %v1848_v36 = vpop.f32.mrf.mxu0 }
 0x2a1   : > { %v2674_v26 = vpop.f32.mrf.mxu1  ;;  %8121 = vmatmul.mubr.bf16.gmra.mxu1 %v2285_v3  ;;  %v2513_v21 = vpop.f32.mrf.mxu0  ;;  %2994 = vmatmul.mubr.bf16.gmra.mxu0 %v2285_v3  ;;  %v15377_v3 = vld [vmem:[#allocation70_spill] sm:$0xff] }
 0x2a2   : > { %v11271_v8 = vadd.f32 %v2674_v26, %v10846_v62  ;;  %v11274_v31 = vadd.f32 %v2513_v21, %v10848_v23  ;;  %8124 = vmatprep.mubr.msk.bf16.mxu1 %vm9115_vm0, %v15124_v18  ;;  %3003 = vmatprep.mubr.bf16.mxu0 %v15081_v47  ;;  %v11310_v21 = vld [vmem:[%s9388_s10 + $0x228] ss:$12 sps:$4 sm:$0xff]  }
 0x2a3   : > { %v8010_v30 = vpop.f32.mrf.mxu1  ;;  %v2515_v45 = vpop.f32.mrf.mxu0 }
 0x2a4   : > { %v11280_v1 = vadd.f32 %v2515_v45, %v10857_v22 }
 0x2a5   : > { %v2677_v53 = vpop.f32.mrf.mxu1  ;;  %v2517_v5 = vpop.f32.mrf.mxu0 }
 0x2a6   : > { %v11283_v12 = vadd.f32 %v2677_v53, %v10867_v55  ;;  %v11286_v62 = vadd.f32 %v2517_v5, %v10869_v20  ;;  %v11319_v5 = vld [vmem:[%s9388_s10 + $0x214] ss:$12 sps:$4 sm:$0xff]  }
 0x2a7   : > { %v8011_v23 = vpop.f32.mrf.mxu1  ;;  %v2519_v43 = vpop.f32.mrf.mxu0 }
 0x2a8   : > { %v11289_v58 = vadd.f32 %v2519_v43, %v10875_v14 }
 0x2a9   : > { %v2682_v34 = vpop.f32.mrf.mxu1  ;;  %8125 = vmatmul.mubr.bf16.gmra.mxu1 %v2286_v15  ;;  %v2523_v22 = vpop.f32.mrf.mxu0  ;;  %3004 = vmatmul.mubr.bf16.gmra.mxu0 %v2286_v15 }
 0x2aa   : > { %v11292_v13 = vadd.f32 %v2682_v34, %v10883_v28  ;;  %v11295_v55 = vadd.f32 %v2523_v22, %v15376_v51  ;;  %8144 = vmatprep.mubr.msk.bf16.mxu1 %vm9115_vm0, %v15124_v18  ;;  %3383 = vmatprep.mubr.bf16.mxu0 %v15081_v47  ;;  %v11335_v34 = vld [vmem:[%s9388_s10 + $0x218] ss:$12 sps:$4 sm:$0xff]  }
 0x2ab   : > { %v8014_v20 = vpop.f32.mrf.mxu1  ;;  %v2525_v14 = vpop.f32.mrf.mxu0 }
 0x2ac   : > { %v11301_v40 = vadd.f32 %v2525_v14, %v15377_v3 }
 0x2ad   : > { %v2685_v46 = vpop.f32.mrf.mxu1  ;;  %v2527_v36 = vpop.f32.mrf.mxu0 }
 0x2ae   : > { %v11304_v26 = vadd.f32 %v2685_v46, %v10900_v56  ;;  %v11307_v28 = vadd.f32 %v2527_v36, %v10902_v54  ;;  %v15378_v56 = vld [vmem:[#allocation74_spill] sm:$0xff]  ;;  %v15379_v46 = vld [vmem:[#allocation71_spill] sm:$0xff] }
 0x2af   : > { %v8015_v30 = vpop.f32.mrf.mxu1  ;;  %v2529_v45 = vpop.f32.mrf.mxu0 }
 0x2b0   : > { %v11316_v53 = vadd.f32 %v2529_v45, %v10910_v9  ;;  %v11332_v9 = vld [vmem:[%s9388_s10 + $0x210] ss:$12 sps:$4 sm:$0xff]   ;;  %v11357_v45 = vld [vmem:[%s9388_s10 + $0x1f8] ss:$12 sps:$4 sm:$0xff]  }
 0x2b1   : > { %v2690_v15 = vpop.f32.mrf.mxu1  ;;  %8145 = vmatmul.mubr.bf16.vlgmr.msra.gmra.mxu1 %v15378_v56  ;;  %v2533_v23 = vpop.f32.mrf.mxu0  ;;  %3384 = vmatmul.mubr.bf16.vlgmr.msra.gmra.mxu0 %v15378_v56  ;;  %15380 = vst [vmem:[#allocation89_spill] sm:$0xff] %v11357_v45  ;;  %v11368_v56 = vld [vmem:[%s9388_s10 + $0x1e4] ss:$12 sps:$4 sm:$0xff]  }
 0x2b2   : > { %v11324_v54 = vadd.f32 %v2690_v15, %v10917_v52  ;;  %v11327_v43 = vadd.f32 %v2533_v23, %v10919_v41  ;;  %4142 = vmatpush1.bf16.msra.mxu0 %v11310_v21  ;;  %8197 = vmatpush3.bf16.msra.mxu1 %v11313_v39  ;;  %v11341_v52 = vld [vmem:[%s9388_s10 + $0x1fc] ss:$12 sps:$4 sm:$0xff]   ;;  %v11362_v15 = vld [vmem:[%s9388_s10 + $0x200] ss:$12 sps:$4 sm:$0xff]   ;;  %15382 = vst [vmem:[#allocation90_spill] sm:$0xff] %v11368_v56 }
 0x2b3   : > { %v8018_v22 = vpop.f32.mrf.mxu1  ;;  %v2535_v51 = vpop.f32.mrf.mxu0  ;;  %8148 = vmatprep.mubr.msk.bf16.mxu1 %vm9115_vm0, %v15124_v18  ;;  %3393 = vmatprep.mubr.bf16.mxu0 %v15081_v47  ;;  %15381 = vst [vmem:[#allocation26_spill] sm:$0xff] %v11362_v15 }
 0x2b4   : > { %v11344_v41 = vadd.f32 %v2535_v51, %v10931_v63  ;;  %4143 = vmatprep.subr.bf16.mxu0 %v11319_v5  ;;  %8198 = vmatprep.subr.bf16.mxu1 %v15124_v18  ;;  %v15383_v22 = vld [vmem:[#allocation77_spill] sm:$0xff] }
 0x2b5   : > { %v2693_v20 = vpop.f32.mrf.mxu1  ;;  %v2537_v14 = vpop.f32.mrf.mxu0 }
 0x2b6   : > { %v11349_v3 = vadd.f32 %v2693_v20, %v10938_v50  ;;  %v11352_v36 = vadd.f32 %v2537_v14, %v15379_v46  ;;  %4144 = vmatpush1.bf16.msra.mxu0 %v11332_v9  ;;  %8199 = vmatpush3.bf16.msra.mxu1 %v11335_v34 }
 0x2b7   : > { %v8019_v30 = vpop.f32.mrf.mxu1  ;;  %v2539_v63 = vpop.f32.mrf.mxu0  ;;  %4145 = vmatprep.subr.bf16.mxu0 %v11341_v52  ;;  %8200 = vmatprep.subr.bf16.mxu1 %v15124_v18 }
 0x2b8   : > { %v11365_v50 = vadd.f32 %v2539_v63, %v10949_v11  ;;  %v11384_v30 = vld [vmem:[%s9388_s10 + $0x1e0] ss:$12 sps:$4 sm:$0xff]  }
 0x2b9   : > { %v2698_v23 = vpop.f32.mrf.mxu1  ;;  %8149 = vmatmul.mubr.bf16.gmra.mxu1 %v15383_v22  ;;  %v2543_v51 = vpop.f32.mrf.mxu0  ;;  %3394 = vmatmul.mubr.bf16.gmra.mxu0 %v15383_v22  ;;  %v15386_v63 = vld [vmem:[#allocation3_spill] sm:$0xff] }
 0x2ba   : > { %v11373_v20 = vadd.f32 %v2698_v23, %v10956_v59  ;;  %v11376_v14 = vadd.f32 %v2543_v51, %v10958_v48  ;;  %8152 = vmatprep.mubr.msk.bf16.mxu1 %vm9115_vm0, %v15124_v18  ;;  %3403 = vmatprep.mubr.bf16.mxu0 %v15081_v47  ;;  %v11387_v59 = vld [vmem:[%s9388_s10 + $0x1e8] ss:$12 sps:$4 sm:$0xff]   ;;  %v11395_v23 = vld [vmem:[%s9388_s10 + $0x1cc] ss:$12 sps:$4 sm:$0xff]  }
 0x2bb   : > { %v8022_v11 = vpop.f32.mrf.mxu1  ;;  %v2545_v46 = vpop.f32.mrf.mxu0  ;;  %4146 = vmatpush1.bf16.msra.mxu0 %v11357_v45  ;;  %8201 = vmatpush3.bf16.msra.mxu1 %v11362_v15  ;;  %15385 = vst [vmem:[#allocation88_spill] sm:$0xff] %v11387_v59  ;;  %15387 = vst [vmem:[#allocation27_spill] sm:$0xff] %v11395_v23 }
 0x2bc   : > { %15384 = vst [vmem:[#allocation87_spill] sm:$0xff] %v11376_v14  ;;  %v11390_v48 = vadd.f32 %v2545_v46, %v15386_v63  ;;  %4147 = vmatprep.subr.bf16.mxu0 %v11368_v56  ;;  %8202 = vmatprep.subr.bf16.mxu1 %v15124_v18  ;;  %v11406_v46 = vld [vmem:[%s9388_s10 + $0x1c8] ss:$12 sps:$4 sm:$0xff]   ;;  %v11409_v63 = vld [vmem:[%s9388_s10 + $0x1d0] ss:$12 sps:$4 sm:$0xff]  }
 0x2bd   : > { %v2701_v22 = vpop.f32.mrf.mxu1  ;;  %v2547_v51 = vpop.f32.mrf.mxu0  ;;  %15388 = vst [vmem:[#allocation91_spill] sm:$0xff] %v11406_v46  ;;  %15389 = vst [vmem:[#allocation28_spill] sm:$0xff] %v11409_v63 }
 0x2be   : > { %v11398_v11 = vadd.f32 %v2701_v22, %v10977_v32  ;;  %v11401_v15 = vadd.f32 %v2547_v51, %v10979_v24  ;;  %v11417_v32 = vld [vmem:[%s9388_s10 + $0x1b4] ss:$12 sps:$4 sm:$0xff]  }
 0x2bf   : > { %v8023_v45 = vpop.f32.mrf.mxu1  ;;  %v2549_v14 = vpop.f32.mrf.mxu0  ;;  %4148 = vmatpush1.bf16.msra.mxu0 %v11384_v30  ;;  %8203 = vmatpush3.bf16.msra.mxu1 %v11387_v59  ;;  %15391 = vst [vmem:[#allocation29_spill] sm:$0xff] %v11417_v32 }
 0x2c0   : > { %v11412_v56 = vadd.f32 %v2549_v14, %v10987_v2  ;;  %4149 = vmatprep.subr.bf16.mxu0 %v11395_v23  ;;  %8204 = vmatprep.subr.bf16.mxu1 %v15124_v18  ;;  %v15392_v45 = vld [vmem:[#allocation82_spill] sm:$0xff] }
 0x2c1   : > { %v2706_v24 = vpop.f32.mrf.mxu1  ;;  %8153 = vmatmul.mubr.bf16.gmra.mxu1 %v15392_v45  ;;  %v2553_v22 = vpop.f32.mrf.mxu0  ;;  %3404 = vmatmul.mubr.bf16.gmra.mxu0 %v15392_v45  ;;  %v11433_v45 = vld [vmem:[%s9388_s10 + $0x1b0] ss:$12 sps:$4 sm:$0xff]  }
 0x2c2   : > { %15390 = vst [vmem:[#allocation93_spill] sm:$0xff] %v11412_v56  ;;  %v11422_v51 = vadd.f32 %v2706_v24, %v10995_v17  ;;  %v11425_v2 = vadd.f32 %v2553_v22, %v10997_v7  ;;  %8156 = vmatprep.mubr.msk.bf16.mxu1 %vm9115_vm0, %v15124_v18  ;;  %3413 = vmatprep.mubr.bf16.mxu0 %v15081_v47  ;;  %15395 = vst [vmem:[#allocation95_spill] sm:$0xff] %v11433_v45  ;;  %v11436_v17 = vld [vmem:[%s9388_s10 + $0x1b8] ss:$12 sps:$4 sm:$0xff]   ;;  %v15397_v24 = vld [vmem:[#allocation73_spill] sm:$0xff] }
 0x2c3   : > { %v8026_v14 = vpop.f32.mrf.mxu1  ;;  %v2555_v23 = vpop.f32.mrf.mxu0  ;;  %4150 = vmatpush1.bf16.msra.mxu0 %v11406_v46  ;;  %8205 = vmatpush3.bf16.msra.mxu1 %v11409_v63  ;;  %15396 = vst [vmem:[#allocation31_spill] sm:$0xff] %v11436_v17  ;;  %v11444_v22 = vld [vmem:[%s9388_s10 + $0x19c] ss:$12 sps:$4 sm:$0xff]  }
 0x2c4   : > { %15393 = vst [vmem:[#allocation94_spill] sm:$0xff] %v11422_v51  ;;  %15394 = vst [vmem:[#allocation30_spill] sm:$0xff] %v11425_v2  ;;  %v11439_v7 = vadd.f32 %v2555_v23, %v15397_v24  ;;  %4151 = vmatprep.subr.bf16.mxu0 %v11417_v32  ;;  %8206 = vmatprep.subr.bf16.mxu1 %v15124_v18  ;;  %v15401_v63 = vld [vmem:[#allocation4_spill] sm:$0xff]  ;;  %v11455_v23 = vld [vmem:[%s9388_s10 + $0x198] ss:$12 sps:$4 sm:$0xff]  }
 0x2c5   : > { %15399 = vst [vmem:[#allocation32_spill] sm:$0xff] %v11444_v22  ;;  %v2709_v14 = vpop.f32.mrf.mxu1  ;;  %v2557_v46 = vpop.f32.mrf.mxu0  ;;  %15403 = vst [vmem:[#allocation99_spill] sm:$0xff] %v11455_v23  ;;  %v11458_v24 = vld [vmem:[%s9388_s10 + $0x1a0] ss:$12 sps:$4 sm:$0xff]   ;;  %v15405_v32 = vld [vmem:[#allocation5_spill] sm:$0xff] }
 0x2c6   : > { %15398 = vst [vmem:[#allocation96_spill] sm:$0xff] %v11439_v7  ;;  %v11447_v2 = vadd.f32 %v2709_v14, %v11016_v60  ;;  %v11450_v51 = vadd.f32 %v2557_v46, %v15401_v63  ;;  %15404 = vst [vmem:[#allocation33_spill] sm:$0xff] %v11458_v24  ;;  %v11466_v60 = vld [vmem:[%s9388_s10 + $0x184] ss:$12 sps:$4 sm:$0xff]  }
 0x2c7   : > { %v8027_v56 = vpop.f32.mrf.mxu1  ;;  %v2559_v59 = vpop.f32.mrf.mxu0  ;;  %4152 = vmatpush1.bf16.msra.mxu0 %v11433_v45  ;;  %8207 = vmatpush3.bf16.msra.mxu1 %v11436_v17  ;;  %15407 = vst [vmem:[#allocation34_spill] sm:$0xff] %v11466_v60  ;;  %v15408_v46 = vld [vmem:[#allocation85_spill] sm:$0xff]  ;;  %v15409_v14 = vld [vmem:[#allocation75_spill] sm:$0xff]  ;;  %v15411_v45 = vld [vmem:[#allocation6_spill] sm:$0xff] }
 0x2c8   : > { %15400 = vst [vmem:[#allocation97_spill] sm:$0xff] %v11447_v2  ;;  %15402 = vst [vmem:[#allocation98_spill] sm:$0xff] %v11450_v51  ;;  %v11461_v7 = vadd.f32 %v2559_v59, %v15405_v32  ;;  %4153 = vmatprep.subr.bf16.mxu0 %v11444_v22  ;;  %8208 = vmatprep.subr.bf16.mxu1 %v15124_v18  ;;  %v15423_v51 = vld [vmem:[#allocation92_spill] sm:$0xff]  ;;  %v15434_v2 = vld [vmem:[#allocation103_spill] sm:$0xff] }
 0x2c9   : > { %v2714_v56 = vpop.f32.mrf.mxu1  ;;  %8157 = vmatmul.mubr.bf16.gmra.mxu1 %v15408_v46  ;;  %v2563_v63 = vpop.f32.mrf.mxu0  ;;  %3414 = vmatmul.mubr.bf16.gmra.mxu0 %v15408_v46  ;;  %v11485_v46 = vld [vmem:[%s9388_s10 + $0x188] ss:$12 sps:$4 sm:$0xff]  }
 0x2ca   : > { %15406 = vst [vmem:[#allocation100_spill] sm:$0xff] %v11461_v7  ;;  %v11471_v17 = vadd.f32 %v2714_v56, %v15409_v14  ;;  %v11474_v59 = vadd.f32 %v2563_v63, %v15411_v45  ;;  %8160 = vmatprep.mubr.msk.bf16.mxu1 %vm9115_vm0, %v15124_v18  ;;  %3423 = vmatprep.mubr.bf16.mxu0 %v15081_v47  ;;  %v11482_v7 = vld [vmem:[%s9388_s10 + $0x180] ss:$12 sps:$4 sm:$0xff]   ;;  %15414 = vst [vmem:[#allocation36_spill] sm:$0xff] %v11485_v46 }
 0x2cb   : > { %v8030_v32 = vpop.f32.mrf.mxu1  ;;  %v2565_v22 = vpop.f32.mrf.mxu0  ;;  %4154 = vmatpush1.bf16.msra.mxu0 %v11455_v23  ;;  %8209 = vmatpush3.bf16.msra.mxu1 %v11458_v24  ;;  %15413 = vst [vmem:[#allocation102_spill] sm:$0xff] %v11482_v7  ;;  %v15415_v56 = vld [vmem:[#allocation7_spill] sm:$0xff] }
 0x2cc   : > { %15410 = vst [vmem:[#allocation101_spill] sm:$0xff] %v11471_v17  ;;  %15412 = vst [vmem:[#allocation35_spill] sm:$0xff] %v11474_v59  ;;  %v11488_v14 = vadd.f32 %v2565_v22, %v15415_v56  ;;  %4155 = vmatprep.subr.bf16.mxu0 %v11466_v60  ;;  %8210 = vmatprep.subr.bf16.mxu1 %v15124_v18  ;;  %v15418_v59 = vld [vmem:[#allocation9_spill] sm:$0xff]  ;;  %v15420_v22 = vld [vmem:[#allocation10_spill] sm:$0xff] }
 0x2cd   : > { %v2717_v45 = vpop.f32.mrf.mxu1  ;;  %v2567_v63 = vpop.f32.mrf.mxu0  ;;  %v15422_v60 = vld [vmem:[#allocation8_spill] sm:$0xff] }
 0x2ce   : > { %15416 = vst [vmem:[#allocation104_spill] sm:$0xff] %v11488_v14  ;;  %v11493_v32 = vadd.f32 %v2717_v45, %v11057_v16  ;;  %v11496_v23 = vadd.f32 %v2567_v63, %v15418_v59  ;;  %v15424_v59 = vld [vmem:[#allocation11_spill] sm:$0xff]  ;;  %v15426_v45 = vld [vmem:[#allocation76_spill] sm:$0xff] }
 0x2cf   : > { %v8031_v24 = vpop.f32.mrf.mxu1  ;;  %v2569_v17 = vpop.f32.mrf.mxu0  ;;  %4156 = vmatpush1.bf16.msra.mxu0 %v11482_v7  ;;  %8211 = vmatpush3.bf16.msra.mxu1 %v11485_v46 }
 0x2d0   : > { %15417 = vst [vmem:[#allocation37_spill] sm:$0xff] %v11493_v32  ;;  %15419 = vst [vmem:[#allocation107_spill] sm:$0xff] %v11496_v23  ;;  %v11501_v56 = vadd.f32 %v2569_v17, %v15420_v22  ;;  %4513 = vmatprep.subr.bf16.mxu0 %v15422_v60  ;;  %8264 = vmatprep.subr.bf16.mxu1 %v15124_v18  ;;  %v15428_v22 = vld [vmem:[#allocation12_spill] sm:$0xff]  ;;  %v15430_v23 = vld [vmem:[#allocation13_spill] sm:$0xff] }
 0x2d1   : > { %v2722_v14 = vpop.f32.mrf.mxu1  ;;  %8161 = vmatmul.mubr.bf16.gmra.mxu1 %v15423_v51  ;;  %v2573_v16 = vpop.f32.mrf.mxu0  ;;  %3424 = vmatmul.mubr.bf16.gmra.mxu0 %v15423_v51 }
 0x2d2   : > { %15421 = vst [vmem:[#allocation38_spill] sm:$0xff] %v11501_v56  ;;  %v11508_v24 = vadd.f32 %v2722_v14, %v15424_v59  ;;  %v11511_v63 = vadd.f32 %v2573_v16, %v15426_v45  ;;  %8164 = vmatprep.mubr.msk.bf16.mxu1 %vm9115_vm0, %v15124_v18  ;;  %3433 = vmatprep.mubr.bf16.mxu0 %v15081_v47  ;;  %v15431_v14 = vld [vmem:[#allocation14_spill] sm:$0xff] }
 0x2d3   : > { %v8034_v17 = vpop.f32.mrf.mxu1  ;;  %v2575_v60 = vpop.f32.mrf.mxu0 }
 0x2d4   : > { %15425 = vst [vmem:[#allocation108_spill] sm:$0xff] %v11508_v24  ;;  %15427 = vst [vmem:[#allocation105_spill] sm:$0xff] %v11511_v63  ;;  %v11517_v56 = vadd.f32 %v2575_v60, %v15428_v22  ;;  %v15432_v63 = vld [vmem:[#allocation80_spill] sm:$0xff]  ;;  %v15435_v60 = vld [vmem:[#allocation78_spill] sm:$0xff] }
 0x2d5   : > { %v2725_v46 = vpop.f32.mrf.mxu1  ;;  %v2577_v7 = vpop.f32.mrf.mxu0 }
 0x2d6   : > { %15429 = vst [vmem:[#allocation106_spill] sm:$0xff] %v11517_v56  ;;  %v11520_v51 = vadd.f32 %v2725_v46, %v15430_v23  ;;  %v11523_v59 = vadd.f32 %v2577_v7, %v15431_v14  ;;  %v15437_v56 = vld [vmem:[#allocation79_spill] sm:$0xff] }
 0x2d7   : > { %v8035_v16 = vpop.f32.mrf.mxu1  ;;  %v2579_v45 = vpop.f32.mrf.mxu0 }
 0x2d8   : > { %v11526_v24 = vadd.f32 %v2579_v45, %v15432_v63  ;;  %v15439_v63 = vld [vmem:[#allocation15_spill] sm:$0xff] }
 0x2d9   : > { %v2730_v32 = vpop.f32.mrf.mxu1  ;;  %8165 = vmatmul.mubr.bf16.gmra.mxu1 %v15434_v2  ;;  %v2583_v17 = vpop.f32.mrf.mxu0  ;;  %3434 = vmatmul.mubr.bf16.gmra.mxu0 %v15434_v2 }
 0x2da   : > { %15433 = vst [vmem:[#allocation39_spill] sm:$0xff] %v11526_v24  ;;  %v11531_v22 = vadd.f32 %v2730_v32, %v15435_v60  ;;  %v11534_v23 = vadd.f32 %v2583_v17, %v15437_v56  ;;  %8168 = vmatprep.mubr.msk.bf16.mxu1 %vm9115_vm0, %v15124_v18  ;;  %3443 = vmatprep.mubr.bf16.mxu0 %v15081_v47  ;;  %v15441_v32 = vld [vmem:[#allocation81_spill] sm:$0xff]  ;;  %v15443_v24 = vld [vmem:[#allocation110_spill] sm:$0xff] }
 0x2db   : > { %v8038_v7 = vpop.f32.mrf.mxu1  ;;  %v2585_v46 = vpop.f32.mrf.mxu0 }
 0x2dc   : > { %15436 = vst [vmem:[#allocation109_spill] sm:$0xff] %v11531_v22  ;;  %15438 = vst [vmem:[#allocation40_spill] sm:$0xff] %v11534_v23  ;;  %v11540_v14 = vadd.f32 %v2585_v46, %v15439_v63  ;;  %v15444_v46 = vld [vmem:[#allocation16_spill] sm:$0xff] }
 0x2dd   : > { %v2733_v16 = vpop.f32.mrf.mxu1  ;;  %v2587_v45 = vpop.f32.mrf.mxu0 }
 0x2de   : > { %15440 = vst [vmem:[#allocation111_spill] sm:$0xff] %v11540_v14  ;;  %v11543_v2 = vadd.f32 %v2733_v16, %v11121_v49  ;;  %v11546_v60 = vadd.f32 %v2587_v45, %v15441_v32  ;;  %v15446_v14 = vld [vmem:[#allocation83_spill] sm:$0xff]  ;;  %v15448_v45 = vld [vmem:[#allocation17_spill] sm:$0xff] }
 0x2df   : > { %v8039_v56 = vpop.f32.mrf.mxu1  ;;  %v2589_v17 = vpop.f32.mrf.mxu0 }
 0x2e0   : > { %v11549_v23 = vadd.f32 %v2589_v17, %v11129_v37 }
 0x2e1   : > { %v2738_v22 = vpop.f32.mrf.mxu1  ;;  %8169 = vmatmul.mubr.bf16.gmra.mxu1 %v15443_v24  ;;  %v2593_v7 = vpop.f32.mrf.mxu0  ;;  %3444 = vmatmul.mubr.bf16.gmra.mxu0 %v15443_v24 }
 0x2e2   : > { %15442 = vst [vmem:[#allocation41_spill] sm:$0xff] %v11549_v23  ;;  %v11554_v63 = vadd.f32 %v2738_v22, %v15444_v46  ;;  %v11557_v49 = vadd.f32 %v2593_v7, %v15446_v14  ;;  %8172 = vmatprep.mubr.msk.bf16.mxu1 %vm9115_vm0, %v15124_v18  ;;  %3453 = vmatprep.mubr.bf16.mxu0 %v15081_v47  ;;  %v15449_v22 = vld [vmem:[#allocation18_spill] sm:$0xff]  ;;  %v15450_v23 = vld [vmem:[#allocation121_spill] sm:$0xff] }
 0x2e3   : > { %v8042_v16 = vpop.f32.mrf.mxu1  ;;  %v2595_v37 = vpop.f32.mrf.mxu0 }
 0x2e4   : > { %15445 = vst [vmem:[#allocation112_spill] sm:$0xff] %v11554_v63  ;;  %15447 = vst [vmem:[#allocation42_spill] sm:$0xff] %v11557_v49  ;;  %v11563_v32 = vadd.f32 %v2595_v37, %v15448_v45  ;;  %v15451_v45 = vld [vmem:[#allocation19_spill] sm:$0xff] }
 0x2e5   : > { %v2741_v56 = vpop.f32.mrf.mxu1  ;;  %v2597_v17 = vpop.f32.mrf.mxu0 }
 0x2e6   : > { %v11566_v24 = vadd.f32 %v2741_v56, %v11152_v25  ;;  %v11569_v46 = vadd.f32 %v2597_v17, %v15449_v22  ;;  %v15453_v17 = vld [vmem:[#allocation20_spill] sm:$0xff] }
 0x2e7   : > { %v8043_v14 = vpop.f32.mrf.mxu1  ;;  %v2599_v7 = vpop.f32.mrf.mxu0 }
 0x2e8   : > { %v11572_v49 = vadd.f32 %v2599_v7, %v11160_v35 }
 0x2e9   : > { %v2746_v63 = vpop.f32.mrf.mxu1  ;;  %8173 = vmatmul.mubr.bf16.gmra.mxu1 %v15450_v23  ;;  %v2603_v16 = vpop.f32.mrf.mxu0  ;;  %3454 = vmatmul.mubr.bf16.gmra.mxu0 %v15450_v23 }
 0x2ea   : > { %v11577_v37 = vadd.f32 %v2746_v63, %v11166_v10  ;;  %v11580_v25 = vadd.f32 %v2603_v16, %v15451_v45  ;;  %8176 = vmatprep.mubr.msk.bf16.mxu1 %vm9115_vm0, %v15124_v18  ;;  %3463 = vmatprep.mubr.bf16.mxu0 %v15081_v47 }
 0x2eb   : > { %v8046_v56 = vpop.f32.mrf.mxu1  ;;  %v2605_v35 = vpop.f32.mrf.mxu0 }
 0x2ec   : > { %15452 = vst [vmem:[#allocation113_spill] sm:$0xff] %v11580_v25  ;;  %v11586_v22 = vadd.f32 %v2605_v35, %v15453_v17  ;;  %v15458_v25 = vld [vmem:[#allocation127_spill] sm:$0xff]  ;;  %v15459_v17 = vld [vmem:[#allocation21_spill] sm:$0xff] }
 0x2ed   : > { %v2749_v14 = vpop.f32.mrf.mxu1  ;;  %v2607_v7 = vpop.f32.mrf.mxu0 }
 0x2ee   : > { %15454 = vst [vmem:[#allocation43_spill] sm:$0xff] %v11586_v22  ;;  %v11589_v23 = vadd.f32 %v2749_v14, %v11183_v57  ;;  %v11592_v10 = vadd.f32 %v2607_v7, %v11185_v29  ;;  %v15461_v57 = vld [vmem:[#allocation22_spill] sm:$0xff]  ;;  %v15463_v7 = vld [vmem:[#allocation23_spill] sm:$0xff] }
 0x2ef   : > { %v8047_v63 = vpop.f32.mrf.mxu1  ;;  %v2609_v16 = vpop.f32.mrf.mxu0 }
 0x2f0   : > { %15455 = vst [vmem:[#allocation114_spill] sm:$0xff] %v11589_v23  ;;  %15456 = vst [vmem:[#allocation44_spill] sm:$0xff] %v11592_v10  ;;  %v11595_v45 = vadd.f32 %v2609_v16, %v11191_v27  ;;  %v11612_v16 = vld [vmem:[%s9395_s14 + $0x10] sm:$0xff] }
 0x2f1   : > { %v2754_v56 = vpop.f32.mrf.mxu1  ;;  %8177 = vmatmul.mubr.bf16.gmra.mxu1 %v15458_v25  ;;  %v2613_v35 = vpop.f32.mrf.mxu0  ;;  %3464 = vmatmul.mubr.bf16.gmra.mxu0 %v15458_v25  ;;  %v11615_v10 = vld [vmem:[%s9395_s14 + $0x30] sm:$0xff] }
 0x2f2   : > { %15457 = vst [vmem:[#allocation115_spill] sm:$0xff] %v11595_v45  ;;  %v11600_v22 = vadd.f32 %v2754_v56, %v15459_v17  ;;  %v11603_v14 = vadd.f32 %v2613_v35, %v15461_v57  ;;  %8180 = vmatprep.mubr.msk.bf16.mxu1 %vm9115_vm0, %v15124_v18  ;;  %3473 = vmatprep.mubr.bf16.mxu0 %v15081_v47  ;;  %v15466_v35 = vld [vmem:[#allocation84_spill] sm:$0xff] }
 0x2f3   : > { %v8050_v29 = vpop.f32.mrf.mxu1  ;;  %v2615_v27 = vpop.f32.mrf.mxu0 }
 0x2f4   : > { %15460 = vst [vmem:[#allocation116_spill] sm:$0xff] %v11600_v22  ;;  %15462 = vst [vmem:[#allocation117_spill] sm:$0xff] %v11603_v14  ;;  %v11609_v63 = vadd.f32 %v2615_v27, %v15463_v7  ;;  %v3773_v29 = vmul.f32 0.70710677, %v11612_v16  ;;  %v3774_v27 = vmul.f32 0.70710677, %v11615_v10 }
 0x2f5   : > { %v2757_v45 = vpop.f32.mrf.mxu1  ;;  %v2617_v25 = vpop.f32.mrf.mxu0 }
 0x2f6   : > { %15464 = vst [vmem:[#allocation45_spill] sm:$0xff] %v11609_v63  ;;  %v11618_v56 = vadd.f32 %v2757_v45, %v11214_v33  ;;  %v11621_v17 = vadd.f32 %v2617_v25, %v15466_v35  ;;  %v15469_v63 = vld [vmem:[#allocation135_spill] sm:$0xff]  ;;  %v15470_v33 = vld [vmem:[#allocation24_spill] sm:$0xff]  ;;  %v15471_v25 = vld [vmem:[#allocation86_spill] sm:$0xff]  ;;  %8990 = verf.f32 %v3773_v29 }
 0x2f7   : > { %v8051_v57 = vpop.f32.mrf.mxu1  ;;  %v2619_v14 = vpop.f32.mrf.mxu0  ;;  %8992 = verf.f32 %v3774_v27 }
 0x2f8   : > { %15465 = vst [vmem:[#allocation118_spill] sm:$0xff] %v11618_v56  ;;  %15467 = vst [vmem:[#allocation46_spill] sm:$0xff] %v11621_v17  ;;  %v11625_v22 = vadd.f32 %v2619_v14, %v11222_v38  ;;  %v15472_v57 = vld [vmem:[#allocation25_spill] sm:$0xff] }
 0x2f9   : > { %v2762_v7 = vpop.f32.mrf.mxu1  ;;  %8181 = vmatmul.mubr.bf16.gmra.mxu1 %v15469_v63  ;;  %v2623_v23 = vpop.f32.mrf.mxu0  ;;  %3474 = vmatmul.mubr.bf16.gmra.mxu0 %v15469_v63  ;;  %v11643_v56 = vld [vmem:[%s9395_s14 + $0x50] sm:$0xff] }
 0x2fa   : > { %15468 = vst [vmem:[#allocation119_spill] sm:$0xff] %v11625_v22  ;;  %v11631_v45 = vadd.f32 %v2762_v7, %v15470_v33  ;;  %v11634_v35 = vadd.f32 %v2623_v23, %v15471_v25  ;;  %8184 = vmatprep.mubr.msk.bf16.mxu1 %vm9115_vm0, %v15124_v18  ;;  %3483 = vmatprep.mubr.bf16.mxu0 %v15081_v47  ;;  %v11652_v33 = vld [vmem:[%s9395_s14 + $0x70] sm:$0xff]  ;;  %v3775_v27 = vmul.f32 0.70710677, %v11643_v56 }
 0x2fb   : > { %v8054_v38 = vpop.f32.mrf.mxu1  ;;  %v2625_v14 = vpop.f32.mrf.mxu0 }
 0x2fc   : > { %v11640_v22 = vadd.f32 %v2625_v14, %v15472_v57  ;;  %v15477_v57 = vld [vmem:[#allocation141_spill] sm:$0xff]  ;;  %8994 = verf.f32 %v3775_v27 }
 0x2fd   : > { %v2765_v17 = vpop.f32.mrf.mxu1  ;;  %v2627_v63 = vpop.f32.mrf.mxu0 }
 0x2fe   : > { %15473 = vst [vmem:[#allocation47_spill] sm:$0xff] %v11640_v22  ;;  %v11646_v7 = vadd.f32 %v2765_v17, %v11245_v42  ;;  %v11649_v23 = vadd.f32 %v2627_v63, %v11247_v19  ;;  %v3776_v19 = vmul.f32 0.70710677, %v11652_v33 }
 0x2ff   : > { %v8055_v25 = vpop.f32.mrf.mxu1  ;;  %v2629_v38 = vpop.f32.mrf.mxu0 }
 0x300   : > { %15474 = vst [vmem:[#allocation120_spill] sm:$0xff] %v11646_v7  ;;  %15475 = vst [vmem:[#allocation48_spill] sm:$0xff] %v11649_v23  ;;  %v11655_v29 = vadd.f32 %v2629_v38, %v11253_v6  ;;  %v11674_v38 = vld [vmem:[%s9395_s14 + $0x90] sm:$0xff]  ;;  %8996 = verf.f32 %v3776_v19  ;;  %v15480_v7 = vld [vmem:[#allocation147_spill] sm:$0xff] }
 0x301   : > { %v2770_v14 = vpop.f32.mrf.mxu1  ;;  %8185 = vmatmul.mubr.bf16.gmra.mxu1 %v15477_v57  ;;  %v2633_v22 = vpop.f32.mrf.mxu0  ;;  %3484 = vmatmul.mubr.bf16.gmra.mxu0 %v15477_v57 }
 0x302   : > { %15476 = vst [vmem:[#allocation122_spill] sm:$0xff] %v11655_v29  ;;  %v11662_v42 = vadd.f32 %v2770_v14, %v11259_v44  ;;  %v11665_v17 = vadd.f32 %v2633_v22, %v11261_v61  ;;  %8188 = vmatprep.mubr.msk.bf16.mxu1 %vm9115_vm0, %v15124_v18  ;;  %3493 = vmatprep.mubr.bf16.mxu0 %v15081_v47  ;;  %v11677_v44 = vld [vmem:[%s9395_s14 + $0xb0] sm:$0xff]  ;;  %v3777_v14 = vmul.f32 0.70710677, %v11674_v38 }
 0x303   : > { %v8058_v6 = vpop.f32.mrf.mxu1  ;;  %v2635_v63 = vpop.f32.mrf.mxu0 }
 0x304   : > { %15478 = vst [vmem:[#allocation49_spill] sm:$0xff] %v11662_v42  ;;  %15479 = vst [vmem:[#allocation124_spill] sm:$0xff] %v11665_v17  ;;  %v11671_v25 = vadd.f32 %v2635_v63, %v11266_v0  ;;  %v8991_v17 = vpop.eup %8990  ;;  %v3778_v42 = vmul.f32 0.70710677, %v11677_v44  ;;  %8998 = verf.f32 %v3777_v14 }
 0x305   : > { %v2773_v57 = vpop.f32.mrf.mxu1  ;;  %v2637_v29 = vpop.f32.mrf.mxu0 }
 0x306   : > { %v8993_v6 = vpop.eup %8992  ;;  %v3748_v57 = vmul.f32 0.5, %v11612_v16  ;;  %9000 = verf.f32 %v3778_v42  ;;  %v11707_v16 = vld [vmem:[%s9395_s14 + $0xf0] sm:$0xff] }
 0x307   : > { %v8059_v61 = vpop.f32.mrf.mxu1  ;;  %v2638_v22 = vpop.f32.mrf.mxu0 }
 0x308   : > { %v3749_v61 = vmul.f32 0.5, %v11615_v10 }
 0x309   : > { %v3046_v23 = vpop.f32.mrf.mxu1  ;;  %8189 = vmatmul.mubr.bf16.gmra.mxu1 %v15480_v7  ;;  %v2885_v0 = vpop.f32.mrf.mxu0  ;;  %3494 = vmatmul.mubr.bf16.gmra.mxu0 %v15480_v7 }
 0x30a   : > { %v11684_v29 = vadd.f32 %v3046_v23, %v11271_v8  ;;  %v11687_v27 = vadd.f32 %v2885_v0, %v11274_v31  ;;  %8192 = vmatprep.mubr.msk.bf16.mxu1 %vm9115_vm0, %v15124_v18  ;;  %3503 = vmatprep.mubr.bf16.mxu0 %v15081_v47  ;;  %v3823_v8 = vadd.f32 1.0, %v8991_v17  ;;  %v3824_v23 = vadd.f32 1.0, %v8993_v6  ;;  %v11698_v0 = vld [vmem:[%s9395_s14 + $0xd0] sm:$0xff] }
 0x30b   : > { %v8078_v19 = vpop.f32.mrf.mxu1  ;;  %v2887_v63 = vpop.f32.mrf.mxu0  ;;  %v3779_v6 = vmul.f32 0.70710677, %v11698_v0 }
 0x30c   : > { %15481 = vst [vmem:[#allocation50_spill] sm:$0xff] %v11687_v27  ;;  %v11695_v7 = vadd.f32 %v2887_v63, %v11280_v1  ;;  %v11712_v17 = vmul.f32 %v3823_v8, %v3748_v57  ;;  %v11714_v42 = vmul.f32 %v3824_v23, %v3749_v61  ;;  %v8995_v63 = vpop.eup %8994 }
 0x30d   : > { %v3049_v31 = vpop.f32.mrf.mxu1  ;;  %v2889_v22 = vpop.f32.mrf.mxu0  ;;  %9002 = verf.f32 %v3779_v6 }
 0x30e   : > { %15482 = vst [vmem:[#allocation125_spill] sm:$0xff] %v11695_v7  ;;  %v11701_v27 = vadd.f32 %v3049_v31, %v11283_v12  ;;  %v11704_v19 = vadd.f32 %v2889_v22, %v11286_v62  ;;  %v3780_v62 = vmul.f32 0.70710677, %v11707_v16  ;;  %v8997_v31 = vpop.eup %8996 }
 0x30f   : > { %v8079_v10 = vpop.f32.mrf.mxu1  ;;  %v2891_v14 = vpop.f32.mrf.mxu0 }
 0x310   : > { %v11710_v1 = vadd.f32 %v2891_v14, %v11289_v58  ;;  %v3751_v10 = vmul.f32 0.5, %v11652_v33  ;;  %v3825_v14 = vadd.f32 1.0, %v8995_v63  ;;  %9004 = verf.f32 %v3780_v62 }
 0x311   : > { %v3054_v7 = vpop.f32.mrf.mxu1  ;;  %8193 = vmatmul.mubr.bf16.gmra.mxu1 %v10861_v4  ;;  %v2895_v12 = vpop.f32.mrf.mxu0  ;;  %3504 = vmatmul.mubr.bf16.gmra.mxu0 %v10861_v4  ;;  %v11734_v4 = vpack.c.bf16 %v11714_v42, %v11712_v17 }
 0x312   : > { %v11721_v58 = vadd.f32 %v3054_v7, %v11292_v13  ;;  %v11724_v57 = vadd.f32 %v2895_v12, %v11295_v55  ;;  %8212 = vmatprep.mubr.msk.bf16.mxu1 %vm9115_vm0, %v15124_v18  ;;  %4173 = vmatprep.mubr.bf16.mxu0 %v15081_v47  ;;  %v3750_v13 = vmul.f32 0.5, %v11643_v56  ;;  %v11738_v55 = vld [vmem:[%s9395_s14 + $0x110] sm:$0xff]  ;;  %v3826_v12 = vadd.f32 1.0, %v8997_v31 }
 0x313   : > { %v8082_v61 = vpop.f32.mrf.mxu1  ;;  %v2897_v8 = vpop.f32.mrf.mxu0  ;;  %15486 = vst [vmem:[#allocation52_spill] sm:$0xff] %v11734_v4  ;;  %v3781_v6 = vmul.f32 0.70710677, %v11738_v55 }
 0x314   : > { %15483 = vst [vmem:[#allocation123_spill] sm:$0xff] %v11721_v58  ;;  %15484 = vst [vmem:[#allocation51_spill] sm:$0xff] %v11724_v57  ;;  %v11730_v23 = vadd.f32 %v2897_v8, %v11301_v40  ;;  %v11742_v61 = vld [vmem:[%s9395_s14 + $0x130] sm:$0xff]  ;;  %v8999_v57 = vpop.eup %8998 }
 0x315   : > { %v3057_v7 = vpop.f32.mrf.mxu1  ;;  %v2899_v22 = vpop.f32.mrf.mxu0  ;;  %v3782_v33 = vmul.f32 0.70710677, %v11742_v61  ;;  %9006 = verf.f32 %v3781_v6 }
 0x316   : > { %15485 = vst [vmem:[#allocation126_spill] sm:$0xff] %v11730_v23  ;;  %v11745_v40 = vadd.f32 %v3057_v7, %v11304_v26  ;;  %v11748_v8 = vadd.f32 %v2899_v22, %v11307_v28  ;;  %v9001_v63 = vpop.eup %9000  ;;  %v11757_v26 = vmul.f32 %v3825_v14, %v3750_v13  ;;  %v11759_v28 = vmul.f32 %v3826_v12, %v3751_v10 }
 0x317   : > { %v8083_v23 = vpop.f32.mrf.mxu1  ;;  %v2901_v56 = vpop.f32.mrf.mxu0  ;;  %v3752_v13 = vmul.f32 0.5, %v11674_v38  ;;  %9008 = verf.f32 %v3782_v33  ;;  %v11784_v38 = vld [vmem:[%s9395_s14 + $0x150] sm:$0xff] }
 0x318   : > { %v11752_v58 = vadd.f32 %v2901_v56, %v11316_v53  ;;  %v11781_v12 = vpack.c.bf16 %v11759_v28, %v11757_v26 }
 0x319   : > { %v3062_v62 = vpop.f32.mrf.mxu1  ;;  %8213 = vmatmul.mubr.bf16.vlgmr.msra.gmra.mxu1 %v11734_v4  ;;  %v2905_v31 = vpop.f32.mrf.mxu0  ;;  %4174 = vmatmul.mubr.bf16.vlgmr.msra.gmra.mxu0 %v11734_v4 }
 0x31a   : > { %v11762_v23 = vadd.f32 %v3062_v62, %v11324_v54  ;;  %v11765_v7 = vadd.f32 %v2905_v31, %v11327_v43  ;;  %4514 = vmatpush1.bf16.msra.mxu0 %v11310_v21  ;;  %8265 = vmatpush3.bf16.msra.mxu1 %v11313_v39  ;;  %v3753_v54 = vmul.f32 0.5, %v11677_v44  ;;  %v3827_v21 = vadd.f32 1.0, %v8999_v57  ;;  %15487 = vst [vmem:[#allocation53_spill] sm:$0xff] %v11781_v12  ;;  %v15488_v31 = vld [vmem:[#allocation87_spill] sm:$0xff] }
 0x31b   : > { %v8086_v53 = vpop.f32.mrf.mxu1  ;;  %v2907_v22 = vpop.f32.mrf.mxu0  ;;  %8216 = vmatprep.mubr.msk.bf16.mxu1 %vm9115_vm0, %v15124_v18  ;;  %4183 = vmatprep.mubr.bf16.mxu0 %v15081_v47  ;;  %v3828_v39 = vadd.f32 1.0, %v9001_v63 }
 0x31c   : > { %v11775_v43 = vadd.f32 %v2907_v22, %v11344_v41  ;;  %4515 = vmatprep.subr.bf16.mxu0 %v11319_v5  ;;  %8266 = vmatprep.subr.bf16.mxu1 %v15124_v18  ;;  %v11795_v5 = vld [vmem:[%s9395_s14 + $0x170] sm:$0xff] }
 0x31d   : > { %v3065_v10 = vpop.f32.mrf.mxu1  ;;  %v2909_v14 = vpop.f32.mrf.mxu0  ;;  %v11804_v33 = vmul.f32 %v3828_v39, %v3753_v54  ;;  %v15490_v54 = vld [vmem:[#allocation89_spill] sm:$0xff] }
 0x31e   : > { %v11787_v44 = vadd.f32 %v3065_v10, %v11349_v3  ;;  %v11790_v41 = vadd.f32 %v2909_v14, %v11352_v36  ;;  %4516 = vmatpush1.bf16.msra.mxu0 %v11332_v9  ;;  %8267 = vmatpush3.bf16.msra.mxu1 %v11335_v34  ;;  %v11802_v3 = vmul.f32 %v3827_v21, %v3752_v13  ;;  %v3783_v36 = vmul.f32 0.70710677, %v11784_v38  ;;  %v9003_v9 = vpop.eup %9002  ;;  %v15491_v21 = vld [vmem:[#allocation26_spill] sm:$0xff] }
 0x31f   : > { %v8087_v57 = vpop.f32.mrf.mxu1  ;;  %v2911_v56 = vpop.f32.mrf.mxu0  ;;  %4517 = vmatprep.subr.bf16.mxu0 %v11341_v52  ;;  %8268 = vmatprep.subr.bf16.mxu1 %v15124_v18  ;;  %v3784_v52 = vmul.f32 0.70710677, %v11795_v5  ;;  %v3754_v10 = vmul.f32 0.5, %v11698_v0  ;;  %v15494_v14 = vld [vmem:[#allocation90_spill] sm:$0xff] }
 0x320   : > { %v11800_v6 = vadd.f32 %v2911_v56, %v11365_v50  ;;  %v9005_v62 = vpop.eup %9004  ;;  %9010 = verf.f32 %v3783_v36  ;;  %v11832_v57 = vld [vmem:[%s9395_s14 + $0x190] sm:$0xff] }
 0x321   : > { %v3070_v63 = vpop.f32.mrf.mxu1  ;;  %8217 = vmatmul.mubr.bf16.gmra.mxu1 %v11781_v12  ;;  %v2915_v34 = vpop.f32.mrf.mxu0  ;;  %4184 = vmatmul.mubr.bf16.gmra.mxu0 %v11781_v12  ;;  %9012 = verf.f32 %v3784_v52 }
 0x322   : > { %v11811_v50 = vadd.f32 %v3070_v63, %v11373_v20  ;;  %v11814_v53 = vadd.f32 %v2915_v34, %v15488_v31  ;;  %8220 = vmatprep.mubr.msk.bf16.mxu1 %vm9115_vm0, %v15124_v18  ;;  %4193 = vmatprep.mubr.bf16.mxu0 %v15081_v47  ;;  %v11826_v20 = vpack.c.bf16 %v11804_v33, %v11802_v3  ;;  %v3755_v34 = vmul.f32 0.5, %v11707_v16  ;;  %v9007_v16 = vpop.eup %9006 }
 0x323   : > { %v8090_v22 = vpop.f32.mrf.mxu1  ;;  %v2917_v13 = vpop.f32.mrf.mxu0  ;;  %4518 = vmatpush1.bf16.msra.mxu0 %v15490_v54  ;;  %8269 = vmatpush3.bf16.msra.mxu1 %v15491_v21  ;;  %v3829_v31 = vadd.f32 1.0, %v9003_v9  ;;  %v15497_v21 = vld [vmem:[#allocation88_spill] sm:$0xff]  ;;  %v15498_v9 = vld [vmem:[#allocation93_spill] sm:$0xff] }
 0x324   : > { %15489 = vst [vmem:[#allocation128_spill] sm:$0xff] %v11814_v53  ;;  %v11822_v39 = vadd.f32 %v2917_v13, %v11390_v48  ;;  %15493 = vst [vmem:[#allocation129_spill] sm:$0xff] %v11826_v20  ;;  %4519 = vmatprep.subr.bf16.mxu0 %v15494_v14  ;;  %8270 = vmatprep.subr.bf16.mxu1 %v15124_v18  ;;  %v3830_v48 = vadd.f32 1.0, %v9005_v62  ;;  %v11836_v22 = vld [vmem:[%s9395_s14 + $0x1b0] sm:$0xff]  ;;  %v3785_v14 = vmul.f32 0.70710677, %v11832_v57 }
 0x325   : > { %v3073_v56 = vpop.f32.mrf.mxu1  ;;  %v2919_v63 = vpop.f32.mrf.mxu0  ;;  %v3786_v52 = vmul.f32 0.70710677, %v11836_v22  ;;  %v15537_v53 = vld [vmem:[#allocation36_spill] sm:$0xff] }
 0x326   : > { %15492 = vst [vmem:[#allocation54_spill] sm:$0xff] %v11822_v39  ;;  %v11839_v13 = vadd.f32 %v3073_v56, %v11398_v11  ;;  %v11842_v0 = vadd.f32 %v2919_v63, %v11401_v15  ;;  %v15500_v39 = vld [vmem:[#allocation27_spill] sm:$0xff]  ;;  %v9009_v15 = vpop.eup %9008  ;;  %v11857_v63 = vmul.f32 %v3830_v48, %v3755_v34  ;;  %9014 = verf.f32 %v3785_v14  ;;  %v15509_v48 = vld [vmem:[#allocation96_spill] sm:$0xff]  ;;  %v11882_v14 = vld [vmem:[%s9395_s14 + $0x1d0] sm:$0xff] }
 0x327   : > { %v8091_v36 = vpop.f32.mrf.mxu1  ;;  %v2921_v54 = vpop.f32.mrf.mxu0  ;;  %4520 = vmatpush1.bf16.msra.mxu0 %v11384_v30  ;;  %8271 = vmatpush3.bf16.msra.mxu1 %v15497_v21  ;;  %v11855_v30 = vmul.f32 %v3829_v31, %v3754_v10  ;;  %v15505_v21 = vld [vmem:[#allocation30_spill] sm:$0xff]  ;;  %v3757_v10 = vmul.f32 0.5, %v11742_v61  ;;  %v15507_v34 = vld [vmem:[#allocation91_spill] sm:$0xff]  ;;  %v15508_v31 = vld [vmem:[#allocation28_spill] sm:$0xff]  ;;  %9016 = verf.f32 %v3786_v52 }
 0x328   : > { %15495 = vst [vmem:[#allocation55_spill] sm:$0xff] %v11839_v13  ;;  %15496 = vst [vmem:[#allocation130_spill] sm:$0xff] %v11842_v0  ;;  %v11848_v62 = vadd.f32 %v2921_v54, %v15498_v9  ;;  %4521 = vmatprep.subr.bf16.mxu0 %v15500_v39  ;;  %8272 = vmatprep.subr.bf16.mxu1 %v15124_v18  ;;  %v15503_v36 = vld [vmem:[#allocation94_spill] sm:$0xff]  ;;  %v3756_v0 = vmul.f32 0.5, %v11738_v55 }
 0x329   : > { %v3078_v11 = vpop.f32.mrf.mxu1  ;;  %8221 = vmatmul.mubr.bf16.gmra.mxu1 %v11826_v20  ;;  %v2925_v56 = vpop.f32.mrf.mxu0  ;;  %4194 = vmatmul.mubr.bf16.gmra.mxu0 %v11826_v20  ;;  %15501 = vst [vmem:[#allocation131_spill] sm:$0xff] %v11855_v30  ;;  %15502 = vst [vmem:[#allocation57_spill] sm:$0xff] %v11857_v63  ;;  %v11879_v61 = vpack.c.bf16 %v11857_v63, %v11855_v30 }
 0x32a   : > { %15499 = vst [vmem:[#allocation56_spill] sm:$0xff] %v11848_v62  ;;  %v11860_v54 = vadd.f32 %v3078_v11, %v15503_v36  ;;  %v11863_v9 = vadd.f32 %v2925_v56, %v15505_v21  ;;  %8224 = vmatprep.mubr.msk.bf16.mxu1 %vm9115_vm0, %v15124_v18  ;;  %4203 = vmatprep.mubr.bf16.mxu0 %v15081_v47  ;;  %v3831_v56 = vadd.f32 1.0, %v9007_v16  ;;  %v3832_v36 = vadd.f32 1.0, %v9009_v15  ;;  %v15511_v21 = vld [vmem:[#allocation29_spill] sm:$0xff] }
 0x32b   : > { %v8094_v39 = vpop.f32.mrf.mxu1  ;;  %v2927_v62 = vpop.f32.mrf.mxu0  ;;  %4522 = vmatpush1.bf16.msra.mxu0 %v15507_v34  ;;  %8273 = vmatpush3.bf16.msra.mxu1 %v15508_v31  ;;  %15512 = vst [vmem:[#allocation59_spill] sm:$0xff] %v11879_v61  ;;  %v15513_v34 = vld [vmem:[#allocation97_spill] sm:$0xff] }
 0x32c   : > { %15504 = vst [vmem:[#allocation132_spill] sm:$0xff] %v11860_v54  ;;  %15506 = vst [vmem:[#allocation58_spill] sm:$0xff] %v11863_v9  ;;  %v11873_v11 = vadd.f32 %v2927_v62, %v15509_v48  ;;  %4523 = vmatprep.subr.bf16.mxu0 %v15511_v21  ;;  %8274 = vmatprep.subr.bf16.mxu1 %v15124_v18  ;;  %v15515_v62 = vld [vmem:[#allocation98_spill] sm:$0xff]  ;;  %v11891_v16 = vld [vmem:[%s9395_s14 + $0x1f0] sm:$0xff]  ;;  %v11898_v63 = vmul.f32 %v3831_v56, %v3756_v0 }
 0x32d   : > { %v3081_v39 = vpop.f32.mrf.mxu1  ;;  %v2929_v55 = vpop.f32.mrf.mxu0  ;;  %v15517_v21 = vld [vmem:[#allocation95_spill] sm:$0xff]  ;;  %v15519_v9 = vld [vmem:[#allocation100_spill] sm:$0xff]  ;;  %v11900_v30 = vmul.f32 %v3832_v36, %v3757_v10 }
 0x32e   : > { %15510 = vst [vmem:[#allocation133_spill] sm:$0xff] %v11873_v11  ;;  %v11885_v31 = vadd.f32 %v3081_v39, %v15513_v34  ;;  %v11888_v48 = vadd.f32 %v2929_v55, %v15515_v62  ;;  %v15518_v11 = vld [vmem:[#allocation31_spill] sm:$0xff]  ;;  %15521 = vst [vmem:[#allocation61_spill] sm:$0xff] %v11898_v63  ;;  %v3787_v39 = vmul.f32 0.70710677, %v11882_v14  ;;  %v15523_v34 = vld [vmem:[#allocation32_spill] sm:$0xff]  ;;  %v9011_v55 = vpop.eup %9010 }
 0x32f   : > { %v8095_v52 = vpop.f32.mrf.mxu1  ;;  %v2931_v15 = vpop.f32.mrf.mxu0  ;;  %4524 = vmatpush1.bf16.msra.mxu0 %v15517_v21  ;;  %8275 = vmatpush3.bf16.msra.mxu1 %v15518_v11  ;;  %15522 = vst [vmem:[#allocation138_spill] sm:$0xff] %v11900_v30  ;;  %v15524_v11 = vld [vmem:[#allocation101_spill] sm:$0xff]  ;;  %v15526_v56 = vld [vmem:[#allocation35_spill] sm:$0xff] }
 0x330   : > { %15514 = vst [vmem:[#allocation134_spill] sm:$0xff] %v11885_v31  ;;  %15516 = vst [vmem:[#allocation60_spill] sm:$0xff] %v11888_v48  ;;  %v11896_v54 = vadd.f32 %v2931_v15, %v15519_v9  ;;  %4525 = vmatprep.subr.bf16.mxu0 %v15523_v34  ;;  %8276 = vmatprep.subr.bf16.mxu1 %v15124_v18  ;;  %v3788_v9 = vmul.f32 0.70710677, %v11891_v16  ;;  %v9013_v0 = vpop.eup %9012  ;;  %v15528_v34 = vld [vmem:[#allocation99_spill] sm:$0xff]  ;;  %v15530_v48 = vld [vmem:[#allocation104_spill] sm:$0xff]  ;;  %9018 = verf.f32 %v3787_v39 }
 0x331   : > { %v3086_v62 = vpop.f32.mrf.mxu1  ;;  %8225 = vmatmul.mubr.bf16.gmra.mxu1 %v11879_v61  ;;  %v2935_v52 = vpop.f32.mrf.mxu0  ;;  %4204 = vmatmul.mubr.bf16.gmra.mxu0 %v11879_v61  ;;  %v15536_v61 = vld [vmem:[#allocation102_spill] sm:$0xff] }
 0x332   : > { %15520 = vst [vmem:[#allocation136_spill] sm:$0xff] %v11896_v54  ;;  %v11909_v10 = vadd.f32 %v3086_v62, %v15524_v11  ;;  %v11912_v36 = vadd.f32 %v2935_v52, %v15526_v56  ;;  %8228 = vmatprep.mubr.msk.bf16.mxu1 %vm9115_vm0, %v15124_v18  ;;  %4213 = vmatprep.mubr.bf16.mxu0 %v15081_v47  ;;  %v15529_v54 = vld [vmem:[#allocation33_spill] sm:$0xff]  ;;  %v3758_v52 = vmul.f32 0.5, %v11784_v38  ;;  %v15533_v56 = vld [vmem:[#allocation34_spill] sm:$0xff]  ;;  %9020 = verf.f32 %v3788_v9  ;;  %v15535_v38 = vld [vmem:[#allocation107_spill] sm:$0xff] }
 0x333   : > { %v8098_v15 = vpop.f32.mrf.mxu1  ;;  %v2937_v21 = vpop.f32.mrf.mxu0  ;;  %4526 = vmatpush1.bf16.msra.mxu0 %v15528_v34  ;;  %8277 = vmatpush3.bf16.msra.mxu1 %v15529_v54  ;;  %v11924_v62 = vpack.c.bf16 %v11900_v30, %v11898_v63  ;;  %v11928_v11 = vld [vmem:[%s9395_s14 + $0x210] sm:$0xff]  ;;  %v3759_v54 = vmul.f32 0.5, %v11795_v5 }
 0x334   : > { %15525 = vst [vmem:[#allocation62_spill] sm:$0xff] %v11909_v10  ;;  %15527 = vst [vmem:[#allocation139_spill] sm:$0xff] %v11912_v36  ;;  %v11920_v31 = vadd.f32 %v2937_v21, %v15530_v48  ;;  %4527 = vmatprep.subr.bf16.mxu0 %v15533_v56  ;;  %8278 = vmatprep.subr.bf16.mxu1 %v15124_v18  ;;  %v8796_v15 = vld [vmem:[%s9393_s13 + $0x22c] ss:$12 sps:$4 sm:$0xff]   ;;  %v3833_v48 = vadd.f32 1.0, %v9011_v55  ;;  %v3834_v21 = vadd.f32 1.0, %v9013_v0  ;;  %v9015_v5 = vpop.eup %9014 }
 0x335   : > { %15532 = vst [vmem:[#allocation63_spill] sm:$0xff] %v11924_v62  ;;  %v3089_v34 = vpop.f32.mrf.mxu1  ;;  %v2939_v36 = vpop.f32.mrf.mxu0  ;;  %v15534_v10 = vld [vmem:[#allocation37_spill] sm:$0xff]  ;;  %v3789_v13 = vmul.f32 0.70710677, %v11928_v11  ;;  %v15538_v55 = vld [vmem:[#allocation38_spill] sm:$0xff] }
 0x336   : > { %15531 = vst [vmem:[#allocation137_spill] sm:$0xff] %v11920_v31  ;;  %v11935_v31 = vld [vmem:[%s9395_s14 + $0x230] sm:$0xff]  ;;  %v11938_v30 = vadd.f32 %v3089_v34, %v15534_v10  ;;  %v11941_v39 = vadd.f32 %v2939_v36, %v15535_v38  ;;  %v9017_v10 = vpop.eup %9016  ;;  %v11953_v34 = vmul.f32 %v3833_v48, %v3758_v52  ;;  %v3760_v52 = vmul.f32 0.5, %v11832_v57  ;;  %v15546_v48 = vld [vmem:[#allocation106_spill] sm:$0xff] }
 0x337   : > { %v8099_v63 = vpop.f32.mrf.mxu1  ;;  %v2941_v56 = vpop.f32.mrf.mxu0  ;;  %4528 = vmatpush1.bf16.msra.mxu0 %v15536_v61  ;;  %8279 = vmatpush3.bf16.msra.mxu1 %v15537_v53  ;;  %v3790_v9 = vmul.f32 0.70710677, %v11935_v31  ;;  %v11955_v61 = vmul.f32 %v3834_v21, %v3759_v54  ;;  %v15542_v53 = vld [vmem:[#allocation108_spill] sm:$0xff]  ;;  %v3761_v54 = vmul.f32 0.5, %v11836_v22  ;;  %9022 = verf.f32 %v3789_v13  ;;  %v11985_v22 = vld [vmem:[%s9395_s14 + $0x270] sm:$0xff] }
 0x338   : > { %v11947_v0 = vadd.f32 %v2941_v56, %v15538_v55  ;;  %5013 = vmatprep.subr.bf16.mxu0 %v8796_v15  ;;  %8332 = vmatprep.subr.bf16.mxu1 %v15124_v18  ;;  %15540 = vst [vmem:[#allocation64_spill] sm:$0xff] %v11953_v34  ;;  %v15544_v56 = vld [vmem:[#allocation105_spill] sm:$0xff] }
 0x339   : > { %v3094_v36 = vpop.f32.mrf.mxu1  ;;  %8229 = vmatmul.mubr.bf16.gmra.mxu1 %v11924_v62  ;;  %v2945_v63 = vpop.f32.mrf.mxu0  ;;  %4214 = vmatmul.mubr.bf16.gmra.mxu0 %v11924_v62  ;;  %15541 = vst [vmem:[#allocation142_spill] sm:$0xff] %v11955_v61  ;;  %9024 = verf.f32 %v3790_v9 }
 0x33a   : > { %15539 = vst [vmem:[#allocation140_spill] sm:$0xff] %v11947_v0  ;;  %v11958_v38 = vadd.f32 %v3094_v36, %v15542_v53  ;;  %v11961_v55 = vadd.f32 %v2945_v63, %v15544_v56  ;;  %8232 = vmatprep.mubr.msk.bf16.mxu1 %vm9115_vm0, %v15124_v18  ;;  %4223 = vmatprep.mubr.bf16.mxu0 %v15081_v47  ;;  %v3835_v36 = vadd.f32 1.0, %v9015_v5  ;;  %v3836_v53 = vadd.f32 1.0, %v9017_v10 }
 0x33b   : > { %v8102_v15 = vpop.f32.mrf.mxu1  ;;  %v2947_v0 = vpop.f32.mrf.mxu0 }
 0x33c   : > { %15543 = vst [vmem:[#allocation65_spill] sm:$0xff] %v11958_v38  ;;  %15545 = vst [vmem:[#allocation143_spill] sm:$0xff] %v11961_v55  ;;  %v11969_v21 = vadd.f32 %v2947_v0, %v15546_v48  ;;  %v11973_v55 = vpack.c.bf16 %v11955_v61, %v11953_v34  ;;  %v11976_v38 = vld [vmem:[%s9395_s14 + $0x250] sm:$0xff]  ;;  %v15551_v0 = vld [vmem:[#allocation39_spill] sm:$0xff]  ;;  %v11990_v10 = vmul.f32 %v3835_v36, %v3760_v52 }
 0x33d   : > { %v3097_v63 = vpop.f32.mrf.mxu1  ;;  %v2949_v56 = vpop.f32.mrf.mxu0  ;;  %v11992_v48 = vmul.f32 %v3836_v53, %v3761_v54  ;;  %v15557_v52 = vld [vmem:[#allocation40_spill] sm:$0xff] }
 0x33e   : > { %15547 = vst [vmem:[#allocation66_spill] sm:$0xff] %v11969_v21  ;;  %15548 = vst [vmem:[#allocation144_spill] sm:$0xff] %v11973_v55  ;;  %v11979_v15 = vadd.f32 %v3097_v63, %v11520_v51  ;;  %v11982_v57 = vadd.f32 %v2949_v56, %v11523_v59  ;;  %v3791_v21 = vmul.f32 0.70710677, %v11976_v38  ;;  %v9019_v61 = vpop.eup %9018  ;;  %v3792_v59 = vmul.f32 0.70710677, %v11985_v22 }
 0x33f   : > { %v8103_v13 = vpop.f32.mrf.mxu1  ;;  %v2951_v5 = vpop.f32.mrf.mxu0  ;;  %15553 = vst [vmem:[#allocation146_spill] sm:$0xff] %v11990_v10  ;;  %15554 = vst [vmem:[#allocation69_spill] sm:$0xff] %v11992_v48  ;;  %v15555_v56 = vld [vmem:[#allocation109_spill] sm:$0xff] }
 0x340   : > { %15549 = vst [vmem:[#allocation67_spill] sm:$0xff] %v11979_v15  ;;  %15550 = vst [vmem:[#allocation145_spill] sm:$0xff] %v11982_v57  ;;  %v11988_v9 = vadd.f32 %v2951_v5, %v15551_v0  ;;  %v9021_v63 = vpop.eup %9020  ;;  %v15559_v5 = vld [vmem:[#allocation111_spill] sm:$0xff]  ;;  %9026 = verf.f32 %v3791_v21 }
 0x341   : > { %v3102_v34 = vpop.f32.mrf.mxu1  ;;  %8233 = vmatmul.mubr.bf16.gmra.mxu1 %v11973_v55  ;;  %v2955_v51 = vpop.f32.mrf.mxu0  ;;  %4224 = vmatmul.mubr.bf16.gmra.mxu0 %v11973_v55  ;;  %v3838_v57 = vadd.f32 1.0, %v9021_v63  ;;  %9028 = verf.f32 %v3792_v59 }
 0x342   : > { %15552 = vst [vmem:[#allocation68_spill] sm:$0xff] %v11988_v9  ;;  %v11999_v13 = vadd.f32 %v3102_v34, %v15555_v56  ;;  %v12002_v36 = vadd.f32 %v2955_v51, %v15557_v52  ;;  %8236 = vmatprep.mubr.msk.bf16.mxu1 %vm9115_vm0, %v15124_v18  ;;  %4233 = vmatprep.mubr.bf16.mxu0 %v15081_v47  ;;  %v3762_v34 = vmul.f32 0.5, %v11882_v14  ;;  %v12016_v51 = vld [vmem:[%s9395_s14 + $0x290] sm:$0xff] }
 0x343   : > { %v8106_v54 = vpop.f32.mrf.mxu1  ;;  %v2957_v53 = vpop.f32.mrf.mxu0  ;;  %v12012_v9 = vpack.c.bf16 %v11992_v48, %v11990_v10  ;;  %v3793_v21 = vmul.f32 0.70710677, %v12016_v51  ;;  %v15562_v10 = vld [vmem:[#allocation41_spill] sm:$0xff] }
 0x344   : > { %15556 = vst [vmem:[#allocation72_spill] sm:$0xff] %v11999_v13  ;;  %15558 = vst [vmem:[#allocation70_spill] sm:$0xff] %v12002_v36  ;;  %v12008_v0 = vadd.f32 %v2957_v53, %v15559_v5  ;;  %v3763_v36 = vmul.f32 0.5, %v11891_v16  ;;  %v3837_v13 = vadd.f32 1.0, %v9019_v61  ;;  %v12020_v54 = vld [vmem:[%s9395_s14 + $0x2b0] sm:$0xff]  ;;  %v9023_v48 = vpop.eup %9022 }
 0x345   : > { %15561 = vst [vmem:[#allocation71_spill] sm:$0xff] %v12012_v9  ;;  %v3105_v56 = vpop.f32.mrf.mxu1  ;;  %v2959_v52 = vpop.f32.mrf.mxu0  ;;  %v3794_v16 = vmul.f32 0.70710677, %v12020_v54  ;;  %9030 = verf.f32 %v3793_v21 }
 0x346   : > { %15560 = vst [vmem:[#allocation74_spill] sm:$0xff] %v12008_v0  ;;  %v12023_v53 = vadd.f32 %v3105_v56, %v11543_v2  ;;  %v12026_v5 = vadd.f32 %v2959_v52, %v11546_v60  ;;  %v9025_v61 = vpop.eup %9024  ;;  %v12035_v2 = vmul.f32 %v3837_v13, %v3762_v34  ;;  %v12037_v60 = vmul.f32 %v3838_v57, %v3763_v36  ;;  %v15567_v52 = vld [vmem:[#allocation42_spill] sm:$0xff] }
 0x347   : > { %v8107_v0 = vpop.f32.mrf.mxu1  ;;  %v2961_v14 = vpop.f32.mrf.mxu0  ;;  %v3764_v13 = vmul.f32 0.5, %v11928_v11  ;;  %v3765_v57 = vmul.f32 0.5, %v11935_v31  ;;  %v3839_v34 = vadd.f32 1.0, %v9023_v48  ;;  %9032 = verf.f32 %v3794_v16  ;;  %v12067_v11 = vld [vmem:[%s9395_s14 + $0x2f0] sm:$0xff] }
 0x348   : > { %v12030_v15 = vadd.f32 %v2961_v14, %v15562_v10  ;;  %15564 = vst [vmem:[#allocation3_spill] sm:$0xff] %v12037_v60  ;;  %v15565_v0 = vld [vmem:[#allocation112_spill] sm:$0xff] }
 0x349   : > { %v3110_v59 = vpop.f32.mrf.mxu1  ;;  %8237 = vmatmul.mubr.bf16.gmra.mxu1 %v12012_v9  ;;  %v2965_v63 = vpop.f32.mrf.mxu0  ;;  %4234 = vmatmul.mubr.bf16.gmra.mxu0 %v12012_v9  ;;  %v12072_v21 = vmul.f32 %v3839_v34, %v3764_v13 }
 0x34a   : > { %15563 = vst [vmem:[#allocation77_spill] sm:$0xff] %v12030_v15  ;;  %v12040_v56 = vadd.f32 %v3110_v59, %v15565_v0  ;;  %v12043_v10 = vadd.f32 %v2965_v63, %v15567_v52  ;;  %8240 = vmatprep.mubr.msk.bf16.mxu1 %vm9115_vm0, %v15124_v18  ;;  %4243 = vmatprep.mubr.bf16.mxu0 %v15081_v47  ;;  %v3840_v59 = vadd.f32 1.0, %v9025_v61 }
 0x34b   : > { %v8110_v14 = vpop.f32.mrf.mxu1  ;;  %v2967_v15 = vpop.f32.mrf.mxu0  ;;  %v12055_v52 = vpack.c.bf16 %v12037_v60, %v12035_v2  ;;  %15574 = vst [vmem:[#allocation7_spill] sm:$0xff] %v12072_v21 }
 0x34c   : > { %15566 = vst [vmem:[#allocation82_spill] sm:$0xff] %v12040_v56  ;;  %15568 = vst [vmem:[#allocation73_spill] sm:$0xff] %v12043_v10  ;;  %v12051_v36 = vadd.f32 %v2967_v15, %v11563_v32  ;;  %v12058_v10 = vld [vmem:[%s9395_s14 + $0x2d0] sm:$0xff]  ;;  %v12074_v16 = vmul.f32 %v3840_v59, %v3765_v57  ;;  %v15579_v59 = vld [vmem:[#allocation43_spill] sm:$0xff] }
 0x34d   : > { %v3113_v63 = vpop.f32.mrf.mxu1  ;;  %v2969_v0 = vpop.f32.mrf.mxu0  ;;  %15570 = vst [vmem:[#allocation5_spill] sm:$0xff] %v12055_v52  ;;  %v3795_v61 = vmul.f32 0.70710677, %v12058_v10 }
 0x34e   : > { %15569 = vst [vmem:[#allocation4_spill] sm:$0xff] %v12051_v36  ;;  %v12061_v14 = vadd.f32 %v3113_v63, %v11566_v24  ;;  %v12064_v31 = vadd.f32 %v2969_v0, %v11569_v46  ;;  %15575 = vst [vmem:[#allocation9_spill] sm:$0xff] %v12074_v16  ;;  %v9027_v36 = vpop.eup %9026  ;;  %v3796_v46 = vmul.f32 0.70710677, %v12067_v11 }
 0x34f   : > { %v8111_v32 = vpop.f32.mrf.mxu1  ;;  %v2971_v15 = vpop.f32.mrf.mxu0  ;;  %9034 = verf.f32 %v3795_v61 }
 0x350   : > { %15571 = vst [vmem:[#allocation85_spill] sm:$0xff] %v12061_v14  ;;  %15572 = vst [vmem:[#allocation75_spill] sm:$0xff] %v12064_v31  ;;  %v12070_v48 = vadd.f32 %v2971_v15, %v11572_v49  ;;  %v9029_v63 = vpop.eup %9028  ;;  %v15577_v49 = vld [vmem:[#allocation113_spill] sm:$0xff]  ;;  %v12094_v15 = vpack.c.bf16 %v12074_v16, %v12072_v21  ;;  %9036 = verf.f32 %v3796_v46  ;;  %v15583_v31 = vld [vmem:[#allocation44_spill] sm:$0xff] }
 0x351   : > { %v3118_v56 = vpop.f32.mrf.mxu1  ;;  %8241 = vmatmul.mubr.bf16.gmra.mxu1 %v12055_v52  ;;  %v2975_v24 = vpop.f32.mrf.mxu0  ;;  %4244 = vmatmul.mubr.bf16.gmra.mxu0 %v12055_v52  ;;  %v15587_v46 = vld [vmem:[#allocation116_spill] sm:$0xff] }
 0x352   : > { %15573 = vst [vmem:[#allocation6_spill] sm:$0xff] %v12070_v48  ;;  %v12081_v0 = vadd.f32 %v3118_v56, %v11577_v37  ;;  %v12084_v13 = vadd.f32 %v2975_v24, %v15577_v49  ;;  %8244 = vmatprep.mubr.msk.bf16.mxu1 %vm9115_vm0, %v15124_v18  ;;  %4253 = vmatprep.mubr.bf16.mxu0 %v15081_v47  ;;  %15581 = vst [vmem:[#allocation11_spill] sm:$0xff] %v12094_v15  ;;  %v3766_v37 = vmul.f32 0.5, %v11976_v38  ;;  %v15582_v48 = vld [vmem:[#allocation114_spill] sm:$0xff]  ;;  %v9031_v21 = vpop.eup %9030  ;;  %v15585_v38 = vld [vmem:[#allocation115_spill] sm:$0xff] }
 0x353   : > { %v8114_v57 = vpop.f32.mrf.mxu1  ;;  %v2977_v34 = vpop.f32.mrf.mxu0  ;;  %v3767_v49 = vmul.f32 0.5, %v11985_v22 }
 0x354   : > { %15576 = vst [vmem:[#allocation10_spill] sm:$0xff] %v12081_v0  ;;  %15578 = vst [vmem:[#allocation8_spill] sm:$0xff] %v12084_v13  ;;  %v12090_v32 = vadd.f32 %v2977_v34, %v15579_v59  ;;  %v3841_v13 = vadd.f32 1.0, %v9027_v36  ;;  %v3842_v0 = vadd.f32 1.0, %v9029_v63  ;;  %v12105_v59 = vld [vmem:[%s9395_s14 + $0x310] sm:$0xf]  ;;  %v9033_v14 = vpop.eup %9032 }
 0x355   : > { %v3121_v56 = vpop.f32.mrf.mxu1  ;;  %v2979_v24 = vpop.f32.mrf.mxu0 }
 0x356   : > { %15580 = vst [vmem:[#allocation92_spill] sm:$0xff] %v12090_v32  ;;  %v12099_v57 = vadd.f32 %v3121_v56, %v15582_v48  ;;  %v12102_v34 = vadd.f32 %v2979_v24, %v15583_v31  ;;  %v12112_v36 = vmul.f32 %v3841_v13, %v3766_v37  ;;  %v12114_v48 = vmul.f32 %v3842_v0, %v3767_v49  ;;  %v15591_v37 = vld [vmem:[#allocation45_spill] sm:$0xff] }
 0x357   : > { %v8115_v32 = vpop.f32.mrf.mxu1  ;;  %v2981_v16 = vpop.f32.mrf.mxu0  ;;  %v3797_v31 = vmul.f32 0.70710677, %v12105_v59  ;;  %v3768_v13 = vmul.f32 0.5, %v12016_v51  ;;  %v3769_v49 = vmul.f32 0.5, %v12020_v54 }
 0x358   : > { %15584 = vst [vmem:[#allocation76_spill] sm:$0xff] %v12102_v34  ;;  %v12108_v61 = vadd.f32 %v2981_v16, %v15585_v38  ;;  %v15589_v32 = vld [vmem:[#allocation117_spill] sm:$0xff]  ;;  %v3843_v38 = vadd.f32 1.0, %v9031_v21 }
 0x359   : > { %v3126_v60 = vpop.f32.mrf.mxu1  ;;  %8245 = vmatmul.mubr.bf16.gmra.mxu1 %v12094_v15  ;;  %v2985_v22 = vpop.f32.mrf.mxu0  ;;  %4254 = vmatmul.mubr.bf16.gmra.mxu0 %v12094_v15  ;;  %9038 = verf.f32 %v3797_v31 }
 0x35a   : > { %15586 = vst [vmem:[#allocation12_spill] sm:$0xff] %v12108_v61  ;;  %v12118_v63 = vadd.f32 %v3126_v60, %v15587_v46  ;;  %v12121_v56 = vadd.f32 %v2985_v22, %v15589_v32  ;;  %8248 = vmatprep.mubr.msk.bf16.mxu1 %vm9115_vm0, %v15124_v18  ;;  %4263 = vmatprep.mubr.bf16.mxu0 %v15081_v47  ;;  %v3844_v60 = vadd.f32 1.0, %v9033_v14  ;;  %v15594_v32 = vld [vmem:[#allocation118_spill] sm:$0xff] }
 0x35b   : > { %v8118_v16 = vpop.f32.mrf.mxu1  ;;  %v2987_v24 = vpop.f32.mrf.mxu0  ;;  %v12133_v22 = vpack.c.bf16 %v12114_v48, %v12112_v36  ;;  %v12144_v54 = vmul.f32 %v3843_v38, %v3768_v13  ;;  %v15602_v38 = vld [vmem:[#allocation47_spill] sm:$0xff] }
 0x35c   : > { %15588 = vst [vmem:[#allocation13_spill] sm:$0xff] %v12118_v63  ;;  %15590 = vst [vmem:[#allocation14_spill] sm:$0xff] %v12121_v56  ;;  %v12128_v0 = vadd.f32 %v2987_v24, %v15591_v37  ;;  %v15595_v16 = vld [vmem:[#allocation46_spill] sm:$0xff]  ;;  %v15596_v37 = vld [vmem:[#allocation119_spill] sm:$0xff]  ;;  %v12146_v14 = vmul.f32 %v3844_v60, %v3769_v49  ;;  %v9035_v21 = vpop.eup %9034 }
 0x35d   : > { %v3129_v46 = vpop.f32.mrf.mxu1  ;;  %v2989_v63 = vpop.f32.mrf.mxu0  ;;  %15593 = vst [vmem:[#allocation103_spill] sm:$0xff] %v12133_v22  ;;  %15598 = vst [vmem:[#allocation79_spill] sm:$0xff] %v12144_v54 }
 0x35e   : > { %15592 = vst [vmem:[#allocation80_spill] sm:$0xff] %v12128_v0  ;;  %v12136_v56 = vadd.f32 %v3129_v46, %v15594_v32  ;;  %v12139_v61 = vadd.f32 %v2989_v63, %v15595_v16  ;;  %15599 = vst [vmem:[#allocation15_spill] sm:$0xff] %v12146_v14  ;;  %v9037_v46 = vpop.eup %9036  ;;  %v12164_v16 = vpack.c.bf16 %v12146_v14, %v12144_v54 }
 0x35f   : > { %v8119_v51 = vpop.f32.mrf.mxu1  ;;  %v2991_v24 = vpop.f32.mrf.mxu0 }
 0x360   : > { %v12142_v0 = vadd.f32 %v2991_v24, %v15596_v37  ;;  %15604 = vst [vmem:[#allocation83_spill] sm:$0xff] %v12164_v16  ;;  %v3845_v24 = vadd.f32 1.0, %v9035_v21  ;;  %v3846_v37 = vadd.f32 1.0, %v9037_v46  ;;  %v15608_v46 = vld [vmem:[#allocation49_spill] sm:$0xff] }
 0x361   : > { %v3134_v34 = vpop.f32.mrf.mxu1  ;;  %8249 = vmatmul.mubr.bf16.gmra.mxu1 %v12133_v22  ;;  %v2995_v31 = vpop.f32.mrf.mxu0  ;;  %4264 = vmatmul.mubr.bf16.gmra.mxu0 %v12133_v22 }
 0x362   : > { %15597 = vst [vmem:[#allocation78_spill] sm:$0xff] %v12142_v0  ;;  %v12151_v63 = vadd.f32 %v3134_v34, %v11631_v45  ;;  %v12154_v32 = vadd.f32 %v2995_v31, %v11634_v35  ;;  %8252 = vmatprep.mubr.msk.bf16.mxu1 %vm9115_vm0, %v15124_v18  ;;  %4273 = vmatprep.mubr.bf16.mxu0 %v15081_v47  ;;  %v3770_v34 = vmul.f32 0.5, %v12058_v10  ;;  %v3771_v35 = vmul.f32 0.5, %v12067_v11  ;;  %v15605_v31 = vld [vmem:[#allocation120_spill] sm:$0xff] }
 0x363   : > { %v8122_v13 = vpop.f32.mrf.mxu1  ;;  %v2997_v49 = vpop.f32.mrf.mxu0 }
 0x364   : > { %15600 = vst [vmem:[#allocation81_spill] sm:$0xff] %v12151_v63  ;;  %15601 = vst [vmem:[#allocation110_spill] sm:$0xff] %v12154_v32  ;;  %v12160_v60 = vadd.f32 %v2997_v49, %v15602_v38  ;;  %v15606_v13 = vld [vmem:[#allocation48_spill] sm:$0xff]  ;;  %v12179_v10 = vmul.f32 %v3845_v24, %v3770_v34  ;;  %v12181_v11 = vmul.f32 %v3846_v37, %v3771_v35 }
 0x365   : > { %v3137_v51 = vpop.f32.mrf.mxu1  ;;  %v2999_v45 = vpop.f32.mrf.mxu0 }
 0x366   : > { %15603 = vst [vmem:[#allocation16_spill] sm:$0xff] %v12160_v60  ;;  %v12169_v32 = vadd.f32 %v3137_v51, %v15605_v31  ;;  %v12172_v63 = vadd.f32 %v2999_v45, %v15606_v13  ;;  %v15607_v60 = vld [vmem:[#allocation122_spill] sm:$0xff]  ;;  %v9039_v21 = vpop.eup %9038  ;;  %v15609_v45 = vld [vmem:[#allocation124_spill] sm:$0xff]  ;;  %v12197_v24 = vpack.c.bf16 %v12181_v11, %v12179_v10 }
 0x367   : > { %v8123_v49 = vpop.f32.mrf.mxu1  ;;  %v3001_v38 = vpop.f32.mrf.mxu0 }
 0x368   : > { %v12175_v0 = vadd.f32 %v3001_v38, %v15607_v60 }
 0x369   : > { %v3142_v14 = vpop.f32.mrf.mxu1  ;;  %8253 = vmatmul.mubr.bf16.gmra.mxu1 %v12164_v16  ;;  %v3005_v54 = vpop.f32.mrf.mxu0  ;;  %4274 = vmatmul.mubr.bf16.gmra.mxu0 %v12164_v16 }
 0x36a   : > { %v12184_v51 = vadd.f32 %v3142_v14, %v15608_v46  ;;  %v12187_v31 = vadd.f32 %v3005_v54, %v15609_v45  ;;  %8256 = vmatprep.mubr.msk.bf16.mxu1 %vm9115_vm0, %v15124_v18  ;;  %4283 = vmatprep.mubr.bf16.mxu0 %v15081_v47  ;;  %v3772_v14 = vmul.f32 0.5, %v12105_v59  ;;  %v3847_v54 = vadd.f32 1.0, %v9039_v21 }
 0x36b   : > { %v8126_v60 = vpop.f32.mrf.mxu1  ;;  %v3007_v13 = vpop.f32.mrf.mxu0 }
 0x36c   : > { %v12193_v49 = vadd.f32 %v3007_v13, %v11671_v25  ;;  %v12202_v60 = vmul.f32 %v3847_v54, %v3772_v14  ;;  %v15611_v13 = vld [vmem:[#allocation50_spill] sm:$0xff]  ;;  %v3887_v54 = vunpack.c.h.bf16 %v11734_v4 }
 0x36d   : > { %v3145_v34 = vpop.f32.mrf.mxu1  ;;  %v3009_v35 = vpop.f32.mrf.mxu0 }
 0x36e   : > { %15610 = vst [vmem:[#allocation17_spill] sm:$0xff] %v12193_v49  ;;  %v15613_v35 = vld [vmem:[#allocation125_spill] sm:$0xff]  ;;  %v12218_v14 = vpack.c.bf16 %v12202_v60, %v12202_v60 }
 0x36f   : > { %v8127_v37 = vpop.f32.mrf.mxu1  ;;  %v3010_v38 = vpop.f32.mrf.mxu0 }
 0x371   : > { %v3546_v46 = vpop.f32.mrf.mxu1  ;;  %8257 = vmatmul.mubr.bf16.gmra.mxu1 %v12197_v24  ;;  %v3385_v45 = vpop.f32.mrf.mxu0  ;;  %4284 = vmatmul.mubr.bf16.gmra.mxu0 %v12197_v24 }
 0x372   : > { %v12205_v25 = vadd.f32 %v3546_v46, %v11684_v29  ;;  %v12208_v34 = vadd.f32 %v3385_v45, %v15611_v13  ;;  %8260 = vmatprep.mubr.msk.bf16.mxu1 %vm9115_vm0, %v15124_v18  ;;  %4293 = vmatprep.mubr.bf16.mxu0 %v15081_v47  ;;  %v3886_v29 = vunpack.c.l.bf16 %v11734_v4  ;;  %v15619_v4 = vld [vmem:[#allocation126_spill] sm:$0xff] }
 0x373   : > { %v8146_v59 = vpop.f32.mrf.mxu1  ;;  %v3387_v21 = vpop.f32.mrf.mxu0 }
 0x374   : > { %15612 = vst [vmem:[#allocation18_spill] sm:$0xff] %v12208_v34  ;;  %v12214_v37 = vadd.f32 %v3387_v21, %v15613_v35  ;;  %v3911_v34 = vsub.f32 %v11712_v17, %v3886_v29 }
 0x375   : > { %v3549_v38 = vpop.f32.mrf.mxu1  ;;  %v3389_v49 = vpop.f32.mrf.mxu0 }
 0x376   : > { %15614 = vst [vmem:[#allocation121_spill] sm:$0xff] %v12214_v37  ;;  %v12223_v46 = vadd.f32 %v3549_v38, %v11701_v27  ;;  %v12226_v45 = vadd.f32 %v3389_v49, %v11704_v19  ;;  %v3912_v27 = vsub.f32 %v11714_v42, %v3887_v54  ;;  %v15615_v38 = vld [vmem:[#allocation123_spill] sm:$0xff] }
 0x377   : > { %v8147_v13 = vpop.f32.mrf.mxu1  ;;  %v3391_v59 = vpop.f32.mrf.mxu0  ;;  %v15617_v49 = vld [vmem:[#allocation51_spill] sm:$0xff] }
 0x378   : > { %v12229_v21 = vadd.f32 %v3391_v59, %v11710_v1  ;;  %v3936_v54 = vpack.c.bf16 %v3912_v27, %v3911_v34  ;;  %v8800_v34 = vld [vmem:[%s9393_s13 + $0x214] ss:$12 sps:$4 sm:$0xff]  }
 0x379   : > { %v3554_v35 = vpop.f32.mrf.mxu1  ;;  %8261 = vmatmul.mubr.bf16.gmra.mxu1 %v12218_v14  ;;  %v3395_v37 = vpop.f32.mrf.mxu0  ;;  %4294 = vmatmul.mubr.bf16.gmra.mxu0 %v12218_v14 }
 0x37a   : > { %v12236_v19 = vadd.f32 %v3554_v35, %v15615_v38  ;;  %v12239_v13 = vadd.f32 %v3395_v37, %v15617_v49  ;;  %8280 = vmatprep.mubr.msk.bf16.mxu1 %vm9115_vm0, %v15124_v18  ;;  %4545 = vmatprep.mubr.bf16.mxu0 %v15081_v47  ;;  %v3888_v35 = vunpack.c.l.bf16 %v11781_v12  ;;  %v3889_v38 = vunpack.c.h.bf16 %v11781_v12 }
 0x37b   : > { %v8150_v1 = vpop.f32.mrf.mxu1  ;;  %v3397_v59 = vpop.f32.mrf.mxu0 }
 0x37c   : > { %15616 = vst [vmem:[#allocation19_spill] sm:$0xff] %v12236_v19  ;;  %15618 = vst [vmem:[#allocation20_spill] sm:$0xff] %v12239_v13  ;;  %v12245_v17 = vadd.f32 %v3397_v59, %v15619_v4  ;;  %v8794_v13 = vld [vmem:[%s9393_s13 + $0x228] ss:$12 sps:$4 sm:$0xff]   ;;  %v8797_v1 = vld [vmem:[%s9393_s13 + $0x230] ss:$12 sps:$4 sm:$0xff]  }
 0x37d   : > { %v3557_v29 = vpop.f32.mrf.mxu1  ;;  %v3399_v42 = vpop.f32.mrf.mxu0 }
 0x37e   : > { %v12250_v37 = vadd.f32 %v3557_v29, %v11745_v40  ;;  %v12253_v49 = vadd.f32 %v3399_v42, %v11748_v8  ;;  %v3913_v40 = vsub.f32 %v11757_v26, %v3888_v35  ;;  %v3914_v8 = vsub.f32 %v11759_v28, %v3889_v38  ;;  %v8804_v26 = vld [vmem:[%s9393_s13 + $0x1fc] ss:$12 sps:$4 sm:$0xff]  }
 0x37f   : > { %v8151_v19 = vpop.f32.mrf.mxu1  ;;  %v3401_v4 = vpop.f32.mrf.mxu0 }
 0x380   : > { %v12258_v59 = vadd.f32 %v3401_v4, %v11752_v58  ;;  %v8798_v58 = vld [vmem:[%s9393_s13 + $0x210] ss:$12 sps:$4 sm:$0xff]   ;;  %v8801_v19 = vld [vmem:[%s9393_s13 + $0x218] ss:$12 sps:$4 sm:$0xff]  }
 0x381   : > { %v3562_v27 = vpop.f32.mrf.mxu1  ;;  %8281 = vmatmul.mubr.bf16.vlgmr.msra.gmra.mxu1 %v3936_v54  ;;  %v3405_v12 = vpop.f32.mrf.mxu0  ;;  %4546 = vmatmul.mubr.bf16.vlgmr.msra.gmra.mxu0 %v3936_v54  ;;  %v3891_v54 = vunpack.c.h.bf16 %v11826_v20 }
 0x382   : > { %15620 = vst [vmem:[#allocation127_spill] sm:$0xff] %v12258_v59  ;;  %v12264_v29 = vadd.f32 %v3562_v27, %v11762_v23  ;;  %v12267_v42 = vadd.f32 %v3405_v12, %v11765_v7  ;;  %5014 = vmatpush1.bf16.msra.mxu0 %v8794_v13  ;;  %8333 = vmatpush3.bf16.msra.mxu1 %v8797_v1  ;;  %v3890_v13 = vunpack.c.l.bf16 %v11826_v20  ;;  %v8813_v20 = vld [vmem:[%s9393_s13 + $0x1d0] ss:$12 sps:$4 sm:$0xff]  }
 0x383   : > { %v8154_v4 = vpop.f32.mrf.mxu1  ;;  %v3407_v59 = vpop.f32.mrf.mxu0  ;;  %8284 = vmatprep.mubr.msk.bf16.mxu1 %vm9115_vm0, %v15124_v18  ;;  %4555 = vmatprep.mubr.bf16.mxu0 %v15081_v47  ;;  %v3937_v12 = vpack.c.bf16 %v3914_v8, %v3913_v40  ;;  %v8808_v40 = vld [vmem:[%s9393_s13 + $0x1e4] ss:$12 sps:$4 sm:$0xff]  }
 0x384   : > { %v12276_v28 = vadd.f32 %v3407_v59, %v11775_v43  ;;  %5015 = vmatprep.subr.bf16.mxu0 %v8800_v34  ;;  %8334 = vmatprep.subr.bf16.mxu1 %v15124_v18  ;;  %v8802_v59 = vld [vmem:[%s9393_s13 + $0x1f8] ss:$12 sps:$4 sm:$0xff]   ;;  %v8805_v34 = vld [vmem:[%s9393_s13 + $0x200] ss:$12 sps:$4 sm:$0xff]  }
 0x385   : > { %v3565_v23 = vpop.f32.mrf.mxu1  ;;  %v3409_v7 = vpop.f32.mrf.mxu0  ;;  %v15621_v4 = vld [vmem:[#allocation128_spill] sm:$0xff] }
 0x386   : > { %v12282_v35 = vadd.f32 %v3565_v23, %v11787_v44  ;;  %v12285_v38 = vadd.f32 %v3409_v7, %v11790_v41  ;;  %5016 = vmatpush1.bf16.msra.mxu0 %v8798_v58  ;;  %8335 = vmatpush3.bf16.msra.mxu1 %v8801_v19  ;;  %v3915_v41 = vsub.f32 %v11802_v3, %v3890_v13  ;;  %v8806_v7 = vld [vmem:[%s9393_s13 + $0x1e0] ss:$12 sps:$4 sm:$0xff]   ;;  %v15623_v3 = vld [vmem:[#allocation54_spill] sm:$0xff] }
 0x387   : > { %v8155_v43 = vpop.f32.mrf.mxu1  ;;  %v3411_v1 = vpop.f32.mrf.mxu0  ;;  %5017 = vmatprep.subr.bf16.mxu0 %v8804_v26  ;;  %8336 = vmatprep.subr.bf16.mxu1 %v15124_v18  ;;  %v3916_v58 = vsub.f32 %v11804_v33, %v3891_v54 }
 0x388   : > { %v12291_v27 = vadd.f32 %v3411_v1, %v11800_v6  ;;  %v15625_v1 = vld [vmem:[#allocation59_spill] sm:$0xff] }
 0x389   : > { %v3570_v44 = vpop.f32.mrf.mxu1  ;;  %8285 = vmatmul.mubr.bf16.gmra.mxu1 %v3937_v12  ;;  %v3415_v8 = vpop.f32.mrf.mxu0  ;;  %4556 = vmatmul.mubr.bf16.gmra.mxu0 %v3937_v12  ;;  %v8809_v12 = vld [vmem:[%s9393_s13 + $0x1e8] ss:$12 sps:$4 sm:$0xff]   ;;  %v3938_v43 = vpack.c.bf16 %v3916_v58, %v3915_v41 }
 0x38a   : > { %v12297_v19 = vadd.f32 %v3570_v44, %v11811_v50  ;;  %v12300_v26 = vadd.f32 %v3415_v8, %v15621_v4  ;;  %8288 = vmatprep.mubr.msk.bf16.mxu1 %vm9115_vm0, %v15124_v18  ;;  %4565 = vmatprep.mubr.bf16.mxu0 %v15081_v47  ;;  %v8812_v50 = vld [vmem:[%s9393_s13 + $0x1cc] ss:$12 sps:$4 sm:$0xff]   ;;  %v3892_v44 = vunpack.c.l.bf16 %v15625_v1  ;;  %v8816_v41 = vld [vmem:[%s9393_s13 + $0x1b4] ss:$12 sps:$4 sm:$0xff]  }
 0x38b   : > { %v8158_v6 = vpop.f32.mrf.mxu1  ;;  %v3417_v23 = vpop.f32.mrf.mxu0  ;;  %5018 = vmatpush1.bf16.msra.mxu0 %v8802_v59  ;;  %8337 = vmatpush3.bf16.msra.mxu1 %v8805_v34  ;;  %v3893_v59 = vunpack.c.h.bf16 %v15625_v1  ;;  %v15626_v34 = vld [vmem:[#allocation55_spill] sm:$0xff]  ;;  %v15627_v4 = vld [vmem:[#allocation130_spill] sm:$0xff] }
 0x38c   : > { %15622 = vst [vmem:[#allocation21_spill] sm:$0xff] %v12300_v26  ;;  %v12308_v33 = vadd.f32 %v3417_v23, %v15623_v3  ;;  %5019 = vmatprep.subr.bf16.mxu0 %v8808_v40  ;;  %8338 = vmatprep.subr.bf16.mxu1 %v15124_v18  ;;  %v8810_v40 = vld [vmem:[%s9393_s13 + $0x1c8] ss:$12 sps:$4 sm:$0xff]  }
 0x38d   : > { %v3573_v13 = vpop.f32.mrf.mxu1  ;;  %v3419_v54 = vpop.f32.mrf.mxu0 }
 0x38e   : > { %15624 = vst [vmem:[#allocation22_spill] sm:$0xff] %v12308_v33  ;;  %v12315_v8 = vadd.f32 %v3573_v13, %v15626_v34  ;;  %v12318_v6 = vadd.f32 %v3419_v54, %v15627_v4  ;;  %v15629_v33 = vld [vmem:[#allocation56_spill] sm:$0xff]  ;;  %v15631_v54 = vld [vmem:[#allocation131_spill] sm:$0xff] }
 0x38f   : > { %v8159_v23 = vpop.f32.mrf.mxu1  ;;  %v3421_v3 = vpop.f32.mrf.mxu0  ;;  %5020 = vmatpush1.bf16.msra.mxu0 %v8806_v7  ;;  %8339 = vmatpush3.bf16.msra.mxu1 %v8809_v12  ;;  %v3917_v34 = vsub.f32 %v15631_v54, %v3892_v44  ;;  %v15632_v7 = vld [vmem:[#allocation57_spill] sm:$0xff]  ;;  %v15633_v4 = vld [vmem:[#allocation132_spill] sm:$0xff] }
 0x390   : > { %15628 = vst [vmem:[#allocation23_spill] sm:$0xff] %v12318_v6  ;;  %v12323_v26 = vadd.f32 %v3421_v3, %v15629_v33  ;;  %5021 = vmatprep.subr.bf16.mxu0 %v8812_v50  ;;  %8340 = vmatprep.subr.bf16.mxu1 %v15124_v18  ;;  %v3918_v12 = vsub.f32 %v15632_v7, %v3893_v59  ;;  %v15635_v33 = vld [vmem:[#allocation58_spill] sm:$0xff]  ;;  %v15637_v44 = vld [vmem:[#allocation133_spill] sm:$0xff] }
 0x391   : > { %v3578_v58 = vpop.f32.mrf.mxu1  ;;  %8289 = vmatmul.mubr.bf16.gmra.mxu1 %v3938_v43  ;;  %v3425_v13 = vpop.f32.mrf.mxu0  ;;  %4566 = vmatmul.mubr.bf16.gmra.mxu0 %v3938_v43  ;;  %v8814_v43 = vld [vmem:[%s9393_s13 + $0x1b0] ss:$12 sps:$4 sm:$0xff]  }
 0x392   : > { %15630 = vst [vmem:[#allocation84_spill] sm:$0xff] %v12323_v26  ;;  %v12330_v23 = vadd.f32 %v3578_v58, %v15633_v4  ;;  %v12333_v3 = vadd.f32 %v3425_v13, %v15635_v33  ;;  %8292 = vmatprep.mubr.msk.bf16.mxu1 %vm9115_vm0, %v15124_v18  ;;  %4575 = vmatprep.mubr.bf16.mxu0 %v15081_v47  ;;  %v8817_v26 = vld [vmem:[%s9393_s13 + $0x1b8] ss:$12 sps:$4 sm:$0xff]   ;;  %v8820_v58 = vld [vmem:[%s9393_s13 + $0x19c] ss:$12 sps:$4 sm:$0xff]   ;;  %v3894_v4 = vunpack.c.l.bf16 %v11924_v62 }
 0x393   : > { %v8162_v50 = vpop.f32.mrf.mxu1  ;;  %v3427_v1 = vpop.f32.mrf.mxu0  ;;  %5022 = vmatpush1.bf16.msra.mxu0 %v8810_v40  ;;  %8341 = vmatpush3.bf16.msra.mxu1 %v8813_v20  ;;  %v3939_v7 = vpack.c.bf16 %v3918_v12, %v3917_v34  ;;  %v3895_v40 = vunpack.c.h.bf16 %v11924_v62  ;;  %v15639_v20 = vld [vmem:[#allocation134_spill] sm:$0xff]  ;;  %v8824_v34 = vld [vmem:[%s9393_s13 + $0x184] ss:$12 sps:$4 sm:$0xff]  }
 0x394   : > { %15634 = vst [vmem:[#allocation135_spill] sm:$0xff] %v12330_v23  ;;  %15636 = vst [vmem:[#allocation24_spill] sm:$0xff] %v12333_v3  ;;  %v12341_v59 = vadd.f32 %v3427_v1, %v15637_v44  ;;  %5023 = vmatprep.subr.bf16.mxu0 %v8816_v41  ;;  %8342 = vmatprep.subr.bf16.mxu1 %v15124_v18  ;;  %v15640_v50 = vld [vmem:[#allocation60_spill] sm:$0xff]  ;;  %v8818_v41 = vld [vmem:[%s9393_s13 + $0x198] ss:$12 sps:$4 sm:$0xff]  }
 0x395   : > { %v3581_v13 = vpop.f32.mrf.mxu1  ;;  %v3429_v54 = vpop.f32.mrf.mxu0  ;;  %v15641_v23 = vld [vmem:[#allocation136_spill] sm:$0xff] }
 0x396   : > { %15638 = vst [vmem:[#allocation86_spill] sm:$0xff] %v12341_v59  ;;  %v12348_v33 = vadd.f32 %v3581_v13, %v15639_v20  ;;  %v12351_v3 = vadd.f32 %v3429_v54, %v15640_v50  ;;  %v8821_v59 = vld [vmem:[%s9393_s13 + $0x1a0] ss:$12 sps:$4 sm:$0xff]   ;;  %v15643_v54 = vld [vmem:[#allocation61_spill] sm:$0xff]  ;;  %v15645_v50 = vld [vmem:[#allocation62_spill] sm:$0xff] }
 0x397   : > { %v8163_v1 = vpop.f32.mrf.mxu1  ;;  %v3431_v44 = vpop.f32.mrf.mxu0  ;;  %5024 = vmatpush1.bf16.msra.mxu0 %v8814_v43  ;;  %8343 = vmatpush3.bf16.msra.mxu1 %v8817_v26  ;;  %v3919_v20 = vsub.f32 %v15643_v54, %v3894_v4  ;;  %v15644_v43 = vld [vmem:[#allocation138_spill] sm:$0xff]  ;;  %v15647_v4 = vld [vmem:[#allocation137_spill] sm:$0xff] }
 0x398   : > { %v12356_v6 = vadd.f32 %v3431_v44, %v15641_v23  ;;  %5025 = vmatprep.subr.bf16.mxu0 %v8820_v58  ;;  %8344 = vmatprep.subr.bf16.mxu1 %v15124_v18  ;;  %v3920_v26 = vsub.f32 %v15644_v43, %v3895_v40  ;;  %v15646_v23 = vld [vmem:[#allocation139_spill] sm:$0xff]  ;;  %v12378_v40 = vld [vmem:[%s9388_s10 + $0x2ec] ss:$12 sps:$4 sm:$0xff]  }
 0x399   : > { %v3586_v12 = vpop.f32.mrf.mxu1  ;;  %8293 = vmatmul.mubr.bf16.gmra.mxu1 %v3939_v7  ;;  %v3435_v13 = vpop.f32.mrf.mxu0  ;;  %4576 = vmatmul.mubr.bf16.gmra.mxu0 %v3939_v7  ;;  %v8822_v7 = vld [vmem:[%s9393_s13 + $0x180] ss:$12 sps:$4 sm:$0xff]   ;;  %15649 = vst [vmem:[#allocation147_spill] sm:$0xff] %v12378_v40 }
 0x39a   : > { %15642 = vst [vmem:[#allocation25_spill] sm:$0xff] %v12356_v6  ;;  %v12363_v1 = vadd.f32 %v3586_v12, %v15645_v50  ;;  %v12366_v44 = vadd.f32 %v3435_v13, %v15646_v23  ;;  %8296 = vmatprep.mubr.msk.bf16.mxu1 %vm9115_vm0, %v15124_v18  ;;  %4585 = vmatprep.mubr.bf16.mxu0 %v15081_v47  ;;  %v8825_v6 = vld [vmem:[%s9393_s13 + $0x188] ss:$12 sps:$4 sm:$0xff]   ;;  %v3896_v50 = vunpack.c.l.bf16 %v11973_v55  ;;  %v3897_v23 = vunpack.c.h.bf16 %v11973_v55  ;;  %v15655_v55 = vld [vmem:[#allocation142_spill] sm:$0xff] }
 0x39b   : > { %v8166_v58 = vpop.f32.mrf.mxu1  ;;  %v3437_v62 = vpop.f32.mrf.mxu0  ;;  %5026 = vmatpush1.bf16.msra.mxu0 %v8818_v41  ;;  %8345 = vmatpush3.bf16.msra.mxu1 %v8821_v59  ;;  %v3940_v43 = vpack.c.bf16 %v3920_v26, %v3919_v20 }
 0x39c   : > { %v12374_v54 = vadd.f32 %v3437_v62, %v15647_v4  ;;  %5027 = vmatprep.subr.bf16.mxu0 %v8824_v34  ;;  %8346 = vmatprep.subr.bf16.mxu1 %v15124_v18  ;;  %v15652_v34 = vld [vmem:[#allocation140_spill] sm:$0xff] }
 0x39d   : > { %v3589_v12 = vpop.f32.mrf.mxu1  ;;  %v3439_v13 = vpop.f32.mrf.mxu0 }
 0x39e   : > { %15648 = vst [vmem:[#allocation141_spill] sm:$0xff] %v12374_v54  ;;  %v12383_v41 = vadd.f32 %v3589_v12, %v11938_v30  ;;  %v12386_v59 = vadd.f32 %v3439_v13, %v11941_v39  ;;  %v15654_v30 = vld [vmem:[#allocation64_spill] sm:$0xff]  ;;  %v3922_v39 = vsub.f32 %v15655_v55, %v3897_v23  ;;  %v15656_v13 = vld [vmem:[#allocation65_spill] sm:$0xff]  ;;  %v3898_v55 = vunpack.c.l.bf16 %v12012_v9 }
 0x39f   : > { %v8167_v62 = vpop.f32.mrf.mxu1  ;;  %v3441_v58 = vpop.f32.mrf.mxu0  ;;  %5028 = vmatpush1.bf16.msra.mxu0 %v8822_v7  ;;  %8347 = vmatpush3.bf16.msra.mxu1 %v8825_v6  ;;  %v3921_v12 = vsub.f32 %v15654_v30, %v3896_v50  ;;  %v15658_v7 = vld [vmem:[#allocation143_spill] sm:$0xff]  ;;  %v3899_v23 = vunpack.c.h.bf16 %v12012_v9  ;;  %v15667_v9 = vld [vmem:[#allocation72_spill] sm:$0xff] }
 0x3a0   : > { %15650 = vst [vmem:[#allocation87_spill] sm:$0xff] %v12383_v41  ;;  %15651 = vst [vmem:[#allocation89_spill] sm:$0xff] %v12386_v59  ;;  %v12389_v4 = vadd.f32 %v3441_v58, %v15652_v34  ;;  %5803 = vmatprep.subr.bf16.mxu0 %v12378_v40  ;;  %8400 = vmatprep.subr.bf16.mxu1 %v15124_v18  ;;  %v15660_v40 = vld [vmem:[#allocation66_spill] sm:$0xff] }
 0x3a1   : > { %v3594_v20 = vpop.f32.mrf.mxu1  ;;  %8297 = vmatmul.mubr.bf16.gmra.mxu1 %v3940_v43  ;;  %v3445_v26 = vpop.f32.mrf.mxu0  ;;  %4586 = vmatmul.mubr.bf16.gmra.mxu0 %v3940_v43  ;;  %v3941_v30 = vpack.c.bf16 %v3922_v39, %v3921_v12  ;;  %v15665_v12 = vld [vmem:[#allocation146_spill] sm:$0xff] }
 0x3a2   : > { %15653 = vst [vmem:[#allocation26_spill] sm:$0xff] %v12389_v4  ;;  %v12396_v62 = vadd.f32 %v3594_v20, %v15656_v13  ;;  %v12399_v6 = vadd.f32 %v3445_v26, %v15658_v7  ;;  %8300 = vmatprep.mubr.msk.bf16.mxu1 %vm9115_vm0, %v15124_v18  ;;  %4595 = vmatprep.mubr.bf16.mxu0 %v15081_v47  ;;  %v15662_v20 = vld [vmem:[#allocation67_spill] sm:$0xff]  ;;  %v15663_v13 = vld [vmem:[#allocation145_spill] sm:$0xff] }
 0x3a3   : > { %v8170_v58 = vpop.f32.mrf.mxu1  ;;  %v3447_v34 = vpop.f32.mrf.mxu0  ;;  %v3923_v39 = vsub.f32 %v15665_v12, %v3898_v55 }
 0x3a4   : > { %15657 = vst [vmem:[#allocation90_spill] sm:$0xff] %v12396_v62  ;;  %15659 = vst [vmem:[#allocation88_spill] sm:$0xff] %v12399_v6  ;;  %v12405_v4 = vadd.f32 %v3447_v34, %v15660_v40  ;;  %v15664_v58 = vld [vmem:[#allocation68_spill] sm:$0xff] }
 0x3a5   : > { %v3597_v43 = vpop.f32.mrf.mxu1  ;;  %v3449_v50 = vpop.f32.mrf.mxu0 }
 0x3a6   : > { %15661 = vst [vmem:[#allocation93_spill] sm:$0xff] %v12405_v4  ;;  %v12410_v26 = vadd.f32 %v3597_v43, %v15662_v20  ;;  %v12413_v7 = vadd.f32 %v3449_v50, %v15663_v13  ;;  %v15666_v4 = vld [vmem:[#allocation69_spill] sm:$0xff]  ;;  %v15668_v43 = vld [vmem:[#allocation70_spill] sm:$0xff] }
 0x3a7   : > { %v8171_v6 = vpop.f32.mrf.mxu1  ;;  %v3451_v62 = vpop.f32.mrf.mxu0  ;;  %v3924_v41 = vsub.f32 %v15666_v4, %v3899_v23  ;;  %v15670_v50 = vld [vmem:[#allocation74_spill] sm:$0xff]  ;;  %v3900_v4 = vunpack.c.l.bf16 %v12055_v52 }
 0x3a8   : > { %v12416_v59 = vadd.f32 %v3451_v62, %v15664_v58 }
 0x3a9   : > { %v3602_v40 = vpop.f32.mrf.mxu1  ;;  %8301 = vmatmul.mubr.bf16.gmra.mxu1 %v3941_v30  ;;  %v3455_v34 = vpop.f32.mrf.mxu0  ;;  %4596 = vmatmul.mubr.bf16.gmra.mxu0 %v3941_v30  ;;  %v3942_v58 = vpack.c.bf16 %v3924_v41, %v3923_v39  ;;  %v3925_v41 = vsub.f32 %v12035_v2, %v3900_v4  ;;  %v15675_v39 = vld [vmem:[#allocation3_spill] sm:$0xff] }
 0x3aa   : > { %v12421_v54 = vadd.f32 %v3602_v40, %v15667_v9  ;;  %v12424_v20 = vadd.f32 %v3455_v34, %v15668_v43  ;;  %8304 = vmatprep.mubr.msk.bf16.mxu1 %vm9115_vm0, %v15124_v18  ;;  %4605 = vmatprep.mubr.bf16.mxu0 %v15081_v47  ;;  %v3901_v9 = vunpack.c.h.bf16 %v12055_v52  ;;  %v15673_v43 = vld [vmem:[#allocation77_spill] sm:$0xff]  ;;  %v15676_v52 = vld [vmem:[#allocation82_spill] sm:$0xff] }
 0x3ab   : > { %v8174_v62 = vpop.f32.mrf.mxu1  ;;  %v3457_v6 = vpop.f32.mrf.mxu0 }
 0x3ac   : > { %15669 = vst [vmem:[#allocation27_spill] sm:$0xff] %v12424_v20  ;;  %v12430_v13 = vadd.f32 %v3457_v6, %v15670_v50 }
 0x3ad   : > { %v3605_v30 = vpop.f32.mrf.mxu1  ;;  %v3459_v55 = vpop.f32.mrf.mxu0 }
 0x3ae   : > { %15671 = vst [vmem:[#allocation94_spill] sm:$0xff] %v12430_v13  ;;  %v12435_v23 = vadd.f32 %v3605_v30, %v12023_v53  ;;  %v12438_v40 = vadd.f32 %v3459_v55, %v12026_v5  ;;  %v3926_v13 = vsub.f32 %v15675_v39, %v3901_v9  ;;  %v15678_v53 = vld [vmem:[#allocation73_spill] sm:$0xff]  ;;  %v3902_v9 = vunpack.c.l.bf16 %v12094_v15 }
 0x3af   : > { %v8175_v34 = vpop.f32.mrf.mxu1  ;;  %v3461_v12 = vpop.f32.mrf.mxu0 }
 0x3b0   : > { %15672 = vst [vmem:[#allocation30_spill] sm:$0xff] %v12438_v40  ;;  %v12441_v62 = vadd.f32 %v3461_v12, %v15673_v43  ;;  %v15680_v34 = vld [vmem:[#allocation4_spill] sm:$0xff]  ;;  %v3943_v4 = vpack.c.bf16 %v3926_v13, %v3925_v41  ;;  %v15682_v43 = vld [vmem:[#allocation85_spill] sm:$0xff]  ;;  %v15685_v13 = vld [vmem:[#allocation7_spill] sm:$0xff] }
 0x3b1   : > { %v3610_v6 = vpop.f32.mrf.mxu1  ;;  %8305 = vmatmul.mubr.bf16.gmra.mxu1 %v3942_v58  ;;  %v3465_v50 = vpop.f32.mrf.mxu0  ;;  %4606 = vmatmul.mubr.bf16.gmra.mxu0 %v3942_v58  ;;  %v3927_v41 = vsub.f32 %v15685_v13, %v3902_v9 }
 0x3b2   : > { %15674 = vst [vmem:[#allocation91_spill] sm:$0xff] %v12441_v62  ;;  %v12446_v20 = vadd.f32 %v3610_v6, %v15676_v52  ;;  %v12449_v30 = vadd.f32 %v3465_v50, %v15678_v53  ;;  %8308 = vmatprep.mubr.msk.bf16.mxu1 %vm9115_vm0, %v15124_v18  ;;  %4615 = vmatprep.mubr.bf16.mxu0 %v15081_v47  ;;  %v3903_v52 = vunpack.c.h.bf16 %v12094_v15  ;;  %v15683_v50 = vld [vmem:[#allocation75_spill] sm:$0xff]  ;;  %v15687_v15 = vld [vmem:[#allocation10_spill] sm:$0xff] }
 0x3b3   : > { %v8178_v5 = vpop.f32.mrf.mxu1  ;;  %v3467_v55 = vpop.f32.mrf.mxu0 }
 0x3b4   : > { %15677 = vst [vmem:[#allocation28_spill] sm:$0xff] %v12446_v20  ;;  %15679 = vst [vmem:[#allocation96_spill] sm:$0xff] %v12449_v30  ;;  %v12455_v12 = vadd.f32 %v3467_v55, %v15680_v34  ;;  %v15684_v5 = vld [vmem:[#allocation6_spill] sm:$0xff] }
 0x3b5   : > { %v3613_v58 = vpop.f32.mrf.mxu1  ;;  %v3469_v2 = vpop.f32.mrf.mxu0 }
 0x3b6   : > { %15681 = vst [vmem:[#allocation29_spill] sm:$0xff] %v12455_v12  ;;  %v12460_v6 = vadd.f32 %v3613_v58, %v15682_v43  ;;  %v12463_v39 = vadd.f32 %v3469_v2, %v15683_v50  ;;  %v15686_v12 = vld [vmem:[#allocation9_spill] sm:$0xff]  ;;  %v15688_v58 = vld [vmem:[#allocation8_spill] sm:$0xff] }
 0x3b7   : > { %v8179_v53 = vpop.f32.mrf.mxu1  ;;  %v3471_v30 = vpop.f32.mrf.mxu0  ;;  %v3928_v62 = vsub.f32 %v15686_v12, %v3903_v52  ;;  %v15690_v50 = vld [vmem:[#allocation92_spill] sm:$0xff]  ;;  %v3904_v12 = vunpack.c.l.bf16 %v12133_v22 }
 0x3b8   : > { %v12466_v20 = vadd.f32 %v3471_v30, %v15684_v5 }
 0x3b9   : > { %v3618_v55 = vpop.f32.mrf.mxu1  ;;  %8309 = vmatmul.mubr.bf16.gmra.mxu1 %v3943_v4  ;;  %v3475_v34 = vpop.f32.mrf.mxu0  ;;  %4616 = vmatmul.mubr.bf16.gmra.mxu0 %v3943_v4  ;;  %v3944_v5 = vpack.c.bf16 %v3928_v62, %v3927_v41  ;;  %v3929_v62 = vsub.f32 %v12112_v36, %v3904_v12 }
 0x3ba   : > { %v12471_v40 = vadd.f32 %v3618_v55, %v15687_v15  ;;  %v12474_v43 = vadd.f32 %v3475_v34, %v15688_v58  ;;  %8312 = vmatprep.mubr.msk.bf16.mxu1 %vm9115_vm0, %v15124_v18  ;;  %4625 = vmatprep.mubr.bf16.mxu0 %v15081_v47  ;;  %v3905_v15 = vunpack.c.h.bf16 %v12133_v22  ;;  %v15692_v55 = vld [vmem:[#allocation76_spill] sm:$0xff]  ;;  %v15694_v22 = vld [vmem:[#allocation13_spill] sm:$0xff] }
 0x3bb   : > { %v8182_v30 = vpop.f32.mrf.mxu1  ;;  %v3477_v2 = vpop.f32.mrf.mxu0 }
 0x3bc   : > { %15689 = vst [vmem:[#allocation97_spill] sm:$0xff] %v12474_v43  ;;  %v12480_v53 = vadd.f32 %v3477_v2, %v15690_v50  ;;  %v15693_v30 = vld [vmem:[#allocation12_spill] sm:$0xff]  ;;  %v3930_v41 = vsub.f32 %v12114_v48, %v3905_v15  ;;  %v3906_v48 = vunpack.c.l.bf16 %v12164_v16 }
 0x3bd   : > { %v3621_v4 = vpop.f32.mrf.mxu1  ;;  %v3479_v9 = vpop.f32.mrf.mxu0 }
 0x3be   : > { %15691 = vst [vmem:[#allocation98_spill] sm:$0xff] %v12480_v53  ;;  %v12485_v52 = vadd.f32 %v3621_v4, %v12099_v57  ;;  %v12488_v34 = vadd.f32 %v3479_v9, %v15692_v55  ;;  %v15696_v57 = vld [vmem:[#allocation14_spill] sm:$0xff]  ;;  %v3945_v12 = vpack.c.bf16 %v3930_v41, %v3929_v62  ;;  %v15701_v62 = vld [vmem:[#allocation79_spill] sm:$0xff] }
 0x3bf   : > { %v8183_v13 = vpop.f32.mrf.mxu1  ;;  %v3481_v58 = vpop.f32.mrf.mxu0  ;;  %v3931_v41 = vsub.f32 %v15701_v62, %v3906_v48 }
 0x3c0   : > { %v12491_v43 = vadd.f32 %v3481_v58, %v15693_v30  ;;  %v15698_v13 = vld [vmem:[#allocation80_spill] sm:$0xff] }
 0x3c1   : > { %v3626_v2 = vpop.f32.mrf.mxu1  ;;  %8313 = vmatmul.mubr.bf16.gmra.mxu1 %v3944_v5  ;;  %v3485_v50 = vpop.f32.mrf.mxu0  ;;  %4626 = vmatmul.mubr.bf16.gmra.mxu0 %v3944_v5 }
 0x3c2   : > { %v12496_v53 = vadd.f32 %v3626_v2, %v15694_v22  ;;  %v12499_v4 = vadd.f32 %v3485_v50, %v15696_v57  ;;  %8316 = vmatprep.mubr.msk.bf16.mxu1 %vm9115_vm0, %v15124_v18  ;;  %4635 = vmatprep.mubr.bf16.mxu0 %v15081_v47  ;;  %v3907_v22 = vunpack.c.h.bf16 %v12164_v16  ;;  %v15700_v57 = vld [vmem:[#allocation78_spill] sm:$0xff]  ;;  %v15703_v16 = vld [vmem:[#allocation81_spill] sm:$0xff] }
 0x3c3   : > { %v8186_v9 = vpop.f32.mrf.mxu1  ;;  %v3487_v55 = vpop.f32.mrf.mxu0 }
 0x3c4   : > { %15695 = vst [vmem:[#allocation95_spill] sm:$0xff] %v12496_v53  ;;  %15697 = vst [vmem:[#allocation31_spill] sm:$0xff] %v12499_v4  ;;  %v12505_v58 = vadd.f32 %v3487_v55, %v15698_v13 }
 0x3c5   : > { %v3629_v5 = vpop.f32.mrf.mxu1  ;;  %v3489_v36 = vpop.f32.mrf.mxu0 }
 0x3c6   : > { %15699 = vst [vmem:[#allocation100_spill] sm:$0xff] %v12505_v58  ;;  %v12510_v15 = vadd.f32 %v3629_v5, %v12136_v56  ;;  %v12513_v30 = vadd.f32 %v3489_v36, %v12139_v61  ;;  %v15702_v58 = vld [vmem:[#allocation15_spill] sm:$0xff]  ;;  %v15704_v56 = vld [vmem:[#allocation110_spill] sm:$0xff] }
 0x3c7   : > { %v8187_v2 = vpop.f32.mrf.mxu1  ;;  %v3491_v50 = vpop.f32.mrf.mxu0  ;;  %v3932_v4 = vsub.f32 %v15702_v58, %v3907_v22  ;;  %v3908_v58 = vunpack.c.l.bf16 %v12197_v24 }
 0x3c8   : > { %v12516_v9 = vadd.f32 %v3491_v50, %v15700_v57  ;;  %v15705_v2 = vld [vmem:[#allocation16_spill] sm:$0xff] }
 0x3c9   : > { %v3634_v55 = vpop.f32.mrf.mxu1  ;;  %8317 = vmatmul.mubr.bf16.gmra.mxu1 %v3945_v12  ;;  %v3495_v13 = vpop.f32.mrf.mxu0  ;;  %4636 = vmatmul.mubr.bf16.gmra.mxu0 %v3945_v12  ;;  %v3946_v57 = vpack.c.bf16 %v3932_v4, %v3931_v41  ;;  %v3933_v4 = vsub.f32 %v12179_v10, %v3908_v58 }
 0x3ca   : > { %v12521_v53 = vadd.f32 %v3634_v55, %v15703_v16  ;;  %v12524_v5 = vadd.f32 %v3495_v13, %v15704_v56  ;;  %8320 = vmatprep.mubr.msk.bf16.mxu1 %vm9115_vm0, %v15124_v18  ;;  %4645 = vmatprep.mubr.bf16.mxu0 %v15081_v47  ;;  %v3909_v16 = vunpack.c.h.bf16 %v12197_v24 }
 0x3cb   : > { %v8190_v61 = vpop.f32.mrf.mxu1  ;;  %v3497_v36 = vpop.f32.mrf.mxu0 }
 0x3cc   : > { %v12530_v50 = vadd.f32 %v3497_v36, %v15705_v2  ;;  %v3934_v41 = vsub.f32 %v12181_v11, %v3909_v16  ;;  %v3910_v11 = vunpack.c.l.bf16 %v12218_v14 }
 0x3cd   : > { %v3637_v12 = vpop.f32.mrf.mxu1  ;;  %v3499_v48 = vpop.f32.mrf.mxu0 }
 0x3ce   : > { %v12535_v22 = vadd.f32 %v3637_v12, %v12169_v32  ;;  %v12538_v55 = vadd.f32 %v3499_v48, %v12172_v63  ;;  %v15706_v12 = vld [vmem:[#allocation17_spill] sm:$0xff]  ;;  %v3947_v58 = vpack.c.bf16 %v3934_v41, %v3933_v4 }
 0x3cf   : > { %v8191_v13 = vpop.f32.mrf.mxu1  ;;  %v3501_v62 = vpop.f32.mrf.mxu0 }
 0x3d0   : > { %v12541_v56 = vadd.f32 %v3501_v62, %v12175_v0  ;;  %v3935_v62 = vsub.f32 %v12202_v60, %v3910_v11 }
 0x3d1   : > { %v3642_v61 = vpop.f32.mrf.mxu1  ;;  %8321 = vmatmul.mubr.bf16.gmra.mxu1 %v3946_v57  ;;  %v3505_v36 = vpop.f32.mrf.mxu0  ;;  %4646 = vmatmul.mubr.bf16.gmra.mxu0 %v3946_v57 }
 0x3d2   : > { %v12546_v2 = vadd.f32 %v3642_v61, %v12184_v51  ;;  %v12549_v32 = vadd.f32 %v3505_v36, %v12187_v31  ;;  %8324 = vmatprep.mubr.msk.bf16.mxu1 %vm9115_vm0, %v15124_v18  ;;  %4655 = vmatprep.mubr.bf16.mxu0 %v15081_v47  ;;  %v15707_v36 = vld [vmem:[#allocation18_spill] sm:$0xff] }
 0x3d3   : > { %v8194_v0 = vpop.f32.mrf.mxu1  ;;  %v3507_v63 = vpop.f32.mrf.mxu0 }
 0x3d4   : > { %v12555_v48 = vadd.f32 %v3507_v63, %v15706_v12  ;;  %v15708_v63 = vld [vmem:[#allocation121_spill] sm:$0xff] }
 0x3d5   : > { %v3645_v57 = vpop.f32.mrf.mxu1  ;;  %v3509_v10 = vpop.f32.mrf.mxu0 }
 0x3d7   : > { %v8195_v51 = vpop.f32.mrf.mxu1  ;;  %v3510_v16 = vpop.f32.mrf.mxu0 }
 0x3d9   : > { %v4336_v13 = vpop.f32.mrf.mxu1  ;;  %8325 = vmatmul.mubr.bf16.gmra.mxu1 %v3947_v58  ;;  %v4175_v31 = vpop.f32.mrf.mxu0  ;;  %4656 = vmatmul.mubr.bf16.gmra.mxu0 %v3947_v58  ;;  %v3948_v58 = vpack.c.bf16 %v3935_v62, %v3935_v62  ;;  %v15710_v62 = vld [vmem:[#allocation20_spill] sm:$0xff] }
 0x3da   : > { %v12560_v61 = vadd.f32 %v4336_v13, %v12205_v25  ;;  %v12563_v0 = vadd.f32 %v4175_v31, %v15707_v36  ;;  %8328 = vmatprep.mubr.msk.bf16.mxu1 %vm9115_vm0, %v15124_v18  ;;  %4665 = vmatprep.mubr.bf16.mxu0 %v15081_v47  ;;  %v15709_v36 = vld [vmem:[#allocation19_spill] sm:$0xff] }
 0x3db   : > { %v8214_v4 = vpop.f32.mrf.mxu1  ;;  %v4177_v41 = vpop.f32.mrf.mxu0 }
 0x3dc   : > { %v12569_v12 = vadd.f32 %v4177_v41, %v15708_v63 }
 0x3dd   : > { %v4339_v57 = vpop.f32.mrf.mxu1  ;;  %v4179_v10 = vpop.f32.mrf.mxu0 }
 0x3de   : > { %v12572_v60 = vadd.f32 %v4339_v57, %v12223_v46  ;;  %v12575_v25 = vadd.f32 %v4179_v10, %v12226_v45 }
 0x3df   : > { %v8215_v11 = vpop.f32.mrf.mxu1  ;;  %v4181_v51 = vpop.f32.mrf.mxu0 }
 0x3e0   : > { %v12578_v16 = vadd.f32 %v4181_v51, %v12229_v21  ;;  %v12599_v11 = vld [vmem:[%s9388_s10 + $0x2e8] ss:$12 sps:$4 sm:$0xff]   ;;  %v12602_v51 = vld [vmem:[%s9388_s10 + $0x2f0] ss:$12 sps:$4 sm:$0xff]  }
 0x3e1   : > { %v4344_v13 = vpop.f32.mrf.mxu1  ;;  %8329 = vmatmul.mubr.bf16.gmra.mxu1 %v3948_v58  ;;  %v4185_v31 = vpop.f32.mrf.mxu0  ;;  %4666 = vmatmul.mubr.bf16.gmra.mxu0 %v3948_v58  ;;  %15711 = vst [vmem:[#allocation32_spill] sm:$0xff] %v12602_v51 }
 0x3e2   : > { %v12581_v4 = vadd.f32 %v4344_v13, %v15709_v36  ;;  %v12584_v46 = vadd.f32 %v4185_v31, %v15710_v62  ;;  %8348 = vmatprep.mubr.msk.bf16.mxu1 %vm9115_vm0, %v15124_v18  ;;  %5045 = vmatprep.mubr.bf16.mxu0 %v15081_v47  ;;  %v15712_v36 = vld [vmem:[#allocation127_spill] sm:$0xff] }
 0x3e3   : > { %v8218_v45 = vpop.f32.mrf.mxu1  ;;  %v4187_v21 = vpop.f32.mrf.mxu0 }
 0x3e4   : > { %v12590_v41 = vadd.f32 %v4187_v21, %v12245_v17  ;;  %v12608_v17 = vld [vmem:[%s9388_s10 + $0x2d4] ss:$12 sps:$4 sm:$0xff]  }
 0x3e5   : > { %v4347_v63 = vpop.f32.mrf.mxu1  ;;  %v4189_v57 = vpop.f32.mrf.mxu0  ;;  %15713 = vst [vmem:[#allocation101_spill] sm:$0xff] %v12608_v17 }
 0x3e6   : > { %v12593_v10 = vadd.f32 %v4347_v63, %v12250_v37  ;;  %v12596_v58 = vadd.f32 %v4189_v57, %v12253_v49  ;;  %v15714_v37 = vld [vmem:[#allocation52_spill] sm:$0xff]  ;;  %v12621_v57 = vld [vmem:[%s9388_s10 + $0x2d0] ss:$12 sps:$4 sm:$0xff]  }
 0x3e7   : > { %v8219_v13 = vpop.f32.mrf.mxu1  ;;  %v4191_v31 = vpop.f32.mrf.mxu0  ;;  %15715 = vst [vmem:[#allocation35_spill] sm:$0xff] %v12621_v57 }
 0x3e8   : > { %v12605_v62 = vadd.f32 %v4191_v31, %v15712_v36  ;;  %v12624_v13 = vld [vmem:[%s9388_s10 + $0x2d8] ss:$12 sps:$4 sm:$0xff]  }
 0x3e9   : > { %v4352_v45 = vpop.f32.mrf.mxu1  ;;  %8349 = vmatmul.mubr.bf16.vlgmr.msra.gmra.mxu1 %v15714_v37  ;;  %v4195_v21 = vpop.f32.mrf.mxu0  ;;  %5046 = vmatmul.mubr.bf16.vlgmr.msra.gmra.mxu0 %v15714_v37  ;;  %15716 = vst [vmem:[#allocation99_spill] sm:$0xff] %v12624_v13 }
 0x3ea   : > { %v12613_v49 = vadd.f32 %v4352_v45, %v12264_v29  ;;  %v12616_v63 = vadd.f32 %v4195_v21, %v12267_v42  ;;  %5804 = vmatpush1.bf16.msra.mxu0 %v12599_v11  ;;  %8401 = vmatpush3.bf16.msra.mxu1 %v12602_v51  ;;  %v12630_v29 = vld [vmem:[%s9388_s10 + $0x2bc] ss:$12 sps:$4 sm:$0xff]  }
 0x3eb   : > { %v8222_v31 = vpop.f32.mrf.mxu1  ;;  %v4197_v36 = vpop.f32.mrf.mxu0  ;;  %8352 = vmatprep.mubr.msk.bf16.mxu1 %vm9115_vm0, %v15124_v18  ;;  %5055 = vmatprep.mubr.bf16.mxu0 %v15081_v47  ;;  %15717 = vst [vmem:[#allocation33_spill] sm:$0xff] %v12630_v29 }
 0x3ec   : > { %v12633_v42 = vadd.f32 %v4197_v36, %v12276_v28  ;;  %5805 = vmatprep.subr.bf16.mxu0 %v12608_v17  ;;  %8402 = vmatprep.subr.bf16.mxu1 %v15124_v18  ;;  %v12646_v36 = vld [vmem:[%s9388_s10 + $0x2b8] ss:$12 sps:$4 sm:$0xff]   ;;  %v12651_v17 = vld [vmem:[%s9388_s10 + $0x2c0] ss:$12 sps:$4 sm:$0xff]  }
 0x3ed   : > { %v4355_v45 = vpop.f32.mrf.mxu1  ;;  %v4199_v37 = vpop.f32.mrf.mxu0  ;;  %15719 = vst [vmem:[#allocation34_spill] sm:$0xff] %v12646_v36  ;;  %15720 = vst [vmem:[#allocation37_spill] sm:$0xff] %v12651_v17 }
 0x3ee   : > { %v12638_v21 = vadd.f32 %v4355_v45, %v12282_v35  ;;  %v12641_v31 = vadd.f32 %v4199_v37, %v12285_v38  ;;  %5806 = vmatpush1.bf16.msra.mxu0 %v12621_v57  ;;  %8403 = vmatpush3.bf16.msra.mxu1 %v12624_v13  ;;  %v12657_v38 = vld [vmem:[%s9388_s10 + $0x2a4] ss:$12 sps:$4 sm:$0xff]  }
 0x3ef   : > { %v8223_v51 = vpop.f32.mrf.mxu1  ;;  %v4201_v28 = vpop.f32.mrf.mxu0  ;;  %5807 = vmatprep.subr.bf16.mxu0 %v12630_v29  ;;  %8404 = vmatprep.subr.bf16.mxu1 %v15124_v18  ;;  %15722 = vst [vmem:[#allocation102_spill] sm:$0xff] %v12657_v38  ;;  %v15723_v37 = vld [vmem:[#allocation53_spill] sm:$0xff] }
 0x3f0   : > { %15718 = vst [vmem:[#allocation104_spill] sm:$0xff] %v12641_v31  ;;  %v12654_v35 = vadd.f32 %v4201_v28, %v12291_v27  ;;  %v15725_v13 = vld [vmem:[#allocation21_spill] sm:$0xff] }
 0x3f1   : > { %v4360_v45 = vpop.f32.mrf.mxu1  ;;  %8353 = vmatmul.mubr.bf16.gmra.mxu1 %v15723_v37  ;;  %v4205_v51 = vpop.f32.mrf.mxu0  ;;  %5056 = vmatmul.mubr.bf16.gmra.mxu0 %v15723_v37  ;;  %v12673_v37 = vld [vmem:[%s9388_s10 + $0x2a0] ss:$12 sps:$4 sm:$0xff]  }
 0x3f2   : > { %15721 = vst [vmem:[#allocation107_spill] sm:$0xff] %v12654_v35  ;;  %v12662_v29 = vadd.f32 %v4360_v45, %v12297_v19  ;;  %v12665_v57 = vadd.f32 %v4205_v51, %v15725_v13  ;;  %8356 = vmatprep.mubr.msk.bf16.mxu1 %vm9115_vm0, %v15124_v18  ;;  %5065 = vmatprep.mubr.bf16.mxu0 %v15081_v47  ;;  %15727 = vst [vmem:[#allocation108_spill] sm:$0xff] %v12673_v37  ;;  %v12676_v19 = vld [vmem:[%s9388_s10 + $0x2a8] ss:$12 sps:$4 sm:$0xff]   ;;  %v15729_v45 = vld [vmem:[#allocation22_spill] sm:$0xff] }
 0x3f3   : > { %v8226_v27 = vpop.f32.mrf.mxu1  ;;  %v4207_v28 = vpop.f32.mrf.mxu0  ;;  %5808 = vmatpush1.bf16.msra.mxu0 %v12646_v36  ;;  %8405 = vmatpush3.bf16.msra.mxu1 %v12651_v17  ;;  %15728 = vst [vmem:[#allocation105_spill] sm:$0xff] %v12676_v19  ;;  %v12684_v51 = vld [vmem:[%s9388_s10 + $0x28c] ss:$12 sps:$4 sm:$0xff]   ;;  %v15732_v17 = vld [vmem:[#allocation23_spill] sm:$0xff] }
 0x3f4   : > { %15724 = vst [vmem:[#allocation36_spill] sm:$0xff] %v12662_v29  ;;  %15726 = vst [vmem:[#allocation38_spill] sm:$0xff] %v12665_v57  ;;  %v12679_v13 = vadd.f32 %v4207_v28, %v15729_v45  ;;  %5809 = vmatprep.subr.bf16.mxu0 %v12657_v38  ;;  %8406 = vmatprep.subr.bf16.mxu1 %v15124_v18  ;;  %v12695_v28 = vld [vmem:[%s9388_s10 + $0x288] ss:$12 sps:$4 sm:$0xff]   ;;  %v12698_v45 = vld [vmem:[%s9388_s10 + $0x290] ss:$12 sps:$4 sm:$0xff]  }
 0x3f5   : > { %15731 = vst [vmem:[#allocation39_spill] sm:$0xff] %v12684_v51  ;;  %v4363_v27 = vpop.f32.mrf.mxu1  ;;  %v4209_v36 = vpop.f32.mrf.mxu0  ;;  %15733 = vst [vmem:[#allocation109_spill] sm:$0xff] %v12695_v28  ;;  %v15735_v38 = vld [vmem:[#allocation84_spill] sm:$0xff] }
 0x3f6   : > { %15730 = vst [vmem:[#allocation106_spill] sm:$0xff] %v12679_v13  ;;  %v12687_v57 = vadd.f32 %v4363_v27, %v12315_v8  ;;  %v12690_v29 = vadd.f32 %v4209_v36, %v15732_v17  ;;  %15734 = vst [vmem:[#allocation40_spill] sm:$0xff] %v12698_v45  ;;  %v12706_v8 = vld [vmem:[%s9388_s10 + $0x274] ss:$12 sps:$4 sm:$0xff]  }
 0x3f7   : > { %v8227_v35 = vpop.f32.mrf.mxu1  ;;  %v4211_v31 = vpop.f32.mrf.mxu0  ;;  %5810 = vmatpush1.bf16.msra.mxu0 %v12673_v37  ;;  %8407 = vmatpush3.bf16.msra.mxu1 %v12676_v19  ;;  %15737 = vst [vmem:[#allocation41_spill] sm:$0xff] %v12706_v8  ;;  %v15738_v36 = vld [vmem:[#allocation129_spill] sm:$0xff]  ;;  %v15739_v27 = vld [vmem:[#allocation135_spill] sm:$0xff] }
 0x3f8   : > { %v12701_v13 = vadd.f32 %v4211_v31, %v15735_v38  ;;  %5811 = vmatprep.subr.bf16.mxu0 %v12684_v51  ;;  %8408 = vmatprep.subr.bf16.mxu1 %v15124_v18  ;;  %v15741_v31 = vld [vmem:[#allocation24_spill] sm:$0xff] }
 0x3f9   : > { %v4368_v17 = vpop.f32.mrf.mxu1  ;;  %8357 = vmatmul.mubr.bf16.gmra.mxu1 %v15738_v36  ;;  %v4215_v35 = vpop.f32.mrf.mxu0  ;;  %5066 = vmatmul.mubr.bf16.gmra.mxu0 %v15738_v36  ;;  %v12722_v36 = vld [vmem:[%s9388_s10 + $0x270] ss:$12 sps:$4 sm:$0xff]  }
 0x3fa   : > { %15736 = vst [vmem:[#allocation111_spill] sm:$0xff] %v12701_v13  ;;  %v12711_v19 = vadd.f32 %v4368_v17, %v15739_v27  ;;  %v12714_v38 = vadd.f32 %v4215_v35, %v15741_v31  ;;  %8360 = vmatprep.mubr.msk.bf16.mxu1 %vm9115_vm0, %v15124_v18  ;;  %5075 = vmatprep.mubr.bf16.mxu0 %v15081_v47  ;;  %15743 = vst [vmem:[#allocation113_spill] sm:$0xff] %v12722_v36  ;;  %v12725_v17 = vld [vmem:[%s9388_s10 + $0x278] ss:$12 sps:$4 sm:$0xff]  }
 0x3fb   : > { %v8230_v51 = vpop.f32.mrf.mxu1  ;;  %v4217_v13 = vpop.f32.mrf.mxu0  ;;  %5812 = vmatpush1.bf16.msra.mxu0 %v12695_v28  ;;  %8409 = vmatpush3.bf16.msra.mxu1 %v12698_v45  ;;  %15744 = vst [vmem:[#allocation43_spill] sm:$0xff] %v12725_v17  ;;  %v15745_v27 = vld [vmem:[#allocation86_spill] sm:$0xff] }
 0x3fc   : > { %15740 = vst [vmem:[#allocation112_spill] sm:$0xff] %v12711_v19  ;;  %15742 = vst [vmem:[#allocation42_spill] sm:$0xff] %v12714_v38  ;;  %v12728_v35 = vadd.f32 %v4217_v13, %v15745_v27  ;;  %5813 = vmatprep.subr.bf16.mxu0 %v12706_v8  ;;  %8410 = vmatprep.subr.bf16.mxu1 %v15124_v18  ;;  %v12733_v51 = vld [vmem:[%s9388_s10 + $0x25c] ss:$12 sps:$4 sm:$0xff]   ;;  %v12744_v13 = vld [vmem:[%s9388_s10 + $0x258] ss:$12 sps:$4 sm:$0xff]  }
 0x3fd   : > { %15747 = vst [vmem:[#allocation44_spill] sm:$0xff] %v12733_v51  ;;  %v4371_v31 = vpop.f32.mrf.mxu1  ;;  %v4219_v28 = vpop.f32.mrf.mxu0  ;;  %15748 = vst [vmem:[#allocation115_spill] sm:$0xff] %v12744_v13  ;;  %v12747_v27 = vld [vmem:[%s9388_s10 + $0x260] ss:$12 sps:$4 sm:$0xff]   ;;  %v15750_v8 = vld [vmem:[#allocation25_spill] sm:$0xff] }
 0x3fe   : > { %15746 = vst [vmem:[#allocation114_spill] sm:$0xff] %v12728_v35  ;;  %v12736_v38 = vadd.f32 %v4371_v31, %v12348_v33  ;;  %v12739_v45 = vadd.f32 %v4219_v28, %v12351_v3  ;;  %15749 = vst [vmem:[#allocation116_spill] sm:$0xff] %v12747_v27  ;;  %v12755_v3 = vld [vmem:[%s9388_s10 + $0x244] ss:$12 sps:$4 sm:$0xff]  }
 0x3ff   : > { %v8231_v19 = vpop.f32.mrf.mxu1  ;;  %v4221_v37 = vpop.f32.mrf.mxu0  ;;  %5814 = vmatpush1.bf16.msra.mxu0 %v12722_v36  ;;  %8411 = vmatpush3.bf16.msra.mxu1 %v12725_v17  ;;  %15752 = vst [vmem:[#allocation45_spill] sm:$0xff] %v12755_v3  ;;  %v15765_v36 = vld [vmem:[#allocation63_spill] sm:$0xff] }
 0x400   : > { %v12750_v35 = vadd.f32 %v4221_v37, %v15750_v8  ;;  %5815 = vmatprep.subr.bf16.mxu0 %v12733_v51  ;;  %8412 = vmatprep.subr.bf16.mxu1 %v15124_v18  ;;  %v15753_v19 = vld [vmem:[#allocation59_spill] sm:$0xff] }
 0x401   : > { %v4376_v33 = vpop.f32.mrf.mxu1  ;;  %8361 = vmatmul.mubr.bf16.gmra.mxu1 %v15753_v19  ;;  %v4225_v28 = vpop.f32.mrf.mxu0  ;;  %5076 = vmatmul.mubr.bf16.gmra.mxu0 %v15753_v19  ;;  %v12774_v19 = vld [vmem:[%s9388_s10 + $0x248] ss:$12 sps:$4 sm:$0xff]  }
 0x402   : > { %15751 = vst [vmem:[#allocation117_spill] sm:$0xff] %v12750_v35  ;;  %v12760_v31 = vadd.f32 %v4376_v33, %v12363_v1  ;;  %v12763_v37 = vadd.f32 %v4225_v28, %v12366_v44  ;;  %8364 = vmatprep.mubr.msk.bf16.mxu1 %vm9115_vm0, %v15124_v18  ;;  %5085 = vmatprep.mubr.bf16.mxu0 %v15081_v47  ;;  %v12771_v35 = vld [vmem:[%s9388_s10 + $0x240] ss:$12 sps:$4 sm:$0xff]   ;;  %15757 = vst [vmem:[#allocation47_spill] sm:$0xff] %v12774_v19  ;;  %v15758_v1 = vld [vmem:[#allocation141_spill] sm:$0xff] }
 0x403   : > { %v8234_v8 = vpop.f32.mrf.mxu1  ;;  %v4227_v51 = vpop.f32.mrf.mxu0  ;;  %5816 = vmatpush1.bf16.msra.mxu0 %v12744_v13  ;;  %8413 = vmatpush3.bf16.msra.mxu1 %v12747_v27  ;;  %15756 = vst [vmem:[#allocation119_spill] sm:$0xff] %v12771_v35 }
 0x404   : > { %15754 = vst [vmem:[#allocation118_spill] sm:$0xff] %v12760_v31  ;;  %15755 = vst [vmem:[#allocation46_spill] sm:$0xff] %v12763_v37  ;;  %v12777_v33 = vadd.f32 %v4227_v51, %v15758_v1  ;;  %5817 = vmatprep.subr.bf16.mxu0 %v12755_v3  ;;  %8414 = vmatprep.subr.bf16.mxu1 %v15124_v18  ;;  %v15760_v37 = vld [vmem:[#allocation87_spill] sm:$0xff]  ;;  %v15761_v31 = vld [vmem:[#allocation89_spill] sm:$0xff] }
 0x405   : > { %v4379_v44 = vpop.f32.mrf.mxu1  ;;  %v4229_v28 = vpop.f32.mrf.mxu0  ;;  %v15762_v51 = vld [vmem:[#allocation26_spill] sm:$0xff]  ;;  %v15764_v3 = vld [vmem:[#allocation147_spill] sm:$0xff] }
 0x406   : > { %15759 = vst [vmem:[#allocation120_spill] sm:$0xff] %v12777_v33  ;;  %v12782_v8 = vadd.f32 %v4379_v44, %v15760_v37  ;;  %v12785_v13 = vadd.f32 %v4229_v28, %v15761_v31  ;;  %v15766_v31 = vld [vmem:[#allocation90_spill] sm:$0xff]  ;;  %v15768_v44 = vld [vmem:[#allocation88_spill] sm:$0xff] }
 0x407   : > { %v8235_v27 = vpop.f32.mrf.mxu1  ;;  %v4231_v17 = vpop.f32.mrf.mxu0  ;;  %5818 = vmatpush1.bf16.msra.mxu0 %v12771_v35  ;;  %8415 = vmatpush3.bf16.msra.mxu1 %v12774_v19 }
 0x408   : > { %v12790_v1 = vadd.f32 %v4231_v17, %v15762_v51  ;;  %6175 = vmatprep.subr.bf16.mxu0 %v15764_v3  ;;  %8468 = vmatprep.subr.bf16.mxu1 %v15124_v18  ;;  %v15770_v51 = vld [vmem:[#allocation93_spill] sm:$0xff] }
 0x409   : > { %v4384_v33 = vpop.f32.mrf.mxu1  ;;  %8365 = vmatmul.mubr.bf16.gmra.mxu1 %v15765_v36  ;;  %v4235_v37 = vpop.f32.mrf.mxu0  ;;  %5086 = vmatmul.mubr.bf16.gmra.mxu0 %v15765_v36 }
 0x40a   : > { %15763 = vst [vmem:[#allocation48_spill] sm:$0xff] %v12790_v1  ;;  %v12797_v27 = vadd.f32 %v4384_v33, %v15766_v31  ;;  %v12800_v28 = vadd.f32 %v4235_v37, %v15768_v44  ;;  %8368 = vmatprep.mubr.msk.bf16.mxu1 %vm9115_vm0, %v15124_v18  ;;  %5095 = vmatprep.mubr.bf16.mxu0 %v15081_v47 }
 0x40b   : > { %v8238_v17 = vpop.f32.mrf.mxu1  ;;  %v4237_v3 = vpop.f32.mrf.mxu0 }
 0x40c   : > { %15767 = vst [vmem:[#allocation122_spill] sm:$0xff] %v12797_v27  ;;  %15769 = vst [vmem:[#allocation49_spill] sm:$0xff] %v12800_v28  ;;  %v12806_v1 = vadd.f32 %v4237_v3, %v15770_v51  ;;  %v15773_v27 = vld [vmem:[#allocation144_spill] sm:$0xff]  ;;  %v15775_v51 = vld [vmem:[#allocation27_spill] sm:$0xff] }
 0x40d   : > { %v4387_v19 = vpop.f32.mrf.mxu1  ;;  %v4239_v35 = vpop.f32.mrf.mxu0 }
 0x40e   : > { %v12809_v36 = vadd.f32 %v4387_v19, %v12410_v26  ;;  %v12812_v33 = vadd.f32 %v4239_v35, %v12413_v7  ;;  %v15777_v35 = vld [vmem:[#allocation94_spill] sm:$0xff] }
 0x40f   : > { %v8239_v37 = vpop.f32.mrf.mxu1  ;;  %v4241_v31 = vpop.f32.mrf.mxu0 }
 0x410   : > { %15771 = vst [vmem:[#allocation124_spill] sm:$0xff] %v12812_v33  ;;  %v12815_v44 = vadd.f32 %v4241_v31, %v12416_v59  ;;  %v15781_v33 = vld [vmem:[#allocation71_spill] sm:$0xff] }
 0x411   : > { %v4392_v28 = vpop.f32.mrf.mxu1  ;;  %8369 = vmatmul.mubr.bf16.gmra.mxu1 %v15773_v27  ;;  %v4245_v17 = vpop.f32.mrf.mxu0  ;;  %5096 = vmatmul.mubr.bf16.gmra.mxu0 %v15773_v27 }
 0x412   : > { %15772 = vst [vmem:[#allocation50_spill] sm:$0xff] %v12815_v44  ;;  %v12820_v3 = vadd.f32 %v4392_v28, %v12421_v54  ;;  %v12823_v26 = vadd.f32 %v4245_v17, %v15775_v51  ;;  %8372 = vmatprep.mubr.msk.bf16.mxu1 %vm9115_vm0, %v15124_v18  ;;  %5105 = vmatprep.mubr.bf16.mxu0 %v15081_v47  ;;  %v15779_v54 = vld [vmem:[#allocation30_spill] sm:$0xff] }
 0x413   : > { %v8242_v7 = vpop.f32.mrf.mxu1  ;;  %v4247_v59 = vpop.f32.mrf.mxu0 }
 0x414   : > { %15774 = vst [vmem:[#allocation125_spill] sm:$0xff] %v12820_v3  ;;  %15776 = vst [vmem:[#allocation123_spill] sm:$0xff] %v12823_v26  ;;  %v12829_v19 = vadd.f32 %v4247_v59, %v15777_v35  ;;  %v15780_v26 = vld [vmem:[#allocation91_spill] sm:$0xff]  ;;  %v15782_v59 = vld [vmem:[#allocation28_spill] sm:$0xff] }
 0x415   : > { %v4395_v37 = vpop.f32.mrf.mxu1  ;;  %v4249_v31 = vpop.f32.mrf.mxu0 }
 0x416   : > { %15778 = vst [vmem:[#allocation51_spill] sm:$0xff] %v12829_v19  ;;  %v12832_v27 = vadd.f32 %v4395_v37, %v12435_v23  ;;  %v12835_v28 = vadd.f32 %v4249_v31, %v15779_v54  ;;  %v15784_v19 = vld [vmem:[#allocation96_spill] sm:$0xff]  ;;  %v15786_v31 = vld [vmem:[#allocation29_spill] sm:$0xff] }
 0x417   : > { %v8243_v17 = vpop.f32.mrf.mxu1  ;;  %v4251_v51 = vpop.f32.mrf.mxu0 }
 0x418   : > { %v12838_v3 = vadd.f32 %v4251_v51, %v15780_v26 }
 0x419   : > { %v4400_v44 = vpop.f32.mrf.mxu1  ;;  %8373 = vmatmul.mubr.bf16.gmra.mxu1 %v15781_v33  ;;  %v4255_v7 = vpop.f32.mrf.mxu0  ;;  %5106 = vmatmul.mubr.bf16.gmra.mxu0 %v15781_v33 }
 0x41a   : > { %v12843_v35 = vadd.f32 %v4400_v44, %v15782_v59  ;;  %v12846_v23 = vadd.f32 %v4255_v7, %v15784_v19  ;;  %8376 = vmatprep.mubr.msk.bf16.mxu1 %vm9115_vm0, %v15124_v18  ;;  %5115 = vmatprep.mubr.bf16.mxu0 %v15081_v47 }
 0x41b   : > { %v8246_v37 = vpop.f32.mrf.mxu1  ;;  %v4257_v26 = vpop.f32.mrf.mxu0 }
 0x41c   : > { %15783 = vst [vmem:[#allocation126_spill] sm:$0xff] %v12843_v35  ;;  %15785 = vst [vmem:[#allocation128_spill] sm:$0xff] %v12846_v23  ;;  %v12852_v54 = vadd.f32 %v4257_v26, %v15786_v31  ;;  %v15787_v35 = vld [vmem:[#allocation5_spill] sm:$0xff] }
 0x41d   : > { %v4403_v17 = vpop.f32.mrf.mxu1  ;;  %v4259_v51 = vpop.f32.mrf.mxu0  ;;  %v15788_v31 = vld [vmem:[#allocation97_spill] sm:$0xff] }
 0x41e   : > { %v12855_v33 = vadd.f32 %v4403_v17, %v12460_v6  ;;  %v12858_v44 = vadd.f32 %v4259_v51, %v12463_v39  ;;  %v15790_v17 = vld [vmem:[#allocation98_spill] sm:$0xff] }
 0x41f   : > { %v8247_v19 = vpop.f32.mrf.mxu1  ;;  %v4261_v7 = vpop.f32.mrf.mxu0 }
 0x420   : > { %v12861_v59 = vadd.f32 %v4261_v7, %v12466_v20 }
 0x421   : > { %v4408_v23 = vpop.f32.mrf.mxu1  ;;  %8377 = vmatmul.mubr.bf16.gmra.mxu1 %v15787_v35  ;;  %v4265_v37 = vpop.f32.mrf.mxu0  ;;  %5116 = vmatmul.mubr.bf16.gmra.mxu0 %v15787_v35 }
 0x422   : > { %v12866_v26 = vadd.f32 %v4408_v23, %v12471_v40  ;;  %v12869_v6 = vadd.f32 %v4265_v37, %v15788_v31  ;;  %8380 = vmatprep.mubr.msk.bf16.mxu1 %vm9115_vm0, %v15124_v18  ;;  %5125 = vmatprep.mubr.bf16.mxu0 %v15081_v47 }
 0x423   : > { %v8250_v39 = vpop.f32.mrf.mxu1  ;;  %v4267_v20 = vpop.f32.mrf.mxu0 }
 0x424   : > { %15789 = vst [vmem:[#allocation54_spill] sm:$0xff] %v12869_v6  ;;  %v12875_v51 = vadd.f32 %v4267_v20, %v15790_v17  ;;  %v15794_v6 = vld [vmem:[#allocation11_spill] sm:$0xff] }
 0x425   : > { %v4411_v19 = vpop.f32.mrf.mxu1  ;;  %v4269_v7 = vpop.f32.mrf.mxu0  ;;  %v15795_v17 = vld [vmem:[#allocation95_spill] sm:$0xff] }
 0x426   : > { %15791 = vst [vmem:[#allocation55_spill] sm:$0xff] %v12875_v51  ;;  %v12878_v35 = vadd.f32 %v4411_v19, %v12485_v52  ;;  %v12881_v40 = vadd.f32 %v4269_v7, %v12488_v34  ;;  %v15797_v52 = vld [vmem:[#allocation31_spill] sm:$0xff]  ;;  %v15799_v7 = vld [vmem:[#allocation100_spill] sm:$0xff] }
 0x427   : > { %v8251_v23 = vpop.f32.mrf.mxu1  ;;  %v4271_v37 = vpop.f32.mrf.mxu0 }
 0x428   : > { %15792 = vst [vmem:[#allocation130_spill] sm:$0xff] %v12881_v40  ;;  %v12884_v31 = vadd.f32 %v4271_v37, %v12491_v43  ;;  %v12901_v37 = vld [vmem:[%s9395_s14 + $0x18] sm:$0xff] }
 0x429   : > { %v4416_v39 = vpop.f32.mrf.mxu1  ;;  %8381 = vmatmul.mubr.bf16.gmra.mxu1 %v15794_v6  ;;  %v4275_v20 = vpop.f32.mrf.mxu0  ;;  %5126 = vmatmul.mubr.bf16.gmra.mxu0 %v15794_v6  ;;  %v12904_v40 = vld [vmem:[%s9395_s14 + $0x38] sm:$0xff] }
 0x42a   : > { %15793 = vst [vmem:[#allocation56_spill] sm:$0xff] %v12884_v31  ;;  %v12889_v51 = vadd.f32 %v4416_v39, %v15795_v17  ;;  %v12892_v19 = vadd.f32 %v4275_v20, %v15797_v52  ;;  %8384 = vmatprep.mubr.msk.bf16.mxu1 %vm9115_vm0, %v15124_v18  ;;  %5135 = vmatprep.mubr.bf16.mxu0 %v15081_v47 }
 0x42b   : > { %v8254_v34 = vpop.f32.mrf.mxu1  ;;  %v4277_v43 = vpop.f32.mrf.mxu0 }
 0x42c   : > { %15796 = vst [vmem:[#allocation131_spill] sm:$0xff] %v12889_v51  ;;  %15798 = vst [vmem:[#allocation57_spill] sm:$0xff] %v12892_v19  ;;  %v12898_v23 = vadd.f32 %v4277_v43, %v15799_v7  ;;  %v5435_v34 = vmul.f32 0.70710677, %v12901_v37  ;;  %v5436_v43 = vmul.f32 0.70710677, %v12904_v40 }
 0x42d   : > { %v4419_v31 = vpop.f32.mrf.mxu1  ;;  %v4279_v6 = vpop.f32.mrf.mxu0 }
 0x42e   : > { %15800 = vst [vmem:[#allocation132_spill] sm:$0xff] %v12898_v23  ;;  %v12907_v39 = vadd.f32 %v4419_v31, %v12510_v15  ;;  %v12910_v20 = vadd.f32 %v4279_v6, %v12513_v30  ;;  %v15801_v23 = vld [vmem:[#allocation103_spill] sm:$0xff]  ;;  %9040 = verf.f32 %v5435_v34 }
 0x42f   : > { %v8255_v17 = vpop.f32.mrf.mxu1  ;;  %v4281_v52 = vpop.f32.mrf.mxu0  ;;  %9042 = verf.f32 %v5436_v43 }
 0x430   : > { %v12914_v19 = vadd.f32 %v4281_v52, %v12516_v9  ;;  %v12932_v52 = vld [vmem:[%s9395_s14 + $0x58] sm:$0xff] }
 0x431   : > { %v4424_v7 = vpop.f32.mrf.mxu1  ;;  %8385 = vmatmul.mubr.bf16.gmra.mxu1 %v15801_v23  ;;  %v4285_v51 = vpop.f32.mrf.mxu0  ;;  %5136 = vmatmul.mubr.bf16.gmra.mxu0 %v15801_v23 }
 0x432   : > { %v12920_v15 = vadd.f32 %v4424_v7, %v12521_v53  ;;  %v12923_v30 = vadd.f32 %v4285_v51, %v12524_v5  ;;  %8388 = vmatprep.mubr.msk.bf16.mxu1 %vm9115_vm0, %v15124_v18  ;;  %5145 = vmatprep.mubr.bf16.mxu0 %v15081_v47  ;;  %v12941_v51 = vld [vmem:[%s9395_s14 + $0x78] sm:$0xff] }
 0x433   : > { %v8258_v9 = vpop.f32.mrf.mxu1  ;;  %v4287_v31 = vpop.f32.mrf.mxu0 }
 0x434   : > { %v12929_v6 = vadd.f32 %v4287_v31, %v12530_v50  ;;  %v5437_v50 = vmul.f32 0.70710677, %v12932_v52  ;;  %v15805_v31 = vld [vmem:[#allocation83_spill] sm:$0xff] }
 0x435   : > { %v4427_v17 = vpop.f32.mrf.mxu1  ;;  %v4289_v23 = vpop.f32.mrf.mxu0 }
 0x436   : > { %15802 = vst [vmem:[#allocation58_spill] sm:$0xff] %v12929_v6  ;;  %v12935_v53 = vadd.f32 %v4427_v17, %v12535_v22  ;;  %v12938_v5 = vadd.f32 %v4289_v23, %v12538_v55  ;;  %v5438_v22 = vmul.f32 0.70710677, %v12941_v51  ;;  %9044 = verf.f32 %v5437_v50 }
 0x437   : > { %v8259_v7 = vpop.f32.mrf.mxu1  ;;  %v4291_v9 = vpop.f32.mrf.mxu0 }
 0x438   : > { %15803 = vst [vmem:[#allocation133_spill] sm:$0xff] %v12938_v5  ;;  %v12944_v34 = vadd.f32 %v4291_v9, %v12541_v56  ;;  %v12963_v9 = vld [vmem:[%s9395_s14 + $0x98] sm:$0xff]  ;;  %9046 = verf.f32 %v5438_v22 }
 0x439   : > { %v4432_v43 = vpop.f32.mrf.mxu1  ;;  %8389 = vmatmul.mubr.bf16.gmra.mxu1 %v15805_v31  ;;  %v4295_v6 = vpop.f32.mrf.mxu0  ;;  %5146 = vmatmul.mubr.bf16.gmra.mxu0 %v15805_v31 }
 0x43a   : > { %15804 = vst [vmem:[#allocation134_spill] sm:$0xff] %v12944_v34  ;;  %v12951_v55 = vadd.f32 %v4432_v43, %v12546_v2  ;;  %v12954_v17 = vadd.f32 %v4295_v6, %v12549_v32  ;;  %8392 = vmatprep.mubr.msk.bf16.mxu1 %vm9115_vm0, %v15124_v18  ;;  %5155 = vmatprep.mubr.bf16.mxu0 %v15081_v47  ;;  %v12966_v2 = vld [vmem:[%s9395_s14 + $0xb8] sm:$0xff]  ;;  %v5439_v43 = vmul.f32 0.70710677, %v12963_v9 }
 0x43b   : > { %v8262_v56 = vpop.f32.mrf.mxu1  ;;  %v4297_v23 = vpop.f32.mrf.mxu0 }
 0x43c   : > { %15806 = vst [vmem:[#allocation60_spill] sm:$0xff] %v12951_v55  ;;  %15807 = vst [vmem:[#allocation136_spill] sm:$0xff] %v12954_v17  ;;  %v12960_v7 = vadd.f32 %v4297_v23, %v12555_v48  ;;  %v9041_v17 = vpop.eup %9040  ;;  %v5440_v55 = vmul.f32 0.70710677, %v12966_v2  ;;  %9048 = verf.f32 %v5439_v43 }
 0x43d   : > { %v4435_v31 = vpop.f32.mrf.mxu1  ;;  %v4299_v34 = vpop.f32.mrf.mxu0 }
 0x43e   : > { %v9043_v56 = vpop.eup %9042  ;;  %v5410_v31 = vmul.f32 0.5, %v12901_v37  ;;  %9050 = verf.f32 %v5440_v55  ;;  %v12996_v37 = vld [vmem:[%s9395_s14 + $0xf8] sm:$0xff] }
 0x43f   : > { %v8263_v32 = vpop.f32.mrf.mxu1  ;;  %v4300_v6 = vpop.f32.mrf.mxu0 }
 0x440   : > { %v5411_v32 = vmul.f32 0.5, %v12904_v40 }
 0x441   : > { %v4708_v5 = vpop.f32.mrf.mxu1  ;;  %8393 = vmatmul.mubr.bf16.gmra.mxu1 %v12197_v24  ;;  %v4547_v48 = vpop.f32.mrf.mxu0  ;;  %5156 = vmatmul.mubr.bf16.gmra.mxu0 %v12197_v24 }
 0x442   : > { %v12973_v34 = vadd.f32 %v4708_v5, %v12560_v61  ;;  %v12976_v50 = vadd.f32 %v4547_v48, %v12563_v0  ;;  %8396 = vmatprep.mubr.msk.bf16.mxu1 %vm9115_vm0, %v15124_v18  ;;  %5165 = vmatprep.mubr.bf16.mxu0 %v15081_v47  ;;  %v5485_v61 = vadd.f32 1.0, %v9041_v17  ;;  %v5486_v5 = vadd.f32 1.0, %v9043_v56  ;;  %v12987_v48 = vld [vmem:[%s9395_s14 + $0xd8] sm:$0xff] }
 0x443   : > { %v8282_v22 = vpop.f32.mrf.mxu1  ;;  %v4549_v23 = vpop.f32.mrf.mxu0  ;;  %v5441_v56 = vmul.f32 0.70710677, %v12987_v48 }
 0x444   : > { %15808 = vst [vmem:[#allocation61_spill] sm:$0xff] %v12976_v50  ;;  %v12984_v24 = vadd.f32 %v4549_v23, %v12569_v12  ;;  %v13001_v17 = vmul.f32 %v5485_v61, %v5410_v31  ;;  %v13003_v55 = vmul.f32 %v5486_v5, %v5411_v32  ;;  %v9045_v23 = vpop.eup %9044 }
 0x445   : > { %v4711_v0 = vpop.f32.mrf.mxu1  ;;  %v4551_v6 = vpop.f32.mrf.mxu0  ;;  %9052 = verf.f32 %v5441_v56 }
 0x446   : > { %15809 = vst [vmem:[#allocation138_spill] sm:$0xff] %v12984_v24  ;;  %v12990_v50 = vadd.f32 %v4711_v0, %v12572_v60  ;;  %v12993_v22 = vadd.f32 %v4551_v6, %v12575_v25  ;;  %v5442_v25 = vmul.f32 0.70710677, %v12996_v37  ;;  %v9047_v0 = vpop.eup %9046 }
 0x447   : > { %v8283_v40 = vpop.f32.mrf.mxu1  ;;  %v4553_v43 = vpop.f32.mrf.mxu0 }
 0x448   : > { %v12999_v12 = vadd.f32 %v4553_v43, %v12578_v16  ;;  %v5413_v40 = vmul.f32 0.5, %v12941_v51  ;;  %v5487_v43 = vadd.f32 1.0, %v9045_v23  ;;  %9054 = verf.f32 %v5442_v25 }
 0x449   : > { %v4716_v24 = vpop.f32.mrf.mxu1  ;;  %8397 = vmatmul.mubr.bf16.gmra.mxu1 %v12218_v14  ;;  %v4557_v60 = vpop.f32.mrf.mxu0  ;;  %5166 = vmatmul.mubr.bf16.gmra.mxu0 %v12218_v14  ;;  %v13023_v14 = vpack.c.bf16 %v13003_v55, %v13001_v17 }
 0x44a   : > { %v13010_v16 = vadd.f32 %v4716_v24, %v12581_v4  ;;  %v13013_v31 = vadd.f32 %v4557_v60, %v12584_v46  ;;  %8416 = vmatprep.mubr.msk.bf16.mxu1 %vm9115_vm0, %v15124_v18  ;;  %5835 = vmatprep.mubr.bf16.mxu0 %v15081_v47  ;;  %v5412_v4 = vmul.f32 0.5, %v12932_v52  ;;  %v13027_v46 = vld [vmem:[%s9395_s14 + $0x118] sm:$0xff]  ;;  %v5488_v60 = vadd.f32 1.0, %v9047_v0 }
 0x44b   : > { %v8286_v32 = vpop.f32.mrf.mxu1  ;;  %v4559_v61 = vpop.f32.mrf.mxu0  ;;  %15813 = vst [vmem:[#allocation140_spill] sm:$0xff] %v13023_v14  ;;  %v5443_v56 = vmul.f32 0.70710677, %v13027_v46 }
 0x44c   : > { %15810 = vst [vmem:[#allocation62_spill] sm:$0xff] %v13010_v16  ;;  %15811 = vst [vmem:[#allocation139_spill] sm:$0xff] %v13013_v31  ;;  %v13019_v5 = vadd.f32 %v4559_v61, %v12590_v41  ;;  %v13031_v32 = vld [vmem:[%s9395_s14 + $0x138] sm:$0xff]  ;;  %v9049_v31 = vpop.eup %9048 }
 0x44d   : > { %v4719_v24 = vpop.f32.mrf.mxu1  ;;  %v4561_v6 = vpop.f32.mrf.mxu0  ;;  %v5444_v51 = vmul.f32 0.70710677, %v13031_v32  ;;  %9056 = verf.f32 %v5443_v56 }
 0x44e   : > { %15812 = vst [vmem:[#allocation137_spill] sm:$0xff] %v13019_v5  ;;  %v13034_v41 = vadd.f32 %v4719_v24, %v12593_v10  ;;  %v13037_v61 = vadd.f32 %v4561_v6, %v12596_v58  ;;  %v9051_v23 = vpop.eup %9050  ;;  %v13046_v10 = vmul.f32 %v5487_v43, %v5412_v4  ;;  %v13048_v58 = vmul.f32 %v5488_v60, %v5413_v40 }
 0x44f   : > { %v8287_v5 = vpop.f32.mrf.mxu1  ;;  %v4563_v52 = vpop.f32.mrf.mxu0  ;;  %v5414_v4 = vmul.f32 0.5, %v12963_v9  ;;  %v5489_v40 = vadd.f32 1.0, %v9049_v31  ;;  %v5490_v43 = vadd.f32 1.0, %v9051_v23  ;;  %9058 = verf.f32 %v5444_v51  ;;  %v13073_v9 = vld [vmem:[%s9395_s14 + $0x158] sm:$0xff] }
 0x450   : > { %v13041_v16 = vadd.f32 %v4563_v52, %v12605_v62  ;;  %v15816_v62 = vld [vmem:[#allocation32_spill] sm:$0xff]  ;;  %v13084_v31 = vld [vmem:[%s9395_s14 + $0x178] sm:$0xff] }
 0x451   : > { %v4724_v25 = vpop.f32.mrf.mxu1  ;;  %8417 = vmatmul.mubr.bf16.vlgmr.msra.gmra.mxu1 %v13023_v14  ;;  %v4567_v0 = vpop.f32.mrf.mxu0  ;;  %5836 = vmatmul.mubr.bf16.vlgmr.msra.gmra.mxu0 %v13023_v14 }
 0x452   : > { %v13051_v5 = vadd.f32 %v4724_v25, %v12613_v49  ;;  %v13054_v24 = vadd.f32 %v4567_v0, %v12616_v63  ;;  %6176 = vmatpush1.bf16.msra.mxu0 %v12599_v11  ;;  %8469 = vmatpush3.bf16.msra.mxu1 %v15816_v62  ;;  %v5415_v49 = vmul.f32 0.5, %v12966_v2  ;;  %v15818_v11 = vld [vmem:[#allocation101_spill] sm:$0xff]  ;;  %v13070_v0 = vpack.c.bf16 %v13048_v58, %v13046_v10  ;;  %v15823_v62 = vld [vmem:[#allocation35_spill] sm:$0xff] }
 0x453   : > { %v8290_v6 = vpop.f32.mrf.mxu1  ;;  %v4569_v52 = vpop.f32.mrf.mxu0  ;;  %8420 = vmatprep.mubr.msk.bf16.mxu1 %vm9115_vm0, %v15124_v18  ;;  %5845 = vmatprep.mubr.bf16.mxu0 %v15081_v47 }
 0x454   : > { %15814 = vst [vmem:[#allocation64_spill] sm:$0xff] %v13051_v5  ;;  %15815 = vst [vmem:[#allocation142_spill] sm:$0xff] %v13054_v24  ;;  %v13064_v63 = vadd.f32 %v4569_v52, %v12633_v42  ;;  %6177 = vmatprep.subr.bf16.mxu0 %v15818_v11  ;;  %8470 = vmatprep.subr.bf16.mxu1 %v15124_v18  ;;  %v15821_v42 = vld [vmem:[#allocation104_spill] sm:$0xff]  ;;  %v15824_v6 = vld [vmem:[#allocation99_spill] sm:$0xff] }
 0x455   : > { %v4727_v60 = vpop.f32.mrf.mxu1  ;;  %v4571_v25 = vpop.f32.mrf.mxu0  ;;  %15819 = vst [vmem:[#allocation143_spill] sm:$0xff] %v13070_v0  ;;  %v15825_v52 = vld [vmem:[#allocation33_spill] sm:$0xff]  ;;  %v15826_v11 = vld [vmem:[#allocation107_spill] sm:$0xff] }
 0x456   : > { %15817 = vst [vmem:[#allocation65_spill] sm:$0xff] %v13064_v63  ;;  %v13076_v2 = vadd.f32 %v4727_v60, %v12638_v21  ;;  %v13079_v56 = vadd.f32 %v4571_v25, %v15821_v42  ;;  %6178 = vmatpush1.bf16.msra.mxu0 %v15823_v62  ;;  %8471 = vmatpush3.bf16.msra.mxu1 %v15824_v6  ;;  %v5445_v25 = vmul.f32 0.70710677, %v13073_v9  ;;  %v9053_v42 = vpop.eup %9052  ;;  %v15845_v5 = vld [vmem:[#allocation39_spill] sm:$0xff] }
 0x457   : > { %v8291_v51 = vpop.f32.mrf.mxu1  ;;  %v4573_v23 = vpop.f32.mrf.mxu0  ;;  %6179 = vmatprep.subr.bf16.mxu0 %v15825_v52  ;;  %8472 = vmatprep.subr.bf16.mxu1 %v15124_v18  ;;  %v13091_v21 = vmul.f32 %v5489_v40, %v5414_v4  ;;  %v13093_v60 = vmul.f32 %v5490_v43, %v5415_v49  ;;  %v15832_v4 = vld [vmem:[#allocation38_spill] sm:$0xff] }
 0x458   : > { %15820 = vst [vmem:[#allocation66_spill] sm:$0xff] %v13076_v2  ;;  %15822 = vst [vmem:[#allocation67_spill] sm:$0xff] %v13079_v56  ;;  %v13089_v63 = vadd.f32 %v4573_v23, %v15826_v11  ;;  %v5446_v51 = vmul.f32 0.70710677, %v13084_v31  ;;  %v9055_v52 = vpop.eup %9054  ;;  %v15830_v56 = vld [vmem:[#allocation36_spill] sm:$0xff]  ;;  %v15834_v11 = vld [vmem:[#allocation34_spill] sm:$0xff]  ;;  %9060 = verf.f32 %v5445_v25 }
 0x459   : > { %15828 = vst [vmem:[#allocation68_spill] sm:$0xff] %v13091_v21  ;;  %15829 = vst [vmem:[#allocation146_spill] sm:$0xff] %v13093_v60  ;;  %v4732_v62 = vpop.f32.mrf.mxu1  ;;  %8421 = vmatmul.mubr.bf16.gmra.mxu1 %v13070_v0  ;;  %v4577_v6 = vpop.f32.mrf.mxu0  ;;  %5846 = vmatmul.mubr.bf16.gmra.mxu0 %v13070_v0  ;;  %v15836_v2 = vld [vmem:[#allocation106_spill] sm:$0xff] }
 0x45a   : > { %15827 = vst [vmem:[#allocation145_spill] sm:$0xff] %v13089_v63  ;;  %v13100_v23 = vadd.f32 %v4732_v62, %v15830_v56  ;;  %v13103_v40 = vadd.f32 %v4577_v6, %v15832_v4  ;;  %8424 = vmatprep.mubr.msk.bf16.mxu1 %vm9115_vm0, %v15124_v18  ;;  %5855 = vmatprep.mubr.bf16.mxu0 %v15081_v47  ;;  %v15835_v63 = vld [vmem:[#allocation37_spill] sm:$0xff]  ;;  %v5416_v62 = vmul.f32 0.5, %v12987_v48  ;;  %v15839_v6 = vld [vmem:[#allocation102_spill] sm:$0xff]  ;;  %9062 = verf.f32 %v5446_v51 }
 0x45b   : > { %v8294_v49 = vpop.f32.mrf.mxu1  ;;  %v4579_v43 = vpop.f32.mrf.mxu0  ;;  %6180 = vmatpush1.bf16.msra.mxu0 %v15834_v11  ;;  %8473 = vmatpush3.bf16.msra.mxu1 %v15835_v63  ;;  %v13115_v56 = vpack.c.bf16 %v13093_v60, %v13091_v21  ;;  %v13121_v4 = vld [vmem:[%s9395_s14 + $0x198] sm:$0xff]  ;;  %v5417_v63 = vmul.f32 0.5, %v12996_v37  ;;  %v15842_v60 = vld [vmem:[#allocation105_spill] sm:$0xff] }
 0x45c   : > { %15831 = vst [vmem:[#allocation69_spill] sm:$0xff] %v13100_v23  ;;  %15833 = vst [vmem:[#allocation72_spill] sm:$0xff] %v13103_v40  ;;  %v13111_v24 = vadd.f32 %v4579_v43, %v15836_v2  ;;  %6181 = vmatprep.subr.bf16.mxu0 %v15839_v6  ;;  %8474 = vmatprep.subr.bf16.mxu1 %v15124_v18  ;;  %v5491_v40 = vadd.f32 1.0, %v9053_v42  ;;  %v5492_v2 = vadd.f32 1.0, %v9055_v52  ;;  %v13125_v43 = vld [vmem:[%s9395_s14 + $0x1b8] sm:$0xff]  ;;  %v15841_v23 = vld [vmem:[#allocation108_spill] sm:$0xff]  ;;  %v9057_v37 = vpop.eup %9056 }
 0x45d   : > { %15838 = vst [vmem:[#allocation74_spill] sm:$0xff] %v13115_v56  ;;  %v4735_v49 = vpop.f32.mrf.mxu1  ;;  %v4581_v11 = vpop.f32.mrf.mxu0  ;;  %v5447_v21 = vmul.f32 0.70710677, %v13121_v4  ;;  %v15843_v42 = vld [vmem:[#allocation111_spill] sm:$0xff]  ;;  %v5448_v51 = vmul.f32 0.70710677, %v13125_v43 }
 0x45e   : > { %15837 = vst [vmem:[#allocation70_spill] sm:$0xff] %v13111_v24  ;;  %v13128_v24 = vadd.f32 %v4735_v49, %v12687_v57  ;;  %v13131_v48 = vadd.f32 %v4581_v11, %v12690_v29  ;;  %v9059_v57 = vpop.eup %9058  ;;  %v15847_v11 = vld [vmem:[#allocation112_spill] sm:$0xff] }
 0x45f   : > { %v8295_v25 = vpop.f32.mrf.mxu1  ;;  %v4583_v6 = vpop.f32.mrf.mxu0  ;;  %6182 = vmatpush1.bf16.msra.mxu0 %v15841_v23  ;;  %8475 = vmatpush3.bf16.msra.mxu1 %v15842_v60  ;;  %v13144_v60 = vmul.f32 %v5491_v40, %v5416_v62  ;;  %v13146_v23 = vmul.f32 %v5492_v2, %v5417_v63  ;;  %v5419_v40 = vmul.f32 0.5, %v13031_v32  ;;  %9064 = verf.f32 %v5447_v21  ;;  %v15851_v62 = vld [vmem:[#allocation109_spill] sm:$0xff]  ;;  %v15852_v63 = vld [vmem:[#allocation40_spill] sm:$0xff]  ;;  %v15853_v2 = vld [vmem:[#allocation114_spill] sm:$0xff] }
 0x460   : > { %15840 = vst [vmem:[#allocation77_spill] sm:$0xff] %v13131_v48  ;;  %v13137_v52 = vadd.f32 %v4583_v6, %v15843_v42  ;;  %6183 = vmatprep.subr.bf16.mxu0 %v15845_v5  ;;  %8476 = vmatprep.subr.bf16.mxu1 %v15124_v18  ;;  %v15849_v6 = vld [vmem:[#allocation42_spill] sm:$0xff]  ;;  %v5418_v48 = vmul.f32 0.5, %v13027_v46  ;;  %9066 = verf.f32 %v5448_v51 }
 0x461   : > { %v4740_v29 = vpop.f32.mrf.mxu1  ;;  %8425 = vmatmul.mubr.bf16.gmra.mxu1 %v13115_v56  ;;  %v4587_v49 = vpop.f32.mrf.mxu0  ;;  %5856 = vmatmul.mubr.bf16.gmra.mxu0 %v13115_v56  ;;  %15846 = vst [vmem:[#allocation82_spill] sm:$0xff] %v13146_v23  ;;  %v13168_v32 = vpack.c.bf16 %v13146_v23, %v13144_v60  ;;  %v13171_v21 = vld [vmem:[%s9395_s14 + $0x1d8] sm:$0xff]  ;;  %v15877_v23 = vld [vmem:[#allocation47_spill] sm:$0xff] }
 0x462   : > { %15844 = vst [vmem:[#allocation3_spill] sm:$0xff] %v13137_v52  ;;  %v13149_v25 = vadd.f32 %v4740_v29, %v15847_v11  ;;  %v13152_v42 = vadd.f32 %v4587_v49, %v15849_v6  ;;  %8428 = vmatprep.mubr.msk.bf16.mxu1 %vm9115_vm0, %v15124_v18  ;;  %5865 = vmatprep.mubr.bf16.mxu0 %v15081_v47  ;;  %v5493_v49 = vadd.f32 1.0, %v9057_v37  ;;  %v5494_v11 = vadd.f32 1.0, %v9059_v57  ;;  %v15855_v6 = vld [vmem:[#allocation41_spill] sm:$0xff]  ;;  %v13180_v37 = vld [vmem:[%s9395_s14 + $0x1f8] sm:$0xff] }
 0x463   : > { %v8298_v5 = vpop.f32.mrf.mxu1  ;;  %v4589_v52 = vpop.f32.mrf.mxu0  ;;  %6184 = vmatpush1.bf16.msra.mxu0 %v15851_v62  ;;  %8477 = vmatpush3.bf16.msra.mxu1 %v15852_v63  ;;  %15856 = vst [vmem:[#allocation75_spill] sm:$0xff] %v13168_v32  ;;  %v15859_v63 = vld [vmem:[#allocation113_spill] sm:$0xff] }
 0x464   : > { %15848 = vst [vmem:[#allocation73_spill] sm:$0xff] %v13149_v25  ;;  %15850 = vst [vmem:[#allocation4_spill] sm:$0xff] %v13152_v42  ;;  %v13162_v29 = vadd.f32 %v4589_v52, %v15853_v2  ;;  %6185 = vmatprep.subr.bf16.mxu0 %v15855_v6  ;;  %8478 = vmatprep.subr.bf16.mxu1 %v15124_v18  ;;  %v15860_v2 = vld [vmem:[#allocation43_spill] sm:$0xff]  ;;  %v15861_v6 = vld [vmem:[#allocation117_spill] sm:$0xff]  ;;  %v13187_v42 = vmul.f32 %v5493_v49, %v5418_v48 }
 0x465   : > { %v4743_v5 = vpop.f32.mrf.mxu1  ;;  %v4591_v46 = vpop.f32.mrf.mxu0  ;;  %v13189_v25 = vmul.f32 %v5494_v11, %v5419_v40  ;;  %v15866_v49 = vld [vmem:[#allocation118_spill] sm:$0xff] }
 0x466   : > { %15854 = vst [vmem:[#allocation85_spill] sm:$0xff] %v13162_v29  ;;  %v13174_v62 = vadd.f32 %v4743_v5, %v12736_v38  ;;  %v13177_v52 = vadd.f32 %v4591_v46, %v12739_v45  ;;  %15863 = vst [vmem:[#allocation10_spill] sm:$0xff] %v13187_v42  ;;  %v5449_v38 = vmul.f32 0.70710677, %v13171_v21  ;;  %v15865_v5 = vld [vmem:[#allocation44_spill] sm:$0xff]  ;;  %v9061_v45 = vpop.eup %9060  ;;  %v15868_v11 = vld [vmem:[#allocation46_spill] sm:$0xff] }
 0x467   : > { %v8299_v51 = vpop.f32.mrf.mxu1  ;;  %v4593_v57 = vpop.f32.mrf.mxu0  ;;  %6186 = vmatpush1.bf16.msra.mxu0 %v15859_v63  ;;  %8479 = vmatpush3.bf16.msra.mxu1 %v15860_v2  ;;  %15864 = vst [vmem:[#allocation8_spill] sm:$0xff] %v13189_v25 }
 0x468   : > { %15857 = vst [vmem:[#allocation6_spill] sm:$0xff] %v13174_v62  ;;  %15858 = vst [vmem:[#allocation7_spill] sm:$0xff] %v13177_v52  ;;  %v13185_v29 = vadd.f32 %v4593_v57, %v15861_v6  ;;  %6187 = vmatprep.subr.bf16.mxu0 %v15865_v5  ;;  %8480 = vmatprep.subr.bf16.mxu1 %v15124_v18  ;;  %v5450_v57 = vmul.f32 0.70710677, %v13180_v37  ;;  %v9063_v48 = vpop.eup %9062  ;;  %v15870_v5 = vld [vmem:[#allocation115_spill] sm:$0xff]  ;;  %v15872_v52 = vld [vmem:[#allocation120_spill] sm:$0xff]  ;;  %9068 = verf.f32 %v5449_v38 }
 0x469   : > { %v4748_v46 = vpop.f32.mrf.mxu1  ;;  %8429 = vmatmul.mubr.bf16.gmra.mxu1 %v13168_v32  ;;  %v4597_v51 = vpop.f32.mrf.mxu0  ;;  %5866 = vmatmul.mubr.bf16.gmra.mxu0 %v13168_v32 }
 0x46a   : > { %15862 = vst [vmem:[#allocation9_spill] sm:$0xff] %v13185_v29  ;;  %v13198_v40 = vadd.f32 %v4748_v46, %v15866_v49  ;;  %v13201_v63 = vadd.f32 %v4597_v51, %v15868_v11  ;;  %8432 = vmatprep.mubr.msk.bf16.mxu1 %vm9115_vm0, %v15124_v18  ;;  %5875 = vmatprep.mubr.bf16.mxu0 %v15081_v47  ;;  %v15871_v29 = vld [vmem:[#allocation116_spill] sm:$0xff]  ;;  %v5420_v51 = vmul.f32 0.5, %v13073_v9  ;;  %v13217_v49 = vld [vmem:[%s9395_s14 + $0x218] sm:$0xff]  ;;  %v15875_v11 = vld [vmem:[#allocation45_spill] sm:$0xff]  ;;  %9070 = verf.f32 %v5450_v57 }
 0x46b   : > { %v8302_v2 = vpop.f32.mrf.mxu1  ;;  %v4599_v6 = vpop.f32.mrf.mxu0  ;;  %6188 = vmatpush1.bf16.msra.mxu0 %v15870_v5  ;;  %8481 = vmatpush3.bf16.msra.mxu1 %v15871_v29  ;;  %v13213_v46 = vpack.c.bf16 %v13189_v25, %v13187_v42  ;;  %v5421_v29 = vmul.f32 0.5, %v13084_v31  ;;  %v5451_v25 = vmul.f32 0.70710677, %v13217_v49  ;;  %v15876_v42 = vld [vmem:[#allocation119_spill] sm:$0xff] }
 0x46c   : > { %15867 = vst [vmem:[#allocation92_spill] sm:$0xff] %v13198_v40  ;;  %15869 = vst [vmem:[#allocation76_spill] sm:$0xff] %v13201_v63  ;;  %v13209_v62 = vadd.f32 %v4599_v6, %v15872_v52  ;;  %6189 = vmatprep.subr.bf16.mxu0 %v15875_v11  ;;  %8482 = vmatprep.subr.bf16.mxu1 %v15124_v18  ;;  %v8860_v2 = vld [vmem:[%s9393_s13 + $0x2ec] ss:$12 sps:$4 sm:$0xff]   ;;  %v5495_v52 = vadd.f32 1.0, %v9061_v45  ;;  %v5496_v6 = vadd.f32 1.0, %v9063_v48  ;;  %v9065_v31 = vpop.eup %9064 }
 0x46d   : > { %15874 = vst [vmem:[#allocation13_spill] sm:$0xff] %v13213_v46  ;;  %v4751_v5 = vpop.f32.mrf.mxu1  ;;  %v4601_v63 = vpop.f32.mrf.mxu0  ;;  %v15878_v45 = vld [vmem:[#allocation48_spill] sm:$0xff]  ;;  %9072 = verf.f32 %v5451_v25  ;;  %v13274_v25 = vld [vmem:[%s9395_s14 + $0x278] sm:$0xff] }
 0x46e   : > { %15873 = vst [vmem:[#allocation12_spill] sm:$0xff] %v13209_v62  ;;  %v13224_v62 = vld [vmem:[%s9395_s14 + $0x238] sm:$0xff]  ;;  %v13227_v40 = vadd.f32 %v4751_v5, %v12782_v8  ;;  %v13230_v9 = vadd.f32 %v4601_v63, %v12785_v13  ;;  %v9067_v8 = vpop.eup %9066  ;;  %v13242_v5 = vmul.f32 %v5495_v52, %v5420_v51  ;;  %v5422_v51 = vmul.f32 0.5, %v13121_v4  ;;  %v15888_v4 = vld [vmem:[#allocation124_spill] sm:$0xff] }
 0x46f   : > { %v8303_v38 = vpop.f32.mrf.mxu1  ;;  %v4603_v11 = vpop.f32.mrf.mxu0  ;;  %6190 = vmatpush1.bf16.msra.mxu0 %v15876_v42  ;;  %8483 = vmatpush3.bf16.msra.mxu1 %v15877_v23  ;;  %v5452_v57 = vmul.f32 0.70710677, %v13224_v62  ;;  %v13244_v42 = vmul.f32 %v5496_v6, %v5421_v29  ;;  %v15882_v23 = vld [vmem:[#allocation122_spill] sm:$0xff]  ;;  %v5423_v29 = vmul.f32 0.5, %v13125_v43  ;;  %v5497_v6 = vadd.f32 1.0, %v9065_v31 }
 0x470   : > { %v13236_v48 = vadd.f32 %v4603_v11, %v15878_v45  ;;  %6675 = vmatprep.subr.bf16.mxu0 %v8860_v2  ;;  %8536 = vmatprep.subr.bf16.mxu1 %v15124_v18  ;;  %15880 = vst [vmem:[#allocation80_spill] sm:$0xff] %v13242_v5  ;;  %v15884_v11 = vld [vmem:[#allocation49_spill] sm:$0xff] }
 0x471   : > { %v4756_v13 = vpop.f32.mrf.mxu1  ;;  %8433 = vmatmul.mubr.bf16.gmra.mxu1 %v13213_v46  ;;  %v4607_v63 = vpop.f32.mrf.mxu0  ;;  %5876 = vmatmul.mubr.bf16.gmra.mxu0 %v13213_v46  ;;  %15881 = vst [vmem:[#allocation78_spill] sm:$0xff] %v13244_v42  ;;  %9074 = verf.f32 %v5452_v57 }
 0x472   : > { %15879 = vst [vmem:[#allocation14_spill] sm:$0xff] %v13236_v48  ;;  %v13247_v38 = vadd.f32 %v4756_v13, %v15882_v23  ;;  %v13250_v45 = vadd.f32 %v4607_v63, %v15884_v11  ;;  %8436 = vmatprep.mubr.msk.bf16.mxu1 %vm9115_vm0, %v15124_v18  ;;  %5885 = vmatprep.mubr.bf16.mxu0 %v15081_v47  ;;  %v5498_v13 = vadd.f32 1.0, %v9067_v8 }
 0x473   : > { %v8306_v2 = vpop.f32.mrf.mxu1  ;;  %v4609_v48 = vpop.f32.mrf.mxu0  ;;  %v13262_v11 = vpack.c.bf16 %v13244_v42, %v13242_v5  ;;  %v13279_v8 = vmul.f32 %v5497_v6, %v5422_v51  ;;  %v15896_v51 = vld [vmem:[#allocation123_spill] sm:$0xff] }
 0x474   : > { %15883 = vst [vmem:[#allocation79_spill] sm:$0xff] %v13247_v38  ;;  %15885 = vst [vmem:[#allocation15_spill] sm:$0xff] %v13250_v45  ;;  %v13258_v52 = vadd.f32 %v4609_v48, %v12806_v1  ;;  %v13265_v45 = vld [vmem:[%s9395_s14 + $0x258] sm:$0xff] }
 0x475   : > { %v4759_v63 = vpop.f32.mrf.mxu1  ;;  %v4611_v23 = vpop.f32.mrf.mxu0  ;;  %15887 = vst [vmem:[#allocation110_spill] sm:$0xff] %v13262_v11  ;;  %v15890_v48 = vld [vmem:[#allocation50_spill] sm:$0xff]  ;;  %15892 = vst [vmem:[#allocation18_spill] sm:$0xff] %v13279_v8  ;;  %v5453_v38 = vmul.f32 0.70710677, %v13265_v45 }
 0x476   : > { %15886 = vst [vmem:[#allocation81_spill] sm:$0xff] %v13258_v52  ;;  %v13268_v2 = vadd.f32 %v4759_v63, %v12809_v36  ;;  %v13271_v43 = vadd.f32 %v4611_v23, %v15888_v4  ;;  %v13281_v52 = vmul.f32 %v5498_v13, %v5423_v29  ;;  %v9069_v42 = vpop.eup %9068  ;;  %v5454_v63 = vmul.f32 0.70710677, %v13274_v25  ;;  %v15894_v4 = vld [vmem:[#allocation125_spill] sm:$0xff] }
 0x477   : > { %v8307_v1 = vpop.f32.mrf.mxu1  ;;  %v4613_v31 = vpop.f32.mrf.mxu0  ;;  %9076 = verf.f32 %v5453_v38 }
 0x478   : > { %15889 = vst [vmem:[#allocation16_spill] sm:$0xff] %v13271_v43  ;;  %v13277_v57 = vadd.f32 %v4613_v31, %v15890_v48  ;;  %15893 = vst [vmem:[#allocation121_spill] sm:$0xff] %v13281_v52  ;;  %v9071_v23 = vpop.eup %9070  ;;  %v15898_v31 = vld [vmem:[#allocation51_spill] sm:$0xff]  ;;  %9078 = verf.f32 %v5454_v63 }
 0x479   : > { %v4764_v5 = vpop.f32.mrf.mxu1  ;;  %8437 = vmatmul.mubr.bf16.gmra.mxu1 %v13262_v11  ;;  %v4617_v36 = vpop.f32.mrf.mxu0  ;;  %5886 = vmatmul.mubr.bf16.gmra.mxu0 %v13262_v11  ;;  %v5500_v43 = vadd.f32 1.0, %v9071_v23 }
 0x47a   : > { %15891 = vst [vmem:[#allocation17_spill] sm:$0xff] %v13277_v57  ;;  %v13288_v1 = vadd.f32 %v4764_v5, %v15894_v4  ;;  %v13291_v6 = vadd.f32 %v4617_v36, %v15896_v51  ;;  %8440 = vmatprep.mubr.msk.bf16.mxu1 %vm9115_vm0, %v15124_v18  ;;  %5895 = vmatprep.mubr.bf16.mxu0 %v15081_v47  ;;  %v5424_v5 = vmul.f32 0.5, %v13171_v21  ;;  %v13305_v36 = vld [vmem:[%s9395_s14 + $0x298] sm:$0xff] }
 0x47b   : > { %v8310_v29 = vpop.f32.mrf.mxu1  ;;  %v4619_v13 = vpop.f32.mrf.mxu0  ;;  %v13301_v57 = vpack.c.bf16 %v13281_v52, %v13279_v8  ;;  %v5455_v38 = vmul.f32 0.70710677, %v13305_v36 }
 0x47c   : > { %15895 = vst [vmem:[#allocation19_spill] sm:$0xff] %v13288_v1  ;;  %15897 = vst [vmem:[#allocation20_spill] sm:$0xff] %v13291_v6  ;;  %v13297_v48 = vadd.f32 %v4619_v13, %v15898_v31  ;;  %v5425_v6 = vmul.f32 0.5, %v13180_v37  ;;  %v5499_v1 = vadd.f32 1.0, %v9069_v42  ;;  %v13309_v29 = vld [vmem:[%s9395_s14 + $0x2b8] sm:$0xff]  ;;  %v9073_v52 = vpop.eup %9072 }
 0x47d   : > { %15900 = vst [vmem:[#allocation52_spill] sm:$0xff] %v13301_v57  ;;  %v4767_v4 = vpop.f32.mrf.mxu1  ;;  %v4621_v51 = vpop.f32.mrf.mxu0  ;;  %v5456_v37 = vmul.f32 0.70710677, %v13309_v29  ;;  %9080 = verf.f32 %v5455_v38 }
 0x47e   : > { %15899 = vst [vmem:[#allocation127_spill] sm:$0xff] %v13297_v48  ;;  %v13312_v13 = vadd.f32 %v4767_v4, %v12832_v27  ;;  %v13315_v31 = vadd.f32 %v4621_v51, %v12835_v28  ;;  %v9075_v42 = vpop.eup %9074  ;;  %v13324_v27 = vmul.f32 %v5499_v1, %v5424_v5  ;;  %v13326_v28 = vmul.f32 %v5500_v43, %v5425_v6  ;;  %v15904_v51 = vld [vmem:[#allocation128_spill] sm:$0xff] }
 0x47f   : > { %v8311_v48 = vpop.f32.mrf.mxu1  ;;  %v4623_v21 = vpop.f32.mrf.mxu0  ;;  %v5426_v1 = vmul.f32 0.5, %v13217_v49  ;;  %v5427_v43 = vmul.f32 0.5, %v13224_v62  ;;  %v5501_v5 = vadd.f32 1.0, %v9073_v52  ;;  %9082 = verf.f32 %v5456_v37  ;;  %v13356_v49 = vld [vmem:[%s9395_s14 + $0x2f8] sm:$0xff] }
 0x480   : > { %v13319_v8 = vadd.f32 %v4623_v21, %v12838_v3  ;;  %v15902_v48 = vld [vmem:[#allocation126_spill] sm:$0xff] }
 0x481   : > { %v4772_v63 = vpop.f32.mrf.mxu1  ;;  %8441 = vmatmul.mubr.bf16.gmra.mxu1 %v13301_v57  ;;  %v4627_v23 = vpop.f32.mrf.mxu0  ;;  %5896 = vmatmul.mubr.bf16.gmra.mxu0 %v13301_v57  ;;  %v13361_v38 = vmul.f32 %v5501_v5, %v5426_v1 }
 0x482   : > { %15901 = vst [vmem:[#allocation53_spill] sm:$0xff] %v13319_v8  ;;  %v13329_v4 = vadd.f32 %v4772_v63, %v15902_v48  ;;  %v13332_v3 = vadd.f32 %v4627_v23, %v15904_v51  ;;  %8444 = vmatprep.mubr.msk.bf16.mxu1 %vm9115_vm0, %v15124_v18  ;;  %5905 = vmatprep.mubr.bf16.mxu0 %v15081_v47  ;;  %v5502_v63 = vadd.f32 1.0, %v9075_v42 }
 0x483   : > { %v8314_v21 = vpop.f32.mrf.mxu1  ;;  %v4629_v8 = vpop.f32.mrf.mxu0  ;;  %v13344_v51 = vpack.c.bf16 %v13326_v28, %v13324_v27  ;;  %15911 = vst [vmem:[#allocation86_spill] sm:$0xff] %v13361_v38 }
 0x484   : > { %15903 = vst [vmem:[#allocation21_spill] sm:$0xff] %v13329_v4  ;;  %15905 = vst [vmem:[#allocation22_spill] sm:$0xff] %v13332_v3  ;;  %v13340_v6 = vadd.f32 %v4629_v8, %v12852_v54  ;;  %v13347_v3 = vld [vmem:[%s9395_s14 + $0x2d8] sm:$0xff]  ;;  %v13363_v37 = vmul.f32 %v5502_v63, %v5427_v43  ;;  %v15916_v63 = vld [vmem:[#allocation55_spill] sm:$0xff] }
 0x485   : > { %v4775_v23 = vpop.f32.mrf.mxu1  ;;  %v4631_v48 = vpop.f32.mrf.mxu0  ;;  %15907 = vst [vmem:[#allocation84_spill] sm:$0xff] %v13344_v51  ;;  %v5457_v42 = vmul.f32 0.70710677, %v13347_v3 }
 0x486   : > { %15906 = vst [vmem:[#allocation23_spill] sm:$0xff] %v13340_v6  ;;  %v13350_v21 = vadd.f32 %v4775_v23, %v12855_v33  ;;  %v13353_v62 = vadd.f32 %v4631_v48, %v12858_v44  ;;  %15912 = vst [vmem:[#allocation25_spill] sm:$0xff] %v13363_v37  ;;  %v9077_v6 = vpop.eup %9076  ;;  %v5458_v44 = vmul.f32 0.70710677, %v13356_v49 }
 0x487   : > { %v8315_v54 = vpop.f32.mrf.mxu1  ;;  %v4633_v52 = vpop.f32.mrf.mxu0  ;;  %9084 = verf.f32 %v5457_v42 }
 0x488   : > { %15908 = vst [vmem:[#allocation129_spill] sm:$0xff] %v13350_v21  ;;  %15909 = vst [vmem:[#allocation135_spill] sm:$0xff] %v13353_v62  ;;  %v13359_v8 = vadd.f32 %v4633_v52, %v12861_v59  ;;  %v9079_v23 = vpop.eup %9078  ;;  %v15914_v59 = vld [vmem:[#allocation54_spill] sm:$0xff]  ;;  %v13383_v52 = vpack.c.bf16 %v13363_v37, %v13361_v38  ;;  %9086 = verf.f32 %v5458_v44  ;;  %v15921_v44 = vld [vmem:[#allocation131_spill] sm:$0xff] }
 0x489   : > { %v4780_v4 = vpop.f32.mrf.mxu1  ;;  %8445 = vmatmul.mubr.bf16.gmra.mxu1 %v13344_v51  ;;  %v4637_v33 = vpop.f32.mrf.mxu0  ;;  %5906 = vmatmul.mubr.bf16.gmra.mxu0 %v13344_v51 }
 0x48a   : > { %15910 = vst [vmem:[#allocation24_spill] sm:$0xff] %v13359_v8  ;;  %v13370_v48 = vadd.f32 %v4780_v4, %v12866_v26  ;;  %v13373_v1 = vadd.f32 %v4637_v33, %v15914_v59  ;;  %8448 = vmatprep.mubr.msk.bf16.mxu1 %vm9115_vm0, %v15124_v18  ;;  %5915 = vmatprep.mubr.bf16.mxu0 %v15081_v47  ;;  %15918 = vst [vmem:[#allocation89_spill] sm:$0xff] %v13383_v52  ;;  %v5428_v26 = vmul.f32 0.5, %v13265_v45  ;;  %v15919_v8 = vld [vmem:[#allocation130_spill] sm:$0xff]  ;;  %v9081_v38 = vpop.eup %9080  ;;  %v15920_v45 = vld [vmem:[#allocation56_spill] sm:$0xff] }
 0x48b   : > { %v8318_v43 = vpop.f32.mrf.mxu1  ;;  %v4639_v5 = vpop.f32.mrf.mxu0  ;;  %v5429_v59 = vmul.f32 0.5, %v13274_v25 }
 0x48c   : > { %15913 = vst [vmem:[#allocation59_spill] sm:$0xff] %v13370_v48  ;;  %15915 = vst [vmem:[#allocation141_spill] sm:$0xff] %v13373_v1  ;;  %v13379_v54 = vadd.f32 %v4639_v5, %v15916_v63  ;;  %v5503_v1 = vadd.f32 1.0, %v9077_v6  ;;  %v5504_v48 = vadd.f32 1.0, %v9079_v23  ;;  %v13394_v63 = vld [vmem:[%s9395_s14 + $0x318] sm:$0xf]  ;;  %v9083_v62 = vpop.eup %9082 }
 0x48d   : > { %v4783_v4 = vpop.f32.mrf.mxu1  ;;  %v4641_v33 = vpop.f32.mrf.mxu0 }
 0x48e   : > { %15917 = vst [vmem:[#allocation87_spill] sm:$0xff] %v13379_v54  ;;  %v13388_v43 = vadd.f32 %v4783_v4, %v12878_v35  ;;  %v13391_v5 = vadd.f32 %v4641_v33, %v15919_v8  ;;  %v13401_v35 = vmul.f32 %v5503_v1, %v5428_v26  ;;  %v13403_v6 = vmul.f32 %v5504_v48, %v5429_v59  ;;  %v15924_v26 = vld [vmem:[#allocation132_spill] sm:$0xff] }
 0x48f   : > { %v8319_v54 = vpop.f32.mrf.mxu1  ;;  %v4643_v37 = vpop.f32.mrf.mxu0  ;;  %v5459_v8 = vmul.f32 0.70710677, %v13394_v63  ;;  %v5430_v1 = vmul.f32 0.5, %v13305_v36  ;;  %v5431_v59 = vmul.f32 0.5, %v13309_v29 }
 0x490   : > { %v13397_v42 = vadd.f32 %v4643_v37, %v15920_v45  ;;  %v15923_v54 = vld [vmem:[#allocation57_spill] sm:$0xff]  ;;  %v5505_v45 = vadd.f32 1.0, %v9081_v38 }
 0x491   : > { %v4788_v21 = vpop.f32.mrf.mxu1  ;;  %8449 = vmatmul.mubr.bf16.gmra.mxu1 %v13383_v52  ;;  %v4647_v25 = vpop.f32.mrf.mxu0  ;;  %5916 = vmatmul.mubr.bf16.gmra.mxu0 %v13383_v52  ;;  %9088 = verf.f32 %v5459_v8 }
 0x492   : > { %v13407_v23 = vadd.f32 %v4788_v21, %v15921_v44  ;;  %v13410_v4 = vadd.f32 %v4647_v25, %v15923_v54  ;;  %8452 = vmatprep.mubr.msk.bf16.mxu1 %vm9115_vm0, %v15124_v18  ;;  %5925 = vmatprep.mubr.bf16.mxu0 %v15081_v47  ;;  %v5506_v21 = vadd.f32 1.0, %v9083_v62  ;;  %v13422_v25 = vpack.c.bf16 %v13403_v6, %v13401_v35 }
 0x493   : > { %v8322_v37 = vpop.f32.mrf.mxu1  ;;  %v4649_v33 = vpop.f32.mrf.mxu0  ;;  %v13433_v29 = vmul.f32 %v5505_v45, %v5430_v1 }
 0x494   : > { %15922 = vst [vmem:[#allocation26_spill] sm:$0xff] %v13407_v23  ;;  %v13417_v48 = vadd.f32 %v4649_v33, %v15924_v26  ;;  %15926 = vst [vmem:[#allocation63_spill] sm:$0xff] %v13422_v25  ;;  %v13435_v62 = vmul.f32 %v5506_v21, %v5431_v59  ;;  %v9085_v38 = vpop.eup %9084  ;;  %v15931_v59 = vld [vmem:[#allocation58_spill] sm:$0xff] }
 0x495   : > { %v4791_v44 = vpop.f32.mrf.mxu1  ;;  %v4651_v23 = vpop.f32.mrf.mxu0  ;;  %15927 = vst [vmem:[#allocation90_spill] sm:$0xff] %v13433_v29 }
 0x496   : > { %15925 = vst [vmem:[#allocation147_spill] sm:$0xff] %v13417_v48  ;;  %v13425_v54 = vadd.f32 %v4791_v44, %v12907_v39  ;;  %v13428_v37 = vadd.f32 %v4651_v23, %v12910_v20  ;;  %15928 = vst [vmem:[#allocation88_spill] sm:$0xff] %v13435_v62  ;;  %v9087_v39 = vpop.eup %9086  ;;  %v13453_v21 = vpack.c.bf16 %v13435_v62, %v13433_v29 }
 0x497   : > { %v8323_v36 = vpop.f32.mrf.mxu1  ;;  %v4653_v33 = vpop.f32.mrf.mxu0 }
 0x498   : > { %v13431_v26 = vadd.f32 %v4653_v33, %v12914_v19  ;;  %15933 = vst [vmem:[#allocation94_spill] sm:$0xff] %v13453_v21  ;;  %v5507_v36 = vadd.f32 1.0, %v9085_v38  ;;  %v5508_v33 = vadd.f32 1.0, %v9087_v39  ;;  %v15936_v38 = vld [vmem:[#allocation60_spill] sm:$0xff] }
 0x499   : > { %v4796_v48 = vpop.f32.mrf.mxu1  ;;  %8453 = vmatmul.mubr.bf16.gmra.mxu1 %v13422_v25  ;;  %v4657_v8 = vpop.f32.mrf.mxu0  ;;  %5926 = vmatmul.mubr.bf16.gmra.mxu0 %v13422_v25 }
 0x49a   : > { %v13440_v20 = vadd.f32 %v4796_v48, %v12920_v15  ;;  %v13443_v23 = vadd.f32 %v4657_v8, %v12923_v30  ;;  %8456 = vmatprep.mubr.msk.bf16.mxu1 %vm9115_vm0, %v15124_v18  ;;  %5935 = vmatprep.mubr.bf16.mxu0 %v15081_v47  ;;  %v5432_v48 = vmul.f32 0.5, %v13347_v3  ;;  %v5433_v30 = vmul.f32 0.5, %v13356_v49 }
 0x49b   : > { %v8326_v19 = vpop.f32.mrf.mxu1  ;;  %v4659_v1 = vpop.f32.mrf.mxu0 }
 0x49c   : > { %15929 = vst [vmem:[#allocation93_spill] sm:$0xff] %v13440_v20  ;;  %15930 = vst [vmem:[#allocation144_spill] sm:$0xff] %v13443_v23  ;;  %v13449_v45 = vadd.f32 %v4659_v1, %v15931_v59  ;;  %v15934_v19 = vld [vmem:[#allocation133_spill] sm:$0xff]  ;;  %v13468_v3 = vmul.f32 %v5507_v36, %v5432_v48  ;;  %v13470_v49 = vmul.f32 %v5508_v33, %v5433_v30 }
 0x49d   : > { %v4799_v44 = vpop.f32.mrf.mxu1  ;;  %v4661_v15 = vpop.f32.mrf.mxu0 }
 0x49e   : > { %15932 = vst [vmem:[#allocation27_spill] sm:$0xff] %v13449_v45  ;;  %v13458_v8 = vadd.f32 %v4799_v44, %v12935_v53  ;;  %v13461_v23 = vadd.f32 %v4661_v15, %v15934_v19  ;;  %v15935_v45 = vld [vmem:[#allocation134_spill] sm:$0xff]  ;;  %v9089_v53 = vpop.eup %9088  ;;  %v15937_v44 = vld [vmem:[#allocation136_spill] sm:$0xff]  ;;  %v13486_v36 = vpack.c.bf16 %v13470_v49, %v13468_v3 }
 0x49f   : > { %v8327_v1 = vpop.f32.mrf.mxu1  ;;  %v4663_v59 = vpop.f32.mrf.mxu0 }
 0x4a0   : > { %v13464_v20 = vadd.f32 %v4663_v59, %v15935_v45 }
 0x4a1   : > { %v4804_v62 = vpop.f32.mrf.mxu1  ;;  %8457 = vmatmul.mubr.bf16.gmra.mxu1 %v13453_v21  ;;  %v4667_v29 = vpop.f32.mrf.mxu0  ;;  %5936 = vmatmul.mubr.bf16.gmra.mxu0 %v13453_v21 }
 0x4a2   : > { %v13473_v39 = vadd.f32 %v4804_v62, %v15936_v38  ;;  %v13476_v15 = vadd.f32 %v4667_v29, %v15937_v44  ;;  %8460 = vmatprep.mubr.msk.bf16.mxu1 %vm9115_vm0, %v15124_v18  ;;  %5945 = vmatprep.mubr.bf16.mxu0 %v15081_v47  ;;  %v5434_v62 = vmul.f32 0.5, %v13394_v63  ;;  %v5509_v29 = vadd.f32 1.0, %v9089_v53 }
 0x4a3   : > { %v8330_v45 = vpop.f32.mrf.mxu1  ;;  %v4669_v19 = vpop.f32.mrf.mxu0 }
 0x4a4   : > { %v13482_v1 = vadd.f32 %v4669_v19, %v12960_v7  ;;  %v13491_v45 = vmul.f32 %v5509_v29, %v5434_v62  ;;  %v15939_v19 = vld [vmem:[#allocation61_spill] sm:$0xff]  ;;  %v5549_v29 = vunpack.c.h.bf16 %v13023_v14 }
 0x4a5   : > { %v4807_v48 = vpop.f32.mrf.mxu1  ;;  %v4671_v30 = vpop.f32.mrf.mxu0 }
 0x4a6   : > { %15938 = vst [vmem:[#allocation30_spill] sm:$0xff] %v13482_v1  ;;  %v15941_v30 = vld [vmem:[#allocation138_spill] sm:$0xff]  ;;  %v13507_v62 = vpack.c.bf16 %v13491_v45, %v13491_v45 }
 0x4a7   : > { %v8331_v33 = vpop.f32.mrf.mxu1  ;;  %v4672_v59 = vpop.f32.mrf.mxu0 }
 0x4a9   : > { %v5208_v38 = vpop.f32.mrf.mxu1  ;;  %8461 = vmatmul.mubr.bf16.gmra.mxu1 %v13486_v36  ;;  %v5047_v44 = vpop.f32.mrf.mxu0  ;;  %5946 = vmatmul.mubr.bf16.gmra.mxu0 %v13486_v36 }
 0x4aa   : > { %v13494_v7 = vadd.f32 %v5208_v38, %v12973_v34  ;;  %v13497_v48 = vadd.f32 %v5047_v44, %v15939_v19  ;;  %8464 = vmatprep.mubr.msk.bf16.mxu1 %vm9115_vm0, %v15124_v18  ;;  %5955 = vmatprep.mubr.bf16.mxu0 %v15081_v47  ;;  %v5548_v34 = vunpack.c.l.bf16 %v13023_v14  ;;  %v15947_v14 = vld [vmem:[#allocation137_spill] sm:$0xff] }
 0x4ab   : > { %v8350_v63 = vpop.f32.mrf.mxu1  ;;  %v5049_v53 = vpop.f32.mrf.mxu0 }
 0x4ac   : > { %15940 = vst [vmem:[#allocation91_spill] sm:$0xff] %v13497_v48  ;;  %v13503_v33 = vadd.f32 %v5049_v53, %v15941_v30  ;;  %v5573_v48 = vsub.f32 %v13001_v17, %v5548_v34 }
 0x4ad   : > { %v5211_v59 = vpop.f32.mrf.mxu1  ;;  %v5051_v1 = vpop.f32.mrf.mxu0 }
 0x4ae   : > { %15942 = vst [vmem:[#allocation71_spill] sm:$0xff] %v13503_v33  ;;  %v13512_v38 = vadd.f32 %v5211_v59, %v12990_v50  ;;  %v13515_v44 = vadd.f32 %v5051_v1, %v12993_v22  ;;  %v5574_v50 = vsub.f32 %v13003_v55, %v5549_v29  ;;  %v15943_v59 = vld [vmem:[#allocation62_spill] sm:$0xff]  ;;  %v15945_v1 = vld [vmem:[#allocation139_spill] sm:$0xff] }
 0x4af   : > { %v8351_v19 = vpop.f32.mrf.mxu1  ;;  %v5053_v63 = vpop.f32.mrf.mxu0 }
 0x4b0   : > { %v13518_v53 = vadd.f32 %v5053_v63, %v12999_v12  ;;  %v5598_v29 = vpack.c.bf16 %v5574_v50, %v5573_v48  ;;  %v8864_v48 = vld [vmem:[%s9393_s13 + $0x2d4] ss:$12 sps:$4 sm:$0xff]  }
 0x4b1   : > { %v5216_v30 = vpop.f32.mrf.mxu1  ;;  %8465 = vmatmul.mubr.bf16.gmra.mxu1 %v13507_v62  ;;  %v5057_v33 = vpop.f32.mrf.mxu0  ;;  %5956 = vmatmul.mubr.bf16.gmra.mxu0 %v13507_v62 }
 0x4b2   : > { %v13525_v22 = vadd.f32 %v5216_v30, %v15943_v59  ;;  %v13528_v19 = vadd.f32 %v5057_v33, %v15945_v1  ;;  %8484 = vmatprep.mubr.msk.bf16.mxu1 %vm9115_vm0, %v15124_v18  ;;  %6207 = vmatprep.mubr.bf16.mxu0 %v15081_v47  ;;  %v5550_v30 = vunpack.c.l.bf16 %v13070_v0  ;;  %v5551_v59 = vunpack.c.h.bf16 %v13070_v0 }
 0x4b3   : > { %v8354_v12 = vpop.f32.mrf.mxu1  ;;  %v5059_v63 = vpop.f32.mrf.mxu0 }
 0x4b4   : > { %15944 = vst [vmem:[#allocation28_spill] sm:$0xff] %v13525_v22  ;;  %15946 = vst [vmem:[#allocation96_spill] sm:$0xff] %v13528_v19  ;;  %v13534_v17 = vadd.f32 %v5059_v63, %v15947_v14  ;;  %v8858_v19 = vld [vmem:[%s9393_s13 + $0x2e8] ss:$12 sps:$4 sm:$0xff]   ;;  %v8861_v12 = vld [vmem:[%s9393_s13 + $0x2f0] ss:$12 sps:$4 sm:$0xff]  }
 0x4b5   : > { %v5219_v34 = vpop.f32.mrf.mxu1  ;;  %v5061_v55 = vpop.f32.mrf.mxu0 }
 0x4b6   : > { %v13539_v33 = vadd.f32 %v5219_v34, %v13034_v41  ;;  %v13542_v1 = vadd.f32 %v5061_v55, %v13037_v61  ;;  %v5575_v41 = vsub.f32 %v13046_v10, %v5550_v30  ;;  %v5576_v61 = vsub.f32 %v13048_v58, %v5551_v59  ;;  %v15951_v34 = vld [vmem:[#allocation64_spill] sm:$0xff]  ;;  %v15953_v58 = vld [vmem:[#allocation65_spill] sm:$0xff] }
 0x4b7   : > { %v8355_v22 = vpop.f32.mrf.mxu1  ;;  %v5063_v14 = vpop.f32.mrf.mxu0  ;;  %v8868_v10 = vld [vmem:[%s9393_s13 + $0x2bc] ss:$12 sps:$4 sm:$0xff]   ;;  %v5552_v59 = vunpack.c.l.bf16 %v13115_v56 }
 0x4b8   : > { %15948 = vst [vmem:[#allocation29_spill] sm:$0xff] %v13539_v33  ;;  %15949 = vst [vmem:[#allocation5_spill] sm:$0xff] %v13542_v1  ;;  %v13547_v63 = vadd.f32 %v5063_v14, %v13041_v16  ;;  %v15952_v1 = vld [vmem:[#allocation142_spill] sm:$0xff]  ;;  %v5599_v30 = vpack.c.bf16 %v5576_v61, %v5575_v41  ;;  %v15959_v41 = vld [vmem:[#allocation145_spill] sm:$0xff] }
 0x4b9   : > { %v5224_v50 = vpop.f32.mrf.mxu1  ;;  %8485 = vmatmul.mubr.bf16.vlgmr.msra.gmra.mxu1 %v5598_v29  ;;  %v5067_v0 = vpop.f32.mrf.mxu0  ;;  %6208 = vmatmul.mubr.bf16.vlgmr.msra.gmra.mxu0 %v5598_v29  ;;  %v8862_v16 = vld [vmem:[%s9393_s13 + $0x2d0] ss:$12 sps:$4 sm:$0xff]   ;;  %v8865_v22 = vld [vmem:[%s9393_s13 + $0x2d8] ss:$12 sps:$4 sm:$0xff]  }
 0x4ba   : > { %15950 = vst [vmem:[#allocation97_spill] sm:$0xff] %v13547_v63  ;;  %v13553_v55 = vadd.f32 %v5224_v50, %v15951_v34  ;;  %v13556_v33 = vadd.f32 %v5067_v0, %v15952_v1  ;;  %6676 = vmatpush1.bf16.msra.mxu0 %v8858_v19  ;;  %8537 = vmatpush3.bf16.msra.mxu1 %v8861_v12  ;;  %v5553_v1 = vunpack.c.h.bf16 %v13115_v56  ;;  %v15955_v12 = vld [vmem:[#allocation66_spill] sm:$0xff]  ;;  %v15957_v34 = vld [vmem:[#allocation67_spill] sm:$0xff] }
 0x4bb   : > { %v8358_v14 = vpop.f32.mrf.mxu1  ;;  %v5069_v63 = vpop.f32.mrf.mxu0  ;;  %8488 = vmatprep.mubr.msk.bf16.mxu1 %vm9115_vm0, %v15124_v18  ;;  %6217 = vmatprep.mubr.bf16.mxu0 %v15081_v47  ;;  %v8872_v56 = vld [vmem:[%s9393_s13 + $0x2a4] ss:$12 sps:$4 sm:$0xff]  }
 0x4bc   : > { %v13565_v29 = vadd.f32 %v5069_v63, %v15953_v58  ;;  %6677 = vmatprep.subr.bf16.mxu0 %v8864_v48  ;;  %8538 = vmatprep.subr.bf16.mxu1 %v15124_v18  ;;  %v8866_v58 = vld [vmem:[%s9393_s13 + $0x2b8] ss:$12 sps:$4 sm:$0xff]  }
 0x4bd   : > { %v5227_v0 = vpop.f32.mrf.mxu1  ;;  %v5071_v19 = vpop.f32.mrf.mxu0 }
 0x4be   : > { %15954 = vst [vmem:[#allocation98_spill] sm:$0xff] %v13565_v29  ;;  %v13571_v50 = vadd.f32 %v5227_v0, %v15955_v12  ;;  %v13574_v14 = vadd.f32 %v5071_v19, %v15957_v34  ;;  %6678 = vmatpush1.bf16.msra.mxu0 %v8862_v16  ;;  %8539 = vmatpush3.bf16.msra.mxu1 %v8865_v22  ;;  %v8869_v29 = vld [vmem:[%s9393_s13 + $0x2c0] ss:$12 sps:$4 sm:$0xff]   ;;  %v15962_v22 = vld [vmem:[#allocation146_spill] sm:$0xff] }
 0x4bf   : > { %v8359_v63 = vpop.f32.mrf.mxu1  ;;  %v5073_v48 = vpop.f32.mrf.mxu0  ;;  %6679 = vmatprep.subr.bf16.mxu0 %v8868_v10  ;;  %8540 = vmatprep.subr.bf16.mxu1 %v15124_v18  ;;  %v15961_v19 = vld [vmem:[#allocation68_spill] sm:$0xff]  ;;  %v5578_v34 = vsub.f32 %v15962_v22, %v5553_v1  ;;  %v5554_v22 = vunpack.c.l.bf16 %v13168_v32 }
 0x4c0   : > { %15956 = vst [vmem:[#allocation11_spill] sm:$0xff] %v13571_v50  ;;  %15958 = vst [vmem:[#allocation95_spill] sm:$0xff] %v13574_v14  ;;  %v13580_v61 = vadd.f32 %v5073_v48, %v15959_v41  ;;  %v5577_v16 = vsub.f32 %v15961_v19, %v5552_v59  ;;  %v15963_v63 = vld [vmem:[#allocation69_spill] sm:$0xff]  ;;  %v15965_v14 = vld [vmem:[#allocation72_spill] sm:$0xff] }
 0x4c1   : > { %v5232_v0 = vpop.f32.mrf.mxu1  ;;  %8489 = vmatmul.mubr.bf16.gmra.mxu1 %v5599_v30  ;;  %v5077_v12 = vpop.f32.mrf.mxu0  ;;  %6218 = vmatmul.mubr.bf16.gmra.mxu0 %v5599_v30  ;;  %v8870_v30 = vld [vmem:[%s9393_s13 + $0x2a0] ss:$12 sps:$4 sm:$0xff]   ;;  %v15967_v59 = vld [vmem:[#allocation70_spill] sm:$0xff] }
 0x4c2   : > { %15960 = vst [vmem:[#allocation31_spill] sm:$0xff] %v13580_v61  ;;  %v13586_v10 = vadd.f32 %v5232_v0, %v15963_v63  ;;  %v13589_v50 = vadd.f32 %v5077_v12, %v15965_v14  ;;  %8492 = vmatprep.mubr.msk.bf16.mxu1 %vm9115_vm0, %v15124_v18  ;;  %6227 = vmatprep.mubr.bf16.mxu0 %v15081_v47  ;;  %v8873_v61 = vld [vmem:[%s9393_s13 + $0x2a8] ss:$12 sps:$4 sm:$0xff]   ;;  %v8876_v14 = vld [vmem:[%s9393_s13 + $0x28c] ss:$12 sps:$4 sm:$0xff]  }
 0x4c3   : > { %v8362_v48 = vpop.f32.mrf.mxu1  ;;  %v5079_v41 = vpop.f32.mrf.mxu0  ;;  %6680 = vmatpush1.bf16.msra.mxu0 %v8866_v58  ;;  %8541 = vmatpush3.bf16.msra.mxu1 %v8869_v29  ;;  %v5600_v19 = vpack.c.bf16 %v5578_v34, %v5577_v16  ;;  %v5555_v58 = vunpack.c.h.bf16 %v13168_v32  ;;  %v15969_v63 = vld [vmem:[#allocation77_spill] sm:$0xff]  ;;  %v8881_v32 = vld [vmem:[%s9393_s13 + $0x278] ss:$12 sps:$4 sm:$0xff]  }
 0x4c4   : > { %15964 = vst [vmem:[#allocation100_spill] sm:$0xff] %v13586_v10  ;;  %15966 = vst [vmem:[#allocation103_spill] sm:$0xff] %v13589_v50  ;;  %v13597_v1 = vadd.f32 %v5079_v41, %v15967_v59  ;;  %6681 = vmatprep.subr.bf16.mxu0 %v8872_v56  ;;  %8542 = vmatprep.subr.bf16.mxu1 %v15124_v18  ;;  %v8874_v56 = vld [vmem:[%s9393_s13 + $0x288] ss:$12 sps:$4 sm:$0xff]   ;;  %v15970_v50 = vld [vmem:[#allocation3_spill] sm:$0xff] }
 0x4c5   : > { %v5235_v0 = vpop.f32.mrf.mxu1  ;;  %v5081_v12 = vpop.f32.mrf.mxu0  ;;  %v8880_v16 = vld [vmem:[%s9393_s13 + $0x274] ss:$12 sps:$4 sm:$0xff]  }
 0x4c6   : > { %15968 = vst [vmem:[#allocation83_spill] sm:$0xff] %v13597_v1  ;;  %v13604_v29 = vadd.f32 %v5235_v0, %v13128_v24  ;;  %v13607_v48 = vadd.f32 %v5081_v12, %v15969_v63  ;;  %v8877_v1 = vld [vmem:[%s9393_s13 + $0x290] ss:$12 sps:$4 sm:$0xff]   ;;  %v5579_v0 = vsub.f32 %v13144_v60, %v5554_v22 }
 0x4c7   : > { %v8363_v41 = vpop.f32.mrf.mxu1  ;;  %v5083_v59 = vpop.f32.mrf.mxu0  ;;  %6682 = vmatpush1.bf16.msra.mxu0 %v8870_v30  ;;  %8543 = vmatpush3.bf16.msra.mxu1 %v8873_v61  ;;  %v15972_v30 = vld [vmem:[#allocation82_spill] sm:$0xff]  ;;  %v15973_v12 = vld [vmem:[#allocation73_spill] sm:$0xff] }
 0x4c8   : > { %v13612_v10 = vadd.f32 %v5083_v59, %v15970_v50  ;;  %6683 = vmatprep.subr.bf16.mxu0 %v8876_v14  ;;  %8544 = vmatprep.subr.bf16.mxu1 %v15124_v18  ;;  %v5580_v61 = vsub.f32 %v15972_v30, %v5555_v58  ;;  %v15975_v50 = vld [vmem:[#allocation4_spill] sm:$0xff]  ;;  %v15977_v60 = vld [vmem:[#allocation85_spill] sm:$0xff] }
 0x4c9   : > { %v5240_v24 = vpop.f32.mrf.mxu1  ;;  %8493 = vmatmul.mubr.bf16.gmra.mxu1 %v5600_v19  ;;  %v5087_v34 = vpop.f32.mrf.mxu0  ;;  %6228 = vmatmul.mubr.bf16.gmra.mxu0 %v5600_v19  ;;  %v8878_v19 = vld [vmem:[%s9393_s13 + $0x270] ss:$12 sps:$4 sm:$0xff]  }
 0x4ca   : > { %15971 = vst [vmem:[#allocation32_spill] sm:$0xff] %v13612_v10  ;;  %v13619_v63 = vadd.f32 %v5240_v24, %v15973_v12  ;;  %v13622_v41 = vadd.f32 %v5087_v34, %v15975_v50  ;;  %8496 = vmatprep.mubr.msk.bf16.mxu1 %vm9115_vm0, %v15124_v18  ;;  %6237 = vmatprep.mubr.bf16.mxu0 %v15081_v47  ;;  %v8884_v58 = vld [vmem:[%s9393_s13 + $0x25c] ss:$12 sps:$4 sm:$0xff]   ;;  %v5556_v12 = vunpack.c.l.bf16 %v13213_v46 }
 0x4cb   : > { %v8366_v14 = vpop.f32.mrf.mxu1  ;;  %v5089_v59 = vpop.f32.mrf.mxu0  ;;  %6684 = vmatpush1.bf16.msra.mxu0 %v8874_v56  ;;  %8545 = vmatpush3.bf16.msra.mxu1 %v8877_v1  ;;  %v5601_v30 = vpack.c.bf16 %v5580_v61, %v5579_v0  ;;  %v5557_v56 = vunpack.c.h.bf16 %v13213_v46  ;;  %v15979_v1 = vld [vmem:[#allocation6_spill] sm:$0xff]  ;;  %v8888_v0 = vld [vmem:[%s9393_s13 + $0x244] ss:$12 sps:$4 sm:$0xff]   ;;  %v15986_v46 = vld [vmem:[#allocation76_spill] sm:$0xff] }
 0x4cc   : > { %15974 = vst [vmem:[#allocation101_spill] sm:$0xff] %v13619_v63  ;;  %15976 = vst [vmem:[#allocation104_spill] sm:$0xff] %v13622_v41  ;;  %v13630_v22 = vadd.f32 %v5089_v59, %v15977_v60  ;;  %6685 = vmatprep.subr.bf16.mxu0 %v8880_v16  ;;  %8546 = vmatprep.subr.bf16.mxu1 %v15124_v18  ;;  %v15980_v14 = vld [vmem:[#allocation7_spill] sm:$0xff]  ;;  %v15981_v63 = vld [vmem:[#allocation9_spill] sm:$0xff] }
 0x4cd   : > { %v5243_v24 = vpop.f32.mrf.mxu1  ;;  %v5091_v34 = vpop.f32.mrf.mxu0  ;;  %v8882_v16 = vld [vmem:[%s9393_s13 + $0x258] ss:$12 sps:$4 sm:$0xff]  }
 0x4ce   : > { %15978 = vst [vmem:[#allocation35_spill] sm:$0xff] %v13630_v22  ;;  %v13637_v50 = vadd.f32 %v5243_v24, %v15979_v1  ;;  %v13640_v41 = vadd.f32 %v5091_v34, %v15980_v14  ;;  %v8885_v22 = vld [vmem:[%s9393_s13 + $0x260] ss:$12 sps:$4 sm:$0xff]   ;;  %v15983_v34 = vld [vmem:[#allocation10_spill] sm:$0xff] }
 0x4cf   : > { %v8367_v59 = vpop.f32.mrf.mxu1  ;;  %v5093_v60 = vpop.f32.mrf.mxu0  ;;  %6686 = vmatpush1.bf16.msra.mxu0 %v8878_v19  ;;  %8547 = vmatpush3.bf16.msra.mxu1 %v8881_v32  ;;  %v5581_v1 = vsub.f32 %v15983_v34, %v5556_v12  ;;  %v15984_v14 = vld [vmem:[#allocation8_spill] sm:$0xff] }
 0x4d0   : > { %v13645_v10 = vadd.f32 %v5093_v60, %v15981_v63  ;;  %6687 = vmatprep.subr.bf16.mxu0 %v8884_v58  ;;  %8548 = vmatprep.subr.bf16.mxu1 %v15124_v18  ;;  %v5582_v19 = vsub.f32 %v15984_v14, %v5557_v56  ;;  %v15985_v32 = vld [vmem:[#allocation92_spill] sm:$0xff]  ;;  %v5559_v14 = vunpack.c.h.bf16 %v13262_v11 }
 0x4d1   : > { %v5248_v61 = vpop.f32.mrf.mxu1  ;;  %8497 = vmatmul.mubr.bf16.gmra.mxu1 %v5601_v30  ;;  %v5097_v24 = vpop.f32.mrf.mxu0  ;;  %6238 = vmatmul.mubr.bf16.gmra.mxu0 %v5601_v30  ;;  %v8886_v30 = vld [vmem:[%s9393_s13 + $0x240] ss:$12 sps:$4 sm:$0xff]  }
 0x4d2   : > { %15982 = vst [vmem:[#allocation99_spill] sm:$0xff] %v13645_v10  ;;  %v13652_v59 = vadd.f32 %v5248_v61, %v15985_v32  ;;  %v13655_v63 = vadd.f32 %v5097_v24, %v15986_v46  ;;  %8500 = vmatprep.mubr.msk.bf16.mxu1 %vm9115_vm0, %v15124_v18  ;;  %6247 = vmatprep.mubr.bf16.mxu0 %v15081_v47  ;;  %v8889_v10 = vld [vmem:[%s9393_s13 + $0x248] ss:$12 sps:$4 sm:$0xff]   ;;  %v5558_v24 = vunpack.c.l.bf16 %v13262_v11  ;;  %v15993_v11 = vld [vmem:[#allocation78_spill] sm:$0xff] }
 0x4d3   : > { %v8370_v58 = vpop.f32.mrf.mxu1  ;;  %v5099_v60 = vpop.f32.mrf.mxu0  ;;  %6688 = vmatpush1.bf16.msra.mxu0 %v8882_v16  ;;  %8549 = vmatpush3.bf16.msra.mxu1 %v8885_v22  ;;  %v15988_v12 = vld [vmem:[#allocation12_spill] sm:$0xff]  ;;  %v5602_v61 = vpack.c.bf16 %v5582_v19, %v5581_v1 }
 0x4d4   : > { %15987 = vst [vmem:[#allocation33_spill] sm:$0xff] %v13655_v63  ;;  %v13663_v34 = vadd.f32 %v5099_v60, %v15988_v12  ;;  %6689 = vmatprep.subr.bf16.mxu0 %v8888_v0  ;;  %8550 = vmatprep.subr.bf16.mxu1 %v15124_v18  ;;  %v15990_v0 = vld [vmem:[#allocation14_spill] sm:$0xff]  ;;  %v15992_v19 = vld [vmem:[#allocation80_spill] sm:$0xff]  ;;  %v5584_v63 = vsub.f32 %v15993_v11, %v5559_v14  ;;  %v5560_v11 = vunpack.c.l.bf16 %v13301_v57  ;;  %v5561_v14 = vunpack.c.h.bf16 %v13301_v57  ;;  %v16004_v57 = vld [vmem:[#allocation19_spill] sm:$0xff] }
 0x4d5   : > { %v5251_v56 = vpop.f32.mrf.mxu1  ;;  %v5101_v46 = vpop.f32.mrf.mxu0 }
 0x4d6   : > { %15989 = vst [vmem:[#allocation107_spill] sm:$0xff] %v13663_v34  ;;  %v13669_v32 = vadd.f32 %v5251_v56, %v13227_v40  ;;  %v13672_v22 = vadd.f32 %v5101_v46, %v13230_v9  ;;  %v5583_v34 = vsub.f32 %v15992_v19, %v5558_v24  ;;  %v15994_v40 = vld [vmem:[#allocation79_spill] sm:$0xff] }
 0x4d7   : > { %v8371_v16 = vpop.f32.mrf.mxu1  ;;  %v5103_v58 = vpop.f32.mrf.mxu0  ;;  %6690 = vmatpush1.bf16.msra.mxu0 %v8886_v30  ;;  %8551 = vmatpush3.bf16.msra.mxu1 %v8889_v10  ;;  %v15996_v9 = vld [vmem:[#allocation15_spill] sm:$0xff] }
 0x4d8   : > { %v13675_v60 = vadd.f32 %v5103_v58, %v15990_v0  ;;  %v15998_v16 = vld [vmem:[#allocation81_spill] sm:$0xff]  ;;  %v5603_v0 = vpack.c.bf16 %v5584_v63, %v5583_v34  ;;  %v16002_v63 = vld [vmem:[#allocation18_spill] sm:$0xff] }
 0x4d9   : > { %v5256_v12 = vpop.f32.mrf.mxu1  ;;  %8501 = vmatmul.mubr.bf16.gmra.mxu1 %v5602_v61  ;;  %v5107_v1 = vpop.f32.mrf.mxu0  ;;  %6248 = vmatmul.mubr.bf16.gmra.mxu0 %v5602_v61  ;;  %v5585_v34 = vsub.f32 %v16002_v63, %v5560_v11 }
 0x4da   : > { %15991 = vst [vmem:[#allocation36_spill] sm:$0xff] %v13675_v60  ;;  %v13680_v56 = vadd.f32 %v5256_v12, %v15994_v40  ;;  %v13683_v46 = vadd.f32 %v5107_v1, %v15996_v9  ;;  %8504 = vmatprep.mubr.msk.bf16.mxu1 %vm9115_vm0, %v15124_v18  ;;  %6257 = vmatprep.mubr.bf16.mxu0 %v15081_v47  ;;  %v16000_v1 = vld [vmem:[#allocation16_spill] sm:$0xff] }
 0x4db   : > { %v8374_v10 = vpop.f32.mrf.mxu1  ;;  %v5109_v30 = vpop.f32.mrf.mxu0 }
 0x4dc   : > { %15995 = vst [vmem:[#allocation38_spill] sm:$0xff] %v13680_v56  ;;  %15997 = vst [vmem:[#allocation34_spill] sm:$0xff] %v13683_v46  ;;  %v13689_v58 = vadd.f32 %v5109_v30, %v15998_v16  ;;  %v16001_v10 = vld [vmem:[#allocation17_spill] sm:$0xff] }
 0x4dd   : > { %v5259_v61 = vpop.f32.mrf.mxu1  ;;  %v5111_v24 = vpop.f32.mrf.mxu0 }
 0x4de   : > { %15999 = vst [vmem:[#allocation37_spill] sm:$0xff] %v13689_v58  ;;  %v13694_v12 = vadd.f32 %v5259_v61, %v13268_v2  ;;  %v13697_v19 = vadd.f32 %v5111_v24, %v16000_v1  ;;  %v16003_v58 = vld [vmem:[#allocation121_spill] sm:$0xff]  ;;  %v16005_v2 = vld [vmem:[#allocation20_spill] sm:$0xff] }
 0x4df   : > { %v8375_v40 = vpop.f32.mrf.mxu1  ;;  %v5113_v9 = vpop.f32.mrf.mxu0  ;;  %v5586_v56 = vsub.f32 %v16003_v58, %v5561_v14  ;;  %v5562_v58 = vunpack.c.l.bf16 %v13344_v51 }
 0x4e0   : > { %v13700_v46 = vadd.f32 %v5113_v9, %v16001_v10  ;;  %v16006_v40 = vld [vmem:[#allocation127_spill] sm:$0xff] }
 0x4e1   : > { %v5264_v30 = vpop.f32.mrf.mxu1  ;;  %8505 = vmatmul.mubr.bf16.gmra.mxu1 %v5603_v0  ;;  %v5117_v16 = vpop.f32.mrf.mxu0  ;;  %6258 = vmatmul.mubr.bf16.gmra.mxu0 %v5603_v0  ;;  %v5604_v10 = vpack.c.bf16 %v5586_v56, %v5585_v34  ;;  %v5587_v56 = vsub.f32 %v13324_v27, %v5562_v58 }
 0x4e2   : > { %v13705_v60 = vadd.f32 %v5264_v30, %v16004_v57  ;;  %v13708_v61 = vadd.f32 %v5117_v16, %v16005_v2  ;;  %8508 = vmatprep.mubr.msk.bf16.mxu1 %vm9115_vm0, %v15124_v18  ;;  %6267 = vmatprep.mubr.bf16.mxu0 %v15081_v47  ;;  %v5563_v57 = vunpack.c.h.bf16 %v13344_v51  ;;  %v16009_v2 = vld [vmem:[#allocation53_spill] sm:$0xff] }
 0x4e3   : > { %v8378_v24 = vpop.f32.mrf.mxu1  ;;  %v5119_v1 = vpop.f32.mrf.mxu0  ;;  %v16011_v51 = vld [vmem:[#allocation21_spill] sm:$0xff] }
 0x4e4   : > { %v13714_v9 = vadd.f32 %v5119_v1, %v16006_v40  ;;  %v5588_v34 = vsub.f32 %v13326_v28, %v5563_v57  ;;  %v5564_v28 = vunpack.c.l.bf16 %v13383_v52  ;;  %v16017_v57 = vld [vmem:[#allocation129_spill] sm:$0xff] }
 0x4e5   : > { %v5267_v0 = vpop.f32.mrf.mxu1  ;;  %v5121_v11 = vpop.f32.mrf.mxu0 }
 0x4e6   : > { %16007 = vst [vmem:[#allocation106_spill] sm:$0xff] %v13714_v9  ;;  %v13719_v14 = vadd.f32 %v5267_v0, %v13312_v13  ;;  %v13722_v30 = vadd.f32 %v5121_v11, %v13315_v31  ;;  %v16013_v13 = vld [vmem:[#allocation22_spill] sm:$0xff]  ;;  %v5605_v58 = vpack.c.bf16 %v5588_v34, %v5587_v56 }
 0x4e7   : > { %v8379_v16 = vpop.f32.mrf.mxu1  ;;  %v5123_v63 = vpop.f32.mrf.mxu0  ;;  %v16020_v56 = vld [vmem:[#allocation86_spill] sm:$0xff] }
 0x4e8   : > { %16008 = vst [vmem:[#allocation102_spill] sm:$0xff] %v13722_v30  ;;  %v13725_v24 = vadd.f32 %v5123_v63, %v16009_v2  ;;  %v16015_v16 = vld [vmem:[#allocation23_spill] sm:$0xff]  ;;  %v5589_v34 = vsub.f32 %v16020_v56, %v5564_v28 }
 0x4e9   : > { %v5272_v1 = vpop.f32.mrf.mxu1  ;;  %8509 = vmatmul.mubr.bf16.gmra.mxu1 %v5604_v10  ;;  %v5127_v40 = vpop.f32.mrf.mxu0  ;;  %6268 = vmatmul.mubr.bf16.gmra.mxu0 %v5604_v10 }
 0x4ea   : > { %16010 = vst [vmem:[#allocation108_spill] sm:$0xff] %v13725_v24  ;;  %v13730_v9 = vadd.f32 %v5272_v1, %v16011_v51  ;;  %v13733_v0 = vadd.f32 %v5127_v40, %v16013_v13  ;;  %8512 = vmatprep.mubr.msk.bf16.mxu1 %vm9115_vm0, %v15124_v18  ;;  %6277 = vmatprep.mubr.bf16.mxu0 %v15081_v47  ;;  %v5565_v51 = vunpack.c.h.bf16 %v13383_v52  ;;  %v16018_v1 = vld [vmem:[#allocation135_spill] sm:$0xff] }
 0x4eb   : > { %v8382_v31 = vpop.f32.mrf.mxu1  ;;  %v5129_v11 = vpop.f32.mrf.mxu0  ;;  %v16022_v52 = vld [vmem:[#allocation59_spill] sm:$0xff] }
 0x4ec   : > { %16012 = vst [vmem:[#allocation105_spill] sm:$0xff] %v13730_v9  ;;  %16014 = vst [vmem:[#allocation111_spill] sm:$0xff] %v13733_v0  ;;  %v13739_v63 = vadd.f32 %v5129_v11, %v16015_v16  ;;  %v16019_v31 = vld [vmem:[#allocation24_spill] sm:$0xff] }
 0x4ed   : > { %v5275_v10 = vpop.f32.mrf.mxu1  ;;  %v5131_v27 = vpop.f32.mrf.mxu0 }
 0x4ee   : > { %16016 = vst [vmem:[#allocation39_spill] sm:$0xff] %v13739_v63  ;;  %v13744_v2 = vadd.f32 %v5275_v10, %v16017_v57  ;;  %v13747_v40 = vadd.f32 %v5131_v27, %v16018_v1  ;;  %v16021_v63 = vld [vmem:[#allocation25_spill] sm:$0xff]  ;;  %v16024_v1 = vld [vmem:[#allocation87_spill] sm:$0xff] }
 0x4ef   : > { %v8383_v13 = vpop.f32.mrf.mxu1  ;;  %v5133_v0 = vpop.f32.mrf.mxu0  ;;  %v5590_v24 = vsub.f32 %v16021_v63, %v5565_v51  ;;  %v16023_v10 = vld [vmem:[#allocation141_spill] sm:$0xff]  ;;  %v5566_v63 = vunpack.c.l.bf16 %v13422_v25 }
 0x4f0   : > { %v13750_v9 = vadd.f32 %v5133_v0, %v16019_v31 }
 0x4f1   : > { %v5280_v11 = vpop.f32.mrf.mxu1  ;;  %8513 = vmatmul.mubr.bf16.gmra.mxu1 %v5605_v58  ;;  %v5137_v16 = vpop.f32.mrf.mxu0  ;;  %6278 = vmatmul.mubr.bf16.gmra.mxu0 %v5605_v58  ;;  %v5606_v31 = vpack.c.bf16 %v5590_v24, %v5589_v34  ;;  %v5591_v24 = vsub.f32 %v13401_v35, %v5566_v63 }
 0x4f2   : > { %v13755_v30 = vadd.f32 %v5280_v11, %v16022_v52  ;;  %v13758_v57 = vadd.f32 %v5137_v16, %v16023_v10  ;;  %8516 = vmatprep.mubr.msk.bf16.mxu1 %vm9115_vm0, %v15124_v18  ;;  %6287 = vmatprep.mubr.bf16.mxu0 %v15081_v47  ;;  %v5567_v52 = vunpack.c.h.bf16 %v13422_v25 }
 0x4f3   : > { %v8386_v0 = vpop.f32.mrf.mxu1  ;;  %v5139_v27 = vpop.f32.mrf.mxu0 }
 0x4f4   : > { %v13764_v13 = vadd.f32 %v5139_v27, %v16024_v1  ;;  %v5592_v34 = vsub.f32 %v13403_v6, %v5567_v52  ;;  %v16025_v1 = vld [vmem:[#allocation26_spill] sm:$0xff]  ;;  %v5568_v6 = vunpack.c.l.bf16 %v13453_v21  ;;  %v5569_v52 = vunpack.c.h.bf16 %v13453_v21  ;;  %v16030_v21 = vld [vmem:[#allocation93_spill] sm:$0xff] }
 0x4f5   : > { %v5283_v58 = vpop.f32.mrf.mxu1  ;;  %v5141_v28 = vpop.f32.mrf.mxu0 }
 0x4f6   : > { %v13769_v51 = vadd.f32 %v5283_v58, %v13388_v43  ;;  %v13772_v11 = vadd.f32 %v5141_v28, %v13391_v5  ;;  %v16026_v58 = vld [vmem:[#allocation147_spill] sm:$0xff]  ;;  %v5607_v63 = vpack.c.bf16 %v5592_v34, %v5591_v24  ;;  %v16028_v24 = vld [vmem:[#allocation90_spill] sm:$0xff] }
 0x4f7   : > { %v8387_v16 = vpop.f32.mrf.mxu1  ;;  %v5143_v56 = vpop.f32.mrf.mxu0  ;;  %v5593_v34 = vsub.f32 %v16028_v24, %v5568_v6 }
 0x4f8   : > { %v13775_v10 = vadd.f32 %v5143_v56, %v13397_v42 }
 0x4f9   : > { %v5288_v0 = vpop.f32.mrf.mxu1  ;;  %8517 = vmatmul.mubr.bf16.gmra.mxu1 %v5606_v31  ;;  %v5147_v27 = vpop.f32.mrf.mxu0  ;;  %6288 = vmatmul.mubr.bf16.gmra.mxu0 %v5606_v31 }
 0x4fa   : > { %v13780_v25 = vadd.f32 %v5288_v0, %v16025_v1  ;;  %v13783_v43 = vadd.f32 %v5147_v27, %v13410_v4  ;;  %8520 = vmatprep.mubr.msk.bf16.mxu1 %vm9115_vm0, %v15124_v18  ;;  %6297 = vmatprep.mubr.bf16.mxu0 %v15081_v47 }
 0x4fb   : > { %v8390_v5 = vpop.f32.mrf.mxu1  ;;  %v5149_v42 = vpop.f32.mrf.mxu0 }
 0x4fc   : > { %v13789_v28 = vadd.f32 %v5149_v42, %v16026_v58  ;;  %v16029_v42 = vld [vmem:[#allocation88_spill] sm:$0xff] }
 0x4fd   : > { %v5291_v31 = vpop.f32.mrf.mxu1  ;;  %v5151_v35 = vpop.f32.mrf.mxu0  ;;  %v5594_v58 = vsub.f32 %v16029_v42, %v5569_v52  ;;  %v5570_v52 = vunpack.c.l.bf16 %v13486_v36 }
 0x4fe   : > { %16027 = vst [vmem:[#allocation112_spill] sm:$0xff] %v13789_v28  ;;  %v13794_v4 = vadd.f32 %v5291_v31, %v13425_v54  ;;  %v13797_v16 = vadd.f32 %v5151_v35, %v13428_v37  ;;  %v16031_v54 = vld [vmem:[#allocation144_spill] sm:$0xff]  ;;  %v16032_v35 = vld [vmem:[#allocation27_spill] sm:$0xff] }
 0x4ff   : > { %v8391_v56 = vpop.f32.mrf.mxu1  ;;  %v5153_v0 = vpop.f32.mrf.mxu0 }
 0x500   : > { %v13800_v27 = vadd.f32 %v5153_v0, %v13431_v26  ;;  %v5608_v0 = vpack.c.bf16 %v5594_v58, %v5593_v34  ;;  %v5595_v34 = vsub.f32 %v13468_v3, %v5570_v52 }
 0x501   : > { %v5296_v1 = vpop.f32.mrf.mxu1  ;;  %8521 = vmatmul.mubr.bf16.gmra.mxu1 %v5607_v63  ;;  %v5157_v5 = vpop.f32.mrf.mxu0  ;;  %6298 = vmatmul.mubr.bf16.gmra.mxu0 %v5607_v63 }
 0x502   : > { %v13805_v28 = vadd.f32 %v5296_v1, %v16030_v21  ;;  %v13808_v31 = vadd.f32 %v5157_v5, %v16031_v54  ;;  %8524 = vmatprep.mubr.msk.bf16.mxu1 %vm9115_vm0, %v15124_v18  ;;  %6307 = vmatprep.mubr.bf16.mxu0 %v15081_v47  ;;  %v5571_v21 = vunpack.c.h.bf16 %v13486_v36 }
 0x503   : > { %v8394_v37 = vpop.f32.mrf.mxu1  ;;  %v5159_v26 = vpop.f32.mrf.mxu0 }
 0x504   : > { %v13814_v56 = vadd.f32 %v5159_v26, %v16032_v35  ;;  %v5596_v58 = vsub.f32 %v13470_v49, %v5571_v21  ;;  %v5572_v49 = vunpack.c.l.bf16 %v13507_v62 }
 0x505   : > { %v5299_v63 = vpop.f32.mrf.mxu1  ;;  %v5161_v6 = vpop.f32.mrf.mxu0 }
 0x506   : > { %v13819_v1 = vadd.f32 %v5299_v63, %v13458_v8  ;;  %v13822_v5 = vadd.f32 %v5161_v6, %v13461_v23  ;;  %v16033_v63 = vld [vmem:[#allocation30_spill] sm:$0xff]  ;;  %v5609_v52 = vpack.c.bf16 %v5596_v58, %v5595_v34 }
 0x507   : > { %v8395_v24 = vpop.f32.mrf.mxu1  ;;  %v5163_v42 = vpop.f32.mrf.mxu0 }
 0x508   : > { %v13825_v54 = vadd.f32 %v5163_v42, %v13464_v20  ;;  %v5597_v42 = vsub.f32 %v13491_v45, %v5572_v49 }
 0x509   : > { %v5304_v37 = vpop.f32.mrf.mxu1  ;;  %8525 = vmatmul.mubr.bf16.gmra.mxu1 %v5608_v0  ;;  %v5167_v26 = vpop.f32.mrf.mxu0  ;;  %6308 = vmatmul.mubr.bf16.gmra.mxu0 %v5608_v0 }
 0x50a   : > { %v13830_v35 = vadd.f32 %v5304_v37, %v13473_v39  ;;  %v13833_v8 = vadd.f32 %v5167_v26, %v13476_v15  ;;  %8528 = vmatprep.mubr.msk.bf16.mxu1 %vm9115_vm0, %v15124_v18  ;;  %6317 = vmatprep.mubr.bf16.mxu0 %v15081_v47  ;;  %v16034_v26 = vld [vmem:[#allocation91_spill] sm:$0xff] }
 0x50b   : > { %v8398_v20 = vpop.f32.mrf.mxu1  ;;  %v5169_v23 = vpop.f32.mrf.mxu0 }
 0x50c   : > { %v13839_v6 = vadd.f32 %v5169_v23, %v16033_v63  ;;  %v16035_v23 = vld [vmem:[#allocation71_spill] sm:$0xff] }
 0x50d   : > { %v5307_v0 = vpop.f32.mrf.mxu1  ;;  %v5171_v3 = vpop.f32.mrf.mxu0 }
 0x50f   : > { %v8399_v39 = vpop.f32.mrf.mxu1  ;;  %v5172_v21 = vpop.f32.mrf.mxu0 }
 0x511   : > { %v5998_v24 = vpop.f32.mrf.mxu1  ;;  %8529 = vmatmul.mubr.bf16.gmra.mxu1 %v5609_v52  ;;  %v5837_v15 = vpop.f32.mrf.mxu0  ;;  %6318 = vmatmul.mubr.bf16.gmra.mxu0 %v5609_v52  ;;  %v5610_v52 = vpack.c.bf16 %v5597_v42, %v5597_v42 }
 0x512   : > { %v13844_v37 = vadd.f32 %v5998_v24, %v13494_v7  ;;  %v13847_v20 = vadd.f32 %v5837_v15, %v16034_v26  ;;  %8532 = vmatprep.mubr.msk.bf16.mxu1 %vm9115_vm0, %v15124_v18  ;;  %6327 = vmatprep.mubr.bf16.mxu0 %v15081_v47  ;;  %v16036_v26 = vld [vmem:[#allocation28_spill] sm:$0xff] }
 0x513   : > { %v8418_v34 = vpop.f32.mrf.mxu1  ;;  %v5839_v58 = vpop.f32.mrf.mxu0 }
 0x514   : > { %v13853_v63 = vadd.f32 %v5839_v58, %v16035_v23  ;;  %v16038_v58 = vld [vmem:[#allocation96_spill] sm:$0xff] }
 0x515   : > { %v6001_v0 = vpop.f32.mrf.mxu1  ;;  %v5841_v3 = vpop.f32.mrf.mxu0 }
 0x516   : > { %v13856_v45 = vadd.f32 %v6001_v0, %v13512_v38  ;;  %v13859_v7 = vadd.f32 %v5841_v3, %v13515_v44  ;;  %v16040_v3 = vld [vmem:[#allocation29_spill] sm:$0xff] }
 0x517   : > { %v8419_v49 = vpop.f32.mrf.mxu1  ;;  %v5843_v39 = vpop.f32.mrf.mxu0 }
 0x518   : > { %v13862_v21 = vadd.f32 %v5843_v39, %v13518_v53  ;;  %v16041_v49 = vld [vmem:[#allocation5_spill] sm:$0xff] }
 0x519   : > { %v6006_v24 = vpop.f32.mrf.mxu1  ;;  %8533 = vmatmul.mubr.bf16.gmra.mxu1 %v5610_v52  ;;  %v5847_v15 = vpop.f32.mrf.mxu0  ;;  %6328 = vmatmul.mubr.bf16.gmra.mxu0 %v5610_v52 }
 0x51a   : > { %v13865_v34 = vadd.f32 %v6006_v24, %v16036_v26  ;;  %v13868_v42 = vadd.f32 %v5847_v15, %v16038_v58  ;;  %8552 = vmatprep.mubr.msk.bf16.mxu1 %vm9115_vm0, %v15124_v18  ;;  %6707 = vmatprep.mubr.bf16.mxu0 %v15081_v47  ;;  %v16043_v26 = vld [vmem:[#allocation97_spill] sm:$0xff] }
 0x51b   : > { %v8422_v38 = vpop.f32.mrf.mxu1  ;;  %v5849_v44 = vpop.f32.mrf.mxu0 }
 0x51c   : > { %16037 = vst [vmem:[#allocation42_spill] sm:$0xff] %v13865_v34  ;;  %16039 = vst [vmem:[#allocation109_spill] sm:$0xff] %v13868_v42  ;;  %v13874_v53 = vadd.f32 %v5849_v44, %v13534_v17  ;;  %v16045_v34 = vld [vmem:[#allocation140_spill] sm:$0xff] }
 0x51d   : > { %v6009_v23 = vpop.f32.mrf.mxu1  ;;  %v5851_v0 = vpop.f32.mrf.mxu0 }
 0x51e   : > { %v13877_v52 = vadd.f32 %v6009_v23, %v16040_v3  ;;  %v13880_v39 = vadd.f32 %v5851_v0, %v16041_v49  ;;  %v16048_v3 = vld [vmem:[#allocation98_spill] sm:$0xff] }
 0x51f   : > { %v8423_v24 = vpop.f32.mrf.mxu1  ;;  %v5853_v15 = vpop.f32.mrf.mxu0 }
 0x520   : > { %16042 = vst [vmem:[#allocation40_spill] sm:$0xff] %v13880_v39  ;;  %v13883_v58 = vadd.f32 %v5853_v15, %v16043_v26  ;;  %v16050_v26 = vld [vmem:[#allocation11_spill] sm:$0xff] }
 0x521   : > { %v6014_v42 = vpop.f32.mrf.mxu1  ;;  %8553 = vmatmul.mubr.bf16.vlgmr.msra.gmra.mxu1 %v16045_v34  ;;  %v5857_v38 = vpop.f32.mrf.mxu0  ;;  %6708 = vmatmul.mubr.bf16.vlgmr.msra.gmra.mxu0 %v16045_v34  ;;  %v16054_v39 = vld [vmem:[#allocation143_spill] sm:$0xff] }
 0x522   : > { %16044 = vst [vmem:[#allocation114_spill] sm:$0xff] %v13883_v58  ;;  %v13888_v17 = vadd.f32 %v6014_v42, %v13553_v55  ;;  %v13891_v44 = vadd.f32 %v5857_v38, %v13556_v33  ;;  %8556 = vmatprep.mubr.msk.bf16.mxu1 %vm9115_vm0, %v15124_v18  ;;  %6717 = vmatprep.mubr.bf16.mxu0 %v15081_v47  ;;  %v16051_v55 = vld [vmem:[#allocation95_spill] sm:$0xff] }
 0x523   : > { %v8426_v23 = vpop.f32.mrf.mxu1  ;;  %v5859_v0 = vpop.f32.mrf.mxu0 }
 0x524   : > { %16046 = vst [vmem:[#allocation41_spill] sm:$0xff] %v13888_v17  ;;  %16047 = vst [vmem:[#allocation113_spill] sm:$0xff] %v13891_v44  ;;  %v13897_v49 = vadd.f32 %v5859_v0, %v16048_v3  ;;  %v16052_v44 = vld [vmem:[#allocation31_spill] sm:$0xff]  ;;  %v16055_v0 = vld [vmem:[#allocation100_spill] sm:$0xff] }
 0x525   : > { %v6017_v24 = vpop.f32.mrf.mxu1  ;;  %v5861_v15 = vpop.f32.mrf.mxu0 }
 0x526   : > { %16049 = vst [vmem:[#allocation43_spill] sm:$0xff] %v13897_v49  ;;  %v13900_v34 = vadd.f32 %v6017_v24, %v16050_v26  ;;  %v13903_v42 = vadd.f32 %v5861_v15, %v16051_v55  ;;  %v16057_v49 = vld [vmem:[#allocation103_spill] sm:$0xff] }
 0x527   : > { %v8427_v33 = vpop.f32.mrf.mxu1  ;;  %v5863_v38 = vpop.f32.mrf.mxu0  ;;  %v16059_v26 = vld [vmem:[#allocation83_spill] sm:$0xff] }
 0x528   : > { %v13906_v17 = vadd.f32 %v5863_v38, %v16052_v44 }
 0x529   : > { %v6022_v58 = vpop.f32.mrf.mxu1  ;;  %8557 = vmatmul.mubr.bf16.gmra.mxu1 %v16054_v39  ;;  %v5867_v23 = vpop.f32.mrf.mxu0  ;;  %6718 = vmatmul.mubr.bf16.gmra.mxu0 %v16054_v39 }
 0x52a   : > { %16053 = vst [vmem:[#allocation117_spill] sm:$0xff] %v13906_v17  ;;  %v13911_v3 = vadd.f32 %v6022_v58, %v16055_v0  ;;  %v13914_v24 = vadd.f32 %v5867_v23, %v16057_v49  ;;  %8560 = vmatprep.mubr.msk.bf16.mxu1 %vm9115_vm0, %v15124_v18  ;;  %6727 = vmatprep.mubr.bf16.mxu0 %v15081_v47  ;;  %v16061_v0 = vld [vmem:[#allocation32_spill] sm:$0xff]  ;;  %v16063_v17 = vld [vmem:[#allocation74_spill] sm:$0xff] }
 0x52b   : > { %v8430_v15 = vpop.f32.mrf.mxu1  ;;  %v5869_v44 = vpop.f32.mrf.mxu0 }
 0x52c   : > { %16056 = vst [vmem:[#allocation44_spill] sm:$0xff] %v13911_v3  ;;  %16058 = vst [vmem:[#allocation118_spill] sm:$0xff] %v13914_v24  ;;  %v13920_v55 = vadd.f32 %v5869_v44, %v16059_v26  ;;  %v16064_v44 = vld [vmem:[#allocation101_spill] sm:$0xff] }
 0x52d   : > { %v6025_v33 = vpop.f32.mrf.mxu1  ;;  %v5871_v38 = vpop.f32.mrf.mxu0 }
 0x52e   : > { %16060 = vst [vmem:[#allocation46_spill] sm:$0xff] %v13920_v55  ;;  %v13923_v39 = vadd.f32 %v6025_v33, %v13604_v29  ;;  %v13926_v58 = vadd.f32 %v5871_v38, %v13607_v48  ;;  %v16066_v55 = vld [vmem:[#allocation104_spill] sm:$0xff]  ;;  %v16068_v38 = vld [vmem:[#allocation35_spill] sm:$0xff] }
 0x52f   : > { %v8431_v49 = vpop.f32.mrf.mxu1  ;;  %v5873_v23 = vpop.f32.mrf.mxu0 }
 0x530   : > { %v13929_v24 = vadd.f32 %v5873_v23, %v16061_v0 }
 0x531   : > { %v6030_v3 = vpop.f32.mrf.mxu1  ;;  %8561 = vmatmul.mubr.bf16.gmra.mxu1 %v16063_v17  ;;  %v5877_v15 = vpop.f32.mrf.mxu0  ;;  %6728 = vmatmul.mubr.bf16.gmra.mxu0 %v16063_v17 }
 0x532   : > { %16062 = vst [vmem:[#allocation115_spill] sm:$0xff] %v13929_v24  ;;  %v13934_v26 = vadd.f32 %v6030_v3, %v16064_v44  ;;  %v13937_v29 = vadd.f32 %v5877_v15, %v16066_v55  ;;  %8564 = vmatprep.mubr.msk.bf16.mxu1 %vm9115_vm0, %v15124_v18  ;;  %6737 = vmatprep.mubr.bf16.mxu0 %v15081_v47  ;;  %v16069_v44 = vld [vmem:[#allocation99_spill] sm:$0xff] }
 0x533   : > { %v8434_v48 = vpop.f32.mrf.mxu1  ;;  %v5879_v33 = vpop.f32.mrf.mxu0  ;;  %v16071_v24 = vld [vmem:[#allocation75_spill] sm:$0xff] }
 0x534   : > { %16065 = vst [vmem:[#allocation116_spill] sm:$0xff] %v13934_v26  ;;  %16067 = vst [vmem:[#allocation120_spill] sm:$0xff] %v13937_v29  ;;  %v13943_v49 = vadd.f32 %v5879_v33, %v16068_v38  ;;  %v16073_v38 = vld [vmem:[#allocation33_spill] sm:$0xff] }
 0x535   : > { %v6033_v23 = vpop.f32.mrf.mxu1  ;;  %v5881_v0 = vpop.f32.mrf.mxu0 }
 0x536   : > { %v13946_v17 = vadd.f32 %v6033_v23, %v13637_v50  ;;  %v13949_v3 = vadd.f32 %v5881_v0, %v13640_v41  ;;  %v16075_v0 = vld [vmem:[#allocation107_spill] sm:$0xff] }
 0x537   : > { %v8435_v55 = vpop.f32.mrf.mxu1  ;;  %v5883_v15 = vpop.f32.mrf.mxu0 }
 0x538   : > { %v13952_v29 = vadd.f32 %v5883_v15, %v16069_v44 }
 0x539   : > { %v6038_v26 = vpop.f32.mrf.mxu1  ;;  %8565 = vmatmul.mubr.bf16.gmra.mxu1 %v16071_v24  ;;  %v5887_v48 = vpop.f32.mrf.mxu0  ;;  %6738 = vmatmul.mubr.bf16.gmra.mxu0 %v16071_v24 }
 0x53a   : > { %16070 = vst [vmem:[#allocation45_spill] sm:$0xff] %v13952_v29  ;;  %v13957_v33 = vadd.f32 %v6038_v26, %v13652_v59  ;;  %v13960_v50 = vadd.f32 %v5887_v48, %v16073_v38  ;;  %8568 = vmatprep.mubr.msk.bf16.mxu1 %vm9115_vm0, %v15124_v18  ;;  %6747 = vmatprep.mubr.bf16.mxu0 %v15081_v47  ;;  %v16077_v38 = vld [vmem:[#allocation36_spill] sm:$0xff]  ;;  %v16078_v29 = vld [vmem:[#allocation13_spill] sm:$0xff] }
 0x53b   : > { %v8438_v41 = vpop.f32.mrf.mxu1  ;;  %v5889_v23 = vpop.f32.mrf.mxu0 }
 0x53c   : > { %16072 = vst [vmem:[#allocation119_spill] sm:$0xff] %v13957_v33  ;;  %16074 = vst [vmem:[#allocation47_spill] sm:$0xff] %v13960_v50  ;;  %v13966_v55 = vadd.f32 %v5889_v23, %v16075_v0  ;;  %v16079_v23 = vld [vmem:[#allocation38_spill] sm:$0xff] }
 0x53d   : > { %v6041_v15 = vpop.f32.mrf.mxu1  ;;  %v5891_v44 = vpop.f32.mrf.mxu0 }
 0x53e   : > { %16076 = vst [vmem:[#allocation48_spill] sm:$0xff] %v13966_v55  ;;  %v13969_v24 = vadd.f32 %v6041_v15, %v13669_v32  ;;  %v13972_v59 = vadd.f32 %v5891_v44, %v13672_v22  ;;  %v16081_v55 = vld [vmem:[#allocation34_spill] sm:$0xff]  ;;  %v16083_v44 = vld [vmem:[#allocation37_spill] sm:$0xff] }
 0x53f   : > { %v8439_v26 = vpop.f32.mrf.mxu1  ;;  %v5893_v48 = vpop.f32.mrf.mxu0 }
 0x540   : > { %v13975_v50 = vadd.f32 %v5893_v48, %v16077_v38 }
 0x541   : > { %v6046_v33 = vpop.f32.mrf.mxu1  ;;  %8569 = vmatmul.mubr.bf16.gmra.mxu1 %v16078_v29  ;;  %v5897_v41 = vpop.f32.mrf.mxu0  ;;  %6748 = vmatmul.mubr.bf16.gmra.mxu0 %v16078_v29 }
 0x542   : > { %v13980_v0 = vadd.f32 %v6046_v33, %v16079_v23  ;;  %v13983_v32 = vadd.f32 %v5897_v41, %v16081_v55  ;;  %8572 = vmatprep.mubr.msk.bf16.mxu1 %vm9115_vm0, %v15124_v18  ;;  %6757 = vmatprep.mubr.bf16.mxu0 %v15081_v47 }
 0x543   : > { %v8442_v22 = vpop.f32.mrf.mxu1  ;;  %v5899_v15 = vpop.f32.mrf.mxu0 }
 0x544   : > { %16080 = vst [vmem:[#allocation122_spill] sm:$0xff] %v13980_v0  ;;  %16082 = vst [vmem:[#allocation49_spill] sm:$0xff] %v13983_v32  ;;  %v13989_v26 = vadd.f32 %v5899_v15, %v16083_v44  ;;  %v16085_v0 = vld [vmem:[#allocation110_spill] sm:$0xff] }
 0x545   : > { %v6049_v48 = vpop.f32.mrf.mxu1  ;;  %v5901_v38 = vpop.f32.mrf.mxu0  ;;  %v16088_v44 = vld [vmem:[#allocation106_spill] sm:$0xff] }
 0x546   : > { %v13992_v29 = vadd.f32 %v6049_v48, %v13694_v12  ;;  %v13995_v33 = vadd.f32 %v5901_v38, %v13697_v19 }
 0x547   : > { %v8443_v55 = vpop.f32.mrf.mxu1  ;;  %v5903_v41 = vpop.f32.mrf.mxu0 }
 0x548   : > { %v13998_v23 = vadd.f32 %v5903_v41, %v13700_v46 }
 0x549   : > { %v6054_v32 = vpop.f32.mrf.mxu1  ;;  %8573 = vmatmul.mubr.bf16.gmra.mxu1 %v16085_v0  ;;  %v5907_v22 = vpop.f32.mrf.mxu0  ;;  %6758 = vmatmul.mubr.bf16.gmra.mxu0 %v16085_v0 }
 0x54a   : > { %16084 = vst [vmem:[#allocation124_spill] sm:$0xff] %v13998_v23  ;;  %v14003_v15 = vadd.f32 %v6054_v32, %v13705_v60  ;;  %v14006_v12 = vadd.f32 %v5907_v22, %v13708_v61  ;;  %8576 = vmatprep.mubr.msk.bf16.mxu1 %vm9115_vm0, %v15124_v18  ;;  %6767 = vmatprep.mubr.bf16.mxu0 %v15081_v47  ;;  %v16090_v60 = vld [vmem:[#allocation102_spill] sm:$0xff]  ;;  %v16091_v22 = vld [vmem:[#allocation108_spill] sm:$0xff] }
 0x54b   : > { %v8446_v19 = vpop.f32.mrf.mxu1  ;;  %v5909_v46 = vpop.f32.mrf.mxu0  ;;  %v16092_v23 = vld [vmem:[#allocation52_spill] sm:$0xff] }
 0x54c   : > { %16086 = vst [vmem:[#allocation50_spill] sm:$0xff] %v14003_v15  ;;  %16087 = vst [vmem:[#allocation125_spill] sm:$0xff] %v14006_v12  ;;  %v14012_v48 = vadd.f32 %v5909_v46, %v16088_v44  ;;  %v16093_v46 = vld [vmem:[#allocation105_spill] sm:$0xff] }
 0x54d   : > { %v6057_v38 = vpop.f32.mrf.mxu1  ;;  %v5911_v55 = vpop.f32.mrf.mxu0 }
 0x54e   : > { %16089 = vst [vmem:[#allocation123_spill] sm:$0xff] %v14012_v48  ;;  %v14015_v0 = vadd.f32 %v6057_v38, %v13719_v14  ;;  %v14018_v32 = vadd.f32 %v5911_v55, %v16090_v60  ;;  %v16095_v48 = vld [vmem:[#allocation111_spill] sm:$0xff] }
 0x54f   : > { %v8447_v61 = vpop.f32.mrf.mxu1  ;;  %v5913_v41 = vpop.f32.mrf.mxu0  ;;  %v16097_v60 = vld [vmem:[#allocation39_spill] sm:$0xff] }
 0x550   : > { %v14021_v12 = vadd.f32 %v5913_v41, %v16091_v22 }
 0x551   : > { %v6062_v15 = vpop.f32.mrf.mxu1  ;;  %8577 = vmatmul.mubr.bf16.gmra.mxu1 %v16092_v23  ;;  %v5917_v19 = vpop.f32.mrf.mxu0  ;;  %6768 = vmatmul.mubr.bf16.gmra.mxu0 %v16092_v23 }
 0x552   : > { %v14026_v44 = vadd.f32 %v6062_v15, %v16093_v46  ;;  %v14029_v14 = vadd.f32 %v5917_v19, %v16095_v48  ;;  %8580 = vmatprep.mubr.msk.bf16.mxu1 %vm9115_vm0, %v15124_v18  ;;  %6777 = vmatprep.mubr.bf16.mxu0 %v15081_v47 }
 0x553   : > { %v8450_v38 = vpop.f32.mrf.mxu1  ;;  %v5919_v55 = vpop.f32.mrf.mxu0 }
 0x554   : > { %16094 = vst [vmem:[#allocation51_spill] sm:$0xff] %v14026_v44  ;;  %16096 = vst [vmem:[#allocation126_spill] sm:$0xff] %v14029_v14  ;;  %v14035_v61 = vadd.f32 %v5919_v55, %v16097_v60  ;;  %v16098_v44 = vld [vmem:[#allocation84_spill] sm:$0xff] }
 0x555   : > { %v6065_v41 = vpop.f32.mrf.mxu1  ;;  %v5921_v22 = vpop.f32.mrf.mxu0 }
 0x556   : > { %v14038_v23 = vadd.f32 %v6065_v41, %v13744_v2  ;;  %v14041_v15 = vadd.f32 %v5921_v22, %v13747_v40 }
 0x557   : > { %v8451_v48 = vpop.f32.mrf.mxu1  ;;  %v5923_v19 = vpop.f32.mrf.mxu0 }
 0x558   : > { %v14044_v46 = vadd.f32 %v5923_v19, %v13750_v9 }
 0x559   : > { %v6070_v14 = vpop.f32.mrf.mxu1  ;;  %8581 = vmatmul.mubr.bf16.gmra.mxu1 %v16098_v44  ;;  %v5927_v38 = vpop.f32.mrf.mxu0  ;;  %6778 = vmatmul.mubr.bf16.gmra.mxu0 %v16098_v44 }
 0x55a   : > { %v14049_v55 = vadd.f32 %v6070_v14, %v13755_v30  ;;  %v14052_v2 = vadd.f32 %v5927_v38, %v13758_v57  ;;  %8584 = vmatprep.mubr.msk.bf16.mxu1 %vm9115_vm0, %v15124_v18  ;;  %6787 = vmatprep.mubr.bf16.mxu0 %v15081_v47  ;;  %v16099_v38 = vld [vmem:[#allocation89_spill] sm:$0xff] }
 0x55b   : > { %v8454_v40 = vpop.f32.mrf.mxu1  ;;  %v5929_v9 = vpop.f32.mrf.mxu0 }
 0x55c   : > { %v14058_v60 = vadd.f32 %v5929_v9, %v13764_v13  ;;  %v16101_v9 = vld [vmem:[#allocation112_spill] sm:$0xff] }
 0x55d   : > { %v6073_v41 = vpop.f32.mrf.mxu1  ;;  %v5931_v22 = vpop.f32.mrf.mxu0 }
 0x55e   : > { %v14061_v44 = vadd.f32 %v6073_v41, %v13769_v51  ;;  %v14064_v30 = vadd.f32 %v5931_v22, %v13772_v11 }
 0x55f   : > { %v8455_v57 = vpop.f32.mrf.mxu1  ;;  %v5933_v14 = vpop.f32.mrf.mxu0 }
 0x560   : > { %v14067_v48 = vadd.f32 %v5933_v14, %v13775_v10 }
 0x561   : > { %v6078_v19 = vpop.f32.mrf.mxu1  ;;  %8585 = vmatmul.mubr.bf16.gmra.mxu1 %v16099_v38  ;;  %v5937_v40 = vpop.f32.mrf.mxu0  ;;  %6788 = vmatmul.mubr.bf16.gmra.mxu0 %v16099_v38 }
 0x562   : > { %v14072_v13 = vadd.f32 %v6078_v19, %v13780_v25  ;;  %v14075_v51 = vadd.f32 %v5937_v40, %v13783_v43  ;;  %8588 = vmatprep.mubr.msk.bf16.mxu1 %vm9115_vm0, %v15124_v18  ;;  %6797 = vmatprep.mubr.bf16.mxu0 %v15081_v47 }
 0x563   : > { %v8458_v11 = vpop.f32.mrf.mxu1  ;;  %v5939_v10 = vpop.f32.mrf.mxu0 }
 0x564   : > { %16100 = vst [vmem:[#allocation128_spill] sm:$0xff] %v14075_v51  ;;  %v14081_v41 = vadd.f32 %v5939_v10, %v16101_v9  ;;  %v16102_v51 = vld [vmem:[#allocation63_spill] sm:$0xff] }
 0x565   : > { %v6081_v22 = vpop.f32.mrf.mxu1  ;;  %v5941_v57 = vpop.f32.mrf.mxu0 }
 0x566   : > { %v14084_v14 = vadd.f32 %v6081_v22, %v13794_v4  ;;  %v14087_v25 = vadd.f32 %v5941_v57, %v13797_v16 }
 0x567   : > { %v8459_v43 = vpop.f32.mrf.mxu1  ;;  %v5943_v19 = vpop.f32.mrf.mxu0 }
 0x568   : > { %v14090_v38 = vadd.f32 %v5943_v19, %v13800_v27 }
 0x569   : > { %v6086_v40 = vpop.f32.mrf.mxu1  ;;  %8589 = vmatmul.mubr.bf16.gmra.mxu1 %v16102_v51  ;;  %v5947_v11 = vpop.f32.mrf.mxu0  ;;  %6798 = vmatmul.mubr.bf16.gmra.mxu0 %v16102_v51 }
 0x56a   : > { %v14095_v10 = vadd.f32 %v6086_v40, %v13805_v28  ;;  %v14098_v4 = vadd.f32 %v5947_v11, %v13808_v31  ;;  %8592 = vmatprep.mubr.msk.bf16.mxu1 %vm9115_vm0, %v15124_v18  ;;  %6807 = vmatprep.mubr.bf16.mxu0 %v15081_v47  ;;  %v16103_v11 = vld [vmem:[#allocation94_spill] sm:$0xff] }
 0x56b   : > { %v8462_v16 = vpop.f32.mrf.mxu1  ;;  %v5949_v27 = vpop.f32.mrf.mxu0 }
 0x56c   : > { %v14104_v9 = vadd.f32 %v5949_v27, %v13814_v56 }
 0x56d   : > { %v6089_v22 = vpop.f32.mrf.mxu1  ;;  %v5951_v57 = vpop.f32.mrf.mxu0 }
 0x56e   : > { %v14107_v51 = vadd.f32 %v6089_v22, %v13819_v1  ;;  %v14110_v28 = vadd.f32 %v5951_v57, %v13822_v5 }
 0x56f   : > { %v8463_v31 = vpop.f32.mrf.mxu1  ;;  %v5953_v43 = vpop.f32.mrf.mxu0 }
 0x570   : > { %v14113_v19 = vadd.f32 %v5953_v43, %v13825_v54 }
 0x571   : > { %v6094_v40 = vpop.f32.mrf.mxu1  ;;  %8593 = vmatmul.mubr.bf16.gmra.mxu1 %v16103_v11  ;;  %v5957_v16 = vpop.f32.mrf.mxu0  ;;  %6808 = vmatmul.mubr.bf16.gmra.mxu0 %v16103_v11 }
 0x572   : > { %v14118_v56 = vadd.f32 %v6094_v40, %v13830_v35  ;;  %v14121_v1 = vadd.f32 %v5957_v16, %v13833_v8  ;;  %8596 = vmatprep.mubr.msk.bf16.mxu1 %vm9115_vm0, %v15124_v18  ;;  %6817 = vmatprep.mubr.bf16.mxu0 %v15081_v47 }
 0x573   : > { %v8466_v5 = vpop.f32.mrf.mxu1  ;;  %v5959_v54 = vpop.f32.mrf.mxu0 }
 0x574   : > { %v14127_v27 = vadd.f32 %v5959_v54, %v13839_v6 }
 0x575   : > { %v6097_v22 = vpop.f32.mrf.mxu1  ;;  %v5961_v57 = vpop.f32.mrf.mxu0 }
 0x577   : > { %v8467_v31 = vpop.f32.mrf.mxu1  ;;  %v5962_v43 = vpop.f32.mrf.mxu0 }
 0x579   : > { %v6370_v11 = vpop.f32.mrf.mxu1  ;;  %8597 = vmatmul.mubr.bf16.gmra.mxu1 %v13486_v36  ;;  %v6209_v35 = vpop.f32.mrf.mxu0  ;;  %6818 = vmatmul.mubr.bf16.gmra.mxu0 %v13486_v36 }
 0x57a   : > { %v14132_v8 = vadd.f32 %v6370_v11, %v13844_v37  ;;  %v14135_v40 = vadd.f32 %v6209_v35, %v13847_v20  ;;  %8600 = vmatprep.mubr.msk.bf16.mxu1 %vm9115_vm0, %v15124_v18  ;;  %6827 = vmatprep.mubr.bf16.mxu0 %v15081_v47  ;;  %v16106_v11 = vld [vmem:[#allocation109_spill] sm:$0xff] }
 0x57b   : > { %v8486_v6 = vpop.f32.mrf.mxu1  ;;  %v6211_v16 = vpop.f32.mrf.mxu0 }
 0x57c   : > { %v14141_v5 = vadd.f32 %v6211_v16, %v13853_v63  ;;  %v16104_v63 = vld [vmem:[#allocation42_spill] sm:$0xff] }
 0x57d   : > { %v6373_v54 = vpop.f32.mrf.mxu1  ;;  %v6213_v22 = vpop.f32.mrf.mxu0 }
 0x57e   : > { %v14144_v36 = vadd.f32 %v6373_v54, %v13856_v45  ;;  %v14147_v37 = vadd.f32 %v6213_v22, %v13859_v7  ;;  %v16109_v22 = vld [vmem:[#allocation40_spill] sm:$0xff] }
 0x57f   : > { %v8487_v20 = vpop.f32.mrf.mxu1  ;;  %v6215_v57 = vpop.f32.mrf.mxu0 }
 0x580   : > { %v14150_v31 = vadd.f32 %v6215_v57, %v13862_v21 }
 0x581   : > { %v6378_v18 = vpop.f32.mrf.mxu1  ;;  %8601 = vmatmul.mubr.bf16.gmra.mxu1 %v13507_v62  ;;  %v6219_v47 = vpop.f32.mrf.mxu0  ;;  %6828 = vmatmul.mubr.bf16.gmra.mxu0 %v13507_v62 }
 0x582   : > { %v14155_v43 = vadd.f32 %v6378_v18, %v16104_v63  ;;  %v14158_v45 = vadd.f32 %v6219_v47, %v16106_v11  ;;  %v16110_v18 = vld [vmem:[#allocation114_spill] sm:$0xff] }
 0x583   : > { %v8490_v35 = vpop.f32.mrf.mxu1  ;;  %v6221_v7 = vpop.f32.mrf.mxu0 }
 0x584   : > { %16105 = vst [vmem:[#allocation54_spill] sm:$0xff] %v14155_v43  ;;  %16107 = vst [vmem:[#allocation55_spill] sm:$0xff] %v14158_v45  ;;  %v14161_v6 = vadd.f32 %v6221_v7, %v13874_v53  ;;  %v16112_v35 = vld [vmem:[#allocation41_spill] sm:$0xff] }
 0x585   : > { %v6381_v16 = vpop.f32.mrf.mxu1  ;;  %v6223_v21 = vpop.f32.mrf.mxu0  ;;  %v16114_v53 = vld [vmem:[#allocation113_spill] sm:$0xff] }
 0x586   : > { %16108 = vst [vmem:[#allocation130_spill] sm:$0xff] %v14161_v6  ;;  %v14164_v54 = vadd.f32 %v6381_v16, %v13877_v52  ;;  %v14167_v20 = vadd.f32 %v6223_v21, %v16109_v22  ;;  %v16116_v52 = vld [vmem:[#allocation43_spill] sm:$0xff] }
 0x587   : > { %v8491_v62 = vpop.f32.mrf.mxu1  ;;  %v6225_v57 = vpop.f32.mrf.mxu0 }
 0x588   : > { %v14170_v63 = vadd.f32 %v6225_v57, %v16110_v18 }
 0x589   : > { %v6386_v47 = vpop.f32.mrf.mxu1  ;;  %v6229_v11 = vpop.f32.mrf.mxu0 }
 0x58a   : > { %16111 = vst [vmem:[#allocation56_spill] sm:$0xff] %v14170_v63  ;;  %v14173_v45 = vadd.f32 %v6386_v47, %v16112_v35  ;;  %v14176_v7 = vadd.f32 %v6229_v11, %v16114_v53  ;;  %v16118_v47 = vld [vmem:[#allocation117_spill] sm:$0xff] }
 0x58b   : > { %v8494_v6 = vpop.f32.mrf.mxu1  ;;  %v6231_v43 = vpop.f32.mrf.mxu0 }
 0x58c   : > { %16113 = vst [vmem:[#allocation131_spill] sm:$0xff] %v14173_v45  ;;  %16115 = vst [vmem:[#allocation57_spill] sm:$0xff] %v14176_v7  ;;  %v14179_v16 = vadd.f32 %v6231_v43, %v16116_v52  ;;  %v16120_v6 = vld [vmem:[#allocation44_spill] sm:$0xff]  ;;  %v16122_v43 = vld [vmem:[#allocation118_spill] sm:$0xff] }
 0x58d   : > { %v6389_v21 = vpop.f32.mrf.mxu1  ;;  %v6233_v22 = vpop.f32.mrf.mxu0 }
 0x58e   : > { %16117 = vst [vmem:[#allocation132_spill] sm:$0xff] %v14179_v16  ;;  %v14182_v62 = vadd.f32 %v6389_v21, %v13900_v34  ;;  %v14185_v57 = vadd.f32 %v6233_v22, %v13903_v42  ;;  %v16124_v34 = vld [vmem:[#allocation46_spill] sm:$0xff] }
 0x58f   : > { %v8495_v18 = vpop.f32.mrf.mxu1  ;;  %v6235_v63 = vpop.f32.mrf.mxu0 }
 0x590   : > { %v14188_v35 = vadd.f32 %v6235_v63, %v16118_v47 }
 0x591   : > { %v6394_v11 = vpop.f32.mrf.mxu1  ;;  %v6239_v53 = vpop.f32.mrf.mxu0 }
 0x592   : > { %16119 = vst [vmem:[#allocation58_spill] sm:$0xff] %v14188_v35  ;;  %v14191_v7 = vadd.f32 %v6394_v11, %v16120_v6  ;;  %v14194_v52 = vadd.f32 %v6239_v53, %v16122_v43  ;;  %v16126_v11 = vld [vmem:[#allocation115_spill] sm:$0xff] }
 0x593   : > { %v8498_v16 = vpop.f32.mrf.mxu1  ;;  %v6241_v45 = vpop.f32.mrf.mxu0 }
 0x594   : > { %16121 = vst [vmem:[#allocation133_spill] sm:$0xff] %v14191_v7  ;;  %16123 = vst [vmem:[#allocation134_spill] sm:$0xff] %v14194_v52  ;;  %v14197_v21 = vadd.f32 %v6241_v45, %v16124_v34  ;;  %v16127_v16 = vld [vmem:[#allocation116_spill] sm:$0xff] }
 0x595   : > { %v6397_v42 = vpop.f32.mrf.mxu1  ;;  %v6243_v22 = vpop.f32.mrf.mxu0  ;;  %v16129_v45 = vld [vmem:[#allocation120_spill] sm:$0xff] }
 0x596   : > { %16125 = vst [vmem:[#allocation60_spill] sm:$0xff] %v14197_v21  ;;  %v14200_v18 = vadd.f32 %v6397_v42, %v13923_v39  ;;  %v14203_v63 = vadd.f32 %v6243_v22, %v13926_v58 }
 0x597   : > { %v8499_v47 = vpop.f32.mrf.mxu1  ;;  %v6245_v35 = vpop.f32.mrf.mxu0 }
 0x598   : > { %v14206_v6 = vadd.f32 %v6245_v35, %v16126_v11 }
 0x599   : > { %v6402_v53 = vpop.f32.mrf.mxu1  ;;  %v6249_v43 = vpop.f32.mrf.mxu0 }
 0x59a   : > { %v14209_v52 = vadd.f32 %v6402_v53, %v16127_v16  ;;  %v14212_v34 = vadd.f32 %v6249_v43, %v16129_v45  ;;  %v16132_v53 = vld [vmem:[#allocation45_spill] sm:$0xff] }
 0x59b   : > { %v8502_v21 = vpop.f32.mrf.mxu1  ;;  %v6251_v7 = vpop.f32.mrf.mxu0 }
 0x59c   : > { %16128 = vst [vmem:[#allocation136_spill] sm:$0xff] %v14209_v52  ;;  %16130 = vst [vmem:[#allocation61_spill] sm:$0xff] %v14212_v34  ;;  %v14215_v39 = vadd.f32 %v6251_v7, %v13943_v49  ;;  %v16134_v21 = vld [vmem:[#allocation119_spill] sm:$0xff] }
 0x59d   : > { %v6405_v58 = vpop.f32.mrf.mxu1  ;;  %v6253_v42 = vpop.f32.mrf.mxu0  ;;  %v16135_v49 = vld [vmem:[#allocation47_spill] sm:$0xff] }
 0x59e   : > { %16131 = vst [vmem:[#allocation138_spill] sm:$0xff] %v14215_v39  ;;  %v14218_v22 = vadd.f32 %v6405_v58, %v13946_v17  ;;  %v14221_v35 = vadd.f32 %v6253_v42, %v13949_v3  ;;  %v16137_v17 = vld [vmem:[#allocation48_spill] sm:$0xff] }
 0x59f   : > { %v8503_v47 = vpop.f32.mrf.mxu1  ;;  %v6255_v11 = vpop.f32.mrf.mxu0 }
 0x5a0   : > { %v14224_v16 = vadd.f32 %v6255_v11, %v16132_v53 }
 0x5a1   : > { %v6410_v43 = vpop.f32.mrf.mxu1  ;;  %v6259_v45 = vpop.f32.mrf.mxu0 }
 0x5a2   : > { %16133 = vst [vmem:[#allocation62_spill] sm:$0xff] %v14224_v16  ;;  %v14227_v34 = vadd.f32 %v6410_v43, %v16134_v21  ;;  %v14230_v7 = vadd.f32 %v6259_v45, %v16135_v49 }
 0x5a3   : > { %v8506_v39 = vpop.f32.mrf.mxu1  ;;  %v6261_v52 = vpop.f32.mrf.mxu0 }
 0x5a4   : > { %16136 = vst [vmem:[#allocation139_spill] sm:$0xff] %v14230_v7  ;;  %v14233_v58 = vadd.f32 %v6261_v52, %v16137_v17  ;;  %v16139_v39 = vld [vmem:[#allocation122_spill] sm:$0xff]  ;;  %v16141_v52 = vld [vmem:[#allocation49_spill] sm:$0xff] }
 0x5a5   : > { %v6413_v3 = vpop.f32.mrf.mxu1  ;;  %v6263_v42 = vpop.f32.mrf.mxu0 }
 0x5a6   : > { %16138 = vst [vmem:[#allocation137_spill] sm:$0xff] %v14233_v58  ;;  %v14236_v47 = vadd.f32 %v6413_v3, %v13969_v24  ;;  %v14239_v11 = vadd.f32 %v6263_v42, %v13972_v59 }
 0x5a7   : > { %v8507_v53 = vpop.f32.mrf.mxu1  ;;  %v6265_v16 = vpop.f32.mrf.mxu0 }
 0x5a8   : > { %v14242_v43 = vadd.f32 %v6265_v16, %v13975_v50 }
 0x5a9   : > { %v6418_v45 = vpop.f32.mrf.mxu1  ;;  %v6269_v21 = vpop.f32.mrf.mxu0 }
 0x5aa   : > { %v14245_v49 = vadd.f32 %v6418_v45, %v16139_v39  ;;  %v14248_v17 = vadd.f32 %v6269_v21, %v16141_v52  ;;  %v16144_v45 = vld [vmem:[#allocation124_spill] sm:$0xff] }
 0x5ab   : > { %v8510_v58 = vpop.f32.mrf.mxu1  ;;  %v6271_v7 = vpop.f32.mrf.mxu0 }
 0x5ac   : > { %16140 = vst [vmem:[#allocation64_spill] sm:$0xff] %v14245_v49  ;;  %16142 = vst [vmem:[#allocation142_spill] sm:$0xff] %v14248_v17  ;;  %v14251_v24 = vadd.f32 %v6271_v7, %v13989_v26  ;;  %v16146_v58 = vld [vmem:[#allocation50_spill] sm:$0xff]  ;;  %v16147_v26 = vld [vmem:[#allocation125_spill] sm:$0xff] }
 0x5ad   : > { %v6421_v59 = vpop.f32.mrf.mxu1  ;;  %v6273_v3 = vpop.f32.mrf.mxu0 }
 0x5ae   : > { %16143 = vst [vmem:[#allocation65_spill] sm:$0xff] %v14251_v24  ;;  %v14254_v42 = vadd.f32 %v6421_v59, %v13992_v29  ;;  %v14257_v50 = vadd.f32 %v6273_v3, %v13995_v33  ;;  %v16149_v29 = vld [vmem:[#allocation123_spill] sm:$0xff] }
 0x5af   : > { %v8511_v16 = vpop.f32.mrf.mxu1  ;;  %v6275_v53 = vpop.f32.mrf.mxu0 }
 0x5b0   : > { %v14260_v39 = vadd.f32 %v6275_v53, %v16144_v45 }
 0x5b1   : > { %v6426_v21 = vpop.f32.mrf.mxu1  ;;  %v6279_v52 = vpop.f32.mrf.mxu0 }
 0x5b2   : > { %16145 = vst [vmem:[#allocation66_spill] sm:$0xff] %v14260_v39  ;;  %v14263_v17 = vadd.f32 %v6426_v21, %v16146_v58  ;;  %v14266_v7 = vadd.f32 %v6279_v52, %v16147_v26 }
 0x5b3   : > { %v8514_v24 = vpop.f32.mrf.mxu1  ;;  %v6281_v49 = vpop.f32.mrf.mxu0 }
 0x5b4   : > { %16148 = vst [vmem:[#allocation67_spill] sm:$0xff] %v14266_v7  ;;  %v14269_v59 = vadd.f32 %v6281_v49, %v16149_v29  ;;  %v16151_v24 = vld [vmem:[#allocation51_spill] sm:$0xff]  ;;  %v16152_v49 = vld [vmem:[#allocation126_spill] sm:$0xff] }
 0x5b5   : > { %v6429_v33 = vpop.f32.mrf.mxu1  ;;  %v6283_v3 = vpop.f32.mrf.mxu0 }
 0x5b6   : > { %16150 = vst [vmem:[#allocation145_spill] sm:$0xff] %v14269_v59  ;;  %v14272_v16 = vadd.f32 %v6429_v33, %v14015_v0  ;;  %v14275_v53 = vadd.f32 %v6283_v3, %v14018_v32 }
 0x5b7   : > { %v8515_v45 = vpop.f32.mrf.mxu1  ;;  %v6285_v39 = vpop.f32.mrf.mxu0 }
 0x5b8   : > { %v14278_v21 = vadd.f32 %v6285_v39, %v14021_v12 }
 0x5b9   : > { %v6434_v52 = vpop.f32.mrf.mxu1  ;;  %v6289_v58 = vpop.f32.mrf.mxu0 }
 0x5ba   : > { %v14281_v26 = vadd.f32 %v6434_v52, %v16151_v24  ;;  %v14284_v29 = vadd.f32 %v6289_v58, %v16152_v49 }
 0x5bb   : > { %v8518_v59 = vpop.f32.mrf.mxu1  ;;  %v6291_v7 = vpop.f32.mrf.mxu0 }
 0x5bc   : > { %v14287_v0 = vadd.f32 %v6291_v7, %v14035_v61 }
 0x5bd   : > { %v6437_v32 = vpop.f32.mrf.mxu1  ;;  %v6293_v33 = vpop.f32.mrf.mxu0 }
 0x5be   : > { %v14290_v3 = vadd.f32 %v6437_v32, %v14038_v23  ;;  %v14293_v12 = vadd.f32 %v6293_v33, %v14041_v15 }
 0x5bf   : > { %v8519_v39 = vpop.f32.mrf.mxu1  ;;  %v6295_v45 = vpop.f32.mrf.mxu0 }
 0x5c0   : > { %v14296_v52 = vadd.f32 %v6295_v45, %v14044_v46 }
 0x5c1   : > { %v6442_v58 = vpop.f32.mrf.mxu1  ;;  %v6299_v24 = vpop.f32.mrf.mxu0 }
 0x5c2   : > { %v14299_v59 = vadd.f32 %v6442_v58, %v14049_v55  ;;  %v14302_v61 = vadd.f32 %v6299_v24, %v14052_v2 }
 0x5c3   : > { %v8522_v7 = vpop.f32.mrf.mxu1  ;;  %v6301_v49 = vpop.f32.mrf.mxu0 }
 0x5c4   : > { %v14305_v23 = vadd.f32 %v6301_v49, %v14058_v60  ;;  %v16154_v60 = vld [vmem:[#allocation128_spill] sm:$0xff] }
 0x5c5   : > { %v6445_v15 = vpop.f32.mrf.mxu1  ;;  %v6303_v32 = vpop.f32.mrf.mxu0 }
 0x5c6   : > { %16153 = vst [vmem:[#allocation68_spill] sm:$0xff] %v14305_v23  ;;  %v14308_v33 = vadd.f32 %v6445_v15, %v14061_v44  ;;  %v14311_v46 = vadd.f32 %v6303_v32, %v14064_v30 }
 0x5c7   : > { %v8523_v39 = vpop.f32.mrf.mxu1  ;;  %v6305_v45 = vpop.f32.mrf.mxu0 }
 0x5c8   : > { %v14314_v55 = vadd.f32 %v6305_v45, %v14067_v48 }
 0x5c9   : > { %v6450_v2 = vpop.f32.mrf.mxu1  ;;  %v6309_v58 = vpop.f32.mrf.mxu0 }
 0x5ca   : > { %v14317_v24 = vadd.f32 %v6450_v2, %v14072_v13  ;;  %v14320_v7 = vadd.f32 %v6309_v58, %v16154_v60 }
 0x5cb   : > { %v8526_v49 = vpop.f32.mrf.mxu1  ;;  %v6311_v23 = vpop.f32.mrf.mxu0 }
 0x5cc   : > { %v14323_v44 = vadd.f32 %v6311_v23, %v14081_v41 }
 0x5cd   : > { %v6453_v30 = vpop.f32.mrf.mxu1  ;;  %v6313_v15 = vpop.f32.mrf.mxu0 }
 0x5ce   : > { %v14326_v32 = vadd.f32 %v6453_v30, %v14084_v14  ;;  %v14329_v48 = vadd.f32 %v6313_v15, %v14087_v25 }
 0x5cf   : > { %v8527_v39 = vpop.f32.mrf.mxu1  ;;  %v6315_v45 = vpop.f32.mrf.mxu0 }
 0x5d0   : > { %v14332_v13 = vadd.f32 %v6315_v45, %v14090_v38 }
 0x5d1   : > { %v6458_v2 = vpop.f32.mrf.mxu1  ;;  %v6319_v58 = vpop.f32.mrf.mxu0 }
 0x5d2   : > { %v14335_v60 = vadd.f32 %v6458_v2, %v14095_v10  ;;  %v14338_v41 = vadd.f32 %v6319_v58, %v14098_v4 }
 0x5d3   : > { %v8530_v23 = vpop.f32.mrf.mxu1  ;;  %v6321_v49 = vpop.f32.mrf.mxu0 }
 0x5d4   : > { %v14341_v14 = vadd.f32 %v6321_v49, %v14104_v9 }
 0x5d5   : > { %v6461_v25 = vpop.f32.mrf.mxu1  ;;  %v6323_v30 = vpop.f32.mrf.mxu0 }
 0x5d6   : > { %v14344_v15 = vadd.f32 %v6461_v25, %v14107_v51  ;;  %v14347_v38 = vadd.f32 %v6323_v30, %v14110_v28 }
 0x5d7   : > { %v8531_v39 = vpop.f32.mrf.mxu1  ;;  %v6325_v45 = vpop.f32.mrf.mxu0 }
 0x5d8   : > { %16155 = vst [vmem:[#allocation146_spill] sm:$0xff] %v14347_v38  ;;  %v14350_v10 = vadd.f32 %v6325_v45, %v14113_v19  ;;  %v7049_v19 = vld [vmem:[%s14900_s4 + $0x10] sm:$0xff] }
 0x5d9   : > { %v6466_v4 = vpop.f32.mrf.mxu1  ;;  %v6329_v2 = vpop.f32.mrf.mxu0 }
 0x5da   : > { %v14353_v58 = vadd.f32 %v6466_v4, %v14118_v56  ;;  %v14356_v9 = vadd.f32 %v6329_v2, %v14121_v1  ;;  %v7047_v56 = vld [vmem:[%s14900_s4] sm:$0xff] }
 0x5db   : > { %v8534_v23 = vpop.f32.mrf.mxu1  ;;  %v6331_v49 = vpop.f32.mrf.mxu0 }
 0x5dc   : > { %v14359_v51 = vadd.f32 %v6331_v49, %v14127_v27  ;;  %v7048_v23 = vld [vmem:[%s14900_s4 + $0x8] sm:$0xff] }
 0x5dd   : > { %v6469_v28 = vpop.f32.mrf.mxu1  ;;  %v6333_v25 = vpop.f32.mrf.mxu0 }
 0x5de   : > { %16156 = vst [vmem:[#allocation69_spill] sm:$0xff] %v14359_v51 }
 0x5df   : > { %v8535_v30 = vpop.f32.mrf.mxu1  ;;  %v6334_v39 = vpop.f32.mrf.mxu0 }
 0x5e0   : > { %v7052_v39 = vld [vmem:[%s14900_s4 + $0x28] sm:$0xff] }
 0x5e1   : > { %v6870_v38 = vpop.f32.mrf.mxu1  ;;  %v6709_v45 = vpop.f32.mrf.mxu0 }
 0x5e2   : > { %v6974_v1 = vadd.f32 %v6870_v38, %v14132_v8  ;;  %v6972_v4 = vadd.f32 %v6709_v45, %v14135_v40  ;;  %v7050_v8 = vld [vmem:[%s14900_s4 + $0x18] sm:$0xff] }
 0x5e3   : > { %v8554_v27 = vpop.f32.mrf.mxu1  ;;  %v6711_v2 = vpop.f32.mrf.mxu0 }
 0x5e4   : > { %v7124_v49 = vadd.f32 %v7049_v19, %v6974_v1  ;;  %v7122_v28 = vadd.f32 %v7047_v56, %v6972_v4  ;;  %v6973_v25 = vadd.f32 %v6711_v2, %v14141_v5  ;;  %v7051_v56 = vld [vmem:[%s14900_s4 + $0x20] sm:$0xff] }
 0x5e5   : > { %v6873_v30 = vpop.f32.mrf.mxu1  ;;  %v6713_v51 = vpop.f32.mrf.mxu0 }
 0x5e6   : > { %7199 = vst [vmem:[%s14900_s4 + $0x10] sm:$0xff] %v7124_v49  ;;  %7197 = vst [vmem:[%s14900_s4] sm:$0xff] %v7122_v28  ;;  %v7123_v40 = vadd.f32 %v7048_v23, %v6973_v25  ;;  %v6977_v5 = vadd.f32 %v6873_v30, %v14144_v36  ;;  %v6975_v38 = vadd.f32 %v6713_v51, %v14147_v37  ;;  %v7055_v36 = vld [vmem:[%s14900_s4 + $0x40] sm:$0xff]  ;;  %v7053_v51 = vld [vmem:[%s14900_s4 + $0x30] sm:$0xff] }
 0x5e7   : > { %v8555_v19 = vpop.f32.mrf.mxu1  ;;  %v6715_v45 = vpop.f32.mrf.mxu0  ;;  %v16158_v28 = vld [vmem:[#allocation55_spill] sm:$0xff] }
 0x5e8   : > { %7198 = vst [vmem:[%s14900_s4 + $0x8] sm:$0xff] %v7123_v40  ;;  %v7127_v1 = vadd.f32 %v7052_v39, %v6977_v5  ;;  %v7125_v4 = vadd.f32 %v7050_v8, %v6975_v38  ;;  %v6976_v27 = vadd.f32 %v6715_v45, %v14150_v31  ;;  %v16157_v31 = vld [vmem:[#allocation54_spill] sm:$0xff] }
 0x5e9   : > { %v6878_v2 = vpop.f32.mrf.mxu1  ;;  %v6719_v37 = vpop.f32.mrf.mxu0  ;;  %v7054_v8 = vld [vmem:[%s14900_s4 + $0x38] sm:$0xff] }
 0x5ea   : > { %7202 = vst [vmem:[%s14900_s4 + $0x28] sm:$0xff] %v7127_v1  ;;  %7200 = vst [vmem:[%s14900_s4 + $0x18] sm:$0xff] %v7125_v4  ;;  %v7126_v23 = vadd.f32 %v7051_v56, %v6976_v27  ;;  %v6980_v49 = vadd.f32 %v6878_v2, %v16157_v31  ;;  %v6978_v25 = vadd.f32 %v6719_v37, %v16158_v28  ;;  %v16159_v38 = vld [vmem:[#allocation130_spill] sm:$0xff]  ;;  %v7056_v4 = vld [vmem:[%s14900_s4 + $0x48] sm:$0xff] }
 0x5eb   : > { %v8558_v30 = vpop.f32.mrf.mxu1  ;;  %v6721_v39 = vpop.f32.mrf.mxu0  ;;  %v7058_v56 = vld [vmem:[%s14900_s4 + $0x58] sm:$0xff]  ;;  %v16160_v28 = vld [vmem:[#allocation56_spill] sm:$0xff] }
 0x5ec   : > { %7201 = vst [vmem:[%s14900_s4 + $0x20] sm:$0xff] %v7126_v23  ;;  %v7130_v40 = vadd.f32 %v7055_v36, %v6980_v49  ;;  %v7128_v5 = vadd.f32 %v7053_v51, %v6978_v25  ;;  %v6979_v19 = vadd.f32 %v6721_v39, %v16159_v38  ;;  %v7057_v23 = vld [vmem:[%s14900_s4 + $0x50] sm:$0xff]  ;;  %v7059_v39 = vld [vmem:[%s14900_s4 + $0x60] sm:$0xff] }
 0x5ed   : > { %v6881_v45 = vpop.f32.mrf.mxu1  ;;  %v6723_v1 = vpop.f32.mrf.mxu0  ;;  %v16162_v38 = vld [vmem:[#allocation57_spill] sm:$0xff] }
 0x5ee   : > { %7205 = vst [vmem:[%s14900_s4 + $0x40] sm:$0xff] %v7130_v40  ;;  %7203 = vst [vmem:[%s14900_s4 + $0x30] sm:$0xff] %v7128_v5  ;;  %v7129_v27 = vadd.f32 %v7054_v8, %v6979_v19  ;;  %v6983_v2 = vadd.f32 %v6881_v45, %v14164_v54  ;;  %v6981_v36 = vadd.f32 %v6723_v1, %v14167_v20  ;;  %v7061_v54 = vld [vmem:[%s14900_s4 + $0x70] sm:$0xff]  ;;  %v16161_v40 = vld [vmem:[#allocation131_spill] sm:$0xff] }
 0x5ef   : > { %v8559_v37 = vpop.f32.mrf.mxu1  ;;  %v6725_v51 = vpop.f32.mrf.mxu0  ;;  %v7060_v1 = vld [vmem:[%s14900_s4 + $0x68] sm:$0xff] }
 0x5f0   : > { %7204 = vst [vmem:[%s14900_s4 + $0x38] sm:$0xff] %v7129_v27  ;;  %v7133_v31 = vadd.f32 %v7058_v56, %v6983_v2  ;;  %v7131_v49 = vadd.f32 %v7056_v4, %v6981_v36  ;;  %v6982_v25 = vadd.f32 %v6725_v51, %v16160_v28  ;;  %v16163_v2 = vld [vmem:[#allocation132_spill] sm:$0xff] }
 0x5f1   : > { %v6886_v30 = vpop.f32.mrf.mxu1  ;;  %v6729_v20 = vpop.f32.mrf.mxu0  ;;  %v7064_v51 = vld [vmem:[%s14900_s4 + $0x88] sm:$0xff] }
 0x5f2   : > { %7208 = vst [vmem:[%s14900_s4 + $0x58] sm:$0xff] %v7133_v31  ;;  %7206 = vst [vmem:[%s14900_s4 + $0x48] sm:$0xff] %v7131_v49  ;;  %v7132_v8 = vadd.f32 %v7057_v23, %v6982_v25  ;;  %v6986_v5 = vadd.f32 %v6886_v30, %v16161_v40  ;;  %v6984_v19 = vadd.f32 %v6729_v20, %v16162_v38  ;;  %v7062_v31 = vld [vmem:[%s14900_s4 + $0x78] sm:$0xff]  ;;  %v7063_v20 = vld [vmem:[%s14900_s4 + $0x80] sm:$0xff] }
 0x5f3   : > { %v8562_v45 = vpop.f32.mrf.mxu1  ;;  %v6731_v56 = vpop.f32.mrf.mxu0  ;;  %v16164_v40 = vld [vmem:[#allocation58_spill] sm:$0xff] }
 0x5f4   : > { %7207 = vst [vmem:[%s14900_s4 + $0x50] sm:$0xff] %v7132_v8  ;;  %v7136_v4 = vadd.f32 %v7061_v54, %v6986_v5  ;;  %v7134_v27 = vadd.f32 %v7059_v39, %v6984_v19  ;;  %v6985_v36 = vadd.f32 %v6731_v56, %v16163_v2  ;;  %v7065_v19 = vld [vmem:[%s14900_s4 + $0x90] sm:$0xff] }
 0x5f5   : > { %v6889_v37 = vpop.f32.mrf.mxu1  ;;  %v6733_v23 = vpop.f32.mrf.mxu0  ;;  %v16165_v56 = vld [vmem:[#allocation133_spill] sm:$0xff] }
 0x5f6   : > { %7211 = vst [vmem:[%s14900_s4 + $0x70] sm:$0xff] %v7136_v4  ;;  %7209 = vst [vmem:[%s14900_s4 + $0x60] sm:$0xff] %v7134_v27  ;;  %v7135_v49 = vadd.f32 %v7060_v1, %v6985_v36  ;;  %v6989_v28 = vadd.f32 %v6889_v37, %v14182_v62  ;;  %v6987_v25 = vadd.f32 %v6733_v23, %v14185_v57  ;;  %v7067_v62 = vld [vmem:[%s14900_s4 + $0xa0] sm:$0xff]  ;;  %v16166_v4 = vld [vmem:[#allocation134_spill] sm:$0xff] }
 0x5f7   : > { %v8563_v30 = vpop.f32.mrf.mxu1  ;;  %v6735_v54 = vpop.f32.mrf.mxu0  ;;  %v7066_v37 = vld [vmem:[%s14900_s4 + $0x98] sm:$0xff] }
 0x5f8   : > { %7210 = vst [vmem:[%s14900_s4 + $0x68] sm:$0xff] %v7135_v49  ;;  %v7139_v39 = vadd.f32 %v7064_v51, %v6989_v28  ;;  %v7137_v8 = vadd.f32 %v7062_v31, %v6987_v25  ;;  %v6988_v5 = vadd.f32 %v6735_v54, %v16164_v40  ;;  %v16167_v31 = vld [vmem:[#allocation60_spill] sm:$0xff]  ;;  %v7070_v25 = vld [vmem:[%s14900_s4 + $0xb8] sm:$0xff] }
 0x5f9   : > { %v6894_v38 = vpop.f32.mrf.mxu1  ;;  %v6739_v57 = vpop.f32.mrf.mxu0  ;;  %v7068_v54 = vld [vmem:[%s14900_s4 + $0xa8] sm:$0xff] }
 0x5fa   : > { %7214 = vst [vmem:[%s14900_s4 + $0x88] sm:$0xff] %v7139_v39  ;;  %7212 = vst [vmem:[%s14900_s4 + $0x78] sm:$0xff] %v7137_v8  ;;  %v7138_v45 = vadd.f32 %v7063_v20, %v6988_v5  ;;  %v6992_v1 = vadd.f32 %v6894_v38, %v16165_v56  ;;  %v6990_v27 = vadd.f32 %v6739_v57, %v16166_v4  ;;  %v7069_v38 = vld [vmem:[%s14900_s4 + $0xb0] sm:$0xff]  ;;  %v7071_v56 = vld [vmem:[%s14900_s4 + $0xc0] sm:$0xff] }
 0x5fb   : > { %v8566_v2 = vpop.f32.mrf.mxu1  ;;  %v6741_v36 = vpop.f32.mrf.mxu0 }
 0x5fc   : > { %7213 = vst [vmem:[%s14900_s4 + $0x80] sm:$0xff] %v7138_v45  ;;  %v7142_v51 = vadd.f32 %v7067_v62, %v6992_v1  ;;  %v7140_v23 = vadd.f32 %v7065_v19, %v6990_v27  ;;  %v6991_v49 = vadd.f32 %v6741_v36, %v16167_v31  ;;  %v16169_v27 = vld [vmem:[#allocation61_spill] sm:$0xff] }
 0x5fd   : > { %v6897_v28 = vpop.f32.mrf.mxu1  ;;  %v6743_v30 = vpop.f32.mrf.mxu0 }
 0x5fe   : > { %7217 = vst [vmem:[%s14900_s4 + $0xa0] sm:$0xff] %v7142_v51  ;;  %7215 = vst [vmem:[%s14900_s4 + $0x90] sm:$0xff] %v7140_v23  ;;  %v7141_v20 = vadd.f32 %v7066_v37, %v6991_v49  ;;  %v6995_v39 = vadd.f32 %v6897_v28, %v14200_v18  ;;  %v6993_v8 = vadd.f32 %v6743_v30, %v14203_v63  ;;  %v7073_v18 = vld [vmem:[%s14900_s4 + $0xd0] sm:$0xff]  ;;  %v7072_v51 = vld [vmem:[%s14900_s4 + $0xc8] sm:$0xff] }
 0x5ff   : > { %v8567_v40 = vpop.f32.mrf.mxu1  ;;  %v6745_v5 = vpop.f32.mrf.mxu0  ;;  %v16170_v49 = vld [vmem:[#allocation138_spill] sm:$0xff]  ;;  %v7076_v30 = vld [vmem:[%s14900_s4 + $0xe8] sm:$0xff] }
 0x600   : > { %7216 = vst [vmem:[%s14900_s4 + $0x98] sm:$0xff] %v7141_v20  ;;  %v7145_v62 = vadd.f32 %v7070_v25, %v6995_v39  ;;  %v7143_v57 = vadd.f32 %v7068_v54, %v6993_v8  ;;  %v6994_v19 = vadd.f32 %v6745_v5, %v14206_v6  ;;  %v16168_v6 = vld [vmem:[#allocation136_spill] sm:$0xff]  ;;  %v7074_v20 = vld [vmem:[%s14900_s4 + $0xd8] sm:$0xff] }
 0x601   : > { %v6902_v45 = vpop.f32.mrf.mxu1  ;;  %v6749_v63 = vpop.f32.mrf.mxu0 }
 0x602   : > { %7220 = vst [vmem:[%s14900_s4 + $0xb8] sm:$0xff] %v7145_v62  ;;  %7218 = vst [vmem:[%s14900_s4 + $0xa8] sm:$0xff] %v7143_v57  ;;  %v7144_v1 = vadd.f32 %v7069_v38, %v6994_v19  ;;  %v6998_v4 = vadd.f32 %v6902_v45, %v16168_v6  ;;  %v6996_v2 = vadd.f32 %v6749_v63, %v16169_v27  ;;  %v7075_v62 = vld [vmem:[%s14900_s4 + $0xe0] sm:$0xff]  ;;  %v16171_v45 = vld [vmem:[#allocation62_spill] sm:$0xff] }
 0x603   : > { %v8570_v36 = vpop.f32.mrf.mxu1  ;;  %v6751_v37 = vpop.f32.mrf.mxu0 }
 0x604   : > { %7219 = vst [vmem:[%s14900_s4 + $0xb0] sm:$0xff] %v7144_v1  ;;  %v7148_v23 = vadd.f32 %v7073_v18, %v6998_v4  ;;  %v7146_v31 = vadd.f32 %v7071_v56, %v6996_v2  ;;  %v6997_v28 = vadd.f32 %v6751_v37, %v16170_v49  ;;  %v7077_v56 = vld [vmem:[%s14900_s4 + $0xf0] sm:$0xff]  ;;  %v16172_v4 = vld [vmem:[#allocation139_spill] sm:$0xff]  ;;  %v7078_v37 = vld [vmem:[%s14900_s4 + $0xf8] sm:$0xff] }
 0x605   : > { %v6905_v25 = vpop.f32.mrf.mxu1  ;;  %v6753_v54 = vpop.f32.mrf.mxu0 }
 0x606   : > { %7223 = vst [vmem:[%s14900_s4 + $0xd0] sm:$0xff] %v7148_v23  ;;  %7221 = vst [vmem:[%s14900_s4 + $0xc0] sm:$0xff] %v7146_v31  ;;  %v7147_v39 = vadd.f32 %v7072_v51, %v6997_v28  ;;  %v7001_v8 = vadd.f32 %v6905_v25, %v14218_v22  ;;  %v6999_v40 = vadd.f32 %v6753_v54, %v14221_v35  ;;  %v7079_v22 = vld [vmem:[%s14900_s4 + $0x100] sm:$0xff]  ;;  %v16173_v31 = vld [vmem:[#allocation137_spill] sm:$0xff] }
 0x607   : > { %v8571_v5 = vpop.f32.mrf.mxu1  ;;  %v6755_v38 = vpop.f32.mrf.mxu0 }
 0x608   : > { %7222 = vst [vmem:[%s14900_s4 + $0xc8] sm:$0xff] %v7147_v39  ;;  %v7151_v57 = vadd.f32 %v7076_v30, %v7001_v8  ;;  %v7149_v19 = vadd.f32 %v7074_v20, %v6999_v40  ;;  %v7000_v18 = vadd.f32 %v6755_v38, %v16171_v45  ;;  %v7080_v30 = vld [vmem:[%s14900_s4 + $0x108] sm:$0xff]  ;;  %v7081_v5 = vld [vmem:[%s14900_s4 + $0x110] sm:$0xff]  ;;  %v7083_v45 = vld [vmem:[%s14900_s4 + $0x120] sm:$0xff] }
 0x609   : > { %v6910_v63 = vpop.f32.mrf.mxu1  ;;  %v6759_v35 = vpop.f32.mrf.mxu0 }
 0x60a   : > { %7226 = vst [vmem:[%s14900_s4 + $0xe8] sm:$0xff] %v7151_v57  ;;  %7224 = vst [vmem:[%s14900_s4 + $0xd8] sm:$0xff] %v7149_v19  ;;  %v7150_v1 = vadd.f32 %v7075_v62, %v7000_v18  ;;  %v7004_v6 = vadd.f32 %v6910_v63, %v14227_v34  ;;  %v7002_v27 = vadd.f32 %v6759_v35, %v16172_v4  ;;  %v7082_v34 = vld [vmem:[%s14900_s4 + $0x118] sm:$0xff] }
 0x60b   : > { %v8574_v2 = vpop.f32.mrf.mxu1  ;;  %v6761_v36 = vpop.f32.mrf.mxu0 }
 0x60c   : > { %7225 = vst [vmem:[%s14900_s4 + $0xe0] sm:$0xff] %v7150_v1  ;;  %v7154_v51 = vadd.f32 %v7079_v22, %v7004_v6  ;;  %v7152_v23 = vadd.f32 %v7077_v56, %v7002_v27  ;;  %v7003_v49 = vadd.f32 %v6761_v36, %v16173_v31  ;;  %v16175_v22 = vld [vmem:[#allocation142_spill] sm:$0xff]  ;;  %v7084_v6 = vld [vmem:[%s14900_s4 + $0x128] sm:$0xff]  ;;  %v16176_v2 = vld [vmem:[#allocation65_spill] sm:$0xff] }
 0x60d   : > { %v6913_v28 = vpop.f32.mrf.mxu1  ;;  %v6763_v25 = vpop.f32.mrf.mxu0  ;;  %v7086_v31 = vld [vmem:[%s14900_s4 + $0x138] sm:$0xff] }
 0x60e   : > { %7229 = vst [vmem:[%s14900_s4 + $0x100] sm:$0xff] %v7154_v51  ;;  %7227 = vst [vmem:[%s14900_s4 + $0xf0] sm:$0xff] %v7152_v23  ;;  %v7153_v54 = vadd.f32 %v7078_v37, %v7003_v49  ;;  %v7007_v20 = vadd.f32 %v6913_v28, %v14236_v47  ;;  %v7005_v39 = vadd.f32 %v6763_v25, %v14239_v11  ;;  %v7085_v47 = vld [vmem:[%s14900_s4 + $0x130] sm:$0xff]  ;;  %v7088_v51 = vld [vmem:[%s14900_s4 + $0x148] sm:$0xff] }
 0x60f   : > { %v8575_v8 = vpop.f32.mrf.mxu1  ;;  %v6765_v40 = vpop.f32.mrf.mxu0 }
 0x610   : > { %7228 = vst [vmem:[%s14900_s4 + $0xf8] sm:$0xff] %v7153_v54  ;;  %v7157_v38 = vadd.f32 %v7082_v34, %v7007_v20  ;;  %v7155_v62 = vadd.f32 %v7080_v30, %v7005_v39  ;;  %v7006_v57 = vadd.f32 %v6765_v40, %v14242_v43  ;;  %v16174_v43 = vld [vmem:[#allocation64_spill] sm:$0xff]  ;;  %v7087_v54 = vld [vmem:[%s14900_s4 + $0x140] sm:$0xff]  ;;  %v16177_v8 = vld [vmem:[#allocation66_spill] sm:$0xff] }
 0x611   : > { %v6918_v19 = vpop.f32.mrf.mxu1  ;;  %v6769_v11 = vpop.f32.mrf.mxu0 }
 0x612   : > { %7232 = vst [vmem:[%s14900_s4 + $0x118] sm:$0xff] %v7157_v38  ;;  %7230 = vst [vmem:[%s14900_s4 + $0x108] sm:$0xff] %v7155_v62  ;;  %v7156_v18 = vadd.f32 %v7081_v5, %v7006_v57  ;;  %v7010_v63 = vadd.f32 %v6918_v19, %v16174_v43  ;;  %v7008_v35 = vadd.f32 %v6769_v11, %v16175_v22  ;;  %v7089_v38 = vld [vmem:[%s14900_s4 + $0x150] sm:$0xff]  ;;  %v16178_v19 = vld [vmem:[#allocation67_spill] sm:$0xff] }
 0x613   : > { %v8578_v56 = vpop.f32.mrf.mxu1  ;;  %v6771_v1 = vpop.f32.mrf.mxu0  ;;  %v16179_v22 = vld [vmem:[#allocation145_spill] sm:$0xff] }
 0x614   : > { %7231 = vst [vmem:[%s14900_s4 + $0x110] sm:$0xff] %v7156_v18  ;;  %v7160_v4 = vadd.f32 %v7085_v47, %v7010_v63  ;;  %v7158_v27 = vadd.f32 %v7083_v45, %v7008_v35  ;;  %v7009_v36 = vadd.f32 %v6771_v1, %v16176_v2  ;;  %v7090_v18 = vld [vmem:[%s14900_s4 + $0x158] sm:$0xff] }
 0x615   : > { %v6921_v37 = vpop.f32.mrf.mxu1  ;;  %v6773_v23 = vpop.f32.mrf.mxu0 }
 0x616   : > { %7235 = vst [vmem:[%s14900_s4 + $0x130] sm:$0xff] %v7160_v4  ;;  %7233 = vst [vmem:[%s14900_s4 + $0x120] sm:$0xff] %v7158_v27  ;;  %v7159_v49 = vadd.f32 %v7084_v6, %v7009_v36  ;;  %v7013_v28 = vadd.f32 %v6921_v37, %v14254_v42  ;;  %v7011_v34 = vadd.f32 %v6773_v23, %v14257_v50  ;;  %v7091_v42 = vld [vmem:[%s14900_s4 + $0x160] sm:$0xff]  ;;  %v7092_v6 = vld [vmem:[%s14900_s4 + $0x168] sm:$0xff] }
 0x617   : > { %v8579_v25 = vpop.f32.mrf.mxu1  ;;  %v6775_v30 = vpop.f32.mrf.mxu0 }
 0x618   : > { %7234 = vst [vmem:[%s14900_s4 + $0x128] sm:$0xff] %v7159_v49  ;;  %v7163_v20 = vadd.f32 %v7088_v51, %v7013_v28  ;;  %v7161_v39 = vadd.f32 %v7086_v31, %v7011_v34  ;;  %v7012_v40 = vadd.f32 %v6775_v30, %v16177_v8  ;;  %v7093_v51 = vld [vmem:[%s14900_s4 + $0x170] sm:$0xff]  ;;  %v7095_v34 = vld [vmem:[%s14900_s4 + $0x180] sm:$0xff] }
 0x619   : > { %v6926_v5 = vpop.f32.mrf.mxu1  ;;  %v6779_v50 = vpop.f32.mrf.mxu0 }
 0x61a   : > { %7238 = vst [vmem:[%s14900_s4 + $0x148] sm:$0xff] %v7163_v20  ;;  %7236 = vst [vmem:[%s14900_s4 + $0x138] sm:$0xff] %v7161_v39  ;;  %v7162_v62 = vadd.f32 %v7087_v54, %v7012_v40  ;;  %v7016_v57 = vadd.f32 %v6926_v5, %v14263_v17  ;;  %v7014_v47 = vadd.f32 %v6779_v50, %v16178_v19  ;;  %v7094_v17 = vld [vmem:[%s14900_s4 + $0x178] sm:$0xff]  ;;  %v7096_v39 = vld [vmem:[%s14900_s4 + $0x188] sm:$0xff] }
 0x61b   : > { %v8582_v11 = vpop.f32.mrf.mxu1  ;;  %v6781_v45 = vpop.f32.mrf.mxu0  ;;  %v7098_v50 = vld [vmem:[%s14900_s4 + $0x198] sm:$0xff] }
 0x61c   : > { %7237 = vst [vmem:[%s14900_s4 + $0x140] sm:$0xff] %v7162_v62  ;;  %v7166_v43 = vadd.f32 %v7091_v42, %v7016_v57  ;;  %v7164_v63 = vadd.f32 %v7089_v38, %v7014_v47  ;;  %v7015_v35 = vadd.f32 %v6781_v45, %v16179_v22  ;;  %v7099_v47 = vld [vmem:[%s14900_s4 + $0x1a0] sm:$0xff] }
 0x61d   : > { %v6929_v56 = vpop.f32.mrf.mxu1  ;;  %v6783_v1 = vpop.f32.mrf.mxu0 }
 0x61e   : > { %7241 = vst [vmem:[%s14900_s4 + $0x160] sm:$0xff] %v7166_v43  ;;  %7239 = vst [vmem:[%s14900_s4 + $0x150] sm:$0xff] %v7164_v63  ;;  %v7165_v4 = vadd.f32 %v7090_v18, %v7015_v35  ;;  %v7019_v27 = vadd.f32 %v6929_v56, %v14272_v16  ;;  %v7017_v2 = vadd.f32 %v6783_v1, %v14275_v53  ;;  %v7097_v16 = vld [vmem:[%s14900_s4 + $0x190] sm:$0xff]  ;;  %v7102_v1 = vld [vmem:[%s14900_s4 + $0x1b8] sm:$0xff] }
 0x61f   : > { %v8583_v36 = vpop.f32.mrf.mxu1  ;;  %v6785_v37 = vpop.f32.mrf.mxu0  ;;  %v7101_v63 = vld [vmem:[%s14900_s4 + $0x1b0] sm:$0xff] }
 0x620   : > { %7240 = vst [vmem:[%s14900_s4 + $0x158] sm:$0xff] %v7165_v4  ;;  %v7169_v23 = vadd.f32 %v7094_v17, %v7019_v27  ;;  %v7167_v31 = vadd.f32 %v7092_v6, %v7017_v2  ;;  %v7018_v49 = vadd.f32 %v6785_v37, %v14278_v21  ;;  %v16180_v27 = vld [vmem:[#allocation68_spill] sm:$0xff] }
 0x621   : > { %v6934_v28 = vpop.f32.mrf.mxu1  ;;  %v6789_v53 = vpop.f32.mrf.mxu0  ;;  %v7104_v37 = vld [vmem:[%s14900_s4 + $0x1c8] sm:$0xff] }
 0x622   : > { %7244 = vst [vmem:[%s14900_s4 + $0x178] sm:$0xff] %v7169_v23  ;;  %7242 = vst [vmem:[%s14900_s4 + $0x168] sm:$0xff] %v7167_v31  ;;  %v7168_v25 = vadd.f32 %v7093_v51, %v7018_v49  ;;  %v7022_v21 = vadd.f32 %v6934_v28, %v14281_v26  ;;  %v7020_v30 = vadd.f32 %v6789_v53, %v14284_v29  ;;  %v7100_v26 = vld [vmem:[%s14900_s4 + $0x1a8] sm:$0xff] }
 0x623   : > { %v8586_v54 = vpop.f32.mrf.mxu1  ;;  %v6791_v20 = vpop.f32.mrf.mxu0 }
 0x624   : > { %7243 = vst [vmem:[%s14900_s4 + $0x170] sm:$0xff] %v7168_v25  ;;  %v7172_v8 = vadd.f32 %v7097_v16, %v7022_v21  ;;  %v7170_v40 = vadd.f32 %v7095_v34, %v7020_v30  ;;  %v7021_v5 = vadd.f32 %v6791_v20, %v14287_v0  ;;  %v7105_v16 = vld [vmem:[%s14900_s4 + $0x1d0] sm:$0xff]  ;;  %v7107_v30 = vld [vmem:[%s14900_s4 + $0x1e0] sm:$0xff] }
 0x625   : > { %v6937_v42 = vpop.f32.mrf.mxu1  ;;  %v6793_v29 = vpop.f32.mrf.mxu0 }
 0x626   : > { %7247 = vst [vmem:[%s14900_s4 + $0x190] sm:$0xff] %v7172_v8  ;;  %7245 = vst [vmem:[%s14900_s4 + $0x180] sm:$0xff] %v7170_v40  ;;  %v7171_v38 = vadd.f32 %v7096_v39, %v7021_v5  ;;  %v7025_v0 = vadd.f32 %v6937_v42, %v14290_v3  ;;  %v7023_v62 = vadd.f32 %v6793_v29, %v14293_v12  ;;  %v7103_v3 = vld [vmem:[%s14900_s4 + $0x1c0] sm:$0xff]  ;;  %v7108_v40 = vld [vmem:[%s14900_s4 + $0x1e8] sm:$0xff] }
 0x627   : > { %v8587_v57 = vpop.f32.mrf.mxu1  ;;  %v6795_v19 = vpop.f32.mrf.mxu0 }
 0x628   : > { %7246 = vst [vmem:[%s14900_s4 + $0x188] sm:$0xff] %v7171_v38  ;;  %v7175_v11 = vadd.f32 %v7100_v26, %v7025_v0  ;;  %v7173_v45 = vadd.f32 %v7098_v50, %v7023_v62  ;;  %v7024_v18 = vadd.f32 %v6795_v19, %v14296_v52  ;;  %v7110_v50 = vld [vmem:[%s14900_s4 + $0x1f8] sm:$0xff]  ;;  %v7111_v19 = vld [vmem:[%s14900_s4 + $0x200] sm:$0xff] }
 0x629   : > { %v6942_v43 = vpop.f32.mrf.mxu1  ;;  %v6799_v12 = vpop.f32.mrf.mxu0 }
 0x62a   : > { %7250 = vst [vmem:[%s14900_s4 + $0x1a8] sm:$0xff] %v7175_v11  ;;  %7248 = vst [vmem:[%s14900_s4 + $0x198] sm:$0xff] %v7173_v45  ;;  %v7174_v22 = vadd.f32 %v7099_v47, %v7024_v18  ;;  %v7028_v52 = vadd.f32 %v6942_v43, %v14299_v59  ;;  %v7026_v35 = vadd.f32 %v6799_v12, %v14302_v61  ;;  %v7106_v59 = vld [vmem:[%s14900_s4 + $0x1d8] sm:$0xff]  ;;  %v7113_v43 = vld [vmem:[%s14900_s4 + $0x210] sm:$0xff] }
 0x62b   : > { %v8590_v56 = vpop.f32.mrf.mxu1  ;;  %v6801_v17 = vpop.f32.mrf.mxu0 }
 0x62c   : > { %7249 = vst [vmem:[%s14900_s4 + $0x1a0] sm:$0xff] %v7174_v22  ;;  %v7178_v6 = vadd.f32 %v7103_v3, %v7028_v52  ;;  %v7176_v4 = vadd.f32 %v7101_v63, %v7026_v35  ;;  %v7027_v2 = vadd.f32 %v6801_v17, %v16180_v27  ;;  %v7114_v52 = vld [vmem:[%s14900_s4 + $0x218] sm:$0xff] }
 0x62d   : > { %v6945_v36 = vpop.f32.mrf.mxu1  ;;  %v6803_v61 = vpop.f32.mrf.mxu0  ;;  %v16181_v27 = vld [vmem:[#allocation146_spill] sm:$0xff] }
 0x62e   : > { %7253 = vst [vmem:[%s14900_s4 + $0x1c0] sm:$0xff] %v7178_v6  ;;  %7251 = vst [vmem:[%s14900_s4 + $0x1b0] sm:$0xff] %v7176_v4  ;;  %v7177_v51 = vadd.f32 %v7102_v1, %v7027_v2  ;;  %v7031_v23 = vadd.f32 %v6945_v36, %v14308_v33  ;;  %v7029_v31 = vadd.f32 %v6803_v61, %v14311_v46  ;;  %v7109_v33 = vld [vmem:[%s14900_s4 + $0x1f0] sm:$0xff]  ;;  %v7116_v6 = vld [vmem:[%s14900_s4 + $0x228] sm:$0xff] }
 0x62f   : > { %v8591_v49 = vpop.f32.mrf.mxu1  ;;  %v6805_v28 = vpop.f32.mrf.mxu0  ;;  %v7117_v61 = vld [vmem:[%s14900_s4 + $0x230] sm:$0xff] }
 0x630   : > { %7252 = vst [vmem:[%s14900_s4 + $0x1b8] sm:$0xff] %v7177_v51  ;;  %v7181_v53 = vadd.f32 %v7106_v59, %v7031_v23  ;;  %v7179_v34 = vadd.f32 %v7104_v37, %v7029_v31  ;;  %v7030_v25 = vadd.f32 %v6805_v28, %v14314_v55  ;;  %v7119_v28 = vld [vmem:[%s14900_s4 + $0x240] sm:$0xf] }
 0x631   : > { %v6950_v21 = vpop.f32.mrf.mxu1  ;;  %v6809_v46 = vpop.f32.mrf.mxu0 }
 0x632   : > { %7256 = vst [vmem:[%s14900_s4 + $0x1d8] sm:$0xff] %v7181_v53  ;;  %7254 = vst [vmem:[%s14900_s4 + $0x1c8] sm:$0xff] %v7179_v34  ;;  %v7180_v54 = vadd.f32 %v7105_v16, %v7030_v25  ;;  %v7034_v55 = vadd.f32 %v6950_v21, %v14317_v24  ;;  %v7032_v20 = vadd.f32 %v6809_v46, %v14320_v7  ;;  %v7112_v24 = vld [vmem:[%s14900_s4 + $0x208] sm:$0xff] }
 0x633   : > { %v8594_v39 = vpop.f32.mrf.mxu1  ;;  %v6811_v8 = vpop.f32.mrf.mxu0  ;;  %v7120_v21 = vld [vmem:[%s14900_s4 + $0x248] sm:$0xf] }
 0x634   : > { %7255 = vst [vmem:[%s14900_s4 + $0x1d0] sm:$0xff] %v7180_v54  ;;  %v7184_v5 = vadd.f32 %v7109_v33, %v7034_v55  ;;  %v7182_v42 = vadd.f32 %v7107_v30, %v7032_v20  ;;  %v7033_v26 = vadd.f32 %v6811_v8, %v14323_v44  ;;  %v16182_v30 = vld [vmem:[#allocation69_spill] sm:$0xff] }
 0x635   : > { %v6953_v29 = vpop.f32.mrf.mxu1  ;;  %v6813_v7 = vpop.f32.mrf.mxu0 }
 0x636   : > { %7259 = vst [vmem:[%s14900_s4 + $0x1f0] sm:$0xff] %v7184_v5  ;;  %7257 = vst [vmem:[%s14900_s4 + $0x1e0] sm:$0xff] %v7182_v42  ;;  %v7183_v38 = vadd.f32 %v7108_v40, %v7033_v26  ;;  %v7037_v44 = vadd.f32 %v6953_v29, %v14326_v32  ;;  %v7035_v0 = vadd.f32 %v6813_v7, %v14329_v48  ;;  %v7115_v32 = vld [vmem:[%s14900_s4 + $0x220] sm:$0xff] }
 0x637   : > { %v8595_v62 = vpop.f32.mrf.mxu1  ;;  %v6815_v57 = vpop.f32.mrf.mxu0 }
 0x638   : > { %7258 = vst [vmem:[%s14900_s4 + $0x1e8] sm:$0xff] %v7183_v38  ;;  %v7187_v47 = vadd.f32 %v7112_v24, %v7037_v44  ;;  %v7185_v11 = vadd.f32 %v7110_v50, %v7035_v0  ;;  %v7036_v45 = vadd.f32 %v6815_v57, %v14332_v13 }
 0x639   : > { %v6958_v18 = vpop.f32.mrf.mxu1  ;;  %v6819_v48 = vpop.f32.mrf.mxu0 }
 0x63a   : > { %7262 = vst [vmem:[%s14900_s4 + $0x208] sm:$0xff] %v7187_v47  ;;  %7260 = vst [vmem:[%s14900_s4 + $0x1f8] sm:$0xff] %v7185_v11  ;;  %v7186_v3 = vadd.f32 %v7111_v19, %v7036_v45  ;;  %v7040_v13 = vadd.f32 %v6958_v18, %v14335_v60  ;;  %v7038_v12 = vadd.f32 %v6819_v48, %v14338_v41  ;;  %v7118_v60 = vld [vmem:[%s14900_s4 + $0x238] sm:$0xff] }
 0x63b   : > { %v8598_v63 = vpop.f32.mrf.mxu1  ;;  %v6821_v22 = vpop.f32.mrf.mxu0 }
 0x63c   : > { %7261 = vst [vmem:[%s14900_s4 + $0x200] sm:$0xff] %v7186_v3  ;;  %v7190_v35 = vadd.f32 %v7115_v32, %v7040_v13  ;;  %v7188_v56 = vadd.f32 %v7113_v43, %v7038_v12  ;;  %v7039_v17 = vadd.f32 %v6821_v22, %v14341_v14 }
 0x63d   : > { %v6961_v1 = vpop.f32.mrf.mxu1  ;;  %v6823_v41 = vpop.f32.mrf.mxu0 }
 0x63e   : > { %7265 = vst [vmem:[%s14900_s4 + $0x220] sm:$0xff] %v7190_v35  ;;  %7263 = vst [vmem:[%s14900_s4 + $0x210] sm:$0xff] %v7188_v56  ;;  %v7189_v4 = vadd.f32 %v7114_v52, %v7039_v17  ;;  %v7043_v14 = vadd.f32 %v6961_v1, %v14344_v15  ;;  %v7041_v2 = vadd.f32 %v6823_v41, %v16181_v27  ;;  %v7121_v15 = vld [vmem:[%s14900_s4 + $0x250] sm:$0xf] }
 0x63f   : > { %v8599_v36 = vpop.f32.mrf.mxu1  ;;  %v6825_v59 = vpop.f32.mrf.mxu0 }
 0x640   : > { %7264 = vst [vmem:[%s14900_s4 + $0x218] sm:$0xff] %v7189_v4  ;;  %v7193_v37 = vadd.f32 %v7118_v60, %v7043_v14  ;;  %v7191_v51 = vadd.f32 %v7116_v6, %v7041_v2  ;;  %v7042_v23 = vadd.f32 %v6825_v59, %v14350_v10 }
 0x641   : > { %v6966_v31 = vpop.f32.mrf.mxu1  ;;  %v6829_v49 = vpop.f32.mrf.mxu0 }
 0x642   : > { %7268 = vst [vmem:[%s14900_s4 + $0x238] sm:$0xff] %v7193_v37  ;;  %7266 = vst [vmem:[%s14900_s4 + $0x228] sm:$0xff] %v7191_v51  ;;  %v7192_v16 = vadd.f32 %v7117_v61, %v7042_v23  ;;  %v7046_v10 = vadd.f32 %v6966_v31, %v14353_v58  ;;  %v7044_v53 = vadd.f32 %v6829_v49, %v14356_v9 }
 0x643   : > { %v8602_v34 = vpop.f32.mrf.mxu1  ;;  %v6831_v25 = vpop.f32.mrf.mxu0 }
 0x644   : > { %7267 = vst [vmem:[%s14900_s4 + $0x230] sm:$0xff] %v7192_v16  ;;  %v7196_v33 = vadd.f32 %v7121_v15, %v7046_v10  ;;  %v7194_v46 = vadd.f32 %v7119_v28, %v7044_v53  ;;  %v7045_v54 = vadd.f32 %v6831_v25, %v16182_v30 }
 0x645   : > { %v6969_v55 = vpop.f32.mrf.mxu1  ;;  %v6833_v20 = vpop.f32.mrf.mxu0 }
 0x646   : > { %7271 = vst [vmem:[%s14900_s4 + $0x250] sm:$0xf] %v7196_v33  ;;  %7269 = vst [vmem:[%s14900_s4 + $0x240] sm:$0xf] %v7194_v46  ;;  %v7195_v58 = vadd.f32 %v7120_v21, %v7045_v54 }
 0x647   : > { %v8603_v9 = vpop.f32.mrf.mxu1  ;;  %v6834_v39 = vpop.f32.mrf.mxu0 }
 0x648   : > { %7270 = vst [vmem:[%s14900_s4 + $0x248] sm:$0xf] %v7195_v58 }
 0x649 PF: > { %p11_p10 = scmp.ge.s32.totalorder %s9159_s19, 5   ;;  %s16183_s15 = smov %s9108_s16 }
 0x64a   : > { %s16184_s16 = smov %s9168_s22  ;;  %s16185_s17 = smov %s9159_s19 }
 0x64b   :  { %13 = sbr.rel (!%p11_p10) target bundleno = 2 (0x2), region = 100 }

</bundles_post_ra>
